<compile_context>
chip_gen: v5e
topology: v5e:2x2
jax: 0.10.0
libtpu: 0.0.40
codegen_flags: <defaults>
</compile_context>

<pallas_src>
import jax
import jax.numpy as jnp
from jax.experimental import pallas as pl
from jax.experimental.pallas import tpu as pltpu


MAX_DELAY = 2        # synthetic per-neuron axonal delay range [0, MAX_DELAY]


def _round_up(x, m):
    return (x + m - 1) // m * m


def _tensorcores_per_chip():
    """2 TensorCores on v7x / v4 (megacore); 1 on v5e / v6e."""
    try:
        kind = jax.devices()[0].device_kind.lower()
    except Exception:
        return 1
    return 2 if ("v7" in kind or "v4" in kind) else 1


def _pick_tile_n(nout):
    """Neuron-tile width (generation dependent).

    Single-TC chips: one tile (up to 512 wide) -> the input-spike chunk is
    DMA'd from HBM exactly once per time chunk.
    Dual-TC chips: >= 2 tiles so the 'parallel' neuron axis shards across both
    cores; the duplicated X read is absorbed by the much faster HBM.
    """
    if _tensorcores_per_chip() >= 2 and nout >= 256 and nout % 256 == 0:
        return 256
    t = min(nout, 512)
    return t if nout % t == 0 else 128


# ---------------------------------------------------------------------------
# Pallas kernel: one CUBA Dense block, time-chunked, delay fused.
# ---------------------------------------------------------------------------
def _make_cuba_dense_kernel(t_chunk, batch, threshold, current_decay,
                            voltage_decay, has_delay):
    threshold = float(threshold)
    alpha_c = 1.0 - float(current_decay)
    alpha_v = 1.0 - float(voltage_decay)

    def kernel(*refs):
        if has_delay:
            (x_ref, wT_ref, delay_ref,
             out_ref, z_ref, cur_ref, volt_ref, hist_ref) = refs
        else:
            x_ref, wT_ref, out_ref, z_ref, cur_ref, volt_ref = refs

        t = pl.program_id(1)

        @pl.when(t == 0)
        def _():
            cur_ref[...] = jnp.zeros_like(cur_ref)
            volt_ref[...] = jnp.zeros_like(volt_ref)
            if has_delay:
                hist_ref[...] = jnp.zeros_like(hist_ref)

        # Hoisted synapse: ONE MXU matmul covers every time step in the chunk,
        # (t_chunk*B, Nin) @ (Nin, tile_n), bf16 in / f32 accumulate, staged in
        # a VMEM scratch so the unrolled scan reads aligned 8-row slices of it.
        z_ref[...] = jnp.dot(x_ref[...], wT_ref[...],
                             preferred_element_type=jnp.float32)

        if has_delay:
            # Hoist per-neuron delay masks out of the scan (broadcasts are not
            # CSE'd by JAX); delays are small integers stored as f32.
            d = jnp.broadcast_to(delay_ref[...], (batch, delay_ref.shape[1]))
            m1 = d == 1.0
            m2 = d == 2.0
            h1 = hist_ref[0]          # spikes at global step t-1 (bf16)
            h2 = hist_ref[1]          # spikes at global step t-2 (bf16)

        cur = cur_ref[...]
        volt = volt_ref[...]
        # Cheap VPU recurrence. t_chunk is bounded to <= target_m/8 = 64 by the
        # batch padding, so a static unroll stays within the vreg budget; for
        # larger chunks this would become lax.fori_loop(..., unroll=8).
        for s in range(t_chunk):
            zs = z_ref[pl.ds(s * batch, batch), :]          # 8-aligned rows
            cur = cur * alpha_c + zs
            volt = volt * alpha_v + cur
            spk_b = volt >= threshold
            volt = jnp.where(spk_b, 0.0, volt)              # hard reset
            spk = spk_b.astype(out_ref.dtype)
            if has_delay:
                # out[t, b, n] = spike[t - d[n], b, n]; history carried in VMEM
                # across time chunks, zeros before t = 0.
                out_ref[pl.ds(s * batch, batch), :] = (
                    jnp.where(m1, h1, jnp.where(m2, h2, spk)))
                h2 = h1
                h1 = spk
            else:
                out_ref[pl.ds(s * batch, batch), :] = spk
        cur_ref[...] = cur
        volt_ref[...] = volt
        if has_delay:
            hist_ref[0] = h1
            hist_ref[1] = h2

    return kernel


def cuba_dense(spike_tbn, wT, delays=None, *, threshold, current_decay,
               voltage_decay, target_m=512):
    """One CUBA Dense block (synapse + LIF dynamics + optional fused delay).

    spike_tbn : (T, B, Nin) bf16 spikes; B multiple of 8, Nin multiple of 128.
    wT        : (Nin, Nout) bf16 weights (pre-transposed / padded).
    delays    : optional (1, Nout) f32 per-neuron delays in {0..MAX_DELAY}.
    returns   : (T, B, Nout) bf16 (delayed) spikes.
    """
    T, B, Nin = spike_tbn.shape
    Nout = wT.shape[1]
    assert Nin % 128 == 0 and Nout % 128 == 0 and B % 8 == 0

    tile_n = _pick_tile_n(Nout)

    # Size the time chunk from the target matmul M (= t_chunk*B rows), not a
    # fixed step count, so the MXU is filled even for small batches.
    t_chunk = max(1, min(target_m // B, T))
    T_pad = pl.cdiv(T, t_chunk) * t_chunk
    M = t_chunk * B

    # Fold time into the matmul M dimension; zero-pad trailing (fake) steps.
    x2 = spike_tbn.reshape(T * B, Nin)
    if T_pad != T:
        x2 = jnp.concatenate(
            [x2, jnp.zeros(((T_pad - T) * B, Nin), x2.dtype)], axis=0)

    has_delay = delays is not None
    kernel = _make_cuba_dense_kernel(t_chunk, B, threshold, current_decay,
                                     voltage_decay, has_delay)

    in_specs = [
        # spike chunk for this time window (re-read once per neuron tile)
        pl.BlockSpec((M, Nin), lambda n, t: (t, 0)),
        # weight tile; block index constant along the inner time axis, so the
        # pipeline fetches it once per neuron tile.
        pl.BlockSpec((Nin, tile_n), lambda n, t: (0, n)),
    ]
    operands = [x2, wT]
    if has_delay:
        in_specs.append(pl.BlockSpec((1, tile_n), lambda n, t: (0, n)))
        operands.append(delays)

    scratch_shapes = [
        pltpu.VMEM((M, tile_n), jnp.float32),      # staged matmul result
        pltpu.VMEM((B, tile_n), jnp.float32),      # current state
        pltpu.VMEM((B, tile_n), jnp.float32),      # voltage state
    ]
    if has_delay:
        scratch_shapes.append(pltpu.VMEM((MAX_DELAY, B, tile_n), jnp.bfloat16))

    n_tiles = Nout // tile_n
    t_chunks = T_pad // t_chunk
    cost = pl.CostEstimate(
        flops=2 * T_pad * B * Nin * Nout,
        transcendentals=0,
        bytes_accessed=(T_pad * B * Nin * 2) * n_tiles   # spike stream per tile
        + Nin * Nout * 2                                  # weights
        + T_pad * B * Nout * 2,                           # output spikes
    )

    out2 = pl.pallas_call(
        kernel,
        out_shape=jax.ShapeDtypeStruct((T_pad * B, Nout), jnp.bfloat16),
        grid_spec=pltpu.PrefetchScalarGridSpec(
            num_scalar_prefetch=0,
            grid=(n_tiles, t_chunks),        # time innermost: true recurrence
            in_specs=in_specs,
            out_specs=pl.BlockSpec((M, tile_n), lambda n, t: (t, n)),
            scratch_shapes=scratch_shapes,
        ),
        compiler_params=pltpu.CompilerParams(
            # neuron tiles are independent (v7x: both TensorCores);
            # time is a true recurrence -> sequential.
            dimension_semantics=("parallel", "arbitrary"),
            # ~12 MB of blocks at M=512 for the 2432-wide layer; be explicit so
            # v5e's 16 MiB default scoped-VMEM limit can never trip.
            vmem_limit_bytes=48 * 1024 * 1024,
        ),
        cost_estimate=cost,
    )(*operands)

    return out2[:T * B].reshape(T, B, Nout)


# ---------------------------------------------------------------------------
# Weight-norm parameterization + network glue (plain JAX).
# ---------------------------------------------------------------------------
def weight_norm(v, g):
    """PyTorch weight_norm for Linear: W = g * v / ||v||, norm per output row."""
    norm = jnp.sqrt(jnp.sum(v * v, axis=1, keepdims=True))
    return g * v / norm


class NetworkPallas:
    """Pallas/JAX equivalent of the PyTorch `Network` module (forward only)."""

    LAYERS = [(34 * 34 * 2, 512, True),   # Dense + delay
              (512, 512, True),           # Dense + delay
              (512, 10, False)]           # Dense (readout)

    def __init__(self, threshold, current_decay, voltage_decay,
                 tau_grad, scale_grad, key):
        # tau_grad / scale_grad affect only the surrogate gradient -> unused.
        del tau_grad, scale_grad
        self.threshold = threshold
        self.current_decay = current_decay
        self.voltage_decay = voltage_decay

        self.params = []
        for (nin, nout, has_delay) in self.LAYERS:
            key, kw, kd = jax.random.split(key, 3)
            v = jax.random.normal(kw, (nout, nin), jnp.float32) / jnp.sqrt(nin)
            g = jnp.sqrt(jnp.sum(v * v, axis=1, keepdims=True))  # g init = ||v||
            w = weight_norm(v, g)                                 # (nout, nin)
            # Pre-transpose, zero-pad to 128 multiples and cast to bf16 ONCE at
            # build time (MXU fast path; padded rows/cols never spike).
            nin_p, nout_p = _round_up(nin, 128), _round_up(nout, 128)
            wT = jnp.pad(w.T, ((0, nin_p - nin), (0, nout_p - nout)))
            wT = wT.astype(jnp.bfloat16)
            # TODO(synk): lava-dl learns real-valued per-neuron axonal delays;
            # deterministic synthetic integer delays in [0, MAX_DELAY] stand in
            # for them here (applied inside the kernel).
            if has_delay:
                delays = jax.random.randint(kd, (1, nout_p), 0, MAX_DELAY + 1)
                delays = delays.astype(jnp.float32)
            else:
                delays = None
            self.params.append((wT, nout, delays))

    def __call__(self, spike_bnt):
        # PyTorch layout (B, N, T) -> kernel layout (T, B, N); spikes are exact
        # in bf16. Dropout(p=0.05) is train-only -> identity here.
        x = jnp.transpose(jnp.asarray(spike_bnt, jnp.bfloat16), (2, 0, 1))
        T, B, N = x.shape
        # Pad batch to a sublane multiple (zero rows never spike) so every VPU
        # op / z slice / output store in the recurrence is full-sublane.
        b_pad = _round_up(B, 8) - B
        n_pad = self.params[0][0].shape[0] - N
        if b_pad or n_pad:
            x = jnp.pad(x, ((0, 0), (0, b_pad), (0, n_pad)))
        for wT, nout, delays in self.params:
            x = cuba_dense(x, wT, delays,
                           threshold=self.threshold,
                           current_decay=self.current_decay,
                           voltage_decay=self.voltage_decay)
        # Strip batch + readout padding, back to PyTorch layout (B, 10, T), f32.
        x = x[:, :B, :self.LAYERS[-1][1]].astype(jnp.float32)
        return jnp.transpose(x, (1, 2, 0))


# ---------------------------------------------------------------------------
if __name__ == "__main__":
    key = jax.random.PRNGKey(0)
    k_net, k_in = jax.random.split(key)

    # Typical lava-dl NMNIST hyper-parameters.
    net = NetworkPallas(threshold=1.25, current_decay=0.25, voltage_decay=0.03,
                        tau_grad=0.03, scale_grad=3.0, key=k_net)

    B, N_IN, T = 2, 34 * 34 * 2, 8        # small batch / time, full feature size
    spike_in = jax.random.bernoulli(k_in, p=0.3, shape=(B, N_IN, T)).astype(
        jnp.float32)

    forward = jax.jit(net.__call__)
    out = jax.block_until_ready(forward(spike_in))    # (B, 10, T)

    assert out.shape == (B, 10, T), out.shape
    assert bool(jnp.all((out == 0.0) | (out == 1.0))), "outputs must be spikes"
    print("KERNEL_OK")
</pallas_src>

<mosaic_0001>
module attributes {stable_mosaic.version = 11 : i64} {
  func.func @kernel(%arg0: i32, %arg1: i32, %arg2: memref<64x2432xbf16, #tpu.memory_space<vmem>>, %arg3: memref<2432x512xbf16, #tpu.memory_space<vmem>>, %arg4: memref<1x512xf32, #tpu.memory_space<vmem>>, %arg5: memref<64x512xbf16, #tpu.memory_space<vmem>>, %arg6: memref<64x512xf32, #tpu.memory_space<vmem>>, %arg7: memref<8x512xf32, #tpu.memory_space<vmem>>, %arg8: memref<8x512xf32, #tpu.memory_space<vmem>>, %arg9: memref<2x8x512xbf16, #tpu.memory_space<vmem>>) attributes {dimension_semantics = [#tpu.dimension_semantics<parallel>, #tpu.dimension_semantics<arbitrary>], iteration_bounds = array<i64: 1, 1>, scalar_prefetch = 0 : i64, scratch_operands = 4 : i64, tpu.core_type = #tpu.core_type<tc>, window_params = [{transform_indices = @transform_0, window_bounds = array<i64: 64, 2432>}, {transform_indices = @transform_1, window_bounds = array<i64: 2432, 512>}, {transform_indices = @transform_2, window_bounds = array<i64: 1, 512>}, {transform_indices = @transform_3, window_bounds = array<i64: 64, 512>}]} {
    %c0_i32 = arith.constant 0 : i32
    %0 = arith.cmpi eq, %arg1, %c0_i32 : i32
    %1 = arith.extui %0 : i1 to i32
    %c0_i32_0 = arith.constant 0 : i32
    %2 = arith.cmpi ne, %1, %c0_i32_0 : i32
    scf.if %2 {
      %cst_86 = arith.constant 0.000000e+00 : f32
      %164 = vector.broadcast %cst_86 : f32 to vector<8x512xf32>
      %c0_87 = arith.constant 0 : index
      %c0_88 = arith.constant 0 : index
      %165 = vector.load %arg7[%c0_87, %c0_88] : memref<8x512xf32, #tpu.memory_space<vmem>>, vector<8x512xf32>
      tpu.vector_store %arg7[%c0_87, %c0_88], %164 {strides = array<i32>} : memref<8x512xf32, #tpu.memory_space<vmem>>, vector<8x512xf32>,
      %cst_89 = arith.constant 0.000000e+00 : f32
      %166 = vector.broadcast %cst_89 : f32 to vector<8x512xf32>
      %c0_90 = arith.constant 0 : index
      %c0_91 = arith.constant 0 : index
      %167 = vector.load %arg8[%c0_90, %c0_91] : memref<8x512xf32, #tpu.memory_space<vmem>>, vector<8x512xf32>
      tpu.vector_store %arg8[%c0_90, %c0_91], %166 {strides = array<i32>} : memref<8x512xf32, #tpu.memory_space<vmem>>, vector<8x512xf32>,
      %cst_92 = arith.constant 0.000000e+00 : bf16
      %168 = vector.broadcast %cst_92 : bf16 to vector<2x8x512xbf16>
      %c0_93 = arith.constant 0 : index
      %c0_94 = arith.constant 0 : index
      %c0_95 = arith.constant 0 : index
      %169 = vector.load %arg9[%c0_93, %c0_94, %c0_95] : memref<2x8x512xbf16, #tpu.memory_space<vmem>>, vector<2x8x512xbf16>
      tpu.vector_store %arg9[%c0_93, %c0_94, %c0_95], %168 {strides = array<i32>} : memref<2x8x512xbf16, #tpu.memory_space<vmem>>, vector<2x8x512xbf16>,
    } else {
    }
    %c0 = arith.constant 0 : index
    %c0_1 = arith.constant 0 : index
    %3 = vector.load %arg2[%c0, %c0_1] : memref<64x2432xbf16, #tpu.memory_space<vmem>>, vector<64x2432xbf16>
    %c0_2 = arith.constant 0 : index
    %c0_3 = arith.constant 0 : index
    %4 = vector.load %arg3[%c0_2, %c0_3] : memref<2432x512xbf16, #tpu.memory_space<vmem>>, vector<2432x512xbf16>
    %cst = arith.constant dense<0.000000e+00> : vector<64x512xf32>
    %5 = tpu.matmul %3, %4, %cst {dimension_numbers = #tpu.dot_dimension_numbers<[1], [0], [0], [1], [0, 0, 1, 1], [], []>} : vector<64x2432xbf16>, vector<2432x512xbf16>, vector<64x512xf32> -> vector<64x512xf32>
    %c0_4 = arith.constant 0 : index
    %c0_5 = arith.constant 0 : index
    %6 = vector.load %arg6[%c0_4, %c0_5] : memref<64x512xf32, #tpu.memory_space<vmem>>, vector<64x512xf32>
    tpu.vector_store %arg6[%c0_4, %c0_5], %5 {strides = array<i32>} : memref<64x512xf32, #tpu.memory_space<vmem>>, vector<64x512xf32>,
    %c0_6 = arith.constant 0 : index
    %c0_7 = arith.constant 0 : index
    %7 = vector.load %arg4[%c0_6, %c0_7] : memref<1x512xf32, #tpu.memory_space<vmem>>, vector<1x512xf32>
    %8 = vector.shape_cast %7 : vector<1x512xf32> to vector<1x512xf32>
    %9 = vector.broadcast %8 : vector<1x512xf32> to vector<8x512xf32>
    %cst_8 = arith.constant 1.000000e+00 : f32
    %10 = vector.broadcast %cst_8 : f32 to vector<8x512xf32>
    %11 = arith.cmpf oeq, %9, %10 : vector<8x512xf32>
    %cst_9 = arith.constant 2.000000e+00 : f32
    %12 = vector.broadcast %cst_9 : f32 to vector<8x512xf32>
    %13 = arith.cmpf oeq, %9, %12 : vector<8x512xf32>
    %c0_10 = arith.constant 0 : index
    %c0_11 = arith.constant 0 : index
    %c0_12 = arith.constant 0 : index
    %14 = vector.load %arg9[%c0_10, %c0_11, %c0_12] : memref<2x8x512xbf16, #tpu.memory_space<vmem>>, vector<1x8x512xbf16>
    %15 = vector.shape_cast %14 : vector<1x8x512xbf16> to vector<8x512xbf16>
    %c1 = arith.constant 1 : index
    %c0_13 = arith.constant 0 : index
    %c0_14 = arith.constant 0 : index
    %16 = vector.load %arg9[%c1, %c0_13, %c0_14] : memref<2x8x512xbf16, #tpu.memory_space<vmem>>, vector<1x8x512xbf16>
    %17 = vector.shape_cast %16 : vector<1x8x512xbf16> to vector<8x512xbf16>
    %c0_15 = arith.constant 0 : index
    %c0_16 = arith.constant 0 : index
    %18 = vector.load %arg7[%c0_15, %c0_16] : memref<8x512xf32, #tpu.memory_space<vmem>>, vector<8x512xf32>
    %c0_17 = arith.constant 0 : index
    %c0_18 = arith.constant 0 : index
    %19 = vector.load %arg8[%c0_17, %c0_18] : memref<8x512xf32, #tpu.memory_space<vmem>>, vector<8x512xf32>
    %c0_19 = arith.constant 0 : index
    %c0_20 = arith.constant 0 : index
    %20 = vector.load %arg6[%c0_19, %c0_20] : memref<64x512xf32, #tpu.memory_space<vmem>>, vector<8x512xf32>
    %cst_21 = arith.constant 7.500000e-01 : f32
    %21 = vector.broadcast %cst_21 : f32 to vector<8x512xf32>
    %22 = arith.mulf %18, %21 : vector<8x512xf32>
    %23 = arith.addf %22, %20 : vector<8x512xf32>
    %cst_22 = arith.constant 9.700000e-01 : f32
    %24 = vector.broadcast %cst_22 : f32 to vector<8x512xf32>
    %25 = arith.mulf %19, %24 : vector<8x512xf32>
    %26 = arith.addf %25, %23 : vector<8x512xf32>
    %cst_23 = arith.constant 1.250000e+00 : f32
    %27 = vector.broadcast %cst_23 : f32 to vector<8x512xf32>
    %28 = arith.cmpf oge, %26, %27 : vector<8x512xf32>
    %cst_24 = arith.constant 0.000000e+00 : f32
    %29 = vector.broadcast %cst_24 : f32 to vector<8x512xf32>
    %30 = arith.select %28, %29, %26 : vector<8x512xi1>, vector<8x512xf32>
    %31 = arith.extui %28 : vector<8x512xi1> to vector<8x512xi32>
    %32 = arith.sitofp %31 : vector<8x512xi32> to vector<8x512xf32>
    %33 = arith.truncf %32 : vector<8x512xf32> to vector<8x512xbf16>
    %34 = arith.select %13, %17, %33 : vector<8x512xi1>, vector<8x512xbf16>
    %35 = arith.select %11, %15, %34 : vector<8x512xi1>, vector<8x512xbf16>
    %c0_25 = arith.constant 0 : index
    %c0_26 = arith.constant 0 : index
    %36 = vector.load %arg5[%c0_25, %c0_26] : memref<64x512xbf16, #tpu.memory_space<vmem>>, vector<8x512xbf16>
    tpu.vector_store %arg5[%c0_25, %c0_26], %35 {strides = array<i32>} : memref<64x512xbf16, #tpu.memory_space<vmem>>, vector<8x512xbf16>,
    %c8 = arith.constant 8 : index
    %c0_27 = arith.constant 0 : index
    %37 = vector.load %arg6[%c8, %c0_27] : memref<64x512xf32, #tpu.memory_space<vmem>>, vector<8x512xf32>
    %cst_28 = arith.constant 7.500000e-01 : f32
    %38 = vector.broadcast %cst_28 : f32 to vector<8x512xf32>
    %39 = arith.mulf %23, %38 : vector<8x512xf32>
    %40 = arith.addf %39, %37 : vector<8x512xf32>
    %cst_29 = arith.constant 9.700000e-01 : f32
    %41 = vector.broadcast %cst_29 : f32 to vector<8x512xf32>
    %42 = arith.mulf %30, %41 : vector<8x512xf32>
    %43 = arith.addf %42, %40 : vector<8x512xf32>
    %cst_30 = arith.constant 1.250000e+00 : f32
    %44 = vector.broadcast %cst_30 : f32 to vector<8x512xf32>
    %45 = arith.cmpf oge, %43, %44 : vector<8x512xf32>
    %cst_31 = arith.constant 0.000000e+00 : f32
    %46 = vector.broadcast %cst_31 : f32 to vector<8x512xf32>
    %47 = arith.select %45, %46, %43 : vector<8x512xi1>, vector<8x512xf32>
    %48 = arith.extui %45 : vector<8x512xi1> to vector<8x512xi32>
    %49 = arith.sitofp %48 : vector<8x512xi32> to vector<8x512xf32>
    %50 = arith.truncf %49 : vector<8x512xf32> to vector<8x512xbf16>
    %51 = arith.select %13, %15, %50 : vector<8x512xi1>, vector<8x512xbf16>
    %52 = arith.select %11, %33, %51 : vector<8x512xi1>, vector<8x512xbf16>
    %c8_32 = arith.constant 8 : index
    %c0_33 = arith.constant 0 : index
    %53 = vector.load %arg5[%c8_32, %c0_33] : memref<64x512xbf16, #tpu.memory_space<vmem>>, vector<8x512xbf16>
    tpu.vector_store %arg5[%c8_32, %c0_33], %52 {strides = array<i32>} : memref<64x512xbf16, #tpu.memory_space<vmem>>, vector<8x512xbf16>,
    %c16 = arith.constant 16 : index
    %c0_34 = arith.constant 0 : index
    %54 = vector.load %arg6[%c16, %c0_34] : memref<64x512xf32, #tpu.memory_space<vmem>>, vector<8x512xf32>
    %cst_35 = arith.constant 7.500000e-01 : f32
    %55 = vector.broadcast %cst_35 : f32 to vector<8x512xf32>
    %56 = arith.mulf %40, %55 : vector<8x512xf32>
    %57 = arith.addf %56, %54 : vector<8x512xf32>
    %cst_36 = arith.constant 9.700000e-01 : f32
    %58 = vector.broadcast %cst_36 : f32 to vector<8x512xf32>
    %59 = arith.mulf %47, %58 : vector<8x512xf32>
    %60 = arith.addf %59, %57 : vector<8x512xf32>
    %cst_37 = arith.constant 1.250000e+00 : f32
    %61 = vector.broadcast %cst_37 : f32 to vector<8x512xf32>
    %62 = arith.cmpf oge, %60, %61 : vector<8x512xf32>
    %cst_38 = arith.constant 0.000000e+00 : f32
    %63 = vector.broadcast %cst_38 : f32 to vector<8x512xf32>
    %64 = arith.select %62, %63, %60 : vector<8x512xi1>, vector<8x512xf32>
    %65 = arith.extui %62 : vector<8x512xi1> to vector<8x512xi32>
    %66 = arith.sitofp %65 : vector<8x512xi32> to vector<8x512xf32>
    %67 = arith.truncf %66 : vector<8x512xf32> to vector<8x512xbf16>
    %68 = arith.select %13, %33, %67 : vector<8x512xi1>, vector<8x512xbf16>
    %69 = arith.select %11, %50, %68 : vector<8x512xi1>, vector<8x512xbf16>
    %c16_39 = arith.constant 16 : index
    %c0_40 = arith.constant 0 : index
    %70 = vector.load %arg5[%c16_39, %c0_40] : memref<64x512xbf16, #tpu.memory_space<vmem>>, vector<8x512xbf16>
    tpu.vector_store %arg5[%c16_39, %c0_40], %69 {strides = array<i32>} : memref<64x512xbf16, #tpu.memory_space<vmem>>, vector<8x512xbf16>,
    %c24 = arith.constant 24 : index
    %c0_41 = arith.constant 0 : index
    %71 = vector.load %arg6[%c24, %c0_41] : memref<64x512xf32, #tpu.memory_space<vmem>>, vector<8x512xf32>
    %cst_42 = arith.constant 7.500000e-01 : f32
    %72 = vector.broadcast %cst_42 : f32 to vector<8x512xf32>
    %73 = arith.mulf %57, %72 : vector<8x512xf32>
    %74 = arith.addf %73, %71 : vector<8x512xf32>
    %cst_43 = arith.constant 9.700000e-01 : f32
    %75 = vector.broadcast %cst_43 : f32 to vector<8x512xf32>
    %76 = arith.mulf %64, %75 : vector<8x512xf32>
    %77 = arith.addf %76, %74 : vector<8x512xf32>
    %cst_44 = arith.constant 1.250000e+00 : f32
    %78 = vector.broadcast %cst_44 : f32 to vector<8x512xf32>
    %79 = arith.cmpf oge, %77, %78 : vector<8x512xf32>
    %cst_45 = arith.constant 0.000000e+00 : f32
    %80 = vector.broadcast %cst_45 : f32 to vector<8x512xf32>
    %81 = arith.select %79, %80, %77 : vector<8x512xi1>, vector<8x512xf32>
    %82 = arith.extui %79 : vector<8x512xi1> to vector<8x512xi32>
    %83 = arith.sitofp %82 : vector<8x512xi32> to vector<8x512xf32>
    %84 = arith.truncf %83 : vector<8x512xf32> to vector<8x512xbf16>
    %85 = arith.select %13, %50, %84 : vector<8x512xi1>, vector<8x512xbf16>
    %86 = arith.select %11, %67, %85 : vector<8x512xi1>, vector<8x512xbf16>
    %c24_46 = arith.constant 24 : index
    %c0_47 = arith.constant 0 : index
    %87 = vector.load %arg5[%c24_46, %c0_47] : memref<64x512xbf16, #tpu.memory_space<vmem>>, vector<8x512xbf16>
    tpu.vector_store %arg5[%c24_46, %c0_47], %86 {strides = array<i32>} : memref<64x512xbf16, #tpu.memory_space<vmem>>, vector<8x512xbf16>,
    %c32 = arith.constant 32 : index
    %c0_48 = arith.constant 0 : index
    %88 = vector.load %arg6[%c32, %c0_48] : memref<64x512xf32, #tpu.memory_space<vmem>>, vector<8x512xf32>
    %cst_49 = arith.constant 7.500000e-01 : f32
    %89 = vector.broadcast %cst_49 : f32 to vector<8x512xf32>
    %90 = arith.mulf %74, %89 : vector<8x512xf32>
    %91 = arith.addf %90, %88 : vector<8x512xf32>
    %cst_50 = arith.constant 9.700000e-01 : f32
    %92 = vector.broadcast %cst_50 : f32 to vector<8x512xf32>
    %93 = arith.mulf %81, %92 : vector<8x512xf32>
    %94 = arith.addf %93, %91 : vector<8x512xf32>
    %cst_51 = arith.constant 1.250000e+00 : f32
    %95 = vector.broadcast %cst_51 : f32 to vector<8x512xf32>
    %96 = arith.cmpf oge, %94, %95 : vector<8x512xf32>
    %cst_52 = arith.constant 0.000000e+00 : f32
    %97 = vector.broadcast %cst_52 : f32 to vector<8x512xf32>
    %98 = arith.select %96, %97, %94 : vector<8x512xi1>, vector<8x512xf32>
    %99 = arith.extui %96 : vector<8x512xi1> to vector<8x512xi32>
    %100 = arith.sitofp %99 : vector<8x512xi32> to vector<8x512xf32>
    %101 = arith.truncf %100 : vector<8x512xf32> to vector<8x512xbf16>
    %102 = arith.select %13, %67, %101 : vector<8x512xi1>, vector<8x512xbf16>
    %103 = arith.select %11, %84, %102 : vector<8x512xi1>, vector<8x512xbf16>
    %c32_53 = arith.constant 32 : index
    %c0_54 = arith.constant 0 : index
    %104 = vector.load %arg5[%c32_53, %c0_54] : memref<64x512xbf16, #tpu.memory_space<vmem>>, vector<8x512xbf16>
    tpu.vector_store %arg5[%c32_53, %c0_54], %103 {strides = array<i32>} : memref<64x512xbf16, #tpu.memory_space<vmem>>, vector<8x512xbf16>,
    %c40 = arith.constant 40 : index
    %c0_55 = arith.constant 0 : index
    %105 = vector.load %arg6[%c40, %c0_55] : memref<64x512xf32, #tpu.memory_space<vmem>>, vector<8x512xf32>
    %cst_56 = arith.constant 7.500000e-01 : f32
    %106 = vector.broadcast %cst_56 : f32 to vector<8x512xf32>
    %107 = arith.mulf %91, %106 : vector<8x512xf32>
    %108 = arith.addf %107, %105 : vector<8x512xf32>
    %cst_57 = arith.constant 9.700000e-01 : f32
    %109 = vector.broadcast %cst_57 : f32 to vector<8x512xf32>
    %110 = arith.mulf %98, %109 : vector<8x512xf32>
    %111 = arith.addf %110, %108 : vector<8x512xf32>
    %cst_58 = arith.constant 1.250000e+00 : f32
    %112 = vector.broadcast %cst_58 : f32 to vector<8x512xf32>
    %113 = arith.cmpf oge, %111, %112 : vector<8x512xf32>
    %cst_59 = arith.constant 0.000000e+00 : f32
    %114 = vector.broadcast %cst_59 : f32 to vector<8x512xf32>
    %115 = arith.select %113, %114, %111 : vector<8x512xi1>, vector<8x512xf32>
    %116 = arith.extui %113 : vector<8x512xi1> to vector<8x512xi32>
    %117 = arith.sitofp %116 : vector<8x512xi32> to vector<8x512xf32>
    %118 = arith.truncf %117 : vector<8x512xf32> to vector<8x512xbf16>
    %119 = arith.select %13, %84, %118 : vector<8x512xi1>, vector<8x512xbf16>
    %120 = arith.select %11, %101, %119 : vector<8x512xi1>, vector<8x512xbf16>
    %c40_60 = arith.constant 40 : index
    %c0_61 = arith.constant 0 : index
    %121 = vector.load %arg5[%c40_60, %c0_61] : memref<64x512xbf16, #tpu.memory_space<vmem>>, vector<8x512xbf16>
    tpu.vector_store %arg5[%c40_60, %c0_61], %120 {strides = array<i32>} : memref<64x512xbf16, #tpu.memory_space<vmem>>, vector<8x512xbf16>,
    %c48 = arith.constant 48 : index
    %c0_62 = arith.constant 0 : index
    %122 = vector.load %arg6[%c48, %c0_62] : memref<64x512xf32, #tpu.memory_space<vmem>>, vector<8x512xf32>
    %cst_63 = arith.constant 7.500000e-01 : f32
    %123 = vector.broadcast %cst_63 : f32 to vector<8x512xf32>
    %124 = arith.mulf %108, %123 : vector<8x512xf32>
    %125 = arith.addf %124, %122 : vector<8x512xf32>
    %cst_64 = arith.constant 9.700000e-01 : f32
    %126 = vector.broadcast %cst_64 : f32 to vector<8x512xf32>
    %127 = arith.mulf %115, %126 : vector<8x512xf32>
    %128 = arith.addf %127, %125 : vector<8x512xf32>
    %cst_65 = arith.constant 1.250000e+00 : f32
    %129 = vector.broadcast %cst_65 : f32 to vector<8x512xf32>
    %130 = arith.cmpf oge, %128, %129 : vector<8x512xf32>
    %cst_66 = arith.constant 0.000000e+00 : f32
    %131 = vector.broadcast %cst_66 : f32 to vector<8x512xf32>
    %132 = arith.select %130, %131, %128 : vector<8x512xi1>, vector<8x512xf32>
    %133 = arith.extui %130 : vector<8x512xi1> to vector<8x512xi32>
    %134 = arith.sitofp %133 : vector<8x512xi32> to vector<8x512xf32>
    %135 = arith.truncf %134 : vector<8x512xf32> to vector<8x512xbf16>
    %136 = arith.select %13, %101, %135 : vector<8x512xi1>, vector<8x512xbf16>
    %137 = arith.select %11, %118, %136 : vector<8x512xi1>, vector<8x512xbf16>
    %c48_67 = arith.constant 48 : index
    %c0_68 = arith.constant 0 : index
    %138 = vector.load %arg5[%c48_67, %c0_68] : memref<64x512xbf16, #tpu.memory_space<vmem>>, vector<8x512xbf16>
    tpu.vector_store %arg5[%c48_67, %c0_68], %137 {strides = array<i32>} : memref<64x512xbf16, #tpu.memory_space<vmem>>, vector<8x512xbf16>,
    %c56 = arith.constant 56 : index
    %c0_69 = arith.constant 0 : index
    %139 = vector.load %arg6[%c56, %c0_69] : memref<64x512xf32, #tpu.memory_space<vmem>>, vector<8x512xf32>
    %cst_70 = arith.constant 7.500000e-01 : f32
    %140 = vector.broadcast %cst_70 : f32 to vector<8x512xf32>
    %141 = arith.mulf %125, %140 : vector<8x512xf32>
    %142 = arith.addf %141, %139 : vector<8x512xf32>
    %cst_71 = arith.constant 9.700000e-01 : f32
    %143 = vector.broadcast %cst_71 : f32 to vector<8x512xf32>
    %144 = arith.mulf %132, %143 : vector<8x512xf32>
    %145 = arith.addf %144, %142 : vector<8x512xf32>
    %cst_72 = arith.constant 1.250000e+00 : f32
    %146 = vector.broadcast %cst_72 : f32 to vector<8x512xf32>
    %147 = arith.cmpf oge, %145, %146 : vector<8x512xf32>
    %cst_73 = arith.constant 0.000000e+00 : f32
    %148 = vector.broadcast %cst_73 : f32 to vector<8x512xf32>
    %149 = arith.select %147, %148, %145 : vector<8x512xi1>, vector<8x512xf32>
    %150 = arith.extui %147 : vector<8x512xi1> to vector<8x512xi32>
    %151 = arith.sitofp %150 : vector<8x512xi32> to vector<8x512xf32>
    %152 = arith.truncf %151 : vector<8x512xf32> to vector<8x512xbf16>
    %153 = arith.select %13, %118, %152 : vector<8x512xi1>, vector<8x512xbf16>
    %154 = arith.select %11, %135, %153 : vector<8x512xi1>, vector<8x512xbf16>
    %c56_74 = arith.constant 56 : index
    %c0_75 = arith.constant 0 : index
    %155 = vector.load %arg5[%c56_74, %c0_75] : memref<64x512xbf16, #tpu.memory_space<vmem>>, vector<8x512xbf16>
    tpu.vector_store %arg5[%c56_74, %c0_75], %154 {strides = array<i32>} : memref<64x512xbf16, #tpu.memory_space<vmem>>, vector<8x512xbf16>,
    %c0_76 = arith.constant 0 : index
    %c0_77 = arith.constant 0 : index
    %156 = vector.load %arg7[%c0_76, %c0_77] : memref<8x512xf32, #tpu.memory_space<vmem>>, vector<8x512xf32>
    tpu.vector_store %arg7[%c0_76, %c0_77], %142 {strides = array<i32>} : memref<8x512xf32, #tpu.memory_space<vmem>>, vector<8x512xf32>,
    %c0_78 = arith.constant 0 : index
    %c0_79 = arith.constant 0 : index
    %157 = vector.load %arg8[%c0_78, %c0_79] : memref<8x512xf32, #tpu.memory_space<vmem>>, vector<8x512xf32>
    tpu.vector_store %arg8[%c0_78, %c0_79], %149 {strides = array<i32>} : memref<8x512xf32, #tpu.memory_space<vmem>>, vector<8x512xf32>,
    %c0_80 = arith.constant 0 : index
    %c0_81 = arith.constant 0 : index
    %c0_82 = arith.constant 0 : index
    %158 = vector.load %arg9[%c0_80, %c0_81, %c0_82] : memref<2x8x512xbf16, #tpu.memory_space<vmem>>, vector<1x8x512xbf16>
    %159 = vector.shape_cast %158 : vector<1x8x512xbf16> to vector<8x512xbf16>
    %160 = vector.shape_cast %152 : vector<8x512xbf16> to vector<1x8x512xbf16>
    tpu.vector_store %arg9[%c0_80, %c0_81, %c0_82], %160 {strides = array<i32>} : memref<2x8x512xbf16, #tpu.memory_space<vmem>>, vector<1x8x512xbf16>,
    %c1_83 = arith.constant 1 : index
    %c0_84 = arith.constant 0 : index
    %c0_85 = arith.constant 0 : index
    %161 = vector.load %arg9[%c1_83, %c0_84, %c0_85] : memref<2x8x512xbf16, #tpu.memory_space<vmem>>, vector<1x8x512xbf16>
    %162 = vector.shape_cast %161 : vector<1x8x512xbf16> to vector<8x512xbf16>
    %163 = vector.shape_cast %135 : vector<8x512xbf16> to vector<1x8x512xbf16>
    tpu.vector_store %arg9[%c1_83, %c0_84, %c0_85], %163 {strides = array<i32>} : memref<2x8x512xbf16, #tpu.memory_space<vmem>>, vector<1x8x512xbf16>,
    return
  }
  func.func @transform_0(%arg0: i32, %arg1: i32) -> (i32, i32) {
    %c0_i32 = arith.constant 0 : i32
    %c0_i32_0 = arith.constant 0 : i32
    return %arg1, %c0_i32 : i32, i32
  }
  func.func @transform_1(%arg0: i32, %arg1: i32) -> (i32, i32) {
    %c0_i32 = arith.constant 0 : i32
    %c0_i32_0 = arith.constant 0 : i32
    return %c0_i32, %arg0 : i32, i32
  }
  func.func @transform_2(%arg0: i32, %arg1: i32) -> (i32, i32) {
    %c0_i32 = arith.constant 0 : i32
    %c0_i32_0 = arith.constant 0 : i32
    return %c0_i32, %arg0 : i32, i32
  }
  func.func @transform_3(%arg0: i32, %arg1: i32) -> (i32, i32) {
    %c0_i32 = arith.constant 0 : i32
    return %arg1, %arg0 : i32, i32
  }
}

module attributes {stable_mosaic.version = 11 : i64} {
  func.func @kernel(%arg0: i32, %arg1: i32, %arg2: memref<64x512xbf16, #tpu.memory_space<vmem>>, %arg3: memref<512x128xbf16, #tpu.memory_space<vmem>>, %arg4: memref<64x128xbf16, #tpu.memory_space<vmem>>, %arg5: memref<64x128xf32, #tpu.memory_space<vmem>>, %arg6: memref<8x128xf32, #tpu.memory_space<vmem>>, %arg7: memref<8x128xf32, #tpu.memory_space<vmem>>) attributes {dimension_semantics = [#tpu.dimension_semantics<parallel>, #tpu.dimension_semantics<arbitrary>], iteration_bounds = array<i64: 1, 1>, scalar_prefetch = 0 : i64, scratch_operands = 3 : i64, tpu.core_type = #tpu.core_type<tc>, window_params = [{transform_indices = @transform_0, window_bounds = array<i64: 64, 512>}, {transform_indices = @transform_1, window_bounds = array<i64: 512, 128>}, {transform_indices = @transform_2, window_bounds = array<i64: 64, 128>}]} {
    %c0_i32 = arith.constant 0 : i32
    %0 = arith.cmpi eq, %arg1, %c0_i32 : i32
    %1 = arith.extui %0 : i1 to i32
    %c0_i32_0 = arith.constant 0 : i32
    %2 = arith.cmpi ne, %1, %c0_i32_0 : i32
    scf.if %2 {
      %cst_71 = arith.constant 0.000000e+00 : f32
      %131 = vector.broadcast %cst_71 : f32 to vector<8x128xf32>
      %c0_72 = arith.constant 0 : index
      %c0_73 = arith.constant 0 : index
      %132 = vector.load %arg6[%c0_72, %c0_73] : memref<8x128xf32, #tpu.memory_space<vmem>>, vector<8x128xf32>
      tpu.vector_store %arg6[%c0_72, %c0_73], %131 {strides = array<i32>} : memref<8x128xf32, #tpu.memory_space<vmem>>, vector<8x128xf32>,
      %cst_74 = arith.constant 0.000000e+00 : f32
      %133 = vector.broadcast %cst_74 : f32 to vector<8x128xf32>
      %c0_75 = arith.constant 0 : index
      %c0_76 = arith.constant 0 : index
      %134 = vector.load %arg7[%c0_75, %c0_76] : memref<8x128xf32, #tpu.memory_space<vmem>>, vector<8x128xf32>
      tpu.vector_store %arg7[%c0_75, %c0_76], %133 {strides = array<i32>} : memref<8x128xf32, #tpu.memory_space<vmem>>, vector<8x128xf32>,
    } else {
    }
    %c0 = arith.constant 0 : index
    %c0_1 = arith.constant 0 : index
    %3 = vector.load %arg2[%c0, %c0_1] : memref<64x512xbf16, #tpu.memory_space<vmem>>, vector<64x512xbf16>
    %c0_2 = arith.constant 0 : index
    %c0_3 = arith.constant 0 : index
    %4 = vector.load %arg3[%c0_2, %c0_3] : memref<512x128xbf16, #tpu.memory_space<vmem>>, vector<512x128xbf16>
    %cst = arith.constant dense<0.000000e+00> : vector<64x128xf32>
    %5 = tpu.matmul %3, %4, %cst {dimension_numbers = #tpu.dot_dimension_numbers<[1], [0], [0], [1], [0, 0, 1, 1], [], []>} : vector<64x512xbf16>, vector<512x128xbf16>, vector<64x128xf32> -> vector<64x128xf32>
    %c0_4 = arith.constant 0 : index
    %c0_5 = arith.constant 0 : index
    %6 = vector.load %arg5[%c0_4, %c0_5] : memref<64x128xf32, #tpu.memory_space<vmem>>, vector<64x128xf32>
    tpu.vector_store %arg5[%c0_4, %c0_5], %5 {strides = array<i32>} : memref<64x128xf32, #tpu.memory_space<vmem>>, vector<64x128xf32>,
    %c0_6 = arith.constant 0 : index
    %c0_7 = arith.constant 0 : index
    %7 = vector.load %arg6[%c0_6, %c0_7] : memref<8x128xf32, #tpu.memory_space<vmem>>, vector<8x128xf32>
    %c0_8 = arith.constant 0 : index
    %c0_9 = arith.constant 0 : index
    %8 = vector.load %arg7[%c0_8, %c0_9] : memref<8x128xf32, #tpu.memory_space<vmem>>, vector<8x128xf32>
    %c0_10 = arith.constant 0 : index
    %c0_11 = arith.constant 0 : index
    %9 = vector.load %arg5[%c0_10, %c0_11] : memref<64x128xf32, #tpu.memory_space<vmem>>, vector<8x128xf32>
    %cst_12 = arith.constant 7.500000e-01 : f32
    %10 = vector.broadcast %cst_12 : f32 to vector<8x128xf32>
    %11 = arith.mulf %7, %10 : vector<8x128xf32>
    %12 = arith.addf %11, %9 : vector<8x128xf32>
    %cst_13 = arith.constant 9.700000e-01 : f32
    %13 = vector.broadcast %cst_13 : f32 to vector<8x128xf32>
    %14 = arith.mulf %8, %13 : vector<8x128xf32>
    %15 = arith.addf %14, %12 : vector<8x128xf32>
    %cst_14 = arith.constant 1.250000e+00 : f32
    %16 = vector.broadcast %cst_14 : f32 to vector<8x128xf32>
    %17 = arith.cmpf oge, %15, %16 : vector<8x128xf32>
    %cst_15 = arith.constant 0.000000e+00 : f32
    %18 = vector.broadcast %cst_15 : f32 to vector<8x128xf32>
    %19 = arith.select %17, %18, %15 : vector<8x128xi1>, vector<8x128xf32>
    %20 = arith.extui %17 : vector<8x128xi1> to vector<8x128xi32>
    %21 = arith.sitofp %20 : vector<8x128xi32> to vector<8x128xf32>
    %22 = arith.truncf %21 : vector<8x128xf32> to vector<8x128xbf16>
    %c0_16 = arith.constant 0 : index
    %c0_17 = arith.constant 0 : index
    %23 = vector.load %arg4[%c0_16, %c0_17] : memref<64x128xbf16, #tpu.memory_space<vmem>>, vector<8x128xbf16>
    tpu.vector_store %arg4[%c0_16, %c0_17], %22 {strides = array<i32>} : memref<64x128xbf16, #tpu.memory_space<vmem>>, vector<8x128xbf16>,
    %c8 = arith.constant 8 : index
    %c0_18 = arith.constant 0 : index
    %24 = vector.load %arg5[%c8, %c0_18] : memref<64x128xf32, #tpu.memory_space<vmem>>, vector<8x128xf32>
    %cst_19 = arith.constant 7.500000e-01 : f32
    %25 = vector.broadcast %cst_19 : f32 to vector<8x128xf32>
    %26 = arith.mulf %12, %25 : vector<8x128xf32>
    %27 = arith.addf %26, %24 : vector<8x128xf32>
    %cst_20 = arith.constant 9.700000e-01 : f32
    %28 = vector.broadcast %cst_20 : f32 to vector<8x128xf32>
    %29 = arith.mulf %19, %28 : vector<8x128xf32>
    %30 = arith.addf %29, %27 : vector<8x128xf32>
    %cst_21 = arith.constant 1.250000e+00 : f32
    %31 = vector.broadcast %cst_21 : f32 to vector<8x128xf32>
    %32 = arith.cmpf oge, %30, %31 : vector<8x128xf32>
    %cst_22 = arith.constant 0.000000e+00 : f32
    %33 = vector.broadcast %cst_22 : f32 to vector<8x128xf32>
    %34 = arith.select %32, %33, %30 : vector<8x128xi1>, vector<8x128xf32>
    %35 = arith.extui %32 : vector<8x128xi1> to vector<8x128xi32>
    %36 = arith.sitofp %35 : vector<8x128xi32> to vector<8x128xf32>
    %37 = arith.truncf %36 : vector<8x128xf32> to vector<8x128xbf16>
    %c8_23 = arith.constant 8 : index
    %c0_24 = arith.constant 0 : index
    %38 = vector.load %arg4[%c8_23, %c0_24] : memref<64x128xbf16, #tpu.memory_space<vmem>>, vector<8x128xbf16>
    tpu.vector_store %arg4[%c8_23, %c0_24], %37 {strides = array<i32>} : memref<64x128xbf16, #tpu.memory_space<vmem>>, vector<8x128xbf16>,
    %c16 = arith.constant 16 : index
    %c0_25 = arith.constant 0 : index
    %39 = vector.load %arg5[%c16, %c0_25] : memref<64x128xf32, #tpu.memory_space<vmem>>, vector<8x128xf32>
    %cst_26 = arith.constant 7.500000e-01 : f32
    %40 = vector.broadcast %cst_26 : f32 to vector<8x128xf32>
    %41 = arith.mulf %27, %40 : vector<8x128xf32>
    %42 = arith.addf %41, %39 : vector<8x128xf32>
    %cst_27 = arith.constant 9.700000e-01 : f32
    %43 = vector.broadcast %cst_27 : f32 to vector<8x128xf32>
    %44 = arith.mulf %34, %43 : vector<8x128xf32>
    %45 = arith.addf %44, %42 : vector<8x128xf32>
    %cst_28 = arith.constant 1.250000e+00 : f32
    %46 = vector.broadcast %cst_28 : f32 to vector<8x128xf32>
    %47 = arith.cmpf oge, %45, %46 : vector<8x128xf32>
    %cst_29 = arith.constant 0.000000e+00 : f32
    %48 = vector.broadcast %cst_29 : f32 to vector<8x128xf32>
    %49 = arith.select %47, %48, %45 : vector<8x128xi1>, vector<8x128xf32>
    %50 = arith.extui %47 : vector<8x128xi1> to vector<8x128xi32>
    %51 = arith.sitofp %50 : vector<8x128xi32> to vector<8x128xf32>
    %52 = arith.truncf %51 : vector<8x128xf32> to vector<8x128xbf16>
    %c16_30 = arith.constant 16 : index
    %c0_31 = arith.constant 0 : index
    %53 = vector.load %arg4[%c16_30, %c0_31] : memref<64x128xbf16, #tpu.memory_space<vmem>>, vector<8x128xbf16>
    tpu.vector_store %arg4[%c16_30, %c0_31], %52 {strides = array<i32>} : memref<64x128xbf16, #tpu.memory_space<vmem>>, vector<8x128xbf16>,
    %c24 = arith.constant 24 : index
    %c0_32 = arith.constant 0 : index
    %54 = vector.load %arg5[%c24, %c0_32] : memref<64x128xf32, #tpu.memory_space<vmem>>, vector<8x128xf32>
    %cst_33 = arith.constant 7.500000e-01 : f32
    %55 = vector.broadcast %cst_33 : f32 to vector<8x128xf32>
    %56 = arith.mulf %42, %55 : vector<8x128xf32>
    %57 = arith.addf %56, %54 : vector<8x128xf32>
    %cst_34 = arith.constant 9.700000e-01 : f32
    %58 = vector.broadcast %cst_34 : f32 to vector<8x128xf32>
    %59 = arith.mulf %49, %58 : vector<8x128xf32>
    %60 = arith.addf %59, %57 : vector<8x128xf32>
    %cst_35 = arith.constant 1.250000e+00 : f32
    %61 = vector.broadcast %cst_35 : f32 to vector<8x128xf32>
    %62 = arith.cmpf oge, %60, %61 : vector<8x128xf32>
    %cst_36 = arith.constant 0.000000e+00 : f32
    %63 = vector.broadcast %cst_36 : f32 to vector<8x128xf32>
    %64 = arith.select %62, %63, %60 : vector<8x128xi1>, vector<8x128xf32>
    %65 = arith.extui %62 : vector<8x128xi1> to vector<8x128xi32>
    %66 = arith.sitofp %65 : vector<8x128xi32> to vector<8x128xf32>
    %67 = arith.truncf %66 : vector<8x128xf32> to vector<8x128xbf16>
    %c24_37 = arith.constant 24 : index
    %c0_38 = arith.constant 0 : index
    %68 = vector.load %arg4[%c24_37, %c0_38] : memref<64x128xbf16, #tpu.memory_space<vmem>>, vector<8x128xbf16>
    tpu.vector_store %arg4[%c24_37, %c0_38], %67 {strides = array<i32>} : memref<64x128xbf16, #tpu.memory_space<vmem>>, vector<8x128xbf16>,
    %c32 = arith.constant 32 : index
    %c0_39 = arith.constant 0 : index
    %69 = vector.load %arg5[%c32, %c0_39] : memref<64x128xf32, #tpu.memory_space<vmem>>, vector<8x128xf32>
    %cst_40 = arith.constant 7.500000e-01 : f32
    %70 = vector.broadcast %cst_40 : f32 to vector<8x128xf32>
    %71 = arith.mulf %57, %70 : vector<8x128xf32>
    %72 = arith.addf %71, %69 : vector<8x128xf32>
    %cst_41 = arith.constant 9.700000e-01 : f32
    %73 = vector.broadcast %cst_41 : f32 to vector<8x128xf32>
    %74 = arith.mulf %64, %73 : vector<8x128xf32>
    %75 = arith.addf %74, %72 : vector<8x128xf32>
    %cst_42 = arith.constant 1.250000e+00 : f32
    %76 = vector.broadcast %cst_42 : f32 to vector<8x128xf32>
    %77 = arith.cmpf oge, %75, %76 : vector<8x128xf32>
    %cst_43 = arith.constant 0.000000e+00 : f32
    %78 = vector.broadcast %cst_43 : f32 to vector<8x128xf32>
    %79 = arith.select %77, %78, %75 : vector<8x128xi1>, vector<8x128xf32>
    %80 = arith.extui %77 : vector<8x128xi1> to vector<8x128xi32>
    %81 = arith.sitofp %80 : vector<8x128xi32> to vector<8x128xf32>
    %82 = arith.truncf %81 : vector<8x128xf32> to vector<8x128xbf16>
    %c32_44 = arith.constant 32 : index
    %c0_45 = arith.constant 0 : index
    %83 = vector.load %arg4[%c32_44, %c0_45] : memref<64x128xbf16, #tpu.memory_space<vmem>>, vector<8x128xbf16>
    tpu.vector_store %arg4[%c32_44, %c0_45], %82 {strides = array<i32>} : memref<64x128xbf16, #tpu.memory_space<vmem>>, vector<8x128xbf16>,
    %c40 = arith.constant 40 : index
    %c0_46 = arith.constant 0 : index
    %84 = vector.load %arg5[%c40, %c0_46] : memref<64x128xf32, #tpu.memory_space<vmem>>, vector<8x128xf32>
    %cst_47 = arith.constant 7.500000e-01 : f32
    %85 = vector.broadcast %cst_47 : f32 to vector<8x128xf32>
    %86 = arith.mulf %72, %85 : vector<8x128xf32>
    %87 = arith.addf %86, %84 : vector<8x128xf32>
    %cst_48 = arith.constant 9.700000e-01 : f32
    %88 = vector.broadcast %cst_48 : f32 to vector<8x128xf32>
    %89 = arith.mulf %79, %88 : vector<8x128xf32>
    %90 = arith.addf %89, %87 : vector<8x128xf32>
    %cst_49 = arith.constant 1.250000e+00 : f32
    %91 = vector.broadcast %cst_49 : f32 to vector<8x128xf32>
    %92 = arith.cmpf oge, %90, %91 : vector<8x128xf32>
    %cst_50 = arith.constant 0.000000e+00 : f32
    %93 = vector.broadcast %cst_50 : f32 to vector<8x128xf32>
    %94 = arith.select %92, %93, %90 : vector<8x128xi1>, vector<8x128xf32>
    %95 = arith.extui %92 : vector<8x128xi1> to vector<8x128xi32>
    %96 = arith.sitofp %95 : vector<8x128xi32> to vector<8x128xf32>
    %97 = arith.truncf %96 : vector<8x128xf32> to vector<8x128xbf16>
    %c40_51 = arith.constant 40 : index
    %c0_52 = arith.constant 0 : index
    %98 = vector.load %arg4[%c40_51, %c0_52] : memref<64x128xbf16, #tpu.memory_space<vmem>>, vector<8x128xbf16>
    tpu.vector_store %arg4[%c40_51, %c0_52], %97 {strides = array<i32>} : memref<64x128xbf16, #tpu.memory_space<vmem>>, vector<8x128xbf16>,
    %c48 = arith.constant 48 : index
    %c0_53 = arith.constant 0 : index
    %99 = vector.load %arg5[%c48, %c0_53] : memref<64x128xf32, #tpu.memory_space<vmem>>, vector<8x128xf32>
    %cst_54 = arith.constant 7.500000e-01 : f32
    %100 = vector.broadcast %cst_54 : f32 to vector<8x128xf32>
    %101 = arith.mulf %87, %100 : vector<8x128xf32>
    %102 = arith.addf %101, %99 : vector<8x128xf32>
    %cst_55 = arith.constant 9.700000e-01 : f32
    %103 = vector.broadcast %cst_55 : f32 to vector<8x128xf32>
    %104 = arith.mulf %94, %103 : vector<8x128xf32>
    %105 = arith.addf %104, %102 : vector<8x128xf32>
    %cst_56 = arith.constant 1.250000e+00 : f32
    %106 = vector.broadcast %cst_56 : f32 to vector<8x128xf32>
    %107 = arith.cmpf oge, %105, %106 : vector<8x128xf32>
    %cst_57 = arith.constant 0.000000e+00 : f32
    %108 = vector.broadcast %cst_57 : f32 to vector<8x128xf32>
    %109 = arith.select %107, %108, %105 : vector<8x128xi1>, vector<8x128xf32>
    %110 = arith.extui %107 : vector<8x128xi1> to vector<8x128xi32>
    %111 = arith.sitofp %110 : vector<8x128xi32> to vector<8x128xf32>
    %112 = arith.truncf %111 : vector<8x128xf32> to vector<8x128xbf16>
    %c48_58 = arith.constant 48 : index
    %c0_59 = arith.constant 0 : index
    %113 = vector.load %arg4[%c48_58, %c0_59] : memref<64x128xbf16, #tpu.memory_space<vmem>>, vector<8x128xbf16>
    tpu.vector_store %arg4[%c48_58, %c0_59], %112 {strides = array<i32>} : memref<64x128xbf16, #tpu.memory_space<vmem>>, vector<8x128xbf16>,
    %c56 = arith.constant 56 : index
    %c0_60 = arith.constant 0 : index
    %114 = vector.load %arg5[%c56, %c0_60] : memref<64x128xf32, #tpu.memory_space<vmem>>, vector<8x128xf32>
    %cst_61 = arith.constant 7.500000e-01 : f32
    %115 = vector.broadcast %cst_61 : f32 to vector<8x128xf32>
    %116 = arith.mulf %102, %115 : vector<8x128xf32>
    %117 = arith.addf %116, %114 : vector<8x128xf32>
    %cst_62 = arith.constant 9.700000e-01 : f32
    %118 = vector.broadcast %cst_62 : f32 to vector<8x128xf32>
    %119 = arith.mulf %109, %118 : vector<8x128xf32>
    %120 = arith.addf %119, %117 : vector<8x128xf32>
    %cst_63 = arith.constant 1.250000e+00 : f32
    %121 = vector.broadcast %cst_63 : f32 to vector<8x128xf32>
    %122 = arith.cmpf oge, %120, %121 : vector<8x128xf32>
    %cst_64 = arith.constant 0.000000e+00 : f32
    %123 = vector.broadcast %cst_64 : f32 to vector<8x128xf32>
    %124 = arith.select %122, %123, %120 : vector<8x128xi1>, vector<8x128xf32>
    %125 = arith.extui %122 : vector<8x128xi1> to vector<8x128xi32>
    %126 = arith.sitofp %125 : vector<8x128xi32> to vector<8x128xf32>
    %127 = arith.truncf %126 : vector<8x128xf32> to vector<8x128xbf16>
    %c56_65 = arith.constant 56 : index
    %c0_66 = arith.constant 0 : index
    %128 = vector.load %arg4[%c56_65, %c0_66] : memref<64x128xbf16, #tpu.memory_space<vmem>>, vector<8x128xbf16>
    tpu.vector_store %arg4[%c56_65, %c0_66], %127 {strides = array<i32>} : memref<64x128xbf16, #tpu.memory_space<vmem>>, vector<8x128xbf16>,
    %c0_67 = arith.constant 0 : index
    %c0_68 = arith.constant 0 : index
    %129 = vector.load %arg6[%c0_67, %c0_68] : memref<8x128xf32, #tpu.memory_space<vmem>>, vector<8x128xf32>
    tpu.vector_store %arg6[%c0_67, %c0_68], %117 {strides = array<i32>} : memref<8x128xf32, #tpu.memory_space<vmem>>, vector<8x128xf32>,
    %c0_69 = arith.constant 0 : index
    %c0_70 = arith.constant 0 : index
    %130 = vector.load %arg7[%c0_69, %c0_70] : memref<8x128xf32, #tpu.memory_space<vmem>>, vector<8x128xf32>
    tpu.vector_store %arg7[%c0_69, %c0_70], %124 {strides = array<i32>} : memref<8x128xf32, #tpu.memory_space<vmem>>, vector<8x128xf32>,
    return
  }
  func.func @transform_0(%arg0: i32, %arg1: i32) -> (i32, i32) {
    %c0_i32 = arith.constant 0 : i32
    %c0_i32_0 = arith.constant 0 : i32
    return %arg1, %c0_i32 : i32, i32
  }
  func.func @transform_1(%arg0: i32, %arg1: i32) -> (i32, i32) {
    %c0_i32 = arith.constant 0 : i32
    %c0_i32_0 = arith.constant 0 : i32
    return %c0_i32, %arg0 : i32, i32
  }
  func.func @transform_2(%arg0: i32, %arg1: i32) -> (i32, i32) {
    %c0_i32 = arith.constant 0 : i32
    return %arg1, %arg0 : i32, i32
  }
}

module attributes {stable_mosaic.version = 11 : i64} {
  func.func @kernel(%arg0: i32, %arg1: i32, %arg2: memref<64x512xbf16, #tpu.memory_space<vmem>>, %arg3: memref<512x512xbf16, #tpu.memory_space<vmem>>, %arg4: memref<1x512xf32, #tpu.memory_space<vmem>>, %arg5: memref<64x512xbf16, #tpu.memory_space<vmem>>, %arg6: memref<64x512xf32, #tpu.memory_space<vmem>>, %arg7: memref<8x512xf32, #tpu.memory_space<vmem>>, %arg8: memref<8x512xf32, #tpu.memory_space<vmem>>, %arg9: memref<2x8x512xbf16, #tpu.memory_space<vmem>>) attributes {dimension_semantics = [#tpu.dimension_semantics<parallel>, #tpu.dimension_semantics<arbitrary>], iteration_bounds = array<i64: 1, 1>, scalar_prefetch = 0 : i64, scratch_operands = 4 : i64, tpu.core_type = #tpu.core_type<tc>, window_params = [{transform_indices = @transform_0, window_bounds = array<i64: 64, 512>}, {transform_indices = @transform_1, window_bounds = array<i64: 512, 512>}, {transform_indices = @transform_2, window_bounds = array<i64: 1, 512>}, {transform_indices = @transform_3, window_bounds = array<i64: 64, 512>}]} {
    %c0_i32 = arith.constant 0 : i32
    %0 = arith.cmpi eq, %arg1, %c0_i32 : i32
    %1 = arith.extui %0 : i1 to i32
    %c0_i32_0 = arith.constant 0 : i32
    %2 = arith.cmpi ne, %1, %c0_i32_0 : i32
    scf.if %2 {
      %cst_86 = arith.constant 0.000000e+00 : f32
      %164 = vector.broadcast %cst_86 : f32 to vector<8x512xf32>
      %c0_87 = arith.constant 0 : index
      %c0_88 = arith.constant 0 : index
      %165 = vector.load %arg7[%c0_87, %c0_88] : memref<8x512xf32, #tpu.memory_space<vmem>>, vector<8x512xf32>
      tpu.vector_store %arg7[%c0_87, %c0_88], %164 {strides = array<i32>} : memref<8x512xf32, #tpu.memory_space<vmem>>, vector<8x512xf32>,
      %cst_89 = arith.constant 0.000000e+00 : f32
      %166 = vector.broadcast %cst_89 : f32 to vector<8x512xf32>
      %c0_90 = arith.constant 0 : index
      %c0_91 = arith.constant 0 : index
      %167 = vector.load %arg8[%c0_90, %c0_91] : memref<8x512xf32, #tpu.memory_space<vmem>>, vector<8x512xf32>
      tpu.vector_store %arg8[%c0_90, %c0_91], %166 {strides = array<i32>} : memref<8x512xf32, #tpu.memory_space<vmem>>, vector<8x512xf32>,
      %cst_92 = arith.constant 0.000000e+00 : bf16
      %168 = vector.broadcast %cst_92 : bf16 to vector<2x8x512xbf16>
      %c0_93 = arith.constant 0 : index
      %c0_94 = arith.constant 0 : index
      %c0_95 = arith.constant 0 : index
      %169 = vector.load %arg9[%c0_93, %c0_94, %c0_95] : memref<2x8x512xbf16, #tpu.memory_space<vmem>>, vector<2x8x512xbf16>
      tpu.vector_store %arg9[%c0_93, %c0_94, %c0_95], %168 {strides = array<i32>} : memref<2x8x512xbf16, #tpu.memory_space<vmem>>, vector<2x8x512xbf16>,
    } else {
    }
    %c0 = arith.constant 0 : index
    %c0_1 = arith.constant 0 : index
    %3 = vector.load %arg2[%c0, %c0_1] : memref<64x512xbf16, #tpu.memory_space<vmem>>, vector<64x512xbf16>
    %c0_2 = arith.constant 0 : index
    %c0_3 = arith.constant 0 : index
    %4 = vector.load %arg3[%c0_2, %c0_3] : memref<512x512xbf16, #tpu.memory_space<vmem>>, vector<512x512xbf16>
    %cst = arith.constant dense<0.000000e+00> : vector<64x512xf32>
    %5 = tpu.matmul %3, %4, %cst {dimension_numbers = #tpu.dot_dimension_numbers<[1], [0], [0], [1], [0, 0, 1, 1], [], []>} : vector<64x512xbf16>, vector<512x512xbf16>, vector<64x512xf32> -> vector<64x512xf32>
    %c0_4 = arith.constant 0 : index
    %c0_5 = arith.constant 0 : index
    %6 = vector.load %arg6[%c0_4, %c0_5] : memref<64x512xf32, #tpu.memory_space<vmem>>, vector<64x512xf32>
    tpu.vector_store %arg6[%c0_4, %c0_5], %5 {strides = array<i32>} : memref<64x512xf32, #tpu.memory_space<vmem>>, vector<64x512xf32>,
    %c0_6 = arith.constant 0 : index
    %c0_7 = arith.constant 0 : index
    %7 = vector.load %arg4[%c0_6, %c0_7] : memref<1x512xf32, #tpu.memory_space<vmem>>, vector<1x512xf32>
    %8 = vector.shape_cast %7 : vector<1x512xf32> to vector<1x512xf32>
    %9 = vector.broadcast %8 : vector<1x512xf32> to vector<8x512xf32>
    %cst_8 = arith.constant 1.000000e+00 : f32
    %10 = vector.broadcast %cst_8 : f32 to vector<8x512xf32>
    %11 = arith.cmpf oeq, %9, %10 : vector<8x512xf32>
    %cst_9 = arith.constant 2.000000e+00 : f32
    %12 = vector.broadcast %cst_9 : f32 to vector<8x512xf32>
    %13 = arith.cmpf oeq, %9, %12 : vector<8x512xf32>
    %c0_10 = arith.constant 0 : index
    %c0_11 = arith.constant 0 : index
    %c0_12 = arith.constant 0 : index
    %14 = vector.load %arg9[%c0_10, %c0_11, %c0_12] : memref<2x8x512xbf16, #tpu.memory_space<vmem>>, vector<1x8x512xbf16>
    %15 = vector.shape_cast %14 : vector<1x8x512xbf16> to vector<8x512xbf16>
    %c1 = arith.constant 1 : index
    %c0_13 = arith.constant 0 : index
    %c0_14 = arith.constant 0 : index
    %16 = vector.load %arg9[%c1, %c0_13, %c0_14] : memref<2x8x512xbf16, #tpu.memory_space<vmem>>, vector<1x8x512xbf16>
    %17 = vector.shape_cast %16 : vector<1x8x512xbf16> to vector<8x512xbf16>
    %c0_15 = arith.constant 0 : index
    %c0_16 = arith.constant 0 : index
    %18 = vector.load %arg7[%c0_15, %c0_16] : memref<8x512xf32, #tpu.memory_space<vmem>>, vector<8x512xf32>
    %c0_17 = arith.constant 0 : index
    %c0_18 = arith.constant 0 : index
    %19 = vector.load %arg8[%c0_17, %c0_18] : memref<8x512xf32, #tpu.memory_space<vmem>>, vector<8x512xf32>
    %c0_19 = arith.constant 0 : index
    %c0_20 = arith.constant 0 : index
    %20 = vector.load %arg6[%c0_19, %c0_20] : memref<64x512xf32, #tpu.memory_space<vmem>>, vector<8x512xf32>
    %cst_21 = arith.constant 7.500000e-01 : f32
    %21 = vector.broadcast %cst_21 : f32 to vector<8x512xf32>
    %22 = arith.mulf %18, %21 : vector<8x512xf32>
    %23 = arith.addf %22, %20 : vector<8x512xf32>
    %cst_22 = arith.constant 9.700000e-01 : f32
    %24 = vector.broadcast %cst_22 : f32 to vector<8x512xf32>
    %25 = arith.mulf %19, %24 : vector<8x512xf32>
    %26 = arith.addf %25, %23 : vector<8x512xf32>
    %cst_23 = arith.constant 1.250000e+00 : f32
    %27 = vector.broadcast %cst_23 : f32 to vector<8x512xf32>
    %28 = arith.cmpf oge, %26, %27 : vector<8x512xf32>
    %cst_24 = arith.constant 0.000000e+00 : f32
    %29 = vector.broadcast %cst_24 : f32 to vector<8x512xf32>
    %30 = arith.select %28, %29, %26 : vector<8x512xi1>, vector<8x512xf32>
    %31 = arith.extui %28 : vector<8x512xi1> to vector<8x512xi32>
    %32 = arith.sitofp %31 : vector<8x512xi32> to vector<8x512xf32>
    %33 = arith.truncf %32 : vector<8x512xf32> to vector<8x512xbf16>
    %34 = arith.select %13, %17, %33 : vector<8x512xi1>, vector<8x512xbf16>
    %35 = arith.select %11, %15, %34 : vector<8x512xi1>, vector<8x512xbf16>
    %c0_25 = arith.constant 0 : index
    %c0_26 = arith.constant 0 : index
    %36 = vector.load %arg5[%c0_25, %c0_26] : memref<64x512xbf16, #tpu.memory_space<vmem>>, vector<8x512xbf16>
    tpu.vector_store %arg5[%c0_25, %c0_26], %35 {strides = array<i32>} : memref<64x512xbf16, #tpu.memory_space<vmem>>, vector<8x512xbf16>,
    %c8 = arith.constant 8 : index
    %c0_27 = arith.constant 0 : index
    %37 = vector.load %arg6[%c8, %c0_27] : memref<64x512xf32, #tpu.memory_space<vmem>>, vector<8x512xf32>
    %cst_28 = arith.constant 7.500000e-01 : f32
    %38 = vector.broadcast %cst_28 : f32 to vector<8x512xf32>
    %39 = arith.mulf %23, %38 : vector<8x512xf32>
    %40 = arith.addf %39, %37 : vector<8x512xf32>
    %cst_29 = arith.constant 9.700000e-01 : f32
    %41 = vector.broadcast %cst_29 : f32 to vector<8x512xf32>
    %42 = arith.mulf %30, %41 : vector<8x512xf32>
    %43 = arith.addf %42, %40 : vector<8x512xf32>
    %cst_30 = arith.constant 1.250000e+00 : f32
    %44 = vector.broadcast %cst_30 : f32 to vector<8x512xf32>
    %45 = arith.cmpf oge, %43, %44 : vector<8x512xf32>
    %cst_31 = arith.constant 0.000000e+00 : f32
    %46 = vector.broadcast %cst_31 : f32 to vector<8x512xf32>
    %47 = arith.select %45, %46, %43 : vector<8x512xi1>, vector<8x512xf32>
    %48 = arith.extui %45 : vector<8x512xi1> to vector<8x512xi32>
    %49 = arith.sitofp %48 : vector<8x512xi32> to vector<8x512xf32>
    %50 = arith.truncf %49 : vector<8x512xf32> to vector<8x512xbf16>
    %51 = arith.select %13, %15, %50 : vector<8x512xi1>, vector<8x512xbf16>
    %52 = arith.select %11, %33, %51 : vector<8x512xi1>, vector<8x512xbf16>
    %c8_32 = arith.constant 8 : index
    %c0_33 = arith.constant 0 : index
    %53 = vector.load %arg5[%c8_32, %c0_33] : memref<64x512xbf16, #tpu.memory_space<vmem>>, vector<8x512xbf16>
    tpu.vector_store %arg5[%c8_32, %c0_33], %52 {strides = array<i32>} : memref<64x512xbf16, #tpu.memory_space<vmem>>, vector<8x512xbf16>,
    %c16 = arith.constant 16 : index
    %c0_34 = arith.constant 0 : index
    %54 = vector.load %arg6[%c16, %c0_34] : memref<64x512xf32, #tpu.memory_space<vmem>>, vector<8x512xf32>
    %cst_35 = arith.constant 7.500000e-01 : f32
    %55 = vector.broadcast %cst_35 : f32 to vector<8x512xf32>
    %56 = arith.mulf %40, %55 : vector<8x512xf32>
    %57 = arith.addf %56, %54 : vector<8x512xf32>
    %cst_36 = arith.constant 9.700000e-01 : f32
    %58 = vector.broadcast %cst_36 : f32 to vector<8x512xf32>
    %59 = arith.mulf %47, %58 : vector<8x512xf32>
    %60 = arith.addf %59, %57 : vector<8x512xf32>
    %cst_37 = arith.constant 1.250000e+00 : f32
    %61 = vector.broadcast %cst_37 : f32 to vector<8x512xf32>
    %62 = arith.cmpf oge, %60, %61 : vector<8x512xf32>
    %cst_38 = arith.constant 0.000000e+00 : f32
    %63 = vector.broadcast %cst_38 : f32 to vector<8x512xf32>
    %64 = arith.select %62, %63, %60 : vector<8x512xi1>, vector<8x512xf32>
    %65 = arith.extui %62 : vector<8x512xi1> to vector<8x512xi32>
    %66 = arith.sitofp %65 : vector<8x512xi32> to vector<8x512xf32>
    %67 = arith.truncf %66 : vector<8x512xf32> to vector<8x512xbf16>
    %68 = arith.select %13, %33, %67 : vector<8x512xi1>, vector<8x512xbf16>
    %69 = arith.select %11, %50, %68 : vector<8x512xi1>, vector<8x512xbf16>
    %c16_39 = arith.constant 16 : index
    %c0_40 = arith.constant 0 : index
    %70 = vector.load %arg5[%c16_39, %c0_40] : memref<64x512xbf16, #tpu.memory_space<vmem>>, vector<8x512xbf16>
    tpu.vector_store %arg5[%c16_39, %c0_40], %69 {strides = array<i32>} : memref<64x512xbf16, #tpu.memory_space<vmem>>, vector<8x512xbf16>,
    %c24 = arith.constant 24 : index
    %c0_41 = arith.constant 0 : index
    %71 = vector.load %arg6[%c24, %c0_41] : memref<64x512xf32, #tpu.memory_space<vmem>>, vector<8x512xf32>
    %cst_42 = arith.constant 7.500000e-01 : f32
    %72 = vector.broadcast %cst_42 : f32 to vector<8x512xf32>
    %73 = arith.mulf %57, %72 : vector<8x512xf32>
    %74 = arith.addf %73, %71 : vector<8x512xf32>
    %cst_43 = arith.constant 9.700000e-01 : f32
    %75 = vector.broadcast %cst_43 : f32 to vector<8x512xf32>
    %76 = arith.mulf %64, %75 : vector<8x512xf32>
    %77 = arith.addf %76, %74 : vector<8x512xf32>
    %cst_44 = arith.constant 1.250000e+00 : f32
    %78 = vector.broadcast %cst_44 : f32 to vector<8x512xf32>
    %79 = arith.cmpf oge, %77, %78 : vector<8x512xf32>
    %cst_45 = arith.constant 0.000000e+00 : f32
    %80 = vector.broadcast %cst_45 : f32 to vector<8x512xf32>
    %81 = arith.select %79, %80, %77 : vector<8x512xi1>, vector<8x512xf32>
    %82 = arith.extui %79 : vector<8x512xi1> to vector<8x512xi32>
    %83 = arith.sitofp %82 : vector<8x512xi32> to vector<8x512xf32>
    %84 = arith.truncf %83 : vector<8x512xf32> to vector<8x512xbf16>
    %85 = arith.select %13, %50, %84 : vector<8x512xi1>, vector<8x512xbf16>
    %86 = arith.select %11, %67, %85 : vector<8x512xi1>, vector<8x512xbf16>
    %c24_46 = arith.constant 24 : index
    %c0_47 = arith.constant 0 : index
    %87 = vector.load %arg5[%c24_46, %c0_47] : memref<64x512xbf16, #tpu.memory_space<vmem>>, vector<8x512xbf16>
    tpu.vector_store %arg5[%c24_46, %c0_47], %86 {strides = array<i32>} : memref<64x512xbf16, #tpu.memory_space<vmem>>, vector<8x512xbf16>,
    %c32 = arith.constant 32 : index
    %c0_48 = arith.constant 0 : index
    %88 = vector.load %arg6[%c32, %c0_48] : memref<64x512xf32, #tpu.memory_space<vmem>>, vector<8x512xf32>
    %cst_49 = arith.constant 7.500000e-01 : f32
    %89 = vector.broadcast %cst_49 : f32 to vector<8x512xf32>
    %90 = arith.mulf %74, %89 : vector<8x512xf32>
    %91 = arith.addf %90, %88 : vector<8x512xf32>
    %cst_50 = arith.constant 9.700000e-01 : f32
    %92 = vector.broadcast %cst_50 : f32 to vector<8x512xf32>
    %93 = arith.mulf %81, %92 : vector<8x512xf32>
    %94 = arith.addf %93, %91 : vector<8x512xf32>
    %cst_51 = arith.constant 1.250000e+00 : f32
    %95 = vector.broadcast %cst_51 : f32 to vector<8x512xf32>
    %96 = arith.cmpf oge, %94, %95 : vector<8x512xf32>
    %cst_52 = arith.constant 0.000000e+00 : f32
    %97 = vector.broadcast %cst_52 : f32 to vector<8x512xf32>
    %98 = arith.select %96, %97, %94 : vector<8x512xi1>, vector<8x512xf32>
    %99 = arith.extui %96 : vector<8x512xi1> to vector<8x512xi32>
    %100 = arith.sitofp %99 : vector<8x512xi32> to vector<8x512xf32>
    %101 = arith.truncf %100 : vector<8x512xf32> to vector<8x512xbf16>
    %102 = arith.select %13, %67, %101 : vector<8x512xi1>, vector<8x512xbf16>
    %103 = arith.select %11, %84, %102 : vector<8x512xi1>, vector<8x512xbf16>
    %c32_53 = arith.constant 32 : index
    %c0_54 = arith.constant 0 : index
    %104 = vector.load %arg5[%c32_53, %c0_54] : memref<64x512xbf16, #tpu.memory_space<vmem>>, vector<8x512xbf16>
    tpu.vector_store %arg5[%c32_53, %c0_54], %103 {strides = array<i32>} : memref<64x512xbf16, #tpu.memory_space<vmem>>, vector<8x512xbf16>,
    %c40 = arith.constant 40 : index
    %c0_55 = arith.constant 0 : index
    %105 = vector.load %arg6[%c40, %c0_55] : memref<64x512xf32, #tpu.memory_space<vmem>>, vector<8x512xf32>
    %cst_56 = arith.constant 7.500000e-01 : f32
    %106 = vector.broadcast %cst_56 : f32 to vector<8x512xf32>
    %107 = arith.mulf %91, %106 : vector<8x512xf32>
    %108 = arith.addf %107, %105 : vector<8x512xf32>
    %cst_57 = arith.constant 9.700000e-01 : f32
    %109 = vector.broadcast %cst_57 : f32 to vector<8x512xf32>
    %110 = arith.mulf %98, %109 : vector<8x512xf32>
    %111 = arith.addf %110, %108 : vector<8x512xf32>
    %cst_58 = arith.constant 1.250000e+00 : f32
    %112 = vector.broadcast %cst_58 : f32 to vector<8x512xf32>
    %113 = arith.cmpf oge, %111, %112 : vector<8x512xf32>
    %cst_59 = arith.constant 0.000000e+00 : f32
    %114 = vector.broadcast %cst_59 : f32 to vector<8x512xf32>
    %115 = arith.select %113, %114, %111 : vector<8x512xi1>, vector<8x512xf32>
    %116 = arith.extui %113 : vector<8x512xi1> to vector<8x512xi32>
    %117 = arith.sitofp %116 : vector<8x512xi32> to vector<8x512xf32>
    %118 = arith.truncf %117 : vector<8x512xf32> to vector<8x512xbf16>
    %119 = arith.select %13, %84, %118 : vector<8x512xi1>, vector<8x512xbf16>
    %120 = arith.select %11, %101, %119 : vector<8x512xi1>, vector<8x512xbf16>
    %c40_60 = arith.constant 40 : index
    %c0_61 = arith.constant 0 : index
    %121 = vector.load %arg5[%c40_60, %c0_61] : memref<64x512xbf16, #tpu.memory_space<vmem>>, vector<8x512xbf16>
    tpu.vector_store %arg5[%c40_60, %c0_61], %120 {strides = array<i32>} : memref<64x512xbf16, #tpu.memory_space<vmem>>, vector<8x512xbf16>,
    %c48 = arith.constant 48 : index
    %c0_62 = arith.constant 0 : index
    %122 = vector.load %arg6[%c48, %c0_62] : memref<64x512xf32, #tpu.memory_space<vmem>>, vector<8x512xf32>
    %cst_63 = arith.constant 7.500000e-01 : f32
    %123 = vector.broadcast %cst_63 : f32 to vector<8x512xf32>
    %124 = arith.mulf %108, %123 : vector<8x512xf32>
    %125 = arith.addf %124, %122 : vector<8x512xf32>
    %cst_64 = arith.constant 9.700000e-01 : f32
    %126 = vector.broadcast %cst_64 : f32 to vector<8x512xf32>
    %127 = arith.mulf %115, %126 : vector<8x512xf32>
    %128 = arith.addf %127, %125 : vector<8x512xf32>
    %cst_65 = arith.constant 1.250000e+00 : f32
    %129 = vector.broadcast %cst_65 : f32 to vector<8x512xf32>
    %130 = arith.cmpf oge, %128, %129 : vector<8x512xf32>
    %cst_66 = arith.constant 0.000000e+00 : f32
    %131 = vector.broadcast %cst_66 : f32 to vector<8x512xf32>
    %132 = arith.select %130, %131, %128 : vector<8x512xi1>, vector<8x512xf32>
    %133 = arith.extui %130 : vector<8x512xi1> to vector<8x512xi32>
    %134 = arith.sitofp %133 : vector<8x512xi32> to vector<8x512xf32>
    %135 = arith.truncf %134 : vector<8x512xf32> to vector<8x512xbf16>
    %136 = arith.select %13, %101, %135 : vector<8x512xi1>, vector<8x512xbf16>
    %137 = arith.select %11, %118, %136 : vector<8x512xi1>, vector<8x512xbf16>
    %c48_67 = arith.constant 48 : index
    %c0_68 = arith.constant 0 : index
    %138 = vector.load %arg5[%c48_67, %c0_68] : memref<64x512xbf16, #tpu.memory_space<vmem>>, vector<8x512xbf16>
    tpu.vector_store %arg5[%c48_67, %c0_68], %137 {strides = array<i32>} : memref<64x512xbf16, #tpu.memory_space<vmem>>, vector<8x512xbf16>,
    %c56 = arith.constant 56 : index
    %c0_69 = arith.constant 0 : index
    %139 = vector.load %arg6[%c56, %c0_69] : memref<64x512xf32, #tpu.memory_space<vmem>>, vector<8x512xf32>
    %cst_70 = arith.constant 7.500000e-01 : f32
    %140 = vector.broadcast %cst_70 : f32 to vector<8x512xf32>
    %141 = arith.mulf %125, %140 : vector<8x512xf32>
    %142 = arith.addf %141, %139 : vector<8x512xf32>
    %cst_71 = arith.constant 9.700000e-01 : f32
    %143 = vector.broadcast %cst_71 : f32 to vector<8x512xf32>
    %144 = arith.mulf %132, %143 : vector<8x512xf32>
    %145 = arith.addf %144, %142 : vector<8x512xf32>
    %cst_72 = arith.constant 1.250000e+00 : f32
    %146 = vector.broadcast %cst_72 : f32 to vector<8x512xf32>
    %147 = arith.cmpf oge, %145, %146 : vector<8x512xf32>
    %cst_73 = arith.constant 0.000000e+00 : f32
    %148 = vector.broadcast %cst_73 : f32 to vector<8x512xf32>
    %149 = arith.select %147, %148, %145 : vector<8x512xi1>, vector<8x512xf32>
    %150 = arith.extui %147 : vector<8x512xi1> to vector<8x512xi32>
    %151 = arith.sitofp %150 : vector<8x512xi32> to vector<8x512xf32>
    %152 = arith.truncf %151 : vector<8x512xf32> to vector<8x512xbf16>
    %153 = arith.select %13, %118, %152 : vector<8x512xi1>, vector<8x512xbf16>
    %154 = arith.select %11, %135, %153 : vector<8x512xi1>, vector<8x512xbf16>
    %c56_74 = arith.constant 56 : index
    %c0_75 = arith.constant 0 : index
    %155 = vector.load %arg5[%c56_74, %c0_75] : memref<64x512xbf16, #tpu.memory_space<vmem>>, vector<8x512xbf16>
    tpu.vector_store %arg5[%c56_74, %c0_75], %154 {strides = array<i32>} : memref<64x512xbf16, #tpu.memory_space<vmem>>, vector<8x512xbf16>,
    %c0_76 = arith.constant 0 : index
    %c0_77 = arith.constant 0 : index
    %156 = vector.load %arg7[%c0_76, %c0_77] : memref<8x512xf32, #tpu.memory_space<vmem>>, vector<8x512xf32>
    tpu.vector_store %arg7[%c0_76, %c0_77], %142 {strides = array<i32>} : memref<8x512xf32, #tpu.memory_space<vmem>>, vector<8x512xf32>,
    %c0_78 = arith.constant 0 : index
    %c0_79 = arith.constant 0 : index
    %157 = vector.load %arg8[%c0_78, %c0_79] : memref<8x512xf32, #tpu.memory_space<vmem>>, vector<8x512xf32>
    tpu.vector_store %arg8[%c0_78, %c0_79], %149 {strides = array<i32>} : memref<8x512xf32, #tpu.memory_space<vmem>>, vector<8x512xf32>,
    %c0_80 = arith.constant 0 : index
    %c0_81 = arith.constant 0 : index
    %c0_82 = arith.constant 0 : index
    %158 = vector.load %arg9[%c0_80, %c0_81, %c0_82] : memref<2x8x512xbf16, #tpu.memory_space<vmem>>, vector<1x8x512xbf16>
    %159 = vector.shape_cast %158 : vector<1x8x512xbf16> to vector<8x512xbf16>
    %160 = vector.shape_cast %152 : vector<8x512xbf16> to vector<1x8x512xbf16>
    tpu.vector_store %arg9[%c0_80, %c0_81, %c0_82], %160 {strides = array<i32>} : memref<2x8x512xbf16, #tpu.memory_space<vmem>>, vector<1x8x512xbf16>,
    %c1_83 = arith.constant 1 : index
    %c0_84 = arith.constant 0 : index
    %c0_85 = arith.constant 0 : index
    %161 = vector.load %arg9[%c1_83, %c0_84, %c0_85] : memref<2x8x512xbf16, #tpu.memory_space<vmem>>, vector<1x8x512xbf16>
    %162 = vector.shape_cast %161 : vector<1x8x512xbf16> to vector<8x512xbf16>
    %163 = vector.shape_cast %135 : vector<8x512xbf16> to vector<1x8x512xbf16>
    tpu.vector_store %arg9[%c1_83, %c0_84, %c0_85], %163 {strides = array<i32>} : memref<2x8x512xbf16, #tpu.memory_space<vmem>>, vector<1x8x512xbf16>,
    return
  }
  func.func @transform_0(%arg0: i32, %arg1: i32) -> (i32, i32) {
    %c0_i32 = arith.constant 0 : i32
    %c0_i32_0 = arith.constant 0 : i32
    return %arg1, %c0_i32 : i32, i32
  }
  func.func @transform_1(%arg0: i32, %arg1: i32) -> (i32, i32) {
    %c0_i32 = arith.constant 0 : i32
    %c0_i32_0 = arith.constant 0 : i32
    return %c0_i32, %arg0 : i32, i32
  }
  func.func @transform_2(%arg0: i32, %arg1: i32) -> (i32, i32) {
    %c0_i32 = arith.constant 0 : i32
    %c0_i32_0 = arith.constant 0 : i32
    return %c0_i32, %arg0 : i32, i32
  }
  func.func @transform_3(%arg0: i32, %arg1: i32) -> (i32, i32) {
    %c0_i32 = arith.constant 0 : i32
    return %arg1, %arg0 : i32, i32
  }
}

</mosaic_0001>

<bundles_post_ra>
// kernel: a_call__.5
= control target key start
LH: loop header
LB: loop body
LE: loop exit
PB: predicated region body
PF: predicated region fallthrough
CT: control target
= control target key end

     0   :  { %s1078_s1 = inlined_call_operand.vmem [shape: bf16[512,128], index: 1, kind: input, shape index: {}]   ;;  %s1079_s0 = inlined_call_operand.vmem [shape: bf16[64,512], index: 0, kind: input, shape index: {}]   ;;  %s1080_s2 = inlined_call_operand.vmem [shape: bf16[64,128], index: 2, kind: output, shape index: {}]  }
   0x1   :  { %v812_v0 = vld [vmem:[%s1078_s1 + $0x38] sm:$0xff]  ;;  %v811_v4 = vld [vmem:[%s1078_s1 + $0x30] sm:$0xff]  ;;  %v810_v8 = vld [vmem:[%s1078_s1 + $0x28] sm:$0xff] }
   0x2   :  { %v820_v1 = vld [vmem:[%s1078_s1 + $0x78] sm:$0xff]  ;;  %369 = vmatpush.bf16.msra.mxu0 %v812_v0  ;;  %v819_v5 = vld [vmem:[%s1078_s1 + $0x70] sm:$0xff]  ;;  %v818_v9 = vld [vmem:[%s1078_s1 + $0x68] sm:$0xff] }
   0x3   :  { %v828_v2 = vld [vmem:[%s1078_s1 + $0xb8] sm:$0xff]  ;;  %398 = vmatpush.bf16.msra.mxu1 %v820_v1  ;;  %v827_v6 = vld [vmem:[%s1078_s1 + $0xb0] sm:$0xff]  ;;  %v826_v10 = vld [vmem:[%s1078_s1 + $0xa8] sm:$0xff] }
   0x4   :  { %v836_v3 = vld [vmem:[%s1078_s1 + $0xf8] sm:$0xff]  ;;  %427 = vmatpush.bf16.msra.mxu2 %v828_v2  ;;  %v835_v7 = vld [vmem:[%s1078_s1 + $0xf0] sm:$0xff]  ;;  %v834_v11 = vld [vmem:[%s1078_s1 + $0xe8] sm:$0xff] }
   0x5   :  { %456 = vmatpush.bf16.msra.mxu3 %v836_v3  ;;  %v809_v12 = vld [vmem:[%s1078_s1 + $0x20] sm:$0xff]  ;;  %v808_v16 = vld [vmem:[%s1078_s1 + $0x18] sm:$0xff]  ;;  %v807_v20 = vld [vmem:[%s1078_s1 + $0x10] sm:$0xff] }
   0x6   :  { %370 = vmatpush.bf16.msra.mxu0 %v811_v4  ;;  %v817_v13 = vld [vmem:[%s1078_s1 + $0x60] sm:$0xff]  ;;  %v816_v17 = vld [vmem:[%s1078_s1 + $0x58] sm:$0xff]  ;;  %v815_v21 = vld [vmem:[%s1078_s1 + $0x50] sm:$0xff] }
   0x7   :  { %399 = vmatpush.bf16.msra.mxu1 %v819_v5  ;;  %v825_v14 = vld [vmem:[%s1078_s1 + $0xa0] sm:$0xff]  ;;  %v824_v18 = vld [vmem:[%s1078_s1 + $0x98] sm:$0xff]  ;;  %v823_v22 = vld [vmem:[%s1078_s1 + $0x90] sm:$0xff] }
   0x8   :  { %428 = vmatpush.bf16.msra.mxu2 %v827_v6  ;;  %v833_v15 = vld [vmem:[%s1078_s1 + $0xe0] sm:$0xff]  ;;  %v832_v19 = vld [vmem:[%s1078_s1 + $0xd8] sm:$0xff]  ;;  %v831_v23 = vld [vmem:[%s1078_s1 + $0xd0] sm:$0xff] }
   0x9   :  { %457 = vmatpush.bf16.msra.mxu3 %v835_v7  ;;  %v806_v24 = vld [vmem:[%s1078_s1 + $0x8] sm:$0xff]  ;;  %v805_v28 = vld [vmem:[%s1078_s1] sm:$0xff]  ;;  %v791_v33 = vld [vmem:[%s1079_s0 + $0xc] sm:$0xf0] }
   0xa   :  { %371 = vmatpush.bf16.msra.mxu0 %v810_v8  ;;  %v814_v25 = vld [vmem:[%s1078_s1 + $0x48] sm:$0xff]  ;;  %v813_v29 = vld [vmem:[%s1078_s1 + $0x40] sm:$0xff]  ;;  %v593_v35 = vld [vmem:[%s1079_s0 + $0x10] sm:$0xf0] }
   0xb   :  { %400 = vmatpush.bf16.msra.mxu1 %v818_v9  ;;  %v822_v26 = vld [vmem:[%s1078_s1 + $0x88] sm:$0xff]  ;;  %v821_v30 = vld [vmem:[%s1078_s1 + $0x80] sm:$0xff]  ;;  %v792_v37 = vld [vmem:[%s1079_s0 + $0x14] sm:$0xf0] }
   0xc   :  { %429 = vmatpush.bf16.msra.mxu2 %v826_v10  ;;  %v830_v27 = vld [vmem:[%s1078_s1 + $0xc8] sm:$0xff]  ;;  %v829_v31 = vld [vmem:[%s1078_s1 + $0xc0] sm:$0xff]  ;;  %v601_v39 = vld [vmem:[%s1079_s0 + $0x18] sm:$0xf0] }
   0xd   :  { %458 = vmatpush.bf16.msra.mxu3 %v834_v11  ;;  %v591_v32 = vld [vmem:[%s1079_s0] sm:$0xf]  ;;  %v789_v34 = vld [vmem:[%s1079_s0 + $0x4] sm:$0xf]  ;;  %v599_v36 = vld [vmem:[%s1079_s0 + $0x8] sm:$0xf] }
   0xe   :  { %372 = vmatpush.bf16.msra.mxu0 %v809_v12  ;;  %v790_v38 = vld [vmem:[%s1079_s0 + $0xc] sm:$0xf]  ;;  %v592_v40 = vor.u32 %v791_v33, %v591_v32  ;;  %v596_v41 = vor.u32 %v789_v34, %v593_v35  ;;  %v600_v42 = vor.u32 %v792_v37, %v599_v36  ;;  %v607_v44 = vld [vmem:[%s1079_s0 + $0x20] sm:$0xf]  ;;  %v795_v45 = vld [vmem:[%s1079_s0 + $0x2c] sm:$0xf0] }
   0xf   :  { %401 = vmatpush.bf16.msra.mxu1 %v817_v13  ;;  %v604_v43 = vor.u32 %v790_v38, %v601_v39  ;;  %v793_v46 = vld [vmem:[%s1079_s0 + $0x24] sm:$0xf]  ;;  %v609_v47 = vld [vmem:[%s1079_s0 + $0x30] sm:$0xf0]  ;;  %v615_v48 = vld [vmem:[%s1079_s0 + $0x28] sm:$0xf]  ;;  %v608_v52 = vor.u32 %v795_v45, %v607_v44 }
  0x10   :  { %430 = vmatpush.bf16.msra.mxu2 %v825_v14  ;;  %v796_v49 = vld [vmem:[%s1079_s0 + $0x34] sm:$0xf0]  ;;  %v794_v50 = vld [vmem:[%s1079_s0 + $0x2c] sm:$0xf]  ;;  %v617_v51 = vld [vmem:[%s1079_s0 + $0x38] sm:$0xf0]  ;;  %v612_v53 = vor.u32 %v793_v46, %v609_v47 }
  0x11   :  { %459 = vmatpush.bf16.msra.mxu3 %v833_v15  ;;  %v616_v54 = vor.u32 %v796_v49, %v615_v48  ;;  %v620_v55 = vor.u32 %v794_v50, %v617_v51  ;;  %v623_v56 = vld [vmem:[%s1079_s0 + $0x40] sm:$0xf]  ;;  %v799_v57 = vld [vmem:[%s1079_s0 + $0x4c] sm:$0xf0]  ;;  %v797_v58 = vld [vmem:[%s1079_s0 + $0x44] sm:$0xf] }
  0x12   :  { %373 = vmatpush.bf16.msra.mxu0 %v808_v16  ;;  %v625_v59 = vld [vmem:[%s1079_s0 + $0x50] sm:$0xf0]  ;;  %v631_v60 = vld [vmem:[%s1079_s0 + $0x48] sm:$0xf]  ;;  %v800_v61 = vld [vmem:[%s1079_s0 + $0x54] sm:$0xf0]  ;;  %v624_v0 = vor.u32 %v799_v57, %v623_v56 }
  0x13   :  { %402 = vmatpush.bf16.msra.mxu1 %v816_v17  ;;  %v798_v62 = vld [vmem:[%s1079_s0 + $0x4c] sm:$0xf]  ;;  %v633_v63 = vld [vmem:[%s1079_s0 + $0x58] sm:$0xf0]  ;;  %v628_v1 = vor.u32 %v797_v58, %v625_v59  ;;  %v632_v2 = vor.u32 %v800_v61, %v631_v60  ;;  %v639_v4 = vld [vmem:[%s1079_s0 + $0x60] sm:$0xf] }
  0x14   :  { %431 = vmatpush.bf16.msra.mxu2 %v824_v18  ;;  %v636_v3 = vor.u32 %v798_v62, %v633_v63  ;;  %v803_v5 = vld [vmem:[%s1079_s0 + $0x6c] sm:$0xf0]  ;;  %v801_v6 = vld [vmem:[%s1079_s0 + $0x64] sm:$0xf]  ;;  %v641_v7 = vld [vmem:[%s1079_s0 + $0x70] sm:$0xf0] }
  0x15   :  { %460 = vmatpush.bf16.msra.mxu3 %v832_v19  ;;  %v647_v8 = vld [vmem:[%s1079_s0 + $0x68] sm:$0xf]  ;;  %v804_v9 = vld [vmem:[%s1079_s0 + $0x74] sm:$0xf0]  ;;  %v802_v10 = vld [vmem:[%s1079_s0 + $0x6c] sm:$0xf]  ;;  %v640_v12 = vor.u32 %v803_v5, %v639_v4  ;;  %v644_v13 = vor.u32 %v801_v6, %v641_v7 }
  0x16   :  { %374 = vmatpush.bf16.msra.mxu0 %v807_v20  ;;  %v649_v11 = vld [vmem:[%s1079_s0 + $0x78] sm:$0xf0]  ;;  %v648_v14 = vor.u32 %v804_v9, %v647_v8 }
  0x17   :  { %403 = vmatpush.bf16.msra.mxu1 %v815_v21  ;;  %v652_v15 = vor.u32 %v802_v10, %v649_v11 }
  0x18   :  { %432 = vmatpush.bf16.msra.mxu2 %v823_v22 }
  0x19   :  { %461 = vmatpush.bf16.msra.mxu3 %v831_v23 }
  0x1a   :  { %375 = vmatpush.bf16.msra.mxu0 %v806_v24 }
  0x1b   :  { %404 = vmatpush.bf16.msra.mxu1 %v814_v25  ;;  %v838_v25 = vmov 0.0  }
  0x1c   :  { %433 = vmatpush.bf16.msra.mxu2 %v822_v26 }
  0x1d   :  { %462 = vmatpush.bf16.msra.mxu3 %v830_v27 }
  0x1e   :  { %376 = vmatpush.bf16.msra.mxu0 %v805_v28 }
  0x1f   :  { %405 = vmatpush.bf16.msra.mxu1 %v813_v29 }
  0x20   :  { %434 = vmatpush.bf16.msra.mxu2 %v821_v30 }
  0x21   :  { %463 = vmatpush.bf16.msra.mxu3 %v829_v31  ;;  %377 = vmatmul.bf16.vlgmr.msra.gmra.mxu0 %v592_v40 }
  0x22   :  { %406 = vmatmul.bf16.vlgmr.msra.gmra.mxu1 %v596_v41 }
  0x23   :  { %435 = vmatmul.bf16.vlgmr.msra.gmra.mxu2 %v600_v42 }
  0x24   :  { %464 = vmatmul.bf16.vlgmr.msra.gmra.mxu3 %v604_v43 }
  0x31   :  { %382 = vmatmul.bf16.gmra.mxu0 %v608_v52 }
  0x32   :  { %411 = vmatmul.bf16.gmra.mxu1 %v612_v53 }
  0x33   :  { %440 = vmatmul.bf16.gmra.mxu2 %v616_v54 }
  0x34   :  { %469 = vmatmul.bf16.gmra.mxu3 %v620_v55 }
  0x41   :  { %387 = vmatmul.bf16.gmra.mxu0 %v624_v0 }
  0x42   :  { %416 = vmatmul.bf16.gmra.mxu1 %v628_v1 }
  0x43   :  { %445 = vmatmul.bf16.gmra.mxu2 %v632_v2 }
  0x44   :  { %474 = vmatmul.bf16.gmra.mxu3 %v636_v3 }
  0x51   :  { %392 = vmatmul.bf16.gmra.mxu0 %v640_v12 }
  0x52   :  { %421 = vmatmul.bf16.gmra.mxu1 %v644_v13 }
  0x53   :  { %450 = vmatmul.bf16.gmra.mxu2 %v648_v14 }
  0x54   :  { %479 = vmatmul.bf16.gmra.mxu3 %v652_v15 }
  0x9e   :  { %v378_v16 = vpop.f32.mrf.mxu0 }
  0x9f   :  { %v407_v17 = vpop.f32.mrf.mxu1 }
  0xa0   :  { %v408_v18 = vadd.f32 %v407_v17, %v378_v16 }
  0xa6   :  { %v436_v19 = vpop.f32.mrf.mxu2  ;;  %v380_v22 = vpop.f32.mrf.mxu0 }
  0xa7   :  { %v465_v20 = vpop.f32.mrf.mxu3  ;;  %v437_v21 = vadd.f32 %v436_v19, %v408_v18  ;;  %v409_v23 = vpop.f32.mrf.mxu1 }
  0xa8   :  { %v410_v28 = vadd.f32 %v409_v23, %v380_v22 }
  0xa9   :  { %v466_v24 = vadd.f32 %v465_v20, %v437_v21 }
  0xab   :  { %vm500_vm0 = vcmp.ge.f32.partialorder %v466_v24, 1.25  ;;  %v507_v36 = vmul.f32 0.75, %v466_v24 }
  0xac   :  { %v781_v26 = vsel %vm500_vm0, 1.0, %v838_v25  ;;  %v501_v34 = vsel %vm500_vm0, 0.0, %v466_v24 }
  0xad   :  { %v504_v27 = vpack.c.bf16 %v781_v26, %v781_v26  ;;  %v509_v37 = vmul.f32 0.97, %v501_v34 }
  0xae   :  { %v438_v29 = vpop.f32.mrf.mxu2  ;;  %v383_v32 = vpop.f32.mrf.mxu0 }
  0xaf   :  { %v467_v30 = vpop.f32.mrf.mxu3  ;;  %505 = vst [vmem:[%s1080_s2] sm:$0xf] %v504_v27  ;;  %v439_v31 = vadd.f32 %v438_v29, %v410_v28  ;;  %v412_v33 = vpop.f32.mrf.mxu1 }
  0xb0   :  { %v413_v39 = vadd.f32 %v412_v33, %v383_v32 }
  0xb1   :  { %v468_v35 = vadd.f32 %v467_v30, %v439_v31 }
  0xb3   :  { %v508_v38 = vadd.f32 %v507_v36, %v468_v35 }
  0xb5   :  { %v510_v40 = vadd.f32 %v509_v37, %v508_v38  ;;  %v518_v50 = vmul.f32 0.75, %v508_v38 }
  0xb6   :  { %v441_v41 = vpop.f32.mrf.mxu2  ;;  %v385_v44 = vpop.f32.mrf.mxu0 }
  0xb7   :  { %v470_v42 = vpop.f32.mrf.mxu3  ;;  %vm511_vm1 = vcmp.ge.f32.partialorder %v510_v40, 1.25  ;;  %v442_v43 = vadd.f32 %v441_v41, %v413_v39  ;;  %v414_v45 = vpop.f32.mrf.mxu1 }
  0xb8   :  { %v512_v46 = vsel %vm511_vm1, 0.0, %v510_v40  ;;  %v782_v47 = vsel %vm511_vm1, 1.0, %v838_v25  ;;  %v415_v54 = vadd.f32 %v414_v45, %v385_v44 }
  0xb9   :  { %v515_v48 = vpack.c.bf16 %v782_v47, %v782_v47  ;;  %v471_v49 = vadd.f32 %v470_v42, %v442_v43  ;;  %v520_v52 = vmul.f32 0.97, %v512_v46 }
  0xbb   :  { %516 = vst [vmem:[%s1080_s2 + $0x4] sm:$0xf] %v515_v48  ;;  %v519_v51 = vadd.f32 %v518_v50, %v471_v49 }
  0xbd   :  { %v521_v53 = vadd.f32 %v520_v52, %v519_v51  ;;  %v529_v0 = vmul.f32 0.75, %v519_v51 }
  0xbe   :  { %v443_v55 = vpop.f32.mrf.mxu2  ;;  %v388_v58 = vpop.f32.mrf.mxu0 }
  0xbf   :  { %v472_v56 = vpop.f32.mrf.mxu3  ;;  %vm522_vm2 = vcmp.ge.f32.partialorder %v521_v53, 1.25  ;;  %v444_v57 = vadd.f32 %v443_v55, %v415_v54  ;;  %v417_v59 = vpop.f32.mrf.mxu1 }
  0xc0   :  { %v523_v60 = vsel %vm522_vm2, 0.0, %v521_v53  ;;  %v783_v61 = vsel %vm522_vm2, 1.0, %v838_v25  ;;  %v418_v3 = vadd.f32 %v417_v59, %v388_v58 }
  0xc1   :  { %v526_v62 = vpack.c.bf16 %v783_v61, %v783_v61  ;;  %v473_v63 = vadd.f32 %v472_v56, %v444_v57  ;;  %v531_v2 = vmul.f32 0.97, %v523_v60 }
  0xc3   :  { %527 = vst [vmem:[%s1080_s2 + $0x8] sm:$0xf] %v526_v62  ;;  %v530_v1 = vadd.f32 %v529_v0, %v473_v63 }
  0xc5   :  { %v532_v4 = vadd.f32 %v531_v2, %v530_v1  ;;  %v540_v14 = vmul.f32 0.75, %v530_v1 }
  0xc6   :  { %v446_v5 = vpop.f32.mrf.mxu2  ;;  %v390_v8 = vpop.f32.mrf.mxu0 }
  0xc7   :  { %v475_v6 = vpop.f32.mrf.mxu3  ;;  %vm533_vm3 = vcmp.ge.f32.partialorder %v532_v4, 1.25  ;;  %v447_v7 = vadd.f32 %v446_v5, %v418_v3  ;;  %v419_v9 = vpop.f32.mrf.mxu1 }
  0xc8   :  { %v534_v10 = vsel %vm533_vm3, 0.0, %v532_v4  ;;  %v784_v11 = vsel %vm533_vm3, 1.0, %v838_v25  ;;  %v420_v18 = vadd.f32 %v419_v9, %v390_v8 }
  0xc9   :  { %v537_v12 = vpack.c.bf16 %v784_v11, %v784_v11  ;;  %v476_v13 = vadd.f32 %v475_v6, %v447_v7  ;;  %v542_v16 = vmul.f32 0.97, %v534_v10 }
  0xcb   :  { %538 = vst [vmem:[%s1080_s2 + $0xc] sm:$0xf] %v537_v12  ;;  %v541_v15 = vadd.f32 %v540_v14, %v476_v13 }
  0xcd   :  { %v543_v17 = vadd.f32 %v542_v16, %v541_v15  ;;  %v551_v29 = vmul.f32 0.75, %v541_v15 }
  0xce   :  { %v448_v19 = vpop.f32.mrf.mxu2  ;;  %v393_v24 = vpop.f32.mrf.mxu0 }
  0xcf   :  { %v477_v20 = vpop.f32.mrf.mxu3  ;;  %vm544_vm4 = vcmp.ge.f32.partialorder %v543_v17, 1.25  ;;  %v449_v21 = vadd.f32 %v448_v19, %v420_v18  ;;  %v422_v26 = vpop.f32.mrf.mxu1 }
  0xd0   :  { %v545_v22 = vsel %vm544_vm4, 0.0, %v543_v17  ;;  %v785_v23 = vsel %vm544_vm4, 1.0, %v838_v25  ;;  %v423_v32 = vadd.f32 %v422_v26, %v393_v24 }
  0xd1   :  { %v548_v27 = vpack.c.bf16 %v785_v23, %v785_v23  ;;  %v478_v28 = vadd.f32 %v477_v20, %v449_v21  ;;  %v553_v31 = vmul.f32 0.97, %v545_v22 }
  0xd3   :  { %549 = vst [vmem:[%s1080_s2 + $0x10] sm:$0xf] %v548_v27  ;;  %v552_v30 = vadd.f32 %v551_v29, %v478_v28 }
  0xd5   :  { %v554_v33 = vadd.f32 %v553_v31, %v552_v30  ;;  %v562_v41 = vmul.f32 0.75, %v552_v30 }
  0xd6   :  { %v451_v34 = vpop.f32.mrf.mxu2  ;;  %v395_v42 = vpop.f32.mrf.mxu0 }
  0xd7   :  { %v480_v35 = vpop.f32.mrf.mxu3  ;;  %vm555_vm5 = vcmp.ge.f32.partialorder %v554_v33, 1.25  ;;  %v452_v36 = vadd.f32 %v451_v34, %v423_v32  ;;  %v424_v43 = vpop.f32.mrf.mxu1 }
  0xd8   :  { %v556_v37 = vsel %vm555_vm5, 0.0, %v554_v33  ;;  %v786_v38 = vsel %vm555_vm5, 1.0, %v838_v25  ;;  %v425_v47 = vadd.f32 %v424_v43, %v395_v42 }
  0xd9   :  { %v559_v39 = vpack.c.bf16 %v786_v38, %v786_v38  ;;  %v481_v40 = vadd.f32 %v480_v35, %v452_v36  ;;  %v564_v45 = vmul.f32 0.97, %v556_v37 }
  0xdb   :  { %560 = vst [vmem:[%s1080_s2 + $0x14] sm:$0xf] %v559_v39  ;;  %v563_v44 = vadd.f32 %v562_v41, %v481_v40 }
  0xdd   :  { %v565_v46 = vadd.f32 %v564_v45, %v563_v44  ;;  %v573_v55 = vmul.f32 0.75, %v563_v44 }
  0xde   :  { %v453_v48 = vpop.f32.mrf.mxu2 }
  0xdf   :  { %vm566_vm6 = vcmp.ge.f32.partialorder %v565_v46, 1.25  ;;  %v454_v49 = vadd.f32 %v453_v48, %v425_v47  ;;  %v482_v52 = vpop.f32.mrf.mxu3 }
  0xe0   :  { %v567_v50 = vsel %vm566_vm6, 0.0, %v565_v46  ;;  %v787_v51 = vsel %vm566_vm6, 1.0, %v838_v25 }
  0xe1   :  { %v570_v53 = vpack.c.bf16 %v787_v51, %v787_v51  ;;  %v483_v54 = vadd.f32 %v482_v52, %v454_v49  ;;  %v575_v57 = vmul.f32 0.97, %v567_v50 }
  0xe3   :  { %571 = vst [vmem:[%s1080_s2 + $0x18] sm:$0xf] %v570_v53  ;;  %v574_v56 = vadd.f32 %v573_v55, %v483_v54 }
  0xe5   :  { %v576_v58 = vadd.f32 %v575_v57, %v574_v56 }
  0xe7   :  { %vm577_vm7 = vcmp.ge.f32.partialorder %v576_v58, 1.25 }
  0xe8   :  { %v788_v59 = vsel %vm577_vm7, 1.0, %v838_v25 }
  0xe9   :  { %v581_v60 = vpack.c.bf16 %v788_v59, %v788_v59 }
  0xeb   :  { %582 = vst [vmem:[%s1080_s2 + $0x1c] sm:$0xf] %v581_v60 }

// kernel: a_call__.4
= control target key start
LH: loop header
LB: loop body
LE: loop exit
PB: predicated region body
PF: predicated region fallthrough
CT: control target
= control target key end

     0   :  { %s3822_s1 = inlined_call_operand.vmem [shape: bf16[512,512], index: 1, kind: input, shape index: {}]   ;;  %s3823_s0 = inlined_call_operand.vmem [shape: bf16[64,512], index: 0, kind: input, shape index: {}]   ;;  %s3824_s2 = inlined_call_operand.vmem [shape: f32[1,512], index: 2, kind: input, shape index: {}]   ;;  %s3825_s3 = inlined_call_operand.vmem [shape: bf16[64,512], index: 3, kind: output, shape index: {}]  }
   0x1   :  { %v1972_v0 = vld [vmem:[%s3822_s1 + $0xe0] sm:$0xf]  ;;  %v2448_v1 = vld [vmem:[%s3822_s1 + $0xec] sm:$0xf0] }
   0x2   :  { %v2100_v2 = vld [vmem:[%s3822_s1 + $0x1e0] sm:$0xf]  ;;  %v1973_v3 = vor.u32 %v2448_v1, %v1972_v0  ;;  %v2480_v4 = vld [vmem:[%s3822_s1 + $0x1ec] sm:$0xf0] }
   0x3   :  { %v2228_v5 = vld [vmem:[%s3822_s1 + $0x2e0] sm:$0xf]  ;;  %v2512_v6 = vld [vmem:[%s3822_s1 + $0x2ec] sm:$0xf0]  ;;  %v2101_v7 = vor.u32 %v2480_v4, %v2100_v2 }
   0x4   :  { %v2229_v8 = vor.u32 %v2512_v6, %v2228_v5  ;;  %v2356_v9 = vld [vmem:[%s3822_s1 + $0x3e0] sm:$0xf]  ;;  %v2544_v10 = vld [vmem:[%s3822_s1 + $0x3ec] sm:$0xf0]  ;;  %895 = vmatpush.bf16.msra.mxu0 %v1973_v3 }
   0x5   :  { %v1956_v11 = vld [vmem:[%s3822_s1 + $0xc0] sm:$0xf]  ;;  %v2357_v12 = vor.u32 %v2544_v10, %v2356_v9  ;;  %v2444_v13 = vld [vmem:[%s3822_s1 + $0xcc] sm:$0xf0]  ;;  %924 = vmatpush.bf16.msra.mxu1 %v2101_v7 }
   0x6   :  { %v2084_v14 = vld [vmem:[%s3822_s1 + $0x1c0] sm:$0xf]  ;;  %v2476_v15 = vld [vmem:[%s3822_s1 + $0x1cc] sm:$0xf0]  ;;  %953 = vmatpush.bf16.msra.mxu2 %v2229_v8  ;;  %v1957_v16 = vor.u32 %v2444_v13, %v1956_v11 }
   0x7   :  { %v2085_v17 = vor.u32 %v2476_v15, %v2084_v14  ;;  %v2212_v18 = vld [vmem:[%s3822_s1 + $0x2c0] sm:$0xf]  ;;  %v2508_v19 = vld [vmem:[%s3822_s1 + $0x2cc] sm:$0xf0]  ;;  %982 = vmatpush.bf16.msra.mxu3 %v2357_v12 }
   0x8   :  { %v2340_v20 = vld [vmem:[%s3822_s1 + $0x3c0] sm:$0xf]  ;;  %v2213_v21 = vor.u32 %v2508_v19, %v2212_v18  ;;  %v2540_v22 = vld [vmem:[%s3822_s1 + $0x3cc] sm:$0xf0]  ;;  %896 = vmatpush.bf16.msra.mxu0 %v1957_v16 }
   0x9   :  { %v1940_v23 = vld [vmem:[%s3822_s1 + $0xa0] sm:$0xf]  ;;  %v2440_v24 = vld [vmem:[%s3822_s1 + $0xac] sm:$0xf0]  ;;  %v2341_v25 = vor.u32 %v2540_v22, %v2340_v20  ;;  %925 = vmatpush.bf16.msra.mxu1 %v2085_v17 }
   0xa   :  { %v2068_v26 = vld [vmem:[%s3822_s1 + $0x1a0] sm:$0xf]  ;;  %v2472_v27 = vld [vmem:[%s3822_s1 + $0x1ac] sm:$0xf0]  ;;  %v1941_v29 = vor.u32 %v2440_v24, %v1940_v23  ;;  %954 = vmatpush.bf16.msra.mxu2 %v2213_v21 }
   0xb   :  { %v2196_v28 = vld [vmem:[%s3822_s1 + $0x2a0] sm:$0xf]  ;;  %v2504_v30 = vld [vmem:[%s3822_s1 + $0x2ac] sm:$0xf0]  ;;  %v2069_v33 = vor.u32 %v2472_v27, %v2068_v26  ;;  %983 = vmatpush.bf16.msra.mxu3 %v2341_v25 }
   0xc   :  { %v2324_v31 = vld [vmem:[%s3822_s1 + $0x3a0] sm:$0xf]  ;;  %v2536_v32 = vld [vmem:[%s3822_s1 + $0x3ac] sm:$0xf0]  ;;  %v2197_v34 = vor.u32 %v2504_v30, %v2196_v28  ;;  %897 = vmatpush.bf16.msra.mxu0 %v1941_v29  ;;  %v2402_v30 = vld [vmem:[%s3823_s0 + $0x4] sm:$0xf] }
   0xd   :  { %v1924_v35 = vld [vmem:[%s3822_s1 + $0x80] sm:$0xf]  ;;  %v2436_v36 = vld [vmem:[%s3822_s1 + $0x8c] sm:$0xf0]  ;;  %v2325_v38 = vor.u32 %v2536_v32, %v2324_v31  ;;  %926 = vmatpush.bf16.msra.mxu1 %v2069_v33  ;;  %v1798_v31 = vld [vmem:[%s3823_s0 + $0x10] sm:$0xf0] }
   0xe   :  { %v2052_v37 = vld [vmem:[%s3822_s1 + $0x180] sm:$0xf]  ;;  %v2468_v39 = vld [vmem:[%s3822_s1 + $0x18c] sm:$0xf0]  ;;  %v1925_v44 = vor.u32 %v2436_v36, %v1924_v35  ;;  %955 = vmatpush.bf16.msra.mxu2 %v2197_v34  ;;  %v2510_v32 = vld [vmem:[%s3822_s1 + $0x2e4] sm:$0xf] }
   0xf   :  { %v2180_v40 = vld [vmem:[%s3822_s1 + $0x280] sm:$0xf]  ;;  %v2500_v41 = vld [vmem:[%s3822_s1 + $0x28c] sm:$0xf0]  ;;  %v2053_v45 = vor.u32 %v2468_v39, %v2052_v37  ;;  %984 = vmatpush.bf16.msra.mxu3 %v2325_v38  ;;  %v2230_v33 = vld [vmem:[%s3822_s1 + $0x2f0] sm:$0xf0] }
  0x10   :  { %v2308_v42 = vld [vmem:[%s3822_s1 + $0x380] sm:$0xf]  ;;  %v2532_v43 = vld [vmem:[%s3822_s1 + $0x38c] sm:$0xf0]  ;;  %v2181_v46 = vor.u32 %v2500_v41, %v2180_v40  ;;  %898 = vmatpush.bf16.msra.mxu0 %v1925_v44  ;;  %v1804_v35 = vld [vmem:[%s3823_s0 + $0x8] sm:$0xf]  ;;  %v2233_v44 = vor.u32 %v2510_v32, %v2230_v33 }
  0x11   :  { %v1908_v47 = vld [vmem:[%s3822_s1 + $0x60] sm:$0xf]  ;;  %v2432_v48 = vld [vmem:[%s3822_s1 + $0x6c] sm:$0xf0]  ;;  %v2309_v50 = vor.u32 %v2532_v43, %v2308_v42  ;;  %927 = vmatpush.bf16.msra.mxu1 %v2053_v45  ;;  %v2542_v36 = vld [vmem:[%s3822_s1 + $0x3e4] sm:$0xf] }
  0x12   :  { %v2036_v49 = vld [vmem:[%s3822_s1 + $0x160] sm:$0xf]  ;;  %v2464_v51 = vld [vmem:[%s3822_s1 + $0x16c] sm:$0xf0]  ;;  %v1909_v56 = vor.u32 %v2432_v48, %v1908_v47  ;;  %956 = vmatpush.bf16.msra.mxu2 %v2181_v46  ;;  %v2358_v37 = vld [vmem:[%s3822_s1 + $0x3f0] sm:$0xf0] }
  0x13   :  { %v2164_v52 = vld [vmem:[%s3822_s1 + $0x260] sm:$0xf]  ;;  %v2496_v53 = vld [vmem:[%s3822_s1 + $0x26c] sm:$0xf0]  ;;  %v2037_v57 = vor.u32 %v2464_v51, %v2036_v49  ;;  %985 = vmatpush.bf16.msra.mxu3 %v2309_v50  ;;  %v2405_v40 = vld [vmem:[%s3823_s0 + $0x14] sm:$0xf0]  ;;  %v2361_v49 = vor.u32 %v2542_v36, %v2358_v37 }
  0x14   :  { %v2292_v54 = vld [vmem:[%s3822_s1 + $0x360] sm:$0xf]  ;;  %v2528_v55 = vld [vmem:[%s3822_s1 + $0x36c] sm:$0xf0]  ;;  %v2165_v58 = vor.u32 %v2496_v53, %v2164_v52  ;;  %899 = vmatpush.bf16.msra.mxu0 %v1909_v56  ;;  %v2403_v41 = vld [vmem:[%s3823_s0 + $0xc] sm:$0xf]  ;;  %v2816_v53 = vor.u32 %v2402_v30, %v1798_v31 }
  0x15   :  { %v1892_v59 = vld [vmem:[%s3822_s1 + $0x40] sm:$0xf]  ;;  %v2428_v60 = vld [vmem:[%s3822_s1 + $0x4c] sm:$0xf0]  ;;  %v2293_v62 = vor.u32 %v2528_v55, %v2292_v54  ;;  %928 = vmatpush.bf16.msra.mxu1 %v2037_v57  ;;  %v1806_v42 = vld [vmem:[%s3823_s0 + $0x18] sm:$0xf0]  ;;  %v2818_v54 = vor.u32 %v2405_v40, %v1804_v35 }
  0x16   :  { %v2020_v61 = vld [vmem:[%s3822_s1 + $0x140] sm:$0xf]  ;;  %v2460_v63 = vld [vmem:[%s3822_s1 + $0x14c] sm:$0xf0]  ;;  %v1893_v4 = vor.u32 %v2428_v60, %v1892_v59  ;;  %957 = vmatpush.bf16.msra.mxu2 %v2165_v58  ;;  %v2446_v45 = vld [vmem:[%s3822_s1 + $0xe4] sm:$0xf]  ;;  %v2826_v57 = vor.u32 %v2403_v41, %v1806_v42 }
  0x17   :  { %v2148_v0 = vld [vmem:[%s3822_s1 + $0x240] sm:$0xf]  ;;  %v2492_v1 = vld [vmem:[%s3822_s1 + $0x24c] sm:$0xf0]  ;;  %v2021_v5 = vor.u32 %v2460_v63, %v2020_v61  ;;  %986 = vmatpush.bf16.msra.mxu3 %v2293_v62  ;;  %v1974_v46 = vld [vmem:[%s3822_s1 + $0xf0] sm:$0xf0] }
  0x18   :  { %v2276_v2 = vld [vmem:[%s3822_s1 + $0x340] sm:$0xf]  ;;  %v2524_v3 = vld [vmem:[%s3822_s1 + $0x34c] sm:$0xf0]  ;;  %v2149_v6 = vor.u32 %v2492_v1, %v2148_v0  ;;  %900 = vmatpush.bf16.msra.mxu0 %v1893_v4  ;;  %v2478_v47 = vld [vmem:[%s3822_s1 + $0x1e4] sm:$0xf]  ;;  %v1977_v58 = vor.u32 %v2446_v45, %v1974_v46 }
  0x19   :  { %v1876_v7 = vld [vmem:[%s3822_s1 + $0x20] sm:$0xf]  ;;  %v2424_v8 = vld [vmem:[%s3822_s1 + $0x2c] sm:$0xf0]  ;;  %v2277_v10 = vor.u32 %v2524_v3, %v2276_v2  ;;  %929 = vmatpush.bf16.msra.mxu1 %v2021_v5  ;;  %v2102_v50 = vld [vmem:[%s3822_s1 + $0x1f0] sm:$0xf0] }
  0x1a   :  { %v2004_v9 = vld [vmem:[%s3822_s1 + $0x120] sm:$0xf]  ;;  %v2456_v11 = vld [vmem:[%s3822_s1 + $0x12c] sm:$0xf0]  ;;  %v1877_v17 = vor.u32 %v2424_v8, %v1876_v7  ;;  %958 = vmatpush.bf16.msra.mxu2 %v2149_v6  ;;  %v2506_v51 = vld [vmem:[%s3822_s1 + $0x2c4] sm:$0xf]  ;;  %v2105_v59 = vor.u32 %v2478_v47, %v2102_v50 }
  0x1b   :  { %v2132_v12 = vld [vmem:[%s3822_s1 + $0x220] sm:$0xf]  ;;  %v2488_v13 = vld [vmem:[%s3822_s1 + $0x22c] sm:$0xf0]  ;;  %v2005_v21 = vor.u32 %v2456_v11, %v2004_v9  ;;  %987 = vmatpush.bf16.msra.mxu3 %v2277_v10  ;;  %v2214_v52 = vld [vmem:[%s3822_s1 + $0x2d0] sm:$0xf0] }
  0x1c   :  { %v2260_v14 = vld [vmem:[%s3822_s1 + $0x320] sm:$0xf]  ;;  %v2520_v15 = vld [vmem:[%s3822_s1 + $0x32c] sm:$0xf0]  ;;  %v2133_v22 = vor.u32 %v2488_v13, %v2132_v12  ;;  %901 = vmatpush.bf16.msra.mxu0 %v1877_v17  ;;  %v2538_v55 = vld [vmem:[%s3822_s1 + $0x3c4] sm:$0xf]  ;;  %v2217_v60 = vor.u32 %v2506_v51, %v2214_v52 }
  0x1d   :  { %v1860_v16 = vld [vmem:[%s3822_s1] sm:$0xf]  ;;  %v2420_v18 = vld [vmem:[%s3822_s1 + $0xc] sm:$0xf0]  ;;  %v2261_v26 = vor.u32 %v2520_v15, %v2260_v14  ;;  %930 = vmatpush.bf16.msra.mxu1 %v2005_v21  ;;  %v2342_v56 = vld [vmem:[%s3822_s1 + $0x3d0] sm:$0xf0] }
  0x1e   :  { %v1988_v19 = vld [vmem:[%s3822_s1 + $0x100] sm:$0xf]  ;;  %v2452_v20 = vld [vmem:[%s3822_s1 + $0x10c] sm:$0xf0]  ;;  %v1861_v34 = vor.u32 %v2420_v18, %v1860_v16  ;;  %959 = vmatpush.bf16.msra.mxu2 %v2133_v22  ;;  %v2442_v61 = vld [vmem:[%s3822_s1 + $0xc4] sm:$0xf]  ;;  %v2345_v0 = vor.u32 %v2538_v55, %v2342_v56 }
  0x1f   :  { %v2116_v23 = vld [vmem:[%s3822_s1 + $0x200] sm:$0xf]  ;;  %v2484_v24 = vld [vmem:[%s3822_s1 + $0x20c] sm:$0xf0]  ;;  %v1989_v38 = vor.u32 %v2452_v20, %v1988_v19  ;;  %988 = vmatpush.bf16.msra.mxu3 %v2261_v26  ;;  %v1958_v62 = vld [vmem:[%s3822_s1 + $0xd0] sm:$0xf0] }
  0x20   :  { %v2244_v25 = vld [vmem:[%s3822_s1 + $0x300] sm:$0xf]  ;;  %v2516_v27 = vld [vmem:[%s3822_s1 + $0x30c] sm:$0xf0]  ;;  %v2117_v39 = vor.u32 %v2484_v24, %v2116_v23  ;;  %902 = vmatpush.bf16.msra.mxu0 %v1861_v34  ;;  %v2474_v63 = vld [vmem:[%s3822_s1 + $0x1c4] sm:$0xf]  ;;  %v1961_v6 = vor.u32 %v2442_v61, %v1958_v62 }
  0x21   :  { %v1796_v28 = vld [vmem:[%s3823_s0] sm:$0xf]  ;;  %v2404_v29 = vld [vmem:[%s3823_s0 + $0xc] sm:$0xf0]  ;;  %v2245_v43 = vor.u32 %v2516_v27, %v2244_v25  ;;  %931 = vmatpush.bf16.msra.mxu1 %v1989_v38  ;;  %v2086_v1 = vld [vmem:[%s3822_s1 + $0x1d0] sm:$0xf0] }
  0x22   :  { %v2805_v48 = vor.u32 %v2404_v29, %v1796_v28  ;;  %960 = vmatpush.bf16.msra.mxu2 %v2117_v39  ;;  %v2502_v2 = vld [vmem:[%s3822_s1 + $0x2a4] sm:$0xf]  ;;  %v2198_v3 = vld [vmem:[%s3822_s1 + $0x2b0] sm:$0xf0]  ;;  %v2089_v7 = vor.u32 %v2474_v63, %v2086_v1  ;;  %v1812_v19 = vld [vmem:[%s3823_s0 + $0x20] sm:$0xf] }
  0x23   :  { %989 = vmatpush.bf16.msra.mxu3 %v2245_v43  ;;  %v2534_v4 = vld [vmem:[%s3822_s1 + $0x3a4] sm:$0xf]  ;;  %v2326_v5 = vld [vmem:[%s3822_s1 + $0x3b0] sm:$0xf0]  ;;  %v2201_v8 = vor.u32 %v2502_v2, %v2198_v3  ;;  %v2408_v20 = vld [vmem:[%s3823_s0 + $0x2c] sm:$0xf0] }
  0x24   :  { %903 = vmatmul.bf16.vlgmr.msra.gmra.mxu0 %v2805_v48  ;;  %932 = vmatmul.bf16.vlgmr.msra.gmra.mxu1 %v2816_v53  ;;  %v2438_v9 = vld [vmem:[%s3822_s1 + $0xa4] sm:$0xf]  ;;  %v1942_v10 = vld [vmem:[%s3822_s1 + $0xb0] sm:$0xf0]  ;;  %v2329_v12 = vor.u32 %v2534_v4, %v2326_v5  ;;  %v1820_v32 = vld [vmem:[%s3823_s0 + $0x28] sm:$0xf] }
  0x25   :  { %961 = vmatmul.bf16.vlgmr.msra.gmra.mxu2 %v2818_v54  ;;  %1011 = vmatpush.bf16.msrb.mxu0 %v1977_v58  ;;  %v2470_v11 = vld [vmem:[%s3822_s1 + $0x1a4] sm:$0xf]  ;;  %v2070_v13 = vld [vmem:[%s3822_s1 + $0x1b0] sm:$0xf0]  ;;  %v1945_v18 = vor.u32 %v2438_v9, %v1942_v10  ;;  %v2409_v35 = vld [vmem:[%s3823_s0 + $0x34] sm:$0xf0] }
  0x26   :  { %1069 = vmatpush.bf16.msrb.mxu2 %v2233_v44  ;;  %990 = vmatmul.bf16.vlgmr.msra.gmra.mxu3 %v2826_v57  ;;  %v2498_v14 = vld [vmem:[%s3822_s1 + $0x284] sm:$0xf]  ;;  %v2182_v15 = vld [vmem:[%s3822_s1 + $0x290] sm:$0xf0]  ;;  %v2073_v21 = vor.u32 %v2470_v11, %v2070_v13  ;;  %v2407_v36 = vld [vmem:[%s3823_s0 + $0x2c] sm:$0xf]  ;;  %v2937_v44 = vor.u32 %v2408_v20, %v1812_v19  ;;  %v2950_v51 = vor.u32 %v2409_v35, %v1820_v32 }
  0x27   :  { %1098 = vmatpush.bf16.msrb.mxu3 %v2361_v49  ;;  %1040 = vmatpush.bf16.msrb.mxu1 %v2105_v59  ;;  %v2530_v16 = vld [vmem:[%s3822_s1 + $0x384] sm:$0xf]  ;;  %v2310_v17 = vld [vmem:[%s3822_s1 + $0x390] sm:$0xf0]  ;;  %v2185_v22 = vor.u32 %v2498_v14, %v2182_v15  ;;  %v1822_v37 = vld [vmem:[%s3823_s0 + $0x38] sm:$0xf0] }
  0x28   :  { %v2434_v23 = vld [vmem:[%s3822_s1 + $0x84] sm:$0xf]  ;;  %v1926_v24 = vld [vmem:[%s3822_s1 + $0x90] sm:$0xf0]  ;;  %v2313_v28 = vor.u32 %v2530_v16, %v2310_v17  ;;  %v2958_v56 = vor.u32 %v2407_v36, %v1822_v37 }
  0x29   :  { %1012 = vmatpush.bf16.msrb.mxu0 %v1961_v6  ;;  %v2466_v25 = vld [vmem:[%s3822_s1 + $0x184] sm:$0xf]  ;;  %v1814_v27 = vld [vmem:[%s3823_s0 + $0x30] sm:$0xf0]  ;;  %v1929_v38 = vor.u32 %v2434_v23, %v1926_v24 }
  0x2a   :  { %1070 = vmatpush.bf16.msrb.mxu2 %v2217_v60  ;;  %v2406_v26 = vld [vmem:[%s3823_s0 + $0x24] sm:$0xf]  ;;  %v2054_v29 = vld [vmem:[%s3822_s1 + $0x190] sm:$0xf0] }
  0x2b   :  { %1099 = vmatpush.bf16.msrb.mxu3 %v2345_v0  ;;  %1041 = vmatpush.bf16.msrb.mxu1 %v2089_v7  ;;  %v2494_v30 = vld [vmem:[%s3822_s1 + $0x264] sm:$0xf]  ;;  %v2166_v31 = vld [vmem:[%s3822_s1 + $0x270] sm:$0xf0]  ;;  %v2057_v39 = vor.u32 %v2466_v25, %v2054_v29  ;;  %v2948_v50 = vor.u32 %v2406_v26, %v1814_v27  ;;  %v1828_v26 = vld [vmem:[%s3823_s0 + $0x40] sm:$0xf] }
  0x2c   :  { %v2526_v33 = vld [vmem:[%s3822_s1 + $0x364] sm:$0xf]  ;;  %v2294_v34 = vld [vmem:[%s3822_s1 + $0x370] sm:$0xf0]  ;;  %v2169_v40 = vor.u32 %v2494_v30, %v2166_v31  ;;  %v2412_v27 = vld [vmem:[%s3823_s0 + $0x4c] sm:$0xf0] }
  0x2d   :  { %1013 = vmatpush.bf16.msrb.mxu0 %v1945_v18  ;;  %v2430_v41 = vld [vmem:[%s3822_s1 + $0x64] sm:$0xf]  ;;  %v1910_v42 = vld [vmem:[%s3822_s1 + $0x70] sm:$0xf0]  ;;  %v2297_v45 = vor.u32 %v2526_v33, %v2294_v34  ;;  %v1836_v30 = vld [vmem:[%s3823_s0 + $0x48] sm:$0xf]  ;;  %v3048_v36 = vor.u32 %v2412_v27, %v1828_v26 }
  0x2e   :  { %1071 = vmatpush.bf16.msrb.mxu2 %v2201_v8  ;;  %v2462_v43 = vld [vmem:[%s3822_s1 + $0x164] sm:$0xf]  ;;  %v2038_v46 = vld [vmem:[%s3822_s1 + $0x170] sm:$0xf0]  ;;  %v1913_v58 = vor.u32 %v2430_v41, %v1910_v42  ;;  %v2413_v31 = vld [vmem:[%s3823_s0 + $0x54] sm:$0xf0] }
  0x2f   :  { %1100 = vmatpush.bf16.msrb.mxu3 %v2329_v12  ;;  %1042 = vmatpush.bf16.msrb.mxu1 %v2073_v21  ;;  %v2490_v47 = vld [vmem:[%s3822_s1 + $0x244] sm:$0xf]  ;;  %v2150_v49 = vld [vmem:[%s3822_s1 + $0x250] sm:$0xf0]  ;;  %v2041_v59 = vor.u32 %v2462_v43, %v2038_v46  ;;  %v2411_v33 = vld [vmem:[%s3823_s0 + $0x4c] sm:$0xf] }
  0x30   :  { %v2522_v52 = vld [vmem:[%s3822_s1 + $0x344] sm:$0xf]  ;;  %v2278_v55 = vld [vmem:[%s3822_s1 + $0x350] sm:$0xf0]  ;;  %v2153_v60 = vor.u32 %v2490_v47, %v2150_v49  ;;  %v1838_v34 = vld [vmem:[%s3823_s0 + $0x58] sm:$0xf0] }
  0x31   :  { %1014 = vmatpush.bf16.msrb.mxu0 %v1929_v38  ;;  %v2426_v61 = vld [vmem:[%s3822_s1 + $0x44] sm:$0xf]  ;;  %v1894_v62 = vld [vmem:[%s3822_s1 + $0x50] sm:$0xf0]  ;;  %v2281_v63 = vor.u32 %v2522_v52, %v2278_v55  ;;  %v3052_v38 = vor.u32 %v2413_v31, %v1836_v30  ;;  %v2513_v41 = vld [vmem:[%s3822_s1 + $0x2f4] sm:$0xf0] }
  0x32   :  { %1072 = vmatpush.bf16.msrb.mxu2 %v2185_v22  ;;  %v2458_v0 = vld [vmem:[%s3822_s1 + $0x144] sm:$0xf]  ;;  %v2022_v1 = vld [vmem:[%s3822_s1 + $0x150] sm:$0xf0]  ;;  %v1897_v2 = vor.u32 %v2426_v61, %v1894_v62  ;;  %v2364_v42 = vld [vmem:[%s3822_s1 + $0x3e8] sm:$0xf] }
  0x33   :  { %1101 = vmatpush.bf16.msrb.mxu3 %v2313_v28  ;;  %1043 = vmatpush.bf16.msrb.mxu1 %v2057_v39  ;;  %v2486_v3 = vld [vmem:[%s3822_s1 + $0x224] sm:$0xf]  ;;  %v2134_v4 = vld [vmem:[%s3822_s1 + $0x230] sm:$0xf0]  ;;  %v2025_v6 = vor.u32 %v2458_v0, %v2022_v1  ;;  %v3054_v39 = vor.u32 %v2411_v33, %v1838_v34  ;;  %v1980_v46 = vld [vmem:[%s3822_s1 + $0xe8] sm:$0xf] }
  0x34   :  { %908 = vmatmul.bf16.gmra.mxu0 %v2937_v44  ;;  %937 = vmatmul.bf16.gmra.mxu1 %v2948_v50  ;;  %v2518_v5 = vld [vmem:[%s3822_s1 + $0x324] sm:$0xf]  ;;  %v2137_v7 = vor.u32 %v2486_v3, %v2134_v4  ;;  %v2262_v8 = vld [vmem:[%s3822_s1 + $0x330] sm:$0xf0]  ;;  %v2449_v47 = vld [vmem:[%s3822_s1 + $0xf4] sm:$0xf0] }
  0x35   :  { %966 = vmatmul.bf16.gmra.mxu2 %v2950_v51  ;;  %1015 = vmatpush.bf16.msrb.mxu0 %v1913_v58  ;;  %v2422_v9 = vld [vmem:[%s3822_s1 + $0x24] sm:$0xf]  ;;  %v1878_v10 = vld [vmem:[%s3822_s1 + $0x30] sm:$0xf0]  ;;  %v2265_v11 = vor.u32 %v2518_v5, %v2262_v8  ;;  %v1981_v52 = vor.u32 %v2449_v47, %v1980_v46  ;;  %v2108_v55 = vld [vmem:[%s3822_s1 + $0x1e8] sm:$0xf] }
  0x36   :  { %1073 = vmatpush.bf16.msrb.mxu2 %v2169_v40  ;;  %995 = vmatmul.bf16.gmra.mxu3 %v2958_v56  ;;  %v2454_v12 = vld [vmem:[%s3822_s1 + $0x124] sm:$0xf]  ;;  %v2006_v13 = vld [vmem:[%s3822_s1 + $0x130] sm:$0xf0]  ;;  %v1881_v18 = vor.u32 %v2422_v9, %v1878_v10  ;;  %v2236_v40 = vld [vmem:[%s3822_s1 + $0x2e8] sm:$0xf] }
  0x37   :  { %1102 = vmatpush.bf16.msrb.mxu3 %v2297_v45  ;;  %1044 = vmatpush.bf16.msrb.mxu1 %v2041_v59  ;;  %v2482_v14 = vld [vmem:[%s3822_s1 + $0x204] sm:$0xf]  ;;  %v2118_v15 = vld [vmem:[%s3822_s1 + $0x210] sm:$0xf0]  ;;  %v2009_v19 = vor.u32 %v2454_v12, %v2006_v13  ;;  %v2237_v43 = vor.u32 %v2513_v41, %v2236_v40  ;;  %v2545_v45 = vld [vmem:[%s3822_s1 + $0x3f4] sm:$0xf0] }
  0x38   :  { %v2514_v16 = vld [vmem:[%s3822_s1 + $0x304] sm:$0xf]  ;;  %v2246_v17 = vld [vmem:[%s3822_s1 + $0x310] sm:$0xf0]  ;;  %v2121_v20 = vor.u32 %v2482_v14, %v2118_v15  ;;  %v2365_v49 = vor.u32 %v2545_v45, %v2364_v42  ;;  %v2481_v58 = vld [vmem:[%s3822_s1 + $0x1f4] sm:$0xf0] }
  0x39   :  { %1016 = vmatpush.bf16.msrb.mxu0 %v1897_v2  ;;  %v2418_v21 = vld [vmem:[%s3822_s1 + $0x4] sm:$0xf]  ;;  %v1862_v22 = vld [vmem:[%s3822_s1 + $0x10] sm:$0xf0]  ;;  %v2249_v23 = vor.u32 %v2514_v16, %v2246_v17  ;;  %v2220_v59 = vld [vmem:[%s3822_s1 + $0x2c8] sm:$0xf] }
  0x3a   :  { %1074 = vmatpush.bf16.msrb.mxu2 %v2153_v60  ;;  %v2450_v24 = vld [vmem:[%s3822_s1 + $0x104] sm:$0xf]  ;;  %v1990_v25 = vld [vmem:[%s3822_s1 + $0x110] sm:$0xf0]  ;;  %v1865_v32 = vor.u32 %v2418_v21, %v1862_v22  ;;  %v2109_v60 = vor.u32 %v2481_v58, %v2108_v55  ;;  %v2509_v61 = vld [vmem:[%s3822_s1 + $0x2d4] sm:$0xf0] }
  0x3b   :  { %1103 = vmatpush.bf16.msrb.mxu3 %v2281_v63  ;;  %1045 = vmatpush.bf16.msrb.mxu1 %v2025_v6  ;;  %v2410_v28 = vld [vmem:[%s3823_s0 + $0x44] sm:$0xf]  ;;  %v1830_v29 = vld [vmem:[%s3823_s0 + $0x50] sm:$0xf0]  ;;  %v1993_v35 = vor.u32 %v2450_v24, %v1990_v25  ;;  %v2348_v62 = vld [vmem:[%s3822_s1 + $0x3c8] sm:$0xf]  ;;  %v2221_v0 = vor.u32 %v2509_v61, %v2220_v59 }
  0x3c   :  { %v3050_v37 = vor.u32 %v2410_v28, %v1830_v29  ;;  %v2541_v63 = vld [vmem:[%s3822_s1 + $0x3d4] sm:$0xf0]  ;;  %v1964_v2 = vld [vmem:[%s3822_s1 + $0xc8] sm:$0xf]  ;;  %v1844_v8 = vld [vmem:[%s3823_s0 + $0x60] sm:$0xf] }
  0x3d   :  { %1017 = vmatpush.bf16.msrb.mxu0 %v1881_v18  ;;  %v2349_v1 = vor.u32 %v2541_v63, %v2348_v62  ;;  %v2445_v3 = vld [vmem:[%s3822_s1 + $0xd4] sm:$0xf0]  ;;  %v2092_v4 = vld [vmem:[%s3822_s1 + $0x1c8] sm:$0xf]  ;;  %v2416_v9 = vld [vmem:[%s3823_s0 + $0x6c] sm:$0xf0] }
  0x3e   :  { %1075 = vmatpush.bf16.msrb.mxu2 %v2137_v7  ;;  %v1965_v5 = vor.u32 %v2445_v3, %v1964_v2  ;;  %v2477_v6 = vld [vmem:[%s3822_s1 + $0x1d4] sm:$0xf0]  ;;  %v2414_v10 = vld [vmem:[%s3823_s0 + $0x64] sm:$0xf]  ;;  %v1852_v12 = vld [vmem:[%s3823_s0 + $0x68] sm:$0xf]  ;;  %v3132_v16 = vor.u32 %v2416_v9, %v1844_v8 }
  0x3f   :  { %1104 = vmatpush.bf16.msrb.mxu3 %v2265_v11  ;;  %1046 = vmatpush.bf16.msrb.mxu1 %v2009_v19  ;;  %v2093_v7 = vor.u32 %v2477_v6, %v2092_v4  ;;  %v1846_v11 = vld [vmem:[%s3823_s0 + $0x70] sm:$0xf0]  ;;  %v2417_v13 = vld [vmem:[%s3823_s0 + $0x74] sm:$0xf0]  ;;  %v2415_v14 = vld [vmem:[%s3823_s0 + $0x6c] sm:$0xf] }
  0x40   :  { %v1854_v15 = vld [vmem:[%s3823_s0 + $0x78] sm:$0xf0]  ;;  %v3134_v17 = vor.u32 %v2414_v10, %v1846_v11  ;;  %v3136_v18 = vor.u32 %v2417_v13, %v1852_v12  ;;  %v2505_v21 = vld [vmem:[%s3822_s1 + $0x2b4] sm:$0xf0]  ;;  %v2332_v22 = vld [vmem:[%s3822_s1 + $0x3a8] sm:$0xf] }
  0x41   :  { %1018 = vmatpush.bf16.msrb.mxu0 %v1865_v32  ;;  %v3138_v19 = vor.u32 %v2415_v14, %v1854_v15  ;;  %v2537_v24 = vld [vmem:[%s3822_s1 + $0x3b4] sm:$0xf0]  ;;  %v1948_v25 = vld [vmem:[%s3822_s1 + $0xa8] sm:$0xf] }
  0x42   :  { %1076 = vmatpush.bf16.msrb.mxu2 %v2121_v20  ;;  %v2204_v20 = vld [vmem:[%s3822_s1 + $0x2a8] sm:$0xf]  ;;  %v2441_v26 = vld [vmem:[%s3822_s1 + $0xb4] sm:$0xf0]  ;;  %v2333_v27 = vor.u32 %v2537_v24, %v2332_v22 }
  0x43   :  { %1105 = vmatpush.bf16.msrb.mxu3 %v2249_v23  ;;  %1047 = vmatpush.bf16.msrb.mxu1 %v1993_v35  ;;  %v2205_v23 = vor.u32 %v2505_v21, %v2204_v20  ;;  %v1949_v28 = vor.u32 %v2441_v26, %v1948_v25  ;;  %v2076_v29 = vld [vmem:[%s3822_s1 + $0x1a8] sm:$0xf]  ;;  %v2473_v30 = vld [vmem:[%s3822_s1 + $0x1b4] sm:$0xf0] }
  0x44   :  { %913 = vmatmul.bf16.gmra.mxu0 %v3048_v36  ;;  %942 = vmatmul.bf16.gmra.mxu1 %v3050_v37  ;;  %v2188_v31 = vld [vmem:[%s3822_s1 + $0x288] sm:$0xf]  ;;  %v2077_v32 = vor.u32 %v2473_v30, %v2076_v29  ;;  %v2501_v33 = vld [vmem:[%s3822_s1 + $0x294] sm:$0xf0] }
  0x45   :  { %971 = vmatmul.bf16.gmra.mxu2 %v3052_v38  ;;  %1127 = vmatpush.bf16.msra.mxu0 %v1981_v52  ;;  %v2316_v34 = vld [vmem:[%s3822_s1 + $0x388] sm:$0xf]  ;;  %v2533_v35 = vld [vmem:[%s3822_s1 + $0x394] sm:$0xf0]  ;;  %v2189_v40 = vor.u32 %v2501_v33, %v2188_v31 }
  0x46   :  { %1000 = vmatmul.bf16.gmra.mxu3 %v3054_v39  ;;  %1185 = vmatpush.bf16.msra.mxu2 %v2237_v43  ;;  %v2317_v41 = vor.u32 %v2533_v35, %v2316_v34  ;;  %v1932_v42 = vld [vmem:[%s3822_s1 + $0x88] sm:$0xf]  ;;  %v2437_v43 = vld [vmem:[%s3822_s1 + $0x94] sm:$0xf0] }
  0x47   :  { %1214 = vmatpush.bf16.msra.mxu3 %v2365_v49  ;;  %1156 = vmatpush.bf16.msra.mxu1 %v2109_v60  ;;  %v2060_v45 = vld [vmem:[%s3822_s1 + $0x188] sm:$0xf]  ;;  %v1933_v46 = vor.u32 %v2437_v43, %v1932_v42  ;;  %v2469_v47 = vld [vmem:[%s3822_s1 + $0x194] sm:$0xf0] }
  0x48   :  { %v2061_v49 = vor.u32 %v2469_v47, %v2060_v45  ;;  %v2172_v52 = vld [vmem:[%s3822_s1 + $0x268] sm:$0xf]  ;;  %v2497_v55 = vld [vmem:[%s3822_s1 + $0x274] sm:$0xf0] }
  0x49   :  { %1128 = vmatpush.bf16.msra.mxu0 %v1965_v5  ;;  %v2300_v58 = vld [vmem:[%s3822_s1 + $0x368] sm:$0xf]  ;;  %v2173_v59 = vor.u32 %v2497_v55, %v2172_v52  ;;  %v2529_v60 = vld [vmem:[%s3822_s1 + $0x374] sm:$0xf0]  ;;  %v2511_v52 = vld [vmem:[%s3822_s1 + $0x2ec] sm:$0xf] }
  0x4a   :  { %1186 = vmatpush.bf16.msra.mxu2 %v2221_v0  ;;  %v1916_v61 = vld [vmem:[%s3822_s1 + $0x68] sm:$0xf]  ;;  %v2433_v62 = vld [vmem:[%s3822_s1 + $0x74] sm:$0xf0]  ;;  %v2301_v63 = vor.u32 %v2529_v60, %v2300_v58  ;;  %v2238_v55 = vld [vmem:[%s3822_s1 + $0x2f8] sm:$0xf0] }
  0x4b   :  { %1215 = vmatpush.bf16.msra.mxu3 %v2349_v1  ;;  %1157 = vmatpush.bf16.msra.mxu1 %v2093_v7  ;;  %v1917_v0 = vor.u32 %v2433_v62, %v1916_v61  ;;  %v2044_v1 = vld [vmem:[%s3822_s1 + $0x168] sm:$0xf]  ;;  %v2465_v2 = vld [vmem:[%s3822_s1 + $0x174] sm:$0xf0]  ;;  %v2543_v58 = vld [vmem:[%s3822_s1 + $0x3ec] sm:$0xf] }
  0x4c   :  { %v2156_v3 = vld [vmem:[%s3822_s1 + $0x248] sm:$0xf]  ;;  %v2045_v4 = vor.u32 %v2465_v2, %v2044_v1  ;;  %v2493_v5 = vld [vmem:[%s3822_s1 + $0x254] sm:$0xf0]  ;;  %v2366_v60 = vld [vmem:[%s3822_s1 + $0x3f8] sm:$0xf0] }
  0x4d   :  { %1129 = vmatpush.bf16.msra.mxu0 %v1949_v28  ;;  %v2284_v6 = vld [vmem:[%s3822_s1 + $0x348] sm:$0xf]  ;;  %v2525_v7 = vld [vmem:[%s3822_s1 + $0x354] sm:$0xf0]  ;;  %v2157_v8 = vor.u32 %v2493_v5, %v2156_v3  ;;  %v2369_v61 = vor.u32 %v2543_v58, %v2366_v60  ;;  %v2447_v62 = vld [vmem:[%s3822_s1 + $0xec] sm:$0xf] }
  0x4e   :  { %1187 = vmatpush.bf16.msra.mxu2 %v2205_v23  ;;  %v2285_v9 = vor.u32 %v2525_v7, %v2284_v6  ;;  %v1900_v10 = vld [vmem:[%s3822_s1 + $0x48] sm:$0xf]  ;;  %v2429_v11 = vld [vmem:[%s3822_s1 + $0x54] sm:$0xf0]  ;;  %v2110_v2 = vld [vmem:[%s3822_s1 + $0x1f8] sm:$0xf0] }
  0x4f   :  { %1216 = vmatpush.bf16.msra.mxu3 %v2333_v27  ;;  %1158 = vmatpush.bf16.msra.mxu1 %v2077_v32  ;;  %v2028_v12 = vld [vmem:[%s3822_s1 + $0x148] sm:$0xf]  ;;  %v1901_v13 = vor.u32 %v2429_v11, %v1900_v10  ;;  %v2461_v14 = vld [vmem:[%s3822_s1 + $0x154] sm:$0xf0]  ;;  %v2507_v3 = vld [vmem:[%s3822_s1 + $0x2cc] sm:$0xf] }
  0x50   :  { %v2029_v15 = vor.u32 %v2461_v14, %v2028_v12  ;;  %v2140_v20 = vld [vmem:[%s3822_s1 + $0x228] sm:$0xf]  ;;  %v2489_v21 = vld [vmem:[%s3822_s1 + $0x234] sm:$0xf0]  ;;  %v2539_v7 = vld [vmem:[%s3822_s1 + $0x3cc] sm:$0xf] }
  0x51   :  { %1130 = vmatpush.bf16.msra.mxu0 %v1933_v46  ;;  %v2268_v22 = vld [vmem:[%s3822_s1 + $0x328] sm:$0xf]  ;;  %v2141_v23 = vor.u32 %v2489_v21, %v2140_v20  ;;  %v2521_v24 = vld [vmem:[%s3822_s1 + $0x334] sm:$0xf0]  ;;  %v2443_v10 = vld [vmem:[%s3822_s1 + $0xcc] sm:$0xf] }
  0x52   :  { %1188 = vmatpush.bf16.msra.mxu2 %v2189_v40  ;;  %v1884_v25 = vld [vmem:[%s3822_s1 + $0x28] sm:$0xf]  ;;  %v2425_v26 = vld [vmem:[%s3822_s1 + $0x34] sm:$0xf0]  ;;  %v2269_v27 = vor.u32 %v2521_v24, %v2268_v22  ;;  %v1966_v11 = vld [vmem:[%s3822_s1 + $0xd8] sm:$0xf0] }
  0x53   :  { %1217 = vmatpush.bf16.msra.mxu3 %v2317_v41  ;;  %1159 = vmatpush.bf16.msra.mxu1 %v2061_v49  ;;  %v1885_v28 = vor.u32 %v2425_v26, %v1884_v25  ;;  %v2012_v29 = vld [vmem:[%s3822_s1 + $0x128] sm:$0xf]  ;;  %v2457_v30 = vld [vmem:[%s3822_s1 + $0x134] sm:$0xf0]  ;;  %v2475_v12 = vld [vmem:[%s3822_s1 + $0x1cc] sm:$0xf] }
  0x54   :  { %918 = vmatmul.bf16.gmra.mxu0 %v3132_v16  ;;  %947 = vmatmul.bf16.gmra.mxu1 %v3134_v17  ;;  %v2124_v31 = vld [vmem:[%s3822_s1 + $0x208] sm:$0xf]  ;;  %v2013_v32 = vor.u32 %v2457_v30, %v2012_v29  ;;  %v2485_v33 = vld [vmem:[%s3822_s1 + $0x214] sm:$0xf0]  ;;  %v2094_v14 = vld [vmem:[%s3822_s1 + $0x1d8] sm:$0xf0] }
  0x55   :  { %976 = vmatmul.bf16.gmra.mxu2 %v3136_v18  ;;  %1131 = vmatpush.bf16.msra.mxu0 %v1917_v0  ;;  %v2252_v34 = vld [vmem:[%s3822_s1 + $0x308] sm:$0xf]  ;;  %v2517_v35 = vld [vmem:[%s3822_s1 + $0x314] sm:$0xf0]  ;;  %v2125_v40 = vor.u32 %v2485_v33, %v2124_v31  ;;  %v2479_v0 = vld [vmem:[%s3822_s1 + $0x1ec] sm:$0xf]  ;;  %v2097_v21 = vor.u32 %v2475_v12, %v2094_v14 }
  0x56   :  { %1005 = vmatmul.bf16.gmra.mxu3 %v3138_v19  ;;  %1189 = vmatpush.bf16.msra.mxu2 %v2173_v59  ;;  %v2253_v41 = vor.u32 %v2517_v35, %v2252_v34  ;;  %v1868_v42 = vld [vmem:[%s3822_s1 + $0x8] sm:$0xf]  ;;  %v2421_v43 = vld [vmem:[%s3822_s1 + $0x14] sm:$0xf0]  ;;  %v2241_v59 = vor.u32 %v2511_v52, %v2238_v55  ;;  %v2113_v5 = vor.u32 %v2479_v0, %v2110_v2  ;;  %v2206_v20 = vld [vmem:[%s3822_s1 + $0x2b8] sm:$0xf0] }
  0x57   :  { %1218 = vmatpush.bf16.msra.mxu3 %v2301_v63  ;;  %1160 = vmatpush.bf16.msra.mxu1 %v2045_v4  ;;  %v1996_v45 = vld [vmem:[%s3822_s1 + $0x108] sm:$0xf]  ;;  %v1869_v46 = vor.u32 %v2421_v43, %v1868_v42  ;;  %v2453_v47 = vld [vmem:[%s3822_s1 + $0x114] sm:$0xf0]  ;;  %v1982_v63 = vld [vmem:[%s3822_s1 + $0xf8] sm:$0xf0] }
  0x58   :  { %v1997_v49 = vor.u32 %v2453_v47, %v1996_v45  ;;  %v1985_v1 = vor.u32 %v2447_v62, %v1982_v63  ;;  %v2222_v4 = vld [vmem:[%s3822_s1 + $0x2d8] sm:$0xf0]  ;;  %v2439_v29 = vld [vmem:[%s3822_s1 + $0xac] sm:$0xf] }
  0x59   :  { %1132 = vmatpush.bf16.msra.mxu0 %v1901_v13  ;;  %v2225_v6 = vor.u32 %v2507_v3, %v2222_v4  ;;  %v1969_v13 = vor.u32 %v2443_v10, %v1966_v11  ;;  %v2334_v24 = vld [vmem:[%s3822_s1 + $0x3b8] sm:$0xf0]  ;;  %v2471_v31 = vld [vmem:[%s3822_s1 + $0x1ac] sm:$0xf] }
  0x5a   :  { %1190 = vmatpush.bf16.msra.mxu2 %v2157_v8  ;;  %v2350_v8 = vld [vmem:[%s3822_s1 + $0x3d8] sm:$0xf0]  ;;  %v2499_v34 = vld [vmem:[%s3822_s1 + $0x28c] sm:$0xf] }
  0x5b   :  { %1219 = vmatpush.bf16.msra.mxu3 %v2285_v9  ;;  %1161 = vmatpush.bf16.msra.mxu1 %v2029_v15  ;;  %v2353_v9 = vor.u32 %v2539_v7, %v2350_v8  ;;  %v2503_v15 = vld [vmem:[%s3822_s1 + $0x2ac] sm:$0xf]  ;;  %v1950_v30 = vld [vmem:[%s3822_s1 + $0xb8] sm:$0xf0] }
  0x5c   :  { %v2209_v22 = vor.u32 %v2503_v15, %v2206_v20  ;;  %v2078_v33 = vld [vmem:[%s3822_s1 + $0x1b8] sm:$0xf0]  ;;  %v2531_v42 = vld [vmem:[%s3822_s1 + $0x38c] sm:$0xf] }
  0x5d   :  { %1133 = vmatpush.bf16.msra.mxu0 %v1885_v28  ;;  %v2190_v35 = vld [vmem:[%s3822_s1 + $0x298] sm:$0xf0]  ;;  %v2527_v2 = vld [vmem:[%s3822_s1 + $0x36c] sm:$0xf] }
  0x5e   :  { %1191 = vmatpush.bf16.msra.mxu2 %v2141_v23  ;;  %v2535_v23 = vld [vmem:[%s3822_s1 + $0x3ac] sm:$0xf]  ;;  %v2318_v43 = vld [vmem:[%s3822_s1 + $0x398] sm:$0xf0] }
  0x5f   :  { %1220 = vmatpush.bf16.msra.mxu3 %v2269_v27  ;;  %1162 = vmatpush.bf16.msra.mxu1 %v2013_v32  ;;  %v2337_v25 = vor.u32 %v2535_v23, %v2334_v24  ;;  %v1953_v32 = vor.u32 %v2439_v29, %v1950_v30  ;;  %v2321_v45 = vor.u32 %v2531_v42, %v2318_v43  ;;  %v1934_v47 = vld [vmem:[%s3822_s1 + $0x98] sm:$0xf0]  ;;  %v2463_v23 = vld [vmem:[%s3822_s1 + $0x16c] sm:$0xf] }
  0x60   :  { %v2062_v58 = vld [vmem:[%s3822_s1 + $0x198] sm:$0xf0] }
  0x61   :  { %1134 = vmatpush.bf16.msra.mxu0 %v1869_v46  ;;  %v2435_v46 = vld [vmem:[%s3822_s1 + $0x8c] sm:$0xf]  ;;  %v2174_v60 = vld [vmem:[%s3822_s1 + $0x278] sm:$0xf0] }
  0x62   :  { %1192 = vmatpush.bf16.msra.mxu2 %v2125_v40  ;;  %v2081_v40 = vor.u32 %v2471_v31, %v2078_v33  ;;  %v1937_v55 = vor.u32 %v2435_v46, %v1934_v47  ;;  %v2302_v3 = vld [vmem:[%s3822_s1 + $0x378] sm:$0xf0]  ;;  %v2487_v47 = vld [vmem:[%s3822_s1 + $0x22c] sm:$0xf] }
  0x63   :  { %1221 = vmatpush.bf16.msra.mxu3 %v2253_v41  ;;  %1163 = vmatpush.bf16.msra.mxu1 %v1997_v49  ;;  %v2193_v41 = vor.u32 %v2499_v34, %v2190_v35  ;;  %v2467_v49 = vld [vmem:[%s3822_s1 + $0x18c] sm:$0xf]  ;;  %v2286_v33 = vld [vmem:[%s3822_s1 + $0x358] sm:$0xf0] }
  0x64   :  { %1019 = vmatmul.bf16.vlgmr.msrb.gmra.mxu0 %v2805_v48  ;;  %1048 = vmatmul.bf16.vlgmr.msrb.gmra.mxu1 %v2816_v53  ;;  %v2065_v0 = vor.u32 %v2467_v49, %v2062_v58  ;;  %v2030_v46 = vld [vmem:[%s3822_s1 + $0x158] sm:$0xf0] }
  0x65   :  { %1077 = vmatmul.bf16.vlgmr.msrb.gmra.mxu2 %v2818_v54  ;;  %1243 = vmatpush.bf16.msrb.mxu0 %v1985_v1 }
  0x66   :  { %1106 = vmatmul.bf16.vlgmr.msrb.gmra.mxu3 %v2826_v57  ;;  %1301 = vmatpush.bf16.msrb.mxu2 %v2241_v59  ;;  %v2495_v59 = vld [vmem:[%s3822_s1 + $0x26c] sm:$0xf] }
  0x67   :  { %1330 = vmatpush.bf16.msrb.mxu3 %v2369_v61  ;;  %1272 = vmatpush.bf16.msrb.mxu1 %v2113_v5  ;;  %v2177_v1 = vor.u32 %v2495_v59, %v2174_v60  ;;  %v2305_v5 = vor.u32 %v2527_v2, %v2302_v3  ;;  %v2142_v59 = vld [vmem:[%s3822_s1 + $0x238] sm:$0xf0]  ;;  %v2519_v60 = vld [vmem:[%s3822_s1 + $0x32c] sm:$0xf] }
  0x69   :  { %1244 = vmatpush.bf16.msrb.mxu0 %v1969_v13 }
  0x6a   :  { %1302 = vmatpush.bf16.msrb.mxu2 %v2225_v6 }
  0x6b   :  { %1331 = vmatpush.bf16.msrb.mxu3 %v2353_v9  ;;  %1273 = vmatpush.bf16.msrb.mxu1 %v2097_v21  ;;  %v2431_v21 = vld [vmem:[%s3822_s1 + $0x6c] sm:$0xf] }
  0x6d   :  { %1245 = vmatpush.bf16.msrb.mxu0 %v1953_v32  ;;  %v2523_v32 = vld [vmem:[%s3822_s1 + $0x34c] sm:$0xf] }
  0x6e   :  { %1303 = vmatpush.bf16.msrb.mxu2 %v2209_v22  ;;  %v1918_v22 = vld [vmem:[%s3822_s1 + $0x78] sm:$0xf0]  ;;  %v2289_v34 = vor.u32 %v2523_v32, %v2286_v33  ;;  %v2451_v33 = vld [vmem:[%s3822_s1 + $0x10c] sm:$0xf] }
  0x6f   :  { %1332 = vmatpush.bf16.msrb.mxu3 %v2337_v25  ;;  %1274 = vmatpush.bf16.msrb.mxu1 %v2081_v40  ;;  %v1921_v24 = vor.u32 %v2431_v21, %v1918_v22  ;;  %v2046_v25 = vld [vmem:[%s3822_s1 + $0x178] sm:$0xf0]  ;;  %v2427_v40 = vld [vmem:[%s3822_s1 + $0x4c] sm:$0xf] }
  0x70   :  { %v2049_v30 = vor.u32 %v2463_v23, %v2046_v25  ;;  %v2126_v21 = vld [vmem:[%s3822_s1 + $0x218] sm:$0xf0]  ;;  %v2515_v22 = vld [vmem:[%s3822_s1 + $0x30c] sm:$0xf] }
  0x71   :  { %1246 = vmatpush.bf16.msrb.mxu0 %v1937_v55  ;;  %v1870_v32 = vld [vmem:[%s3822_s1 + $0x18] sm:$0xf0] }
  0x72   :  { %1304 = vmatpush.bf16.msrb.mxu2 %v2193_v41  ;;  %v1902_v41 = vld [vmem:[%s3822_s1 + $0x58] sm:$0xf0] }
  0x73   :  { %1333 = vmatpush.bf16.msrb.mxu3 %v2321_v45  ;;  %1275 = vmatpush.bf16.msrb.mxu1 %v2065_v0  ;;  %v1905_v43 = vor.u32 %v2427_v40, %v1902_v41  ;;  %v2459_v45 = vld [vmem:[%s3822_s1 + $0x14c] sm:$0xf]  ;;  %v2270_v0 = vld [vmem:[%s3822_s1 + $0x338] sm:$0xf0] }
  0x74   :  { %1024 = vmatmul.bf16.gmra.mxu0 %v2937_v44  ;;  %1053 = vmatmul.bf16.gmra.mxu1 %v2948_v50  ;;  %v2033_v58 = vor.u32 %v2459_v45, %v2030_v46 }
  0x75   :  { %1082 = vmatmul.bf16.gmra.mxu2 %v2950_v51  ;;  %1247 = vmatpush.bf16.msrb.mxu0 %v1921_v24 }
  0x76   :  { %1111 = vmatmul.bf16.gmra.mxu3 %v2958_v56  ;;  %1305 = vmatpush.bf16.msrb.mxu2 %v2177_v1 }
  0x77   :  { %1334 = vmatpush.bf16.msrb.mxu3 %v2305_v5  ;;  %1276 = vmatpush.bf16.msrb.mxu1 %v2049_v30  ;;  %v2423_v5 = vld [vmem:[%s3822_s1 + $0x2c] sm:$0xf] }
  0x79   :  { %1248 = vmatpush.bf16.msrb.mxu0 %v1905_v43  ;;  %v1998_v43 = vld [vmem:[%s3822_s1 + $0x118] sm:$0xf0] }
  0x7a   :  { %v2001_v45 = vor.u32 %v2451_v33, %v1998_v43 }
  0x7b   :  { %1335 = vmatpush.bf16.msrb.mxu3 %v2289_v34  ;;  %1277 = vmatpush.bf16.msrb.mxu1 %v2033_v58 }
  0x84   :  { %1029 = vmatmul.bf16.gmra.mxu0 %v3048_v36  ;;  %1058 = vmatmul.bf16.gmra.mxu1 %v3050_v37 }
  0x85   :  { %1087 = vmatmul.bf16.gmra.mxu2 %v3052_v38 }
  0x86   :  { %1116 = vmatmul.bf16.gmra.mxu3 %v3054_v39 }
  0x94   :  { %1034 = vmatmul.bf16.gmra.mxu0 %v3132_v16  ;;  %1063 = vmatmul.bf16.gmra.mxu1 %v3134_v17 }
  0x95   :  { %1092 = vmatmul.bf16.gmra.mxu2 %v3136_v18 }
  0x96   :  { %1121 = vmatmul.bf16.gmra.mxu3 %v3138_v19 }
  0xa1   :  { %v904_v26 = vpop.f32.mrf.mxu0  ;;  %v933_v27 = vpop.f32.mrf.mxu1 }
  0xa2   :  { %v934_v28 = vadd.f32 %v933_v27, %v904_v26  ;;  %v2491_v26 = vld [vmem:[%s3822_s1 + $0x24c] sm:$0xf]  ;;  %v2158_v27 = vld [vmem:[%s3822_s1 + $0x258] sm:$0xf0] }
  0xa3   :  { %v2161_v31 = vor.u32 %v2491_v26, %v2158_v27  ;;  %v2254_v27 = vld [vmem:[%s3822_s1 + $0x318] sm:$0xf0] }
  0xa4   :  { %1135 = vmatmul.bf16.vlgmr.msra.gmra.mxu0 %v2805_v48  ;;  %1164 = vmatmul.bf16.vlgmr.msra.gmra.mxu1 %v2816_v53 }
  0xa5   :  { %1193 = vmatmul.bf16.vlgmr.msra.gmra.mxu2 %v2818_v54 }
  0xa6   :  { %1222 = vmatmul.bf16.vlgmr.msra.gmra.mxu3 %v2826_v57  ;;  %1306 = vmatpush.bf16.msrb.mxu2 %v2161_v31  ;;  %v2257_v31 = vor.u32 %v2515_v22, %v2254_v27 }
  0xa8   :  { %v962_v52 = vpop.f32.mrf.mxu2 }
  0xa9   :  { %v963_v61 = vadd.f32 %v962_v52, %v934_v28  ;;  %v991_v62 = vpop.f32.mrf.mxu3  ;;  %v906_v63 = vpop.f32.mrf.mxu0 }
  0xaa   :  { %v935_v4 = vpop.f32.mrf.mxu1 }
  0xab   :  { %v3416_v6 = vadd.f32 %v991_v62, %v963_v61  ;;  %v936_v7 = vadd.f32 %v935_v4, %v906_v63  ;;  %v2145_v63 = vor.u32 %v2487_v47, %v2142_v59  ;;  %v2273_v4 = vor.u32 %v2519_v60, %v2270_v0 }
  0xad   :  { %vm1442_vm0 = vcmp.ge.f32.partialorder %v3416_v6, 1.25  ;;  %v1474_v13 = vmul.f32 0.75, %v3416_v6  ;;  %1307 = vmatpush.bf16.msrb.mxu2 %v2145_v63  ;;  %1336 = vmatpush.bf16.msrb.mxu3 %v2273_v4 }
  0xae   :  { %v1446_v12 = vsel %vm1442_vm0, 0.0, %v3416_v6 }
  0xaf   :  { %v1482_v28 = vmul.f32 0.97, %v1446_v12  ;;  %v2014_v12 = vld [vmem:[%s3822_s1 + $0x138] sm:$0xf0] }
  0xb0   :  { %v964_v8 = vpop.f32.mrf.mxu2 }
  0xb1   :  { %v965_v9 = vadd.f32 %v964_v8, %v936_v7  ;;  %v993_v10 = vpop.f32.mrf.mxu3  ;;  %v909_v11 = vpop.f32.mrf.mxu0  ;;  %v1886_v7 = vld [vmem:[%s3822_s1 + $0x38] sm:$0xf0]  ;;  %v2455_v8 = vld [vmem:[%s3822_s1 + $0x12c] sm:$0xf]  ;;  %1337 = vmatpush.bf16.msrb.mxu3 %v2257_v31 }
  0xb2   :  { %v938_v14 = vpop.f32.mrf.mxu1 }
  0xb3   :  { %v994_v15 = vadd.f32 %v993_v10, %v965_v9  ;;  %v939_v20 = vadd.f32 %v938_v14, %v909_v11  ;;  %v1889_v11 = vor.u32 %v2423_v5, %v1886_v7 }
  0xb4   :  { %1140 = vmatmul.bf16.gmra.mxu0 %v2937_v44  ;;  %1169 = vmatmul.bf16.gmra.mxu1 %v2948_v50 }
  0xb5   :  { %v1478_v29 = vadd.f32 %v1474_v13, %v994_v15  ;;  %1198 = vmatmul.bf16.gmra.mxu2 %v2950_v51  ;;  %v2017_v13 = vor.u32 %v2455_v8, %v2014_v12  ;;  %1249 = vmatpush.bf16.msrb.mxu0 %v1889_v11 }
  0xb6   :  { %1227 = vmatmul.bf16.gmra.mxu3 %v2958_v56 }
  0xb7   :  { %v3451_v35 = vadd.f32 %v1482_v28, %v1478_v29  ;;  %v1518_v2 = vmul.f32 0.75, %v1478_v29  ;;  %1278 = vmatpush.bf16.msrb.mxu1 %v2017_v13  ;;  %v2419_v28 = vld [vmem:[%s3822_s1 + $0xc] sm:$0xf] }
  0xb8   :  { %v967_v42 = vpop.f32.mrf.mxu2 }
  0xb9   :  { %v968_v49 = vadd.f32 %v967_v42, %v939_v20  ;;  %v996_v52 = vpop.f32.mrf.mxu3  ;;  %vm1490_vm1 = vcmp.ge.f32.partialorder %v3451_v35, 1.25  ;;  %v911_v55 = vpop.f32.mrf.mxu0  ;;  %v2483_v20 = vld [vmem:[%s3822_s1 + $0x20c] sm:$0xf]  ;;  %v1873_v42 = vor.u32 %v2419_v28, %v1870_v32 }
  0xba   :  { %v1494_v61 = vsel %vm1490_vm1, 0.0, %v3451_v35  ;;  %v940_v62 = vpop.f32.mrf.mxu1  ;;  %v2129_v26 = vor.u32 %v2483_v20, %v2126_v21 }
  0xbb   :  { %v997_v1 = vadd.f32 %v996_v52, %v968_v49  ;;  %v941_v3 = vadd.f32 %v940_v62, %v911_v55  ;;  %v1526_v10 = vmul.f32 0.97, %v1494_v61  ;;  %1250 = vmatpush.bf16.msrb.mxu0 %v1873_v42  ;;  %1279 = vmatpush.bf16.msrb.mxu1 %v2001_v45 }
  0xbc   :  { %1308 = vmatpush.bf16.msrb.mxu2 %v2129_v26 }
  0xbd   :  { %v1522_v9 = vadd.f32 %v1518_v2, %v997_v1 }
  0xbf   :  { %v3493_v14 = vadd.f32 %v1526_v10, %v1522_v9  ;;  %v1562_v34 = vmul.f32 0.75, %v1522_v9 }
  0xc0   :  { %v969_v15 = vpop.f32.mrf.mxu2 }
  0xc1   :  { %vm1534_vm2 = vcmp.ge.f32.partialorder %v3493_v14, 1.25  ;;  %v970_v23 = vadd.f32 %v969_v15, %v941_v3  ;;  %v998_v24 = vpop.f32.mrf.mxu3  ;;  %v914_v25 = vpop.f32.mrf.mxu0 }
  0xc2   :  { %v1538_v29 = vsel %vm1534_vm2, 0.0, %v3493_v14  ;;  %v943_v30 = vpop.f32.mrf.mxu1 }
  0xc3   :  { %v999_v40 = vadd.f32 %v998_v24, %v970_v23  ;;  %v944_v41 = vadd.f32 %v943_v30, %v914_v25  ;;  %v1570_v46 = vmul.f32 0.97, %v1538_v29 }
  0xc4   :  { %1145 = vmatmul.bf16.gmra.mxu0 %v3048_v36  ;;  %1174 = vmatmul.bf16.gmra.mxu1 %v3050_v37 }
  0xc5   :  { %v1566_v47 = vadd.f32 %v1562_v34, %v999_v40  ;;  %1203 = vmatmul.bf16.gmra.mxu2 %v3052_v38 }
  0xc6   :  { %1232 = vmatmul.bf16.gmra.mxu3 %v3054_v39 }
  0xc7   :  { %v3527_v49 = vadd.f32 %v1570_v46, %v1566_v47  ;;  %v1606_v63 = vmul.f32 0.75, %v1566_v47 }
  0xc8   :  { %v972_v52 = vpop.f32.mrf.mxu2 }
  0xc9   :  { %v973_v55 = vadd.f32 %v972_v52, %v944_v41  ;;  %v1001_v58 = vpop.f32.mrf.mxu3  ;;  %vm1578_vm3 = vcmp.ge.f32.partialorder %v3527_v49, 1.25  ;;  %v916_v59 = vpop.f32.mrf.mxu0  ;;  %v3559_v52 = vld [vmem:[%s3824_s2] sm:$0xf] }
  0xca   :  { %v1582_v60 = vsel %vm1578_vm3, 0.0, %v3527_v49  ;;  %v945_v61 = vpop.f32.mrf.mxu1 }
  0xcb   :  { %v1002_v62 = vadd.f32 %v1001_v58, %v973_v55  ;;  %v946_v0 = vadd.f32 %v945_v61, %v916_v59  ;;  %v1614_v2 = vmul.f32 0.97, %v1582_v60  ;;  %v1393_v61 = vperm.slane %v3559_v52, 0 }
  0xcd   :  { %v1610_v1 = vadd.f32 %v1606_v63, %v1002_v62  ;;  %vm1405_vm7 = vcmp.eq.f32.partialorder %v1393_v61, 2.0  ;;  %vm1401_vm9 = vcmp.eq.f32.partialorder %v1393_v61, 1.0 }
  0xcf   :  { %v3533_v3 = vadd.f32 %v1614_v2, %v1610_v1  ;;  %v1650_v11 = vmul.f32 0.75, %v1610_v1 }
  0xd0   :  { %v974_v4 = vpop.f32.mrf.mxu2 }
  0xd1   :  { %vm1622_vm4 = vcmp.ge.f32.partialorder %v3533_v3, 1.25  ;;  %v975_v5 = vadd.f32 %v974_v4, %v946_v0  ;;  %v1003_v7 = vpop.f32.mrf.mxu3  ;;  %v919_v8 = vpop.f32.mrf.mxu0 }
  0xd2   :  { %v1626_v9 = vsel %vm1622_vm4, 0.0, %v3533_v3  ;;  %v948_v10 = vpop.f32.mrf.mxu1 }
  0xd3   :  { %v1004_v12 = vadd.f32 %v1003_v7, %v975_v5  ;;  %v949_v13 = vadd.f32 %v948_v10, %v919_v8  ;;  %v1658_v15 = vmul.f32 0.97, %v1626_v9 }
  0xd4   :  { %1150 = vmatmul.bf16.gmra.mxu0 %v3132_v16  ;;  %1179 = vmatmul.bf16.gmra.mxu1 %v3134_v17 }
  0xd5   :  { %v1654_v20 = vadd.f32 %v1650_v11, %v1004_v12  ;;  %1208 = vmatmul.bf16.gmra.mxu2 %v3136_v18 }
  0xd6   :  { %1237 = vmatmul.bf16.gmra.mxu3 %v3138_v19 }
  0xd7   :  { %v3543_v21 = vadd.f32 %v1658_v15, %v1654_v20  ;;  %v1694_v29 = vmul.f32 0.75, %v1654_v20 }
  0xd8   :  { %v977_v22 = vpop.f32.mrf.mxu2 }
  0xd9   :  { %v978_v23 = vadd.f32 %v977_v22, %v949_v13  ;;  %v1006_v24 = vpop.f32.mrf.mxu3  ;;  %vm1666_vm5 = vcmp.ge.f32.partialorder %v3543_v21, 1.25  ;;  %v921_v25 = vpop.f32.mrf.mxu0 }
  0xda   :  { %v1670_v26 = vsel %vm1666_vm5, 0.0, %v3543_v21  ;;  %v950_v27 = vpop.f32.mrf.mxu1 }
  0xdb   :  { %v1007_v28 = vadd.f32 %v1006_v24, %v978_v23  ;;  %v951_v30 = vadd.f32 %v950_v27, %v921_v25  ;;  %v1702_v32 = vmul.f32 0.97, %v1670_v26 }
  0xdd   :  { %v1698_v31 = vadd.f32 %v1694_v29, %v1007_v28 }
  0xdf   :  { %v3549_v33 = vadd.f32 %v1702_v32, %v1698_v31  ;;  %v1738_v46 = vmul.f32 0.75, %v1698_v31 }
  0xe0   :  { %v979_v34 = vpop.f32.mrf.mxu2 }
  0xe1   :  { %vm1710_vm6 = vcmp.ge.f32.partialorder %v3549_v33, 1.25  ;;  %v980_v40 = vadd.f32 %v979_v34, %v951_v30  ;;  %v1008_v41 = vpop.f32.mrf.mxu3  ;;  %v1020_v42 = vpop.f32.mrf.mxu0 }
  0xe2   :  { %v1714_v43 = vsel %vm1710_vm6, 0.0, %v3549_v33  ;;  %v1049_v45 = vpop.f32.mrf.mxu1 }
  0xe3   :  { %v1009_v47 = vadd.f32 %v1008_v41, %v980_v40  ;;  %v1746_v55 = vmul.f32 0.97, %v1714_v43  ;;  %v1050_v59 = vadd.f32 %v1049_v45, %v1020_v42 }
  0xe4   :  { %1251 = vmatmul.bf16.vlgmr.msrb.gmra.mxu0 %v2805_v48  ;;  %1280 = vmatmul.bf16.vlgmr.msrb.gmra.mxu1 %v2816_v53  ;;  %v1394_v48 = vperm.slane %v3559_v52, 1  ;;  %v2547_v53 = vmov 0.0  }
  0xe5   :  { %v1742_v58 = vadd.f32 %v1738_v46, %v1009_v47  ;;  %1309 = vmatmul.bf16.vlgmr.msrb.gmra.mxu2 %v2818_v54  ;;  %v2370_v54 = vsel %vm1442_vm0, 1.0, %v2547_v53  ;;  %v2374_v34 = vsel %vm1490_vm1, 1.0, %v2547_v53 }
  0xe6   :  { %1338 = vmatmul.bf16.vlgmr.msrb.gmra.mxu3 %v2826_v57  ;;  %vm1406_vm8 = vcmp.eq.f32.partialorder %v1394_v48, 2.0  ;;  %vm1402_vm10 = vcmp.eq.f32.partialorder %v1394_v48, 1.0  ;;  %v2378_v48 = vsel %vm1534_vm2, 1.0, %v2547_v53 }
  0xe7   :  { %v3564_v60 = vadd.f32 %v1746_v55, %v1742_v58  ;;  %vm3572_vm12 = vmpackc.low %vm1406_vm8, %vm1405_vm7 }
  0xe8   :  { %v1078_v62 = vpop.f32.mrf.mxu2  ;;  %vm3578_vm13 = vmpackc.low %vm1402_vm10, %vm1401_vm9 }
  0xe9   :  { %v1079_v63 = vadd.f32 %v1078_v62, %v1050_v59  ;;  %v1107_v0 = vpop.f32.mrf.mxu3  ;;  %v1022_v1 = vpop.f32.mrf.mxu0 }
  0xea   :  { %v1051_v2 = vpop.f32.mrf.mxu1 }
  0xeb   :  { %v1108_v4 = vadd.f32 %v1107_v0, %v1079_v63  ;;  %v1052_v9 = vadd.f32 %v1051_v2, %v1022_v1 }
  0xed   :  { %vm1443_vm11 = vcmp.ge.f32.partialorder %v1108_v4, 1.25  ;;  %v1475_v24 = vmul.f32 0.75, %v1108_v4 }
  0xee   :  { %v2371_v57 = vsel %vm1443_vm11, 1.0, %v2547_v53  ;;  %v1447_v15 = vsel %vm1443_vm11, 0.0, %v1108_v4 }
  0xef   :  { %v3576_v7 = vpack.c.bf16 %v2371_v57, %v2370_v54  ;;  %v1483_v25 = vmul.f32 0.97, %v1447_v15 }
  0xf0   :  { %v1080_v10 = vpop.f32.mrf.mxu2 }
  0xf1   :  { %v1462_v11 = vsel %vm3572_vm12, 0, %v3576_v7  ;;  %v1081_v6 = vadd.f32 %v1080_v10, %v1052_v9  ;;  %v1109_v12 = vpop.f32.mrf.mxu3  ;;  %v1025_v13 = vpop.f32.mrf.mxu0 }
  0xf2   :  { %v1466_v20 = vsel %vm3578_vm13, 0, %v1462_v11  ;;  %v1054_v22 = vpop.f32.mrf.mxu1 }
  0xf3   :  { %1468 = vst [vmem:[%s3825_s3] sm:$0xff] %v1466_v20  ;;  %v1110_v23 = vadd.f32 %v1109_v12, %v1081_v6  ;;  %v1055_v27 = vadd.f32 %v1054_v22, %v1025_v13 }
  0xf4   :  { %1256 = vmatmul.bf16.gmra.mxu0 %v2937_v44  ;;  %1285 = vmatmul.bf16.gmra.mxu1 %v2948_v50 }
  0xf5   :  { %v1479_v26 = vadd.f32 %v1475_v24, %v1110_v23  ;;  %1314 = vmatmul.bf16.gmra.mxu2 %v2950_v51 }
  0xf6   :  { %1343 = vmatmul.bf16.gmra.mxu3 %v2958_v56 }
  0xf7   :  { %v1487_v28 = vadd.f32 %v1483_v25, %v1479_v26  ;;  %v1519_v43 = vmul.f32 0.75, %v1479_v26 }
  0xf8   :  { %v1083_v29 = vpop.f32.mrf.mxu2 }
  0xf9   :  { %vm1491_vm14 = vcmp.ge.f32.partialorder %v1487_v28, 1.25  ;;  %v1084_v30 = vadd.f32 %v1083_v29, %v1055_v27  ;;  %v1112_v31 = vpop.f32.mrf.mxu3  ;;  %v1027_v32 = vpop.f32.mrf.mxu0 }
  0xfa   :  { %v1495_v44 = vsel %vm1491_vm14, 0.0, %v1487_v28  ;;  %v2375_v40 = vsel %vm1491_vm14, 1.0, %v2547_v53  ;;  %v1056_v41 = vpop.f32.mrf.mxu1 }
  0xfb   :  { %v1506_v42 = vpack.c.bf16 %v2375_v40, %v2374_v34  ;;  %v1113_v50 = vadd.f32 %v1112_v31, %v1084_v30  ;;  %v1527_v45 = vmul.f32 0.97, %v1495_v44  ;;  %v1057_v47 = vadd.f32 %v1056_v41, %v1027_v32 }
  0xfc   :  { %v2386_v32 = vsel %vm1622_vm4, 1.0, %v2547_v53  ;;  %vm1754_vm4 = vcmp.ge.f32.partialorder %v3564_v60, 1.25 }
  0xfd   :  { %v1508_v51 = vsel %vm3572_vm12, 0, %v1506_v42  ;;  %v1523_v56 = vadd.f32 %v1519_v43, %v1113_v50 }
  0xfe   :  { %v1510_v46 = vsel %vm3578_vm13, %v3576_v7, %v1508_v51 }
  0xff   :  { %1512 = vst [vmem:[%s3825_s3 + $0x10] sm:$0xff] %v1510_v46  ;;  %v1531_v35 = vadd.f32 %v1527_v45, %v1523_v56  ;;  %v1563_v4 = vmul.f32 0.75, %v1523_v56 }
 0x100   :  { %v1085_v55 = vpop.f32.mrf.mxu2 }
 0x101   :  { %vm1535_vm15 = vcmp.ge.f32.partialorder %v1531_v35, 1.25  ;;  %v1086_v58 = vadd.f32 %v1085_v55, %v1057_v47  ;;  %v1114_v59 = vpop.f32.mrf.mxu3  ;;  %v1030_v61 = vpop.f32.mrf.mxu0 }
 0x102   :  { %v1539_v62 = vsel %vm1535_vm15, 0.0, %v1531_v35  ;;  %v2379_v63 = vsel %vm1535_vm15, 1.0, %v2547_v53  ;;  %v1059_v0 = vpop.f32.mrf.mxu1 }
 0x103   :  { %v1550_v1 = vpack.c.bf16 %v2379_v63, %v2378_v48  ;;  %v1115_v2 = vadd.f32 %v1114_v59, %v1086_v58  ;;  %v1571_v9 = vmul.f32 0.97, %v1539_v62  ;;  %v1060_v10 = vadd.f32 %v1059_v0, %v1030_v61 }
 0x104   :  { %1261 = vmatmul.bf16.gmra.mxu0 %v3048_v36  ;;  %1290 = vmatmul.bf16.gmra.mxu1 %v3050_v37  ;;  %v2382_v37 = vsel %vm1578_vm3, 1.0, %v2547_v53 }
 0x105   :  { %v1552_v54 = vsel %vm3572_vm12, %v3576_v7, %v1550_v1  ;;  %v1567_v57 = vadd.f32 %v1563_v4, %v1115_v2  ;;  %1319 = vmatmul.bf16.gmra.mxu2 %v3052_v38 }
 0x106   :  { %v1554_v14 = vsel %vm3578_vm13, %v1506_v42, %v1552_v54  ;;  %1348 = vmatmul.bf16.gmra.mxu3 %v3054_v39 }
 0x107   :  { %1556 = vst [vmem:[%s3825_s3 + $0x20] sm:$0xff] %v1554_v14  ;;  %v1575_v36 = vadd.f32 %v1571_v9, %v1567_v57  ;;  %v1607_v22 = vmul.f32 0.75, %v1567_v57 }
 0x108   :  { %v1088_v11 = vpop.f32.mrf.mxu2 }
 0x109   :  { %vm1579_vm0 = vcmp.ge.f32.partialorder %v1575_v36, 1.25  ;;  %v1089_v7 = vadd.f32 %v1088_v11, %v1060_v10  ;;  %v1117_v6 = vpop.f32.mrf.mxu3  ;;  %v1032_v12 = vpop.f32.mrf.mxu0  ;;  %v2394_v10 = vsel %vm1710_vm6, 1.0, %v2547_v53 }
 0x10a   :  { %v1583_v38 = vsel %vm1579_vm0, 0.0, %v1575_v36  ;;  %v2383_v13 = vsel %vm1579_vm0, 1.0, %v2547_v53  ;;  %v1061_v15 = vpop.f32.mrf.mxu1 }
 0x10b   :  { %v1594_v20 = vpack.c.bf16 %v2383_v13, %v2382_v37  ;;  %v1118_v39 = vadd.f32 %v1117_v6, %v1089_v7  ;;  %v1615_v25 = vmul.f32 0.97, %v1583_v38  ;;  %v1062_v27 = vadd.f32 %v1061_v15, %v1032_v12 }
 0x10d   :  { %v1596_v23 = vsel %vm3572_vm12, %v1506_v42, %v1594_v20  ;;  %v1611_v24 = vadd.f32 %v1607_v22, %v1118_v39 }
 0x10e   :  { %v1598_v26 = vsel %vm3578_vm13, %v1550_v1, %v1596_v23 }
 0x10f   :  { %1600 = vst [vmem:[%s3825_s3 + $0x30] sm:$0xff] %v1598_v26  ;;  %v1619_v49 = vadd.f32 %v1615_v25, %v1611_v24  ;;  %v1651_v50 = vmul.f32 0.75, %v1611_v24  ;;  %v2398_v25 = vsel %vm1754_vm4, 1.0, %v2547_v53 }
 0x110   :  { %v1090_v28 = vpop.f32.mrf.mxu2 }
 0x111   :  { %vm1623_vm1 = vcmp.ge.f32.partialorder %v1619_v49, 1.25  ;;  %v1091_v29 = vadd.f32 %v1090_v28, %v1062_v27  ;;  %v1119_v30 = vpop.f32.mrf.mxu3  ;;  %v1035_v31 = vpop.f32.mrf.mxu0 }
 0x112   :  { %v1627_v34 = vsel %vm1623_vm1, 0.0, %v1619_v49  ;;  %v2387_v44 = vsel %vm1623_vm1, 1.0, %v2547_v53  ;;  %v1064_v40 = vpop.f32.mrf.mxu1 }
 0x113   :  { %v1638_v41 = vpack.c.bf16 %v2387_v44, %v2386_v32  ;;  %v1120_v42 = vadd.f32 %v1119_v30, %v1091_v29  ;;  %v1659_v56 = vmul.f32 0.97, %v1627_v34  ;;  %v1065_v45 = vadd.f32 %v1064_v40, %v1035_v31 }
 0x114   :  { %1266 = vmatmul.bf16.gmra.mxu0 %v3132_v16  ;;  %1295 = vmatmul.bf16.gmra.mxu1 %v3134_v17  ;;  %v2390_v17 = vsel %vm1666_vm5, 1.0, %v2547_v53 }
 0x115   :  { %v1640_v43 = vsel %vm3572_vm12, %v1550_v1, %v1638_v41  ;;  %v1655_v51 = vadd.f32 %v1651_v50, %v1120_v42  ;;  %1324 = vmatmul.bf16.gmra.mxu2 %v3136_v18 }
 0x116   :  { %v1642_v3 = vsel %vm3578_vm13, %v1594_v20, %v1640_v43  ;;  %1353 = vmatmul.bf16.gmra.mxu3 %v3138_v19 }
 0x117   :  { %1644 = vst [vmem:[%s3825_s3 + $0x40] sm:$0xff] %v1642_v3  ;;  %v1663_v16 = vadd.f32 %v1659_v56, %v1655_v51  ;;  %v1695_v48 = vmul.f32 0.75, %v1655_v51 }
 0x118   :  { %v1093_v46 = vpop.f32.mrf.mxu2 }
 0x119   :  { %vm1667_vm2 = vcmp.ge.f32.partialorder %v1663_v16, 1.25  ;;  %v1094_v35 = vadd.f32 %v1093_v46, %v1065_v45  ;;  %v1122_v47 = vpop.f32.mrf.mxu3  ;;  %v1037_v55 = vpop.f32.mrf.mxu0 }
 0x11a   :  { %v1671_v18 = vsel %vm1667_vm2, 0.0, %v1663_v16  ;;  %v2391_v58 = vsel %vm1667_vm2, 1.0, %v2547_v53  ;;  %v1066_v59 = vpop.f32.mrf.mxu1 }
 0x11b   :  { %v1682_v61 = vpack.c.bf16 %v2391_v58, %v2390_v17  ;;  %v1123_v19 = vadd.f32 %v1122_v47, %v1094_v35  ;;  %v1703_v0 = vmul.f32 0.97, %v1671_v18  ;;  %v1067_v2 = vadd.f32 %v1066_v59, %v1037_v55 }
 0x11d   :  { %v1684_v62 = vsel %vm3572_vm12, %v1594_v20, %v1682_v61  ;;  %v1699_v63 = vadd.f32 %v1695_v48, %v1123_v19 }
 0x11e   :  { %v1686_v1 = vsel %vm3578_vm13, %v1638_v41, %v1684_v62 }
 0x11f   :  { %1688 = vst [vmem:[%s3825_s3 + $0x50] sm:$0xff] %v1686_v1  ;;  %v1707_v21 = vadd.f32 %v1703_v0, %v1699_v63  ;;  %v1739_v12 = vmul.f32 0.75, %v1699_v63 }
 0x120   :  { %v1095_v4 = vpop.f32.mrf.mxu2 }
 0x121   :  { %vm1711_vm3 = vcmp.ge.f32.partialorder %v1707_v21, 1.25  ;;  %v1096_v54 = vadd.f32 %v1095_v4, %v1067_v2  ;;  %v1124_v57 = vpop.f32.mrf.mxu3  ;;  %v1136_v9 = vpop.f32.mrf.mxu0 }
 0x122   :  { %v1715_v14 = vsel %vm1711_vm3, 0.0, %v1707_v21  ;;  %v2395_v36 = vsel %vm1711_vm3, 1.0, %v2547_v53  ;;  %v1165_v11 = vpop.f32.mrf.mxu1 }
 0x123   :  { %v1726_v7 = vpack.c.bf16 %v2395_v36, %v2394_v10  ;;  %v1125_v6 = vadd.f32 %v1124_v57, %v1096_v54  ;;  %v1166_v37 = vadd.f32 %v1165_v11, %v1136_v9  ;;  %v1747_v15 = vmul.f32 0.97, %v1715_v14 }
 0x125   :  { %v1728_v38 = vsel %vm3572_vm12, %v1638_v41, %v1726_v7  ;;  %v1743_v13 = vadd.f32 %v1739_v12, %v1125_v6 }
 0x126   :  { %v1730_v20 = vsel %vm3578_vm13, %v1682_v61, %v1728_v38 }
 0x127   :  { %1732 = vst [vmem:[%s3825_s3 + $0x60] sm:$0xff] %v1730_v20  ;;  %v1751_v33 = vadd.f32 %v1747_v15, %v1743_v13 }
 0x128   :  { %v1194_v39 = vpop.f32.mrf.mxu2 }
 0x129   :  { %vm1755_vm5 = vcmp.ge.f32.partialorder %v1751_v33, 1.25  ;;  %v1195_v22 = vadd.f32 %v1194_v39, %v1166_v37  ;;  %v1223_v23 = vpop.f32.mrf.mxu3  ;;  %v1138_v24 = vpop.f32.mrf.mxu0 }
 0x12a   :  { %v2399_v26 = vsel %vm1755_vm5, 1.0, %v2547_v53  ;;  %v1167_v49 = vpop.f32.mrf.mxu1 }
 0x12b   :  { %v1770_v27 = vpack.c.bf16 %v2399_v26, %v2398_v25  ;;  %v3673_v28 = vadd.f32 %v1223_v23, %v1195_v22  ;;  %v1168_v29 = vadd.f32 %v1167_v49, %v1138_v24 }
 0x12d   :  { %v1772_v60 = vsel %vm3572_vm12, %v1682_v61, %v1770_v27  ;;  %vm1444_vm6 = vcmp.ge.f32.partialorder %v3673_v28, 1.25  ;;  %v1476_v42 = vmul.f32 0.75, %v3673_v28 }
 0x12e   :  { %v1774_v30 = vsel %vm3578_vm13, %v1726_v7, %v1772_v60  ;;  %v1448_v40 = vsel %vm1444_vm6, 0.0, %v3673_v28 }
 0x12f   :  { %1776 = vst [vmem:[%s3825_s3 + $0x70] sm:$0xff] %v1774_v30  ;;  %v1484_v50 = vmul.f32 0.97, %v1448_v40 }
 0x130   :  { %v1196_v31 = vpop.f32.mrf.mxu2 }
 0x131   :  { %v1197_v32 = vadd.f32 %v1196_v31, %v1168_v29  ;;  %v1225_v34 = vpop.f32.mrf.mxu3  ;;  %v1141_v44 = vpop.f32.mrf.mxu0 }
 0x132   :  { %v1170_v41 = vpop.f32.mrf.mxu1 }
 0x133   :  { %v1226_v5 = vadd.f32 %v1225_v34, %v1197_v32  ;;  %v1171_v8 = vadd.f32 %v1170_v41, %v1141_v44 }
 0x135   :  { %v1480_v43 = vadd.f32 %v1476_v42, %v1226_v5 }
 0x137   :  { %v3687_v51 = vadd.f32 %v1484_v50, %v1480_v43  ;;  %v1520_v55 = vmul.f32 0.75, %v1480_v43 }
 0x138   :  { %v1199_v56 = vpop.f32.mrf.mxu2 }
 0x139   :  { %vm1492_vm7 = vcmp.ge.f32.partialorder %v3687_v51, 1.25  ;;  %v1200_v45 = vadd.f32 %v1199_v56, %v1171_v8  ;;  %v1228_v3 = vpop.f32.mrf.mxu3  ;;  %v1143_v16 = vpop.f32.mrf.mxu0 }
 0x13a   :  { %v1496_v46 = vsel %vm1492_vm7, 0.0, %v3687_v51  ;;  %v1172_v35 = vpop.f32.mrf.mxu1 }
 0x13b   :  { %v1229_v47 = vadd.f32 %v1228_v3, %v1200_v45  ;;  %v1173_v17 = vadd.f32 %v1172_v35, %v1143_v16  ;;  %v1528_v58 = vmul.f32 0.97, %v1496_v46 }
 0x13d   :  { %v1524_v18 = vadd.f32 %v1520_v55, %v1229_v47 }
 0x13f   :  { %v3693_v59 = vadd.f32 %v1528_v58, %v1524_v18  ;;  %v1564_v21 = vmul.f32 0.75, %v1524_v18 }
 0x140   :  { %v1201_v61 = vpop.f32.mrf.mxu2 }
 0x141   :  { %vm1536_vm8 = vcmp.ge.f32.partialorder %v3693_v59, 1.25  ;;  %v1202_v19 = vadd.f32 %v1201_v61, %v1173_v17  ;;  %v1230_v48 = vpop.f32.mrf.mxu3  ;;  %v1146_v62 = vpop.f32.mrf.mxu0 }
 0x142   :  { %v1540_v63 = vsel %vm1536_vm8, 0.0, %v3693_v59  ;;  %v1175_v0 = vpop.f32.mrf.mxu1 }
 0x143   :  { %v1231_v1 = vadd.f32 %v1230_v48, %v1202_v19  ;;  %v1176_v2 = vadd.f32 %v1175_v0, %v1146_v62  ;;  %v1572_v54 = vmul.f32 0.97, %v1540_v63  ;;  %v1395_v19 = vperm.slane %v3559_v52, 2 }
 0x144   :  { %v1396_v48 = vperm.slane %v3559_v52, 3 }
 0x145   :  { %v1568_v4 = vadd.f32 %v1564_v21, %v1231_v1  ;;  %vm1407_vm13 = vcmp.eq.f32.partialorder %v1395_v19, 2.0  ;;  %vm1403_vm15 = vcmp.eq.f32.partialorder %v1395_v19, 1.0 }
 0x146   :  { %vm1408_vm14 = vcmp.eq.f32.partialorder %v1396_v48, 2.0  ;;  %vm1404_vm0 = vcmp.eq.f32.partialorder %v1396_v48, 1.0 }
 0x147   :  { %v3699_v57 = vadd.f32 %v1572_v54, %v1568_v4  ;;  %v1608_v12 = vmul.f32 0.75, %v1568_v4  ;;  %v2372_v4 = vsel %vm1444_vm6, 1.0, %v2547_v53  ;;  %vm3731_vm2 = vmpackc.low %vm1408_vm14, %vm1407_vm13 }
 0x148   :  { %v1204_v9 = vpop.f32.mrf.mxu2  ;;  %vm3735_vm3 = vmpackc.low %vm1404_vm0, %vm1403_vm15 }
 0x149   :  { %vm1580_vm9 = vcmp.ge.f32.partialorder %v3699_v57, 1.25  ;;  %v1205_v10 = vadd.f32 %v1204_v9, %v1176_v2  ;;  %v1233_v14 = vpop.f32.mrf.mxu3  ;;  %v1148_v36 = vpop.f32.mrf.mxu0 }
 0x14a   :  { %v1584_v11 = vsel %vm1580_vm9, 0.0, %v3699_v57  ;;  %v1177_v7 = vpop.f32.mrf.mxu1 }
 0x14b   :  { %v1234_v6 = vadd.f32 %v1233_v14, %v1205_v10  ;;  %v1178_v37 = vadd.f32 %v1177_v7, %v1148_v36  ;;  %v1616_v13 = vmul.f32 0.97, %v1584_v11 }
 0x14d   :  { %v1612_v38 = vadd.f32 %v1608_v12, %v1234_v6 }
 0x14f   :  { %v3705_v15 = vadd.f32 %v1616_v13, %v1612_v38  ;;  %v1652_v26 = vmul.f32 0.75, %v1612_v38 }
 0x150   :  { %v1206_v20 = vpop.f32.mrf.mxu2 }
 0x151   :  { %vm1624_vm10 = vcmp.ge.f32.partialorder %v3705_v15, 1.25  ;;  %v1207_v33 = vadd.f32 %v1206_v20, %v1178_v37  ;;  %v1235_v39 = vpop.f32.mrf.mxu3  ;;  %v1151_v22 = vpop.f32.mrf.mxu0 }
 0x152   :  { %v1628_v23 = vsel %vm1624_vm10, 0.0, %v3705_v15  ;;  %v1180_v24 = vpop.f32.mrf.mxu1 }
 0x153   :  { %v1236_v25 = vadd.f32 %v1235_v39, %v1207_v33  ;;  %v1181_v49 = vadd.f32 %v1180_v24, %v1151_v22  ;;  %v1660_v29 = vmul.f32 0.97, %v1628_v23 }
 0x155   :  { %v1656_v27 = vadd.f32 %v1652_v26, %v1236_v25 }
 0x157   :  { %v3711_v60 = vadd.f32 %v1660_v29, %v1656_v27  ;;  %v1696_v5 = vmul.f32 0.75, %v1656_v27  ;;  %v2376_v27 = vsel %vm1492_vm7, 1.0, %v2547_v53 }
 0x158   :  { %v1209_v30 = vpop.f32.mrf.mxu2 }
 0x159   :  { %vm1668_vm11 = vcmp.ge.f32.partialorder %v3711_v60, 1.25  ;;  %v1210_v31 = vadd.f32 %v1209_v30, %v1181_v49  ;;  %v1238_v32 = vpop.f32.mrf.mxu3  ;;  %v1153_v34 = vpop.f32.mrf.mxu0 }
 0x15a   :  { %v1672_v44 = vsel %vm1668_vm11, 0.0, %v3711_v60  ;;  %v1182_v40 = vpop.f32.mrf.mxu1 }
 0x15b   :  { %v1239_v41 = vadd.f32 %v1238_v32, %v1210_v31  ;;  %v1183_v42 = vadd.f32 %v1182_v40, %v1153_v34  ;;  %v1704_v50 = vmul.f32 0.97, %v1672_v44 }
 0x15d   :  { %v1700_v8 = vadd.f32 %v1696_v5, %v1239_v41 }
 0x15f   :  { %v3717_v43 = vadd.f32 %v1704_v50, %v1700_v8  ;;  %v1740_v55 = vmul.f32 0.75, %v1700_v8 }
 0x160   :  { %v1211_v56 = vpop.f32.mrf.mxu2 }
 0x161   :  { %vm1712_vm12 = vcmp.ge.f32.partialorder %v3717_v43, 1.25  ;;  %v1212_v45 = vadd.f32 %v1211_v56, %v1183_v42  ;;  %v1240_v3 = vpop.f32.mrf.mxu3  ;;  %v1252_v16 = vpop.f32.mrf.mxu0 }
 0x162   :  { %v1716_v46 = vsel %vm1712_vm12, 0.0, %v3717_v43  ;;  %v1281_v35 = vpop.f32.mrf.mxu1 }
 0x163   :  { %v1241_v47 = vadd.f32 %v1240_v3, %v1212_v45  ;;  %v1748_v18 = vmul.f32 0.97, %v1716_v46  ;;  %v1282_v58 = vadd.f32 %v1281_v35, %v1252_v16  ;;  %v2380_v16 = vsel %vm1536_vm8, 1.0, %v2547_v53 }
 0x165   :  { %v1744_v17 = vadd.f32 %v1740_v55, %v1241_v47 }
 0x167   :  { %v3723_v61 = vadd.f32 %v1748_v18, %v1744_v17 }
 0x168   :  { %v1310_v62 = vpop.f32.mrf.mxu2 }
 0x169   :  { %v1311_v63 = vadd.f32 %v1310_v62, %v1282_v58  ;;  %v1339_v0 = vpop.f32.mrf.mxu3  ;;  %v1254_v1 = vpop.f32.mrf.mxu0 }
 0x16a   :  { %v1283_v21 = vpop.f32.mrf.mxu1 }
 0x16b   :  { %v1340_v2 = vadd.f32 %v1339_v0, %v1311_v63  ;;  %v1284_v14 = vadd.f32 %v1283_v21, %v1254_v1 }
 0x16d   :  { %vm1445_vm1 = vcmp.ge.f32.partialorder %v1340_v2, 1.25  ;;  %v1477_v20 = vmul.f32 0.75, %v1340_v2 }
 0x16e   :  { %v2373_v54 = vsel %vm1445_vm1, 1.0, %v2547_v53  ;;  %v1449_v12 = vsel %vm1445_vm1, 0.0, %v1340_v2 }
 0x16f   :  { %v1459_v52 = vpack.c.bf16 %v2373_v54, %v2372_v4  ;;  %v1485_v33 = vmul.f32 0.97, %v1449_v12  ;;  %v2384_v4 = vsel %vm1580_vm9, 1.0, %v2547_v53 }
 0x170   :  { %v1312_v36 = vpop.f32.mrf.mxu2 }
 0x171   :  { %v1463_v11 = vsel %vm3731_vm2, 0, %v1459_v52  ;;  %v1313_v7 = vadd.f32 %v1312_v36, %v1284_v14  ;;  %v1341_v6 = vpop.f32.mrf.mxu3  ;;  %v1257_v28 = vpop.f32.mrf.mxu0 }
 0x172   :  { %v1467_v37 = vsel %vm3735_vm3, 0, %v1463_v11  ;;  %v1286_v38 = vpop.f32.mrf.mxu1 }
 0x173   :  { %1469 = vst [vmem:[%s3825_s3 + $0x8] sm:$0xff] %v1467_v37  ;;  %v1342_v13 = vadd.f32 %v1341_v6, %v1313_v7  ;;  %v1287_v22 = vadd.f32 %v1286_v38, %v1257_v28 }
 0x175   :  { %v1481_v39 = vadd.f32 %v1477_v20, %v1342_v13 }
 0x177   :  { %v1489_v23 = vadd.f32 %v1485_v33, %v1481_v39  ;;  %v1521_v44 = vmul.f32 0.75, %v1481_v39  ;;  %v2388_v39 = vsel %vm1624_vm10, 1.0, %v2547_v53  ;;  %vm1756_vm10 = vcmp.ge.f32.partialorder %v3723_v61, 1.25 }
 0x178   :  { %v1315_v24 = vpop.f32.mrf.mxu2 }
 0x179   :  { %vm1493_vm4 = vcmp.ge.f32.partialorder %v1489_v23, 1.25  ;;  %v1316_v25 = vadd.f32 %v1315_v24, %v1287_v22  ;;  %v1344_v26 = vpop.f32.mrf.mxu3  ;;  %v1259_v49 = vpop.f32.mrf.mxu0 }
 0x17a   :  { %v1497_v29 = vsel %vm1493_vm4, 0.0, %v1489_v23  ;;  %v2377_v30 = vsel %vm1493_vm4, 1.0, %v2547_v53  ;;  %v1288_v31 = vpop.f32.mrf.mxu1 }
 0x17b   :  { %v1507_v32 = vpack.c.bf16 %v2377_v30, %v2376_v27  ;;  %v1345_v34 = vadd.f32 %v1344_v26, %v1316_v25  ;;  %v1529_v5 = vmul.f32 0.97, %v1497_v29  ;;  %v1289_v8 = vadd.f32 %v1288_v31, %v1259_v49 }
 0x17d   :  { %v1509_v40 = vsel %vm3731_vm2, 0, %v1507_v32  ;;  %v1525_v41 = vadd.f32 %v1521_v44, %v1345_v34 }
 0x17e   :  { %v1511_v42 = vsel %vm3735_vm3, %v1459_v52, %v1509_v40 }
 0x17f   :  { %1513 = vst [vmem:[%s3825_s3 + $0x18] sm:$0xff] %v1511_v42  ;;  %v1533_v51 = vadd.f32 %v1529_v5, %v1525_v41  ;;  %v1565_v18 = vmul.f32 0.75, %v1525_v41  ;;  %v2392_v5 = vsel %vm1668_vm11, 1.0, %v2547_v53 }
 0x180   :  { %v1317_v50 = vpop.f32.mrf.mxu2 }
 0x181   :  { %vm1537_vm5 = vcmp.ge.f32.partialorder %v1533_v51, 1.25  ;;  %v1318_v56 = vadd.f32 %v1317_v50, %v1289_v8  ;;  %v1346_v45 = vpop.f32.mrf.mxu3  ;;  %v1262_v3 = vpop.f32.mrf.mxu0 }
 0x182   :  { %v1541_v46 = vsel %vm1537_vm5, 0.0, %v1533_v51  ;;  %v2381_v35 = vsel %vm1537_vm5, 1.0, %v2547_v53  ;;  %v1291_v47 = vpop.f32.mrf.mxu1 }
 0x183   :  { %v1551_v55 = vpack.c.bf16 %v2381_v35, %v2380_v16  ;;  %v1347_v17 = vadd.f32 %v1346_v45, %v1318_v56  ;;  %v1573_v48 = vmul.f32 0.97, %v1541_v46  ;;  %v1292_v62 = vadd.f32 %v1291_v47, %v1262_v3 }
 0x185   :  { %v1553_v58 = vsel %vm3731_vm2, %v1459_v52, %v1551_v55  ;;  %v1569_v19 = vadd.f32 %v1565_v18, %v1347_v17 }
 0x186   :  { %v1555_v63 = vsel %vm3735_vm3, %v1507_v32, %v1553_v58  ;;  %v2396_v58 = vsel %vm1712_vm12, 1.0, %v2547_v53 }
 0x187   :  { %1557 = vst [vmem:[%s3825_s3 + $0x28] sm:$0xff] %v1555_v63  ;;  %v1577_v59 = vadd.f32 %v1573_v48, %v1569_v19  ;;  %v1609_v7 = vmul.f32 0.75, %v1569_v19 }
 0x188   :  { %v1320_v0 = vpop.f32.mrf.mxu2 }
 0x189   :  { %vm1581_vm6 = vcmp.ge.f32.partialorder %v1577_v59, 1.25  ;;  %v1321_v1 = vadd.f32 %v1320_v0, %v1292_v62  ;;  %v1349_v21 = vpop.f32.mrf.mxu3  ;;  %v1264_v2 = vpop.f32.mrf.mxu0 }
 0x18a   :  { %v1585_v54 = vsel %vm1581_vm6, 0.0, %v1577_v59  ;;  %v2385_v52 = vsel %vm1581_vm6, 1.0, %v2547_v53  ;;  %v1293_v14 = vpop.f32.mrf.mxu1 }
 0x18b   :  { %v1595_v36 = vpack.c.bf16 %v2385_v52, %v2384_v4  ;;  %v1350_v11 = vadd.f32 %v1349_v21, %v1321_v1  ;;  %v1617_v12 = vmul.f32 0.97, %v1585_v54  ;;  %v1294_v38 = vadd.f32 %v1293_v14, %v1264_v2 }
 0x18c   :  { %v2400_v54 = vsel %vm1756_vm10, 1.0, %v2547_v53 }
 0x18d   :  { %v1597_v6 = vsel %vm3731_vm2, %v1507_v32, %v1595_v36  ;;  %v1613_v28 = vadd.f32 %v1609_v7, %v1350_v11 }
 0x18e   :  { %v1599_v37 = vsel %vm3735_vm3, %v1551_v55, %v1597_v6 }
 0x18f   :  { %1601 = vst [vmem:[%s3825_s3 + $0x38] sm:$0xff] %v1599_v37  ;;  %v1621_v57 = vadd.f32 %v1617_v12, %v1613_v28  ;;  %v1653_v27 = vmul.f32 0.75, %v1613_v28 }
 0x190   :  { %v1322_v13 = vpop.f32.mrf.mxu2 }
 0x191   :  { %vm1625_vm7 = vcmp.ge.f32.partialorder %v1621_v57, 1.25  ;;  %v1323_v20 = vadd.f32 %v1322_v13, %v1294_v38  ;;  %v1351_v33 = vpop.f32.mrf.mxu3  ;;  %v1267_v24 = vpop.f32.mrf.mxu0 }
 0x192   :  { %v1629_v22 = vsel %vm1625_vm7, 0.0, %v1621_v57  ;;  %v2389_v23 = vsel %vm1625_vm7, 1.0, %v2547_v53  ;;  %v1296_v25 = vpop.f32.mrf.mxu1 }
 0x193   :  { %v1639_v26 = vpack.c.bf16 %v2389_v23, %v2388_v39  ;;  %v1352_v49 = vadd.f32 %v1351_v33, %v1323_v20  ;;  %v1661_v31 = vmul.f32 0.97, %v1629_v22  ;;  %v1297_v32 = vadd.f32 %v1296_v25, %v1267_v24 }
 0x195   :  { %v1641_v29 = vsel %vm3731_vm2, %v1551_v55, %v1639_v26  ;;  %v1657_v30 = vadd.f32 %v1653_v27, %v1352_v49 }
 0x196   :  { %v1643_v34 = vsel %vm3735_vm3, %v1595_v36, %v1641_v29 }
 0x197   :  { %1645 = vst [vmem:[%s3825_s3 + $0x48] sm:$0xff] %v1643_v34  ;;  %v1665_v15 = vadd.f32 %v1661_v31, %v1657_v30  ;;  %v1697_v56 = vmul.f32 0.75, %v1657_v30 }
 0x198   :  { %v1325_v44 = vpop.f32.mrf.mxu2 }
 0x199   :  { %vm1669_vm8 = vcmp.ge.f32.partialorder %v1665_v15, 1.25  ;;  %v1326_v40 = vadd.f32 %v1325_v44, %v1297_v32  ;;  %v1354_v41 = vpop.f32.mrf.mxu3  ;;  %v1269_v45 = vpop.f32.mrf.mxu0 }
 0x19a   :  { %v1673_v42 = vsel %vm1669_vm8, 0.0, %v1665_v15  ;;  %v2393_v51 = vsel %vm1669_vm8, 1.0, %v2547_v53  ;;  %v1298_v3 = vpop.f32.mrf.mxu1 }
 0x19b   :  { %v1683_v8 = vpack.c.bf16 %v2393_v51, %v2392_v5  ;;  %v1355_v50 = vadd.f32 %v1354_v41, %v1326_v40  ;;  %v1705_v35 = vmul.f32 0.97, %v1673_v42  ;;  %v1299_v55 = vadd.f32 %v1298_v3, %v1269_v45 }
 0x19d   :  { %v1685_v16 = vsel %vm3731_vm2, %v1595_v36, %v1683_v8  ;;  %v1701_v46 = vadd.f32 %v1697_v56, %v1355_v50 }
 0x19e   :  { %v1687_v47 = vsel %vm3735_vm3, %v1639_v26, %v1685_v16 }
 0x19f   :  { %1689 = vst [vmem:[%s3825_s3 + $0x58] sm:$0xff] %v1687_v47  ;;  %v1709_v60 = vadd.f32 %v1705_v35, %v1701_v46  ;;  %v1741_v0 = vmul.f32 0.75, %v1701_v46 }
 0x1a0   :  { %v1327_v17 = vpop.f32.mrf.mxu2 }
 0x1a1   :  { %vm1713_vm9 = vcmp.ge.f32.partialorder %v1709_v60, 1.25  ;;  %v1328_v18 = vadd.f32 %v1327_v17, %v1299_v55  ;;  %v1356_v62 = vpop.f32.mrf.mxu3 }
 0x1a2   :  { %v1717_v19 = vsel %vm1713_vm9, 0.0, %v1709_v60  ;;  %v2397_v48 = vsel %vm1713_vm9, 1.0, %v2547_v53 }
 0x1a3   :  { %v1727_v63 = vpack.c.bf16 %v2397_v48, %v2396_v58  ;;  %v1357_v59 = vadd.f32 %v1356_v62, %v1328_v18  ;;  %v1749_v2 = vmul.f32 0.97, %v1717_v19 }
 0x1a5   :  { %v1729_v1 = vsel %vm3731_vm2, %v1639_v26, %v1727_v63  ;;  %v1745_v21 = vadd.f32 %v1741_v0, %v1357_v59 }
 0x1a6   :  { %v1731_v4 = vsel %vm3735_vm3, %v1683_v8, %v1729_v1 }
 0x1a7   :  { %1733 = vst [vmem:[%s3825_s3 + $0x68] sm:$0xff] %v1731_v4  ;;  %v1753_v43 = vadd.f32 %v1749_v2, %v1745_v21 }
 0x1a9   :  { %vm1757_vm11 = vcmp.ge.f32.partialorder %v1753_v43, 1.25 }
 0x1aa   :  { %v2401_v52 = vsel %vm1757_vm11, 1.0, %v2547_v53 }
 0x1ab   :  { %v1771_v14 = vpack.c.bf16 %v2401_v52, %v2400_v54 }
 0x1ad   :  { %v1773_v36 = vsel %vm3731_vm2, %v1683_v8, %v1771_v14 }
 0x1ae   :  { %v1775_v11 = vsel %vm3735_vm3, %v1727_v63, %v1773_v36 }
 0x1af   :  { %1777 = vst [vmem:[%s3825_s3 + $0x78] sm:$0xff] %v1775_v11 }

// kernel: a_call__.3
= control target key start
LH: loop header
LB: loop body
LE: loop exit
PB: predicated region body
PF: predicated region fallthrough
CT: control target
= control target key end

     0   :  { %8 = vsyncpa [#allocation7], 0  ;;  %s12145_s0 = inlined_call_operand.vmem [shape: bf16[64,2432], index: 0, kind: input, shape index: {}]   ;;  %s12146_s1 = inlined_call_operand.hbm [shape: bf16[2432,512], index: 1, kind: input, shape index: {}]   ;;  %s12147_s2 = inlined_call_operand.hbm [shape: f32[1,512], index: 2, kind: input, shape index: {}]   ;;  %s12148_s3 = inlined_call_operand.vmem [shape: bf16[64,512], index: 3, kind: output, shape index: {}]  }
   0x1   :  { %s16_s14 = sshll.u32 %s12146_s1, 4  ;;  %s17_s14 = int_to_ptr.hbm [resolvable:$true] %s16_s14 }
   0x2   :  { %9 = vsyncpa [#allocation9], 0  ;;  %s10324_s15 = smov [#allocation6]   ;;  %s30_s19 = sshll.u32 %s12147_s2, 4  ;;  %s31_s19 = int_to_ptr.hbm [resolvable:$true] %s30_s19 }
   0x3   :  { %s18_s16 = sshll.u32 %s10324_s15, 4  ;;  %s10325_s20 = smov 256   ;;  %s19_s16 = int_to_ptr.vmem [resolvable:$true] %s18_s16 }
   0x4   :  { %s10326_s21 = smov 16   ;;  %s10327_s22 = smov [#allocation8]  }
   0x5   :  { %24 = dma.hbm_to_vmem [thread:$0]  %s17_s14, 77824, %s19_s16, [#allocation7], %s10325_s20, %s10325_s20, %s10326_s21  }
   0x6   :  { %s32_s23 = sshll.u32 %s10327_s22, 4  ;;  %s33_s23 = int_to_ptr.vmem [resolvable:$true] %s32_s23 }
   0x7   :  { %35 = dma.hbm_to_vmem [thread:$0]  %s31_s19, 64, %s33_s23, [#allocation9]  }
   0x8   :  { %10320 = dma.done.wait [#allocation7], 77824  }
   0x9   :  { %10321 = vsyncadd [#allocation7], 4294889472 }
   0xa   :  { %10322 = dma.done.wait [#allocation9], 64  }
   0xb   :  { %10323 = vsyncadd [#allocation9], 4294967232  ;;  %v7232_v0 = vld [vmem:[#allocation6 + $0xe0] sm:$0xf]  ;;  %v9688_v1 = vld [vmem:[#allocation6 + $0xec] sm:$0xf0] }
   0xc   :  { %v7360_v2 = vld [vmem:[#allocation6 + $0x1e0] sm:$0xf]  ;;  %v7233_v3 = vor.u32 %v9688_v1, %v7232_v0  ;;  %v9720_v4 = vld [vmem:[#allocation6 + $0x1ec] sm:$0xf0] }
   0xd   :  { %v7488_v5 = vld [vmem:[#allocation6 + $0x2e0] sm:$0xf]  ;;  %v9752_v6 = vld [vmem:[#allocation6 + $0x2ec] sm:$0xf0]  ;;  %v7361_v7 = vor.u32 %v9720_v4, %v7360_v2 }
   0xe   :  { %v7489_v8 = vor.u32 %v9752_v6, %v7488_v5  ;;  %v7616_v9 = vld [vmem:[#allocation6 + $0x3e0] sm:$0xf]  ;;  %v9784_v10 = vld [vmem:[#allocation6 + $0x3ec] sm:$0xf0]  ;;  %4173 = vmatpush.bf16.msra.mxu0 %v7233_v3 }
   0xf   :  { %v7216_v11 = vld [vmem:[#allocation6 + $0xc0] sm:$0xf]  ;;  %v7617_v12 = vor.u32 %v9784_v10, %v7616_v9  ;;  %v9684_v13 = vld [vmem:[#allocation6 + $0xcc] sm:$0xf0]  ;;  %4202 = vmatpush.bf16.msra.mxu1 %v7361_v7 }
  0x10   :  { %v7344_v14 = vld [vmem:[#allocation6 + $0x1c0] sm:$0xf]  ;;  %v9716_v15 = vld [vmem:[#allocation6 + $0x1cc] sm:$0xf0]  ;;  %4231 = vmatpush.bf16.msra.mxu2 %v7489_v8  ;;  %v7217_v16 = vor.u32 %v9684_v13, %v7216_v11 }
  0x11   :  { %v7345_v17 = vor.u32 %v9716_v15, %v7344_v14  ;;  %v7472_v18 = vld [vmem:[#allocation6 + $0x2c0] sm:$0xf]  ;;  %v9748_v19 = vld [vmem:[#allocation6 + $0x2cc] sm:$0xf0]  ;;  %4260 = vmatpush.bf16.msra.mxu3 %v7617_v12 }
  0x12   :  { %v7600_v20 = vld [vmem:[#allocation6 + $0x3c0] sm:$0xf]  ;;  %v7473_v21 = vor.u32 %v9748_v19, %v7472_v18  ;;  %v9780_v22 = vld [vmem:[#allocation6 + $0x3cc] sm:$0xf0]  ;;  %4174 = vmatpush.bf16.msra.mxu0 %v7217_v16 }
  0x13   :  { %v7200_v23 = vld [vmem:[#allocation6 + $0xa0] sm:$0xf]  ;;  %v9680_v24 = vld [vmem:[#allocation6 + $0xac] sm:$0xf0]  ;;  %v7601_v25 = vor.u32 %v9780_v22, %v7600_v20  ;;  %4203 = vmatpush.bf16.msra.mxu1 %v7345_v17 }
  0x14   :  { %v7328_v26 = vld [vmem:[#allocation6 + $0x1a0] sm:$0xf]  ;;  %v9712_v27 = vld [vmem:[#allocation6 + $0x1ac] sm:$0xf0]  ;;  %v7201_v29 = vor.u32 %v9680_v24, %v7200_v23  ;;  %4232 = vmatpush.bf16.msra.mxu2 %v7473_v21 }
  0x15   :  { %v7456_v28 = vld [vmem:[#allocation6 + $0x2a0] sm:$0xf]  ;;  %v9744_v30 = vld [vmem:[#allocation6 + $0x2ac] sm:$0xf0]  ;;  %v7329_v33 = vor.u32 %v9712_v27, %v7328_v26  ;;  %4261 = vmatpush.bf16.msra.mxu3 %v7601_v25 }
  0x16   :  { %v7584_v31 = vld [vmem:[#allocation6 + $0x3a0] sm:$0xf]  ;;  %v9776_v32 = vld [vmem:[#allocation6 + $0x3ac] sm:$0xf0]  ;;  %v7457_v34 = vor.u32 %v9744_v30, %v7456_v28  ;;  %4175 = vmatpush.bf16.msra.mxu0 %v7201_v29  ;;  %v9591_v29 = vld [vmem:[%s12145_s0 + $0x48] sm:$0xf0] }
  0x17   :  { %v7184_v35 = vld [vmem:[#allocation6 + $0x80] sm:$0xf]  ;;  %v9676_v36 = vld [vmem:[#allocation6 + $0x8c] sm:$0xf0]  ;;  %v7585_v38 = vor.u32 %v9776_v32, %v7584_v31  ;;  %4204 = vmatpush.bf16.msra.mxu1 %v7329_v33  ;;  %v9582_v30 = vld [vmem:[%s12145_s0 + $0x4] sm:$0xf] }
  0x18   :  { %v7312_v37 = vld [vmem:[#allocation6 + $0x180] sm:$0xf]  ;;  %v9708_v39 = vld [vmem:[#allocation6 + $0x18c] sm:$0xf0]  ;;  %v7185_v44 = vor.u32 %v9676_v36, %v7184_v35  ;;  %4233 = vmatpush.bf16.msra.mxu2 %v7457_v34  ;;  %v6824_v35 = vld [vmem:[%s12145_s0 + $0x8] sm:$0xf] }
  0x19   :  { %v7440_v40 = vld [vmem:[#allocation6 + $0x280] sm:$0xf]  ;;  %v9740_v41 = vld [vmem:[#allocation6 + $0x28c] sm:$0xf0]  ;;  %v7313_v45 = vor.u32 %v9708_v39, %v7312_v37  ;;  %4262 = vmatpush.bf16.msra.mxu3 %v7585_v38 }
  0x1a   :  { %v7568_v42 = vld [vmem:[#allocation6 + $0x380] sm:$0xf]  ;;  %v9772_v43 = vld [vmem:[#allocation6 + $0x38c] sm:$0xf0]  ;;  %v7441_v46 = vor.u32 %v9740_v41, %v7440_v40  ;;  %4176 = vmatpush.bf16.msra.mxu0 %v7185_v44  ;;  %v9592_v40 = vld [vmem:[%s12145_s0 + $0x50] sm:$0xf0] }
  0x1b   :  { %v7168_v47 = vld [vmem:[#allocation6 + $0x60] sm:$0xf]  ;;  %v9672_v48 = vld [vmem:[#allocation6 + $0x6c] sm:$0xf0]  ;;  %v7569_v50 = vor.u32 %v9772_v43, %v7568_v42  ;;  %4205 = vmatpush.bf16.msra.mxu1 %v7313_v45  ;;  %v9583_v41 = vld [vmem:[%s12145_s0 + $0xc] sm:$0xf] }
  0x1c   :  { %v7296_v49 = vld [vmem:[#allocation6 + $0x160] sm:$0xf]  ;;  %v9704_v51 = vld [vmem:[#allocation6 + $0x16c] sm:$0xf0]  ;;  %v7169_v56 = vor.u32 %v9672_v48, %v7168_v47  ;;  %4234 = vmatpush.bf16.msra.mxu2 %v7441_v46  ;;  %v6826_v42 = vld [vmem:[%s12145_s0 + $0x54] sm:$0xf0] }
  0x1d   :  { %v7424_v52 = vld [vmem:[#allocation6 + $0x260] sm:$0xf]  ;;  %v9736_v53 = vld [vmem:[#allocation6 + $0x26c] sm:$0xf0]  ;;  %v7297_v57 = vor.u32 %v9704_v51, %v7296_v49  ;;  %4263 = vmatpush.bf16.msra.mxu3 %v7569_v50 }
  0x1e   :  { %v7552_v54 = vld [vmem:[#allocation6 + $0x360] sm:$0xf]  ;;  %v9768_v55 = vld [vmem:[#allocation6 + $0x36c] sm:$0xf0]  ;;  %v7425_v58 = vor.u32 %v9736_v53, %v7424_v52  ;;  %4177 = vmatpush.bf16.msra.mxu0 %v7169_v56 }
  0x1f   :  { %v7152_v59 = vld [vmem:[#allocation6 + $0x40] sm:$0xf]  ;;  %v9668_v60 = vld [vmem:[#allocation6 + $0x4c] sm:$0xf0]  ;;  %v7553_v62 = vor.u32 %v9768_v55, %v7552_v54  ;;  %4206 = vmatpush.bf16.msra.mxu1 %v7297_v57  ;;  %v10383_v54 = vor.u32 %v9592_v40, %v6824_v35  ;;  %v10385_v57 = vor.u32 %v9583_v41, %v6826_v42  ;;  %v9611_v35 = vld [vmem:[%s12145_s0 + $0xe8] sm:$0xf0] }
  0x20   :  { %v7280_v61 = vld [vmem:[#allocation6 + $0x140] sm:$0xf]  ;;  %v9700_v63 = vld [vmem:[#allocation6 + $0x14c] sm:$0xf0]  ;;  %v7153_v4 = vor.u32 %v9668_v60, %v7152_v59  ;;  %4235 = vmatpush.bf16.msra.mxu2 %v7425_v58 }
  0x21   :  { %v7408_v0 = vld [vmem:[#allocation6 + $0x240] sm:$0xf]  ;;  %v9732_v1 = vld [vmem:[#allocation6 + $0x24c] sm:$0xf0]  ;;  %v7281_v5 = vor.u32 %v9700_v63, %v7280_v61  ;;  %4264 = vmatpush.bf16.msra.mxu3 %v7553_v62  ;;  %12283 = vst [vmem:[#allocation14_spill] sm:$0xff] %v10383_v54 }
  0x22   :  { %v7536_v2 = vld [vmem:[#allocation6 + $0x340] sm:$0xf]  ;;  %v9764_v3 = vld [vmem:[#allocation6 + $0x34c] sm:$0xf0]  ;;  %v7409_v6 = vor.u32 %v9732_v1, %v7408_v0  ;;  %4178 = vmatpush.bf16.msra.mxu0 %v7153_v4  ;;  %12284 = vst [vmem:[#allocation15_spill] sm:$0xff] %v10385_v57 }
  0x23   :  { %v7136_v7 = vld [vmem:[#allocation6 + $0x20] sm:$0xf]  ;;  %v9664_v8 = vld [vmem:[#allocation6 + $0x2c] sm:$0xf0]  ;;  %v7537_v10 = vor.u32 %v9764_v3, %v7536_v2  ;;  %4207 = vmatpush.bf16.msra.mxu1 %v7281_v5 }
  0x24   :  { %v7264_v9 = vld [vmem:[#allocation6 + $0x120] sm:$0xf]  ;;  %v9696_v11 = vld [vmem:[#allocation6 + $0x12c] sm:$0xf0]  ;;  %v7137_v17 = vor.u32 %v9664_v8, %v7136_v7  ;;  %4236 = vmatpush.bf16.msra.mxu2 %v7409_v6 }
  0x25   :  { %v7392_v12 = vld [vmem:[#allocation6 + $0x220] sm:$0xf]  ;;  %v9728_v13 = vld [vmem:[#allocation6 + $0x22c] sm:$0xf0]  ;;  %v7265_v21 = vor.u32 %v9696_v11, %v7264_v9  ;;  %4265 = vmatpush.bf16.msra.mxu3 %v7537_v10 }
  0x26   :  { %v7520_v14 = vld [vmem:[#allocation6 + $0x320] sm:$0xf]  ;;  %v9760_v15 = vld [vmem:[#allocation6 + $0x32c] sm:$0xf0]  ;;  %v7393_v22 = vor.u32 %v9728_v13, %v7392_v12  ;;  %4179 = vmatpush.bf16.msra.mxu0 %v7137_v17 }
  0x27   :  { %v7120_v16 = vld [vmem:[#allocation6] sm:$0xf]  ;;  %v9660_v18 = vld [vmem:[#allocation6 + $0xc] sm:$0xf0]  ;;  %v7521_v26 = vor.u32 %v9760_v15, %v7520_v14  ;;  %4208 = vmatpush.bf16.msra.mxu1 %v7265_v21 }
  0x28   :  { %v7248_v19 = vld [vmem:[#allocation6 + $0x100] sm:$0xf]  ;;  %v9692_v20 = vld [vmem:[#allocation6 + $0x10c] sm:$0xf0]  ;;  %v7121_v34 = vor.u32 %v9660_v18, %v7120_v16  ;;  %4237 = vmatpush.bf16.msra.mxu2 %v7393_v22 }
  0x29   :  { %v7376_v23 = vld [vmem:[#allocation6 + $0x200] sm:$0xf]  ;;  %v9724_v24 = vld [vmem:[#allocation6 + $0x20c] sm:$0xf0]  ;;  %v7249_v38 = vor.u32 %v9692_v20, %v7248_v19  ;;  %4266 = vmatpush.bf16.msra.mxu3 %v7521_v26  ;;  %v6892_v19 = vld [vmem:[%s12145_s0 + $0x98] sm:$0xf] }
  0x2a   :  { %v7504_v25 = vld [vmem:[#allocation6 + $0x300] sm:$0xf]  ;;  %v9756_v27 = vld [vmem:[#allocation6 + $0x30c] sm:$0xf0]  ;;  %v7377_v39 = vor.u32 %v9724_v24, %v7376_v23  ;;  %4180 = vmatpush.bf16.msra.mxu0 %v7121_v34  ;;  %v9610_v20 = vld [vmem:[%s12145_s0 + $0xe0] sm:$0xf0] }
  0x2b   :  { %v6816_v28 = vld [vmem:[%s12145_s0] sm:$0xf]  ;;  %v6818_v31 = vld [vmem:[%s12145_s0 + $0x4c] sm:$0xf0]  ;;  %v7505_v43 = vor.u32 %v9756_v27, %v7504_v25  ;;  %4209 = vmatpush.bf16.msra.mxu1 %v7249_v38  ;;  %v9601_v26 = vld [vmem:[%s12145_s0 + $0x9c] sm:$0xf] }
  0x2c   :  { %v8000_v32 = vld [vmem:[#allocation6 + $0x6e0] sm:$0xf]  ;;  %v9880_v33 = vld [vmem:[#allocation6 + $0x6ec] sm:$0xf0]  ;;  %v10379_v48 = vor.u32 %v9591_v29, %v6816_v28  ;;  %v10381_v53 = vor.u32 %v9582_v30, %v6818_v31  ;;  %4238 = vmatpush.bf16.msra.mxu2 %v7377_v39  ;;  %v6894_v27 = vld [vmem:[%s12145_s0 + $0xe4] sm:$0xf0] }
  0x2d   :  { %v8128_v36 = vld [vmem:[#allocation6 + $0x7e0] sm:$0xf]  ;;  %v9912_v37 = vld [vmem:[#allocation6 + $0x7ec] sm:$0xf0]  ;;  %v8001_v44 = vor.u32 %v9880_v33, %v8000_v32  ;;  %4267 = vmatpush.bf16.msra.mxu3 %v7505_v43 }
  0x2e   :  { %v7744_v45 = vld [vmem:[#allocation6 + $0x4e0] sm:$0xf]  ;;  %v9816_v46 = vld [vmem:[#allocation6 + $0x4ec] sm:$0xf0]  ;;  %12281 = vst [vmem:[#allocation12_spill] sm:$0xff] %v10379_v48  ;;  %v8129_v49 = vor.u32 %v9912_v37, %v8128_v36  ;;  %4181 = vmatmul.bf16.vlgmr.msra.gmra.mxu0 %v10379_v48  ;;  %4210 = vmatmul.bf16.vlgmr.msra.gmra.mxu1 %v10381_v53 }
  0x2f   :  { %v7872_v47 = vld [vmem:[#allocation6 + $0x5e0] sm:$0xf]  ;;  %v9848_v50 = vld [vmem:[#allocation6 + $0x5ec] sm:$0xf0]  ;;  %12282 = vst [vmem:[#allocation13_spill] sm:$0xff] %v10381_v53  ;;  %v7745_v58 = vor.u32 %v9816_v46, %v7744_v45  ;;  %4239 = vmatmul.bf16.vlgmr.msra.gmra.mxu2 %v10383_v54 }
  0x30   :  { %v7984_v51 = vld [vmem:[#allocation6 + $0x6c0] sm:$0xf]  ;;  %v9876_v52 = vld [vmem:[#allocation6 + $0x6cc] sm:$0xf0]  ;;  %4347 = vmatpush.bf16.msrb.mxu2 %v8001_v44  ;;  %v7873_v59 = vor.u32 %v9848_v50, %v7872_v47  ;;  %4268 = vmatmul.bf16.vlgmr.msra.gmra.mxu3 %v10385_v57  ;;  %v9602_v36 = vld [vmem:[%s12145_s0 + $0xa4] sm:$0xf]  ;;  %v10415_v44 = vor.u32 %v9610_v20, %v6892_v19  ;;  %v10417_v50 = vor.u32 %v9601_v26, %v6894_v27 }
  0x31   :  { %v8112_v55 = vld [vmem:[#allocation6 + $0x7c0] sm:$0xf]  ;;  %v9908_v56 = vld [vmem:[#allocation6 + $0x7cc] sm:$0xf0]  ;;  %v7985_v60 = vor.u32 %v9876_v52, %v7984_v51  ;;  %4376 = vmatpush.bf16.msrb.mxu3 %v8129_v49  ;;  %4289 = vmatpush.bf16.msrb.mxu0 %v7745_v58  ;;  %v9629_v27 = vld [vmem:[%s12145_s0 + $0x178] sm:$0xf0] }
  0x32   :  { %v7728_v61 = vld [vmem:[#allocation6 + $0x4c0] sm:$0xf]  ;;  %v9812_v62 = vld [vmem:[#allocation6 + $0x4cc] sm:$0xf0]  ;;  %v8113_v0 = vor.u32 %v9908_v56, %v8112_v55  ;;  %4318 = vmatpush.bf16.msrb.mxu1 %v7873_v59  ;;  %12285 = vst [vmem:[#allocation16_spill] sm:$0xff] %v10415_v44 }
  0x33   :  { %v7856_v63 = vld [vmem:[#allocation6 + $0x5c0] sm:$0xf]  ;;  %v9844_v1 = vld [vmem:[#allocation6 + $0x5cc] sm:$0xf0]  ;;  %v7729_v6 = vor.u32 %v9812_v62, %v7728_v61  ;;  %12286 = vst [vmem:[#allocation17_spill] sm:$0xff] %v10417_v50 }
  0x34   :  { %v7968_v2 = vld [vmem:[#allocation6 + $0x6a0] sm:$0xf]  ;;  %v9872_v3 = vld [vmem:[#allocation6 + $0x6ac] sm:$0xf0]  ;;  %4348 = vmatpush.bf16.msrb.mxu2 %v7985_v60  ;;  %v7857_v7 = vor.u32 %v9844_v1, %v7856_v63 }
  0x35   :  { %v8096_v4 = vld [vmem:[#allocation6 + $0x7a0] sm:$0xf]  ;;  %v9904_v5 = vld [vmem:[#allocation6 + $0x7ac] sm:$0xf0]  ;;  %v7969_v8 = vor.u32 %v9872_v3, %v7968_v2  ;;  %4377 = vmatpush.bf16.msrb.mxu3 %v8113_v0  ;;  %4290 = vmatpush.bf16.msrb.mxu0 %v7729_v6 }
  0x36   :  { %v7712_v9 = vld [vmem:[#allocation6 + $0x4a0] sm:$0xf]  ;;  %v9808_v10 = vld [vmem:[#allocation6 + $0x4ac] sm:$0xf0]  ;;  %v8097_v12 = vor.u32 %v9904_v5, %v8096_v4  ;;  %4319 = vmatpush.bf16.msrb.mxu1 %v7857_v7 }
  0x37   :  { %v7840_v11 = vld [vmem:[#allocation6 + $0x5a0] sm:$0xf]  ;;  %v9840_v13 = vld [vmem:[#allocation6 + $0x5ac] sm:$0xf0]  ;;  %v7713_v18 = vor.u32 %v9808_v10, %v7712_v9 }
  0x38   :  { %v7952_v14 = vld [vmem:[#allocation6 + $0x680] sm:$0xf]  ;;  %v9868_v15 = vld [vmem:[#allocation6 + $0x68c] sm:$0xf0]  ;;  %4349 = vmatpush.bf16.msrb.mxu2 %v7969_v8  ;;  %v7841_v21 = vor.u32 %v9840_v13, %v7840_v11 }
  0x39   :  { %v8080_v16 = vld [vmem:[#allocation6 + $0x780] sm:$0xf]  ;;  %v9900_v17 = vld [vmem:[#allocation6 + $0x78c] sm:$0xf0]  ;;  %v7953_v22 = vor.u32 %v9868_v15, %v7952_v14  ;;  %4378 = vmatpush.bf16.msrb.mxu3 %v8097_v12  ;;  %4291 = vmatpush.bf16.msrb.mxu0 %v7713_v18 }
  0x3a   :  { %v7696_v23 = vld [vmem:[#allocation6 + $0x480] sm:$0xf]  ;;  %v9804_v24 = vld [vmem:[#allocation6 + $0x48c] sm:$0xf0]  ;;  %v8081_v28 = vor.u32 %v9900_v17, %v8080_v16  ;;  %4320 = vmatpush.bf16.msrb.mxu1 %v7841_v21 }
  0x3b   :  { %v7824_v25 = vld [vmem:[#allocation6 + $0x580] sm:$0xf]  ;;  %v9836_v29 = vld [vmem:[#allocation6 + $0x58c] sm:$0xf0]  ;;  %v7697_v38 = vor.u32 %v9804_v24, %v7696_v23 }
  0x3c   :  { %v7936_v30 = vld [vmem:[#allocation6 + $0x660] sm:$0xf]  ;;  %v9864_v31 = vld [vmem:[#allocation6 + $0x66c] sm:$0xf0]  ;;  %4350 = vmatpush.bf16.msrb.mxu2 %v7953_v22  ;;  %v7825_v39 = vor.u32 %v9836_v29, %v7824_v25 }
  0x3d   :  { %v6900_v32 = vld [vmem:[%s12145_s0 + $0xa0] sm:$0xf]  ;;  %v9896_v34 = vld [vmem:[#allocation6 + $0x76c] sm:$0xf0]  ;;  %v7937_v40 = vor.u32 %v9864_v31, %v7936_v30  ;;  %4379 = vmatpush.bf16.msrb.mxu3 %v8081_v28  ;;  %4292 = vmatpush.bf16.msrb.mxu0 %v7697_v38  ;;  %v9620_v28 = vld [vmem:[%s12145_s0 + $0x134] sm:$0xf] }
  0x3e   :  { %v8064_v33 = vld [vmem:[#allocation6 + $0x760] sm:$0xf]  ;;  %v6902_v37 = vld [vmem:[%s12145_s0 + $0xec] sm:$0xf0]  ;;  %v10419_v51 = vor.u32 %v9611_v35, %v6900_v32  ;;  %4321 = vmatpush.bf16.msrb.mxu1 %v7825_v39  ;;  %4186 = vmatmul.bf16.gmra.mxu0 %v10415_v44  ;;  %v6976_v30 = vld [vmem:[%s12145_s0 + $0x138] sm:$0xf] }
  0x3f   :  { %v7680_v41 = vld [vmem:[#allocation6 + $0x460] sm:$0xf]  ;;  %v9800_v42 = vld [vmem:[#allocation6 + $0x46c] sm:$0xf0]  ;;  %v8065_v45 = vor.u32 %v9896_v34, %v8064_v33  ;;  %v10421_v56 = vor.u32 %v9602_v36, %v6902_v37  ;;  %4215 = vmatmul.bf16.gmra.mxu1 %v10417_v50  ;;  %v9630_v31 = vld [vmem:[%s12145_s0 + $0x180] sm:$0xf0] }
  0x40   :  { %v7808_v43 = vld [vmem:[#allocation6 + $0x560] sm:$0xf]  ;;  %v9832_v46 = vld [vmem:[#allocation6 + $0x56c] sm:$0xf0]  ;;  %12287 = vst [vmem:[#allocation18_spill] sm:$0xff] %v10419_v51  ;;  %v7681_v58 = vor.u32 %v9800_v42, %v7680_v41  ;;  %4351 = vmatpush.bf16.msrb.mxu2 %v7937_v40  ;;  %v10455_v38 = vor.u32 %v9630_v31, %v6976_v30 }
  0x41   :  { %v7920_v47 = vld [vmem:[#allocation6 + $0x640] sm:$0xf]  ;;  %v9860_v49 = vld [vmem:[#allocation6 + $0x64c] sm:$0xf0]  ;;  %12288 = vst [vmem:[#allocation19_spill] sm:$0xff] %v10421_v56  ;;  %v7809_v59 = vor.u32 %v9832_v46, %v7808_v43  ;;  %4380 = vmatpush.bf16.msrb.mxu3 %v8065_v45  ;;  %4244 = vmatmul.bf16.gmra.mxu2 %v10419_v51 }
  0x42   :  { %v8048_v52 = vld [vmem:[#allocation6 + $0x740] sm:$0xf]  ;;  %v9892_v55 = vld [vmem:[#allocation6 + $0x74c] sm:$0xf0]  ;;  %v7921_v60 = vor.u32 %v9860_v49, %v7920_v47  ;;  %4273 = vmatmul.bf16.gmra.mxu3 %v10421_v56  ;;  %4293 = vmatpush.bf16.msrb.mxu0 %v7681_v58  ;;  %v9621_v33 = vld [vmem:[%s12145_s0 + $0x13c] sm:$0xf] }
  0x43   :  { %v7664_v61 = vld [vmem:[#allocation6 + $0x440] sm:$0xf]  ;;  %v9796_v62 = vld [vmem:[#allocation6 + $0x44c] sm:$0xf0]  ;;  %v8049_v63 = vor.u32 %v9892_v55, %v8048_v52  ;;  %4322 = vmatpush.bf16.msrb.mxu1 %v7809_v59  ;;  %v6978_v34 = vld [vmem:[%s12145_s0 + $0x184] sm:$0xf0] }
  0x44   :  { %v7792_v0 = vld [vmem:[#allocation6 + $0x540] sm:$0xf]  ;;  %v9828_v1 = vld [vmem:[#allocation6 + $0x54c] sm:$0xf0]  ;;  %v7665_v2 = vor.u32 %v9796_v62, %v7664_v61  ;;  %4352 = vmatpush.bf16.msrb.mxu2 %v7921_v60  ;;  %12291 = vst [vmem:[#allocation22_spill] sm:$0xff] %v10455_v38  ;;  %v10457_v39 = vor.u32 %v9621_v33, %v6978_v34 }
  0x45   :  { %v7904_v3 = vld [vmem:[#allocation6 + $0x620] sm:$0xf]  ;;  %v9856_v4 = vld [vmem:[#allocation6 + $0x62c] sm:$0xf0]  ;;  %v7793_v6 = vor.u32 %v9828_v1, %v7792_v0  ;;  %4381 = vmatpush.bf16.msrb.mxu3 %v8049_v63 }
  0x46   :  { %v7648_v5 = vld [vmem:[#allocation6 + $0x420] sm:$0xf]  ;;  %v7905_v7 = vor.u32 %v9856_v4, %v7904_v3  ;;  %v9792_v8 = vld [vmem:[#allocation6 + $0x42c] sm:$0xf0]  ;;  %4294 = vmatpush.bf16.msrb.mxu0 %v7665_v2  ;;  %12292 = vst [vmem:[#allocation23_spill] sm:$0xff] %v10457_v39 }
  0x47   :  { %v8032_v9 = vld [vmem:[#allocation6 + $0x720] sm:$0xf]  ;;  %v9888_v10 = vld [vmem:[#allocation6 + $0x72c] sm:$0xf0]  ;;  %v7649_v16 = vor.u32 %v9792_v8, %v7648_v5  ;;  %4323 = vmatpush.bf16.msrb.mxu1 %v7793_v6  ;;  %v7044_v8 = vld [vmem:[%s12145_s0 + $0x1c8] sm:$0xf] }
  0x48   :  { %v8033_v11 = vor.u32 %v9888_v10, %v8032_v9  ;;  %v7776_v12 = vld [vmem:[#allocation6 + $0x520] sm:$0xf]  ;;  %v9824_v13 = vld [vmem:[#allocation6 + $0x52c] sm:$0xf0]  ;;  %4353 = vmatpush.bf16.msrb.mxu2 %v7905_v7  ;;  %v9648_v9 = vld [vmem:[%s12145_s0 + $0x210] sm:$0xf0] }
  0x49   :  { %v7888_v14 = vld [vmem:[#allocation6 + $0x600] sm:$0xf]  ;;  %v9852_v15 = vld [vmem:[#allocation6 + $0x60c] sm:$0xf0]  ;;  %v7777_v19 = vor.u32 %v9824_v13, %v7776_v12  ;;  %v9639_v10 = vld [vmem:[%s12145_s0 + $0x1cc] sm:$0xf] }
  0x4a   :  { %v8016_v17 = vld [vmem:[#allocation6 + $0x700] sm:$0xf]  ;;  %v9884_v18 = vld [vmem:[#allocation6 + $0x70c] sm:$0xf0]  ;;  %v7889_v20 = vor.u32 %v9852_v15, %v7888_v14  ;;  %4382 = vmatpush.bf16.msrb.mxu3 %v8033_v11  ;;  %4295 = vmatpush.bf16.msrb.mxu0 %v7649_v16  ;;  %v7046_v11 = vld [vmem:[%s12145_s0 + $0x214] sm:$0xf0]  ;;  %v10487_v16 = vor.u32 %v9648_v9, %v7044_v8 }
  0x4b   :  { %v7632_v21 = vld [vmem:[#allocation6 + $0x400] sm:$0xf]  ;;  %v9788_v22 = vld [vmem:[#allocation6 + $0x40c] sm:$0xf0]  ;;  %v8017_v23 = vor.u32 %v9884_v18, %v8016_v17  ;;  %4324 = vmatpush.bf16.msrb.mxu1 %v7777_v19  ;;  %v9649_v13 = vld [vmem:[%s12145_s0 + $0x218] sm:$0xf0]  ;;  %v10489_v17 = vor.u32 %v9639_v10, %v7046_v11 }
  0x4c   :  { %v7760_v24 = vld [vmem:[#allocation6 + $0x500] sm:$0xf]  ;;  %v9820_v25 = vld [vmem:[#allocation6 + $0x50c] sm:$0xf0]  ;;  %v7633_v32 = vor.u32 %v9788_v22, %v7632_v21  ;;  %4354 = vmatpush.bf16.msrb.mxu2 %v7889_v20  ;;  %v9640_v14 = vld [vmem:[%s12145_s0 + $0x1d4] sm:$0xf] }
  0x4d   :  { %v6968_v26 = vld [vmem:[%s12145_s0 + $0x130] sm:$0xf]  ;;  %v6970_v29 = vld [vmem:[%s12145_s0 + $0x17c] sm:$0xf0]  ;;  %v7761_v35 = vor.u32 %v9820_v25, %v7760_v24  ;;  %12293 = vst [vmem:[#allocation24_spill] sm:$0xff] %v10487_v16 }
  0x4e   :  { %v10451_v36 = vor.u32 %v9629_v27, %v6968_v26  ;;  %4383 = vmatpush.bf16.msrb.mxu3 %v8017_v23  ;;  %v10453_v37 = vor.u32 %v9620_v28, %v6970_v29  ;;  %4296 = vmatpush.bf16.msrb.mxu0 %v7633_v32  ;;  %v8512_v40 = vld [vmem:[#allocation6 + $0xae0] sm:$0xf]  ;;  %v10008_v41 = vld [vmem:[#allocation6 + $0xaec] sm:$0xf0]  ;;  %12294 = vst [vmem:[#allocation25_spill] sm:$0xff] %v10489_v17 }
  0x4f   :  { %4325 = vmatpush.bf16.msrb.mxu1 %v7761_v35  ;;  %v8256_v42 = vld [vmem:[#allocation6 + $0x8e0] sm:$0xf]  ;;  %v8513_v43 = vor.u32 %v10008_v41, %v8512_v40  ;;  %v9944_v45 = vld [vmem:[#allocation6 + $0x8ec] sm:$0xf0] }
  0x50   :  { %12289 = vst [vmem:[#allocation20_spill] sm:$0xff] %v10451_v36  ;;  %4191 = vmatmul.bf16.gmra.mxu0 %v10451_v36  ;;  %4220 = vmatmul.bf16.gmra.mxu1 %v10453_v37  ;;  %v8640_v46 = vld [vmem:[#allocation6 + $0xbe0] sm:$0xf]  ;;  %v10040_v47 = vld [vmem:[#allocation6 + $0xbec] sm:$0xf0]  ;;  %v8257_v49 = vor.u32 %v9944_v45, %v8256_v42 }
  0x51   :  { %12290 = vst [vmem:[#allocation21_spill] sm:$0xff] %v10453_v37  ;;  %4249 = vmatmul.bf16.gmra.mxu2 %v10455_v38  ;;  %v8641_v52 = vor.u32 %v10040_v47, %v8640_v46  ;;  %v8384_v55 = vld [vmem:[#allocation6 + $0x9e0] sm:$0xf]  ;;  %v9976_v58 = vld [vmem:[#allocation6 + $0x9ec] sm:$0xf0] }
  0x52   :  { %4278 = vmatmul.bf16.gmra.mxu3 %v10457_v39  ;;  %v8496_v59 = vld [vmem:[#allocation6 + $0xac0] sm:$0xf]  ;;  %4463 = vmatpush.bf16.msra.mxu2 %v8513_v43  ;;  %v8385_v60 = vor.u32 %v9976_v58, %v8384_v55  ;;  %v10004_v61 = vld [vmem:[#allocation6 + $0xacc] sm:$0xf0]  ;;  %v9593_v55 = vld [vmem:[%s12145_s0 + $0x58] sm:$0xf0] }
  0x53   :  { %v8240_v62 = vld [vmem:[#allocation6 + $0x8c0] sm:$0xf]  ;;  %v9940_v63 = vld [vmem:[#allocation6 + $0x8cc] sm:$0xf0]  ;;  %4405 = vmatpush.bf16.msra.mxu0 %v8257_v49  ;;  %4492 = vmatpush.bf16.msra.mxu3 %v8641_v52  ;;  %v8497_v0 = vor.u32 %v10004_v61, %v8496_v59  ;;  %v9584_v58 = vld [vmem:[%s12145_s0 + $0x14] sm:$0xf] }
  0x54   :  { %v8241_v1 = vor.u32 %v9940_v63, %v8240_v62  ;;  %v8624_v2 = vld [vmem:[#allocation6 + $0xbc0] sm:$0xf]  ;;  %v10036_v3 = vld [vmem:[#allocation6 + $0xbcc] sm:$0xf0]  ;;  %4434 = vmatpush.bf16.msra.mxu1 %v8385_v60  ;;  %v6840_v60 = vld [vmem:[%s12145_s0 + $0x18] sm:$0xf] }
  0x55   :  { %v8368_v4 = vld [vmem:[#allocation6 + $0x9c0] sm:$0xf]  ;;  %v8625_v5 = vor.u32 %v10036_v3, %v8624_v2  ;;  %v9972_v6 = vld [vmem:[#allocation6 + $0x9cc] sm:$0xf0]  ;;  %v9594_v61 = vld [vmem:[%s12145_s0 + $0x60] sm:$0xf0] }
  0x56   :  { %v8369_v7 = vor.u32 %v9972_v6, %v8368_v4  ;;  %4464 = vmatpush.bf16.msra.mxu2 %v8497_v0  ;;  %v7052_v12 = vld [vmem:[%s12145_s0 + $0x1d0] sm:$0xf]  ;;  %v7054_v15 = vld [vmem:[%s12145_s0 + $0x21c] sm:$0xf0]  ;;  %v9585_v62 = vld [vmem:[%s12145_s0 + $0x1c] sm:$0xf]  ;;  %v10527_v2 = vor.u32 %v9594_v61, %v6840_v60 }
  0x57   :  { %4406 = vmatpush.bf16.msra.mxu0 %v8241_v1  ;;  %4493 = vmatpush.bf16.msra.mxu3 %v8625_v5  ;;  %v10491_v18 = vor.u32 %v9649_v13, %v7052_v12  ;;  %v10493_v19 = vor.u32 %v9640_v14, %v7054_v15  ;;  %v8480_v20 = vld [vmem:[#allocation6 + $0xaa0] sm:$0xf]  ;;  %v10000_v21 = vld [vmem:[#allocation6 + $0xaac] sm:$0xf0]  ;;  %v6842_v63 = vld [vmem:[%s12145_s0 + $0x64] sm:$0xf0] }
  0x58   :  { %4435 = vmatpush.bf16.msra.mxu1 %v8369_v7  ;;  %v8224_v22 = vld [vmem:[#allocation6 + $0x8a0] sm:$0xf]  ;;  %v8481_v23 = vor.u32 %v10000_v21, %v8480_v20  ;;  %v9936_v24 = vld [vmem:[#allocation6 + $0x8ac] sm:$0xf0]  ;;  %v10529_v3 = vor.u32 %v9585_v62, %v6842_v63 }
  0x59   :  { %12295 = vst [vmem:[#allocation26_spill] sm:$0xff] %v10491_v18  ;;  %v8608_v25 = vld [vmem:[#allocation6 + $0xba0] sm:$0xf]  ;;  %v10032_v26 = vld [vmem:[#allocation6 + $0xbac] sm:$0xf0]  ;;  %v8225_v27 = vor.u32 %v9936_v24, %v8224_v22 }
  0x5a   :  { %12296 = vst [vmem:[#allocation27_spill] sm:$0xff] %v10493_v19  ;;  %v8609_v28 = vor.u32 %v10032_v26, %v8608_v25  ;;  %v8352_v29 = vld [vmem:[#allocation6 + $0x9a0] sm:$0xf]  ;;  %v9968_v30 = vld [vmem:[#allocation6 + $0x9ac] sm:$0xf0]  ;;  %4465 = vmatpush.bf16.msra.mxu2 %v8481_v23 }
  0x5b   :  { %v8464_v31 = vld [vmem:[#allocation6 + $0xa80] sm:$0xf]  ;;  %v8353_v32 = vor.u32 %v9968_v30, %v8352_v29  ;;  %v9996_v33 = vld [vmem:[#allocation6 + $0xa8c] sm:$0xf0]  ;;  %4407 = vmatpush.bf16.msra.mxu0 %v8225_v27 }
  0x5c   :  { %v8208_v34 = vld [vmem:[#allocation6 + $0x880] sm:$0xf]  ;;  %v9932_v35 = vld [vmem:[#allocation6 + $0x88c] sm:$0xf0]  ;;  %4494 = vmatpush.bf16.msra.mxu3 %v8609_v28  ;;  %v8465_v40 = vor.u32 %v9996_v33, %v8464_v31  ;;  %v9612_v33 = vld [vmem:[%s12145_s0 + $0xf0] sm:$0xf0] }
  0x5d   :  { %v8209_v41 = vor.u32 %v9932_v35, %v8208_v34  ;;  %v8592_v42 = vld [vmem:[#allocation6 + $0xb80] sm:$0xf]  ;;  %v10028_v43 = vld [vmem:[#allocation6 + $0xb8c] sm:$0xf0]  ;;  %4436 = vmatpush.bf16.msra.mxu1 %v8353_v32  ;;  %v6908_v32 = vld [vmem:[%s12145_s0 + $0xa8] sm:$0xf] }
  0x5e   :  { %v8336_v45 = vld [vmem:[#allocation6 + $0x980] sm:$0xf]  ;;  %v8593_v46 = vor.u32 %v10028_v43, %v8592_v42  ;;  %v9964_v47 = vld [vmem:[#allocation6 + $0x98c] sm:$0xf0]  ;;  %4466 = vmatpush.bf16.msra.mxu2 %v8465_v40  ;;  %v9603_v34 = vld [vmem:[%s12145_s0 + $0xac] sm:$0xf] }
  0x5f   :  { %v8337_v49 = vor.u32 %v9964_v47, %v8336_v45  ;;  %v6832_v52 = vld [vmem:[%s12145_s0 + $0x10] sm:$0xf]  ;;  %v6834_v59 = vld [vmem:[%s12145_s0 + $0x5c] sm:$0xf0]  ;;  %4408 = vmatpush.bf16.msra.mxu0 %v8209_v41  ;;  %v6910_v35 = vld [vmem:[%s12145_s0 + $0xf4] sm:$0xf0]  ;;  %v10559_v45 = vor.u32 %v9612_v33, %v6908_v32 }
  0x60   :  { %4196 = vmatmul.bf16.gmra.mxu0 %v10487_v16  ;;  %4225 = vmatmul.bf16.gmra.mxu1 %v10489_v17  ;;  %v10523_v0 = vor.u32 %v9593_v55, %v6832_v52  ;;  %v10525_v1 = vor.u32 %v9584_v58, %v6834_v59  ;;  %v8448_v4 = vld [vmem:[#allocation6 + $0xa60] sm:$0xf]  ;;  %v9992_v5 = vld [vmem:[#allocation6 + $0xa6c] sm:$0xf0]  ;;  %v9613_v41 = vld [vmem:[%s12145_s0 + $0xf8] sm:$0xf0] }
  0x61   :  { %4254 = vmatmul.bf16.gmra.mxu2 %v10491_v18  ;;  %4495 = vmatpush.bf16.msra.mxu3 %v8593_v46  ;;  %v8192_v6 = vld [vmem:[#allocation6 + $0x860] sm:$0xf]  ;;  %v8449_v7 = vor.u32 %v9992_v5, %v8448_v4  ;;  %v9928_v8 = vld [vmem:[#allocation6 + $0x86c] sm:$0xf0]  ;;  %v9604_v42 = vld [vmem:[%s12145_s0 + $0xb4] sm:$0xf]  ;;  %v10561_v46 = vor.u32 %v9603_v34, %v6910_v35 }
  0x62   :  { %4283 = vmatmul.bf16.gmra.mxu3 %v10493_v19  ;;  %4437 = vmatpush.bf16.msra.mxu1 %v8337_v49  ;;  %12297 = vst [vmem:[#allocation28_spill] sm:$0xff] %v10523_v0  ;;  %v8576_v9 = vld [vmem:[#allocation6 + $0xb60] sm:$0xf]  ;;  %v10024_v10 = vld [vmem:[#allocation6 + $0xb6c] sm:$0xf0]  ;;  %v8193_v11 = vor.u32 %v9928_v8, %v8192_v6 }
  0x63   :  { %12298 = vst [vmem:[#allocation29_spill] sm:$0xff] %v10525_v1  ;;  %v8577_v12 = vor.u32 %v10024_v10, %v8576_v9  ;;  %v8320_v13 = vld [vmem:[#allocation6 + $0x960] sm:$0xf]  ;;  %v9960_v14 = vld [vmem:[#allocation6 + $0x96c] sm:$0xf0]  ;;  %4467 = vmatpush.bf16.msra.mxu2 %v8449_v7 }
  0x64   :  { %v8432_v15 = vld [vmem:[#allocation6 + $0xa40] sm:$0xf]  ;;  %v8321_v20 = vor.u32 %v9960_v14, %v8320_v13  ;;  %v9988_v21 = vld [vmem:[#allocation6 + $0xa4c] sm:$0xf0]  ;;  %4409 = vmatpush.bf16.msra.mxu0 %v8193_v11  ;;  %12299 = vst [vmem:[#allocation30_spill] sm:$0xff] %v10559_v45 }
  0x65   :  { %v8176_v22 = vld [vmem:[#allocation6 + $0x840] sm:$0xf]  ;;  %v9924_v23 = vld [vmem:[#allocation6 + $0x84c] sm:$0xf0]  ;;  %4496 = vmatpush.bf16.msra.mxu3 %v8577_v12  ;;  %v8433_v24 = vor.u32 %v9988_v21, %v8432_v15  ;;  %12300 = vst [vmem:[#allocation31_spill] sm:$0xff] %v10561_v46 }
  0x66   :  { %v8177_v25 = vor.u32 %v9924_v23, %v8176_v22  ;;  %v8560_v26 = vld [vmem:[#allocation6 + $0xb40] sm:$0xf]  ;;  %v10020_v27 = vld [vmem:[#allocation6 + $0xb4c] sm:$0xf0]  ;;  %4438 = vmatpush.bf16.msra.mxu1 %v8321_v20 }
  0x67   :  { %v8304_v28 = vld [vmem:[#allocation6 + $0x940] sm:$0xf]  ;;  %v8561_v29 = vor.u32 %v10020_v27, %v8560_v26  ;;  %v9956_v30 = vld [vmem:[#allocation6 + $0x94c] sm:$0xf0]  ;;  %4468 = vmatpush.bf16.msra.mxu2 %v8433_v24  ;;  %v9622_v26 = vld [vmem:[%s12145_s0 + $0x144] sm:$0xf] }
  0x68   :  { %v8305_v31 = vor.u32 %v9956_v30, %v8304_v28  ;;  %v6916_v40 = vld [vmem:[%s12145_s0 + $0xb0] sm:$0xf]  ;;  %4410 = vmatpush.bf16.msra.mxu0 %v8177_v25  ;;  %v6918_v43 = vld [vmem:[%s12145_s0 + $0xfc] sm:$0xf0]  ;;  %v9631_v25 = vld [vmem:[%s12145_s0 + $0x188] sm:$0xf0] }
  0x69   :  { %4497 = vmatpush.bf16.msra.mxu3 %v8561_v29  ;;  %v10563_v47 = vor.u32 %v9613_v41, %v6916_v40  ;;  %v10565_v49 = vor.u32 %v9604_v42, %v6918_v43  ;;  %v8416_v52 = vld [vmem:[#allocation6 + $0xa20] sm:$0xf]  ;;  %v9984_v55 = vld [vmem:[#allocation6 + $0xa2c] sm:$0xf0]  ;;  %v6992_v28 = vld [vmem:[%s12145_s0 + $0x148] sm:$0xf] }
  0x6a   :  { %4439 = vmatpush.bf16.msra.mxu1 %v8305_v31  ;;  %v8160_v58 = vld [vmem:[#allocation6 + $0x820] sm:$0xf]  ;;  %v8417_v59 = vor.u32 %v9984_v55, %v8416_v52  ;;  %v9920_v60 = vld [vmem:[#allocation6 + $0x82c] sm:$0xf0]  ;;  %v9632_v29 = vld [vmem:[%s12145_s0 + $0x190] sm:$0xf0] }
  0x6b   :  { %v8544_v61 = vld [vmem:[#allocation6 + $0xb20] sm:$0xf]  ;;  %v10016_v62 = vld [vmem:[#allocation6 + $0xb2c] sm:$0xf0]  ;;  %v8161_v63 = vor.u32 %v9920_v60, %v8160_v58  ;;  %v9623_v30 = vld [vmem:[%s12145_s0 + $0x14c] sm:$0xf]  ;;  %v10599_v34 = vor.u32 %v9632_v29, %v6992_v28 }
  0x6c   :  { %v8545_v4 = vor.u32 %v10016_v62, %v8544_v61  ;;  %v8288_v5 = vld [vmem:[#allocation6 + $0x920] sm:$0xf]  ;;  %v9952_v6 = vld [vmem:[#allocation6 + $0x92c] sm:$0xf0]  ;;  %4469 = vmatpush.bf16.msra.mxu2 %v8417_v59  ;;  %v6994_v31 = vld [vmem:[%s12145_s0 + $0x194] sm:$0xf0] }
  0x6d   :  { %v8400_v7 = vld [vmem:[#allocation6 + $0xa00] sm:$0xf]  ;;  %v8289_v8 = vor.u32 %v9952_v6, %v8288_v5  ;;  %v9980_v9 = vld [vmem:[#allocation6 + $0xa0c] sm:$0xf0]  ;;  %4411 = vmatpush.bf16.msra.mxu0 %v8161_v63  ;;  %12303 = vst [vmem:[#allocation34_spill] sm:$0xff] %v10599_v34  ;;  %v10601_v35 = vor.u32 %v9623_v30, %v6994_v31 }
  0x6e   :  { %v8144_v10 = vld [vmem:[#allocation6 + $0x800] sm:$0xf]  ;;  %v9916_v11 = vld [vmem:[#allocation6 + $0x80c] sm:$0xf0]  ;;  %4498 = vmatpush.bf16.msra.mxu3 %v8545_v4  ;;  %v8401_v12 = vor.u32 %v9980_v9, %v8400_v7  ;;  %v7060_v61 = vld [vmem:[%s12145_s0 + $0x1d8] sm:$0xf] }
  0x6f   :  { %v8145_v13 = vor.u32 %v9916_v11, %v8144_v10  ;;  %v8528_v14 = vld [vmem:[#allocation6 + $0xb00] sm:$0xf]  ;;  %v10012_v15 = vld [vmem:[#allocation6 + $0xb0c] sm:$0xf0]  ;;  %4440 = vmatpush.bf16.msra.mxu1 %v8289_v8  ;;  %12304 = vst [vmem:[#allocation35_spill] sm:$0xff] %v10601_v35 }
  0x70   :  { %4297 = vmatmul.bf16.vlgmr.msrb.gmra.mxu0 %v10523_v0  ;;  %4326 = vmatmul.bf16.vlgmr.msrb.gmra.mxu1 %v10525_v1  ;;  %v8272_v20 = vld [vmem:[#allocation6 + $0x900] sm:$0xf]  ;;  %v8529_v21 = vor.u32 %v10012_v15, %v8528_v14  ;;  %v9948_v22 = vld [vmem:[#allocation6 + $0x90c] sm:$0xf0]  ;;  %v9650_v62 = vld [vmem:[%s12145_s0 + $0x220] sm:$0xf0] }
  0x71   :  { %4355 = vmatmul.bf16.vlgmr.msrb.gmra.mxu2 %v10527_v2  ;;  %v8273_v23 = vor.u32 %v9948_v22, %v8272_v20  ;;  %v6984_v24 = vld [vmem:[%s12145_s0 + $0x140] sm:$0xf]  ;;  %v6986_v27 = vld [vmem:[%s12145_s0 + $0x18c] sm:$0xf0]  ;;  %4412 = vmatpush.bf16.msra.mxu0 %v8145_v13  ;;  %v9641_v10 = vld [vmem:[%s12145_s0 + $0x1dc] sm:$0xf] }
  0x72   :  { %4384 = vmatmul.bf16.vlgmr.msrb.gmra.mxu3 %v10529_v3  ;;  %4470 = vmatpush.bf16.msra.mxu2 %v8401_v12  ;;  %v10595_v32 = vor.u32 %v9631_v25, %v6984_v24  ;;  %v10597_v33 = vor.u32 %v9622_v26, %v6986_v27  ;;  %v9024_v40 = vld [vmem:[#allocation6 + $0xee0] sm:$0xf]  ;;  %v10136_v41 = vld [vmem:[#allocation6 + $0xeec] sm:$0xf0]  ;;  %v7062_v15 = vld [vmem:[%s12145_s0 + $0x224] sm:$0xf0]  ;;  %v10631_v25 = vor.u32 %v9650_v62, %v7060_v61 }
  0x73   :  { %4499 = vmatpush.bf16.msra.mxu3 %v8529_v21  ;;  %4441 = vmatpush.bf16.msra.mxu1 %v8273_v23  ;;  %v8768_v42 = vld [vmem:[#allocation6 + $0xce0] sm:$0xf]  ;;  %v9025_v43 = vor.u32 %v10136_v41, %v9024_v40  ;;  %v10072_v52 = vld [vmem:[#allocation6 + $0xcec] sm:$0xf0]  ;;  %v9651_v21 = vld [vmem:[%s12145_s0 + $0x228] sm:$0xf0]  ;;  %v10633_v26 = vor.u32 %v9641_v10, %v7062_v15 }
  0x74   :  { %12301 = vst [vmem:[#allocation32_spill] sm:$0xff] %v10595_v32  ;;  %v9152_v55 = vld [vmem:[#allocation6 + $0xfe0] sm:$0xf]  ;;  %v10168_v58 = vld [vmem:[#allocation6 + $0xfec] sm:$0xf0]  ;;  %v8769_v59 = vor.u32 %v10072_v52, %v8768_v42 }
  0x75   :  { %12302 = vst [vmem:[#allocation33_spill] sm:$0xff] %v10597_v33  ;;  %v9153_v60 = vor.u32 %v10168_v58, %v9152_v55  ;;  %v8896_v63 = vld [vmem:[#allocation6 + $0xde0] sm:$0xf]  ;;  %v10104_v4 = vld [vmem:[#allocation6 + $0xdec] sm:$0xf0] }
  0x76   :  { %4579 = vmatpush.bf16.msrb.mxu2 %v9025_v43  ;;  %4521 = vmatpush.bf16.msrb.mxu0 %v8769_v59  ;;  %v9008_v5 = vld [vmem:[#allocation6 + $0xec0] sm:$0xf]  ;;  %v8897_v6 = vor.u32 %v10104_v4, %v8896_v63  ;;  %v10132_v7 = vld [vmem:[#allocation6 + $0xecc] sm:$0xf0]  ;;  %v9642_v23 = vld [vmem:[%s12145_s0 + $0x1e4] sm:$0xf] }
  0x77   :  { %4608 = vmatpush.bf16.msrb.mxu3 %v9153_v60  ;;  %v8752_v8 = vld [vmem:[#allocation6 + $0xcc0] sm:$0xf]  ;;  %v10068_v9 = vld [vmem:[#allocation6 + $0xccc] sm:$0xf0]  ;;  %v9009_v11 = vor.u32 %v10132_v7, %v9008_v5  ;;  %12305 = vst [vmem:[#allocation36_spill] sm:$0xff] %v10631_v25 }
  0x78   :  { %v8753_v12 = vor.u32 %v10068_v9, %v8752_v8  ;;  %v9136_v13 = vld [vmem:[#allocation6 + $0xfc0] sm:$0xf]  ;;  %v10164_v14 = vld [vmem:[#allocation6 + $0xfcc] sm:$0xf0]  ;;  %4550 = vmatpush.bf16.msrb.mxu1 %v8897_v6  ;;  %12306 = vst [vmem:[#allocation37_spill] sm:$0xff] %v10633_v26 }
  0x79   :  { %v7068_v20 = vld [vmem:[%s12145_s0 + $0x1e0] sm:$0xf]  ;;  %v9137_v22 = vor.u32 %v10164_v14, %v9136_v13  ;;  %v7070_v24 = vld [vmem:[%s12145_s0 + $0x22c] sm:$0xf0]  ;;  %v9595_v62 = vld [vmem:[%s12145_s0 + $0x68] sm:$0xf0] }
  0x7a   :  { %4580 = vmatpush.bf16.msrb.mxu2 %v9009_v11  ;;  %4522 = vmatpush.bf16.msrb.mxu0 %v8753_v12  ;;  %v10635_v27 = vor.u32 %v9651_v21, %v7068_v20  ;;  %v10637_v28 = vor.u32 %v9642_v23, %v7070_v24  ;;  %v8880_v29 = vld [vmem:[#allocation6 + $0xdc0] sm:$0xf]  ;;  %v10100_v30 = vld [vmem:[#allocation6 + $0xdcc] sm:$0xf0]  ;;  %v9586_v10 = vld [vmem:[%s12145_s0 + $0x24] sm:$0xf] }
  0x7b   :  { %4609 = vmatpush.bf16.msrb.mxu3 %v9137_v22  ;;  %v8881_v31 = vor.u32 %v10100_v30, %v8880_v29  ;;  %v8992_v40 = vld [vmem:[#allocation6 + $0xea0] sm:$0xf]  ;;  %v10128_v41 = vld [vmem:[#allocation6 + $0xeac] sm:$0xf0]  ;;  %v6856_v20 = vld [vmem:[%s12145_s0 + $0x28] sm:$0xf] }
  0x7c   :  { %12307 = vst [vmem:[#allocation38_spill] sm:$0xff] %v10635_v27  ;;  %v8993_v42 = vor.u32 %v10128_v41, %v8992_v40  ;;  %v8736_v43 = vld [vmem:[#allocation6 + $0xca0] sm:$0xf]  ;;  %v10064_v52 = vld [vmem:[#allocation6 + $0xcac] sm:$0xf0] }
  0x7d   :  { %12308 = vst [vmem:[#allocation39_spill] sm:$0xff] %v10637_v28  ;;  %4551 = vmatpush.bf16.msrb.mxu1 %v8881_v31  ;;  %v9120_v55 = vld [vmem:[#allocation6 + $0xfa0] sm:$0xf]  ;;  %v8737_v58 = vor.u32 %v10064_v52, %v8736_v43  ;;  %v10160_v59 = vld [vmem:[#allocation6 + $0xfac] sm:$0xf0] }
  0x7e   :  { %4581 = vmatpush.bf16.msrb.mxu2 %v8993_v42  ;;  %v9121_v60 = vor.u32 %v10160_v59, %v9120_v55  ;;  %v6848_v61 = vld [vmem:[%s12145_s0 + $0x20] sm:$0xf]  ;;  %v10096_v4 = vld [vmem:[#allocation6 + $0xdac] sm:$0xf0]  ;;  %v9596_v21 = vld [vmem:[%s12145_s0 + $0x70] sm:$0xf0] }
  0x7f   :  { %4523 = vmatpush.bf16.msrb.mxu0 %v8737_v58  ;;  %v8864_v63 = vld [vmem:[#allocation6 + $0xda0] sm:$0xf]  ;;  %v10124_v7 = vld [vmem:[#allocation6 + $0xe8c] sm:$0xf0]  ;;  %v9587_v23 = vld [vmem:[%s12145_s0 + $0x2c] sm:$0xf]  ;;  %v10667_v29 = vor.u32 %v9595_v62, %v6848_v61  ;;  %v10671_v40 = vor.u32 %v9596_v21, %v6856_v20 }
  0x80   :  { %4302 = vmatmul.bf16.gmra.mxu0 %v10559_v45  ;;  %4331 = vmatmul.bf16.gmra.mxu1 %v10561_v46  ;;  %v8976_v5 = vld [vmem:[#allocation6 + $0xe80] sm:$0xf]  ;;  %v8865_v6 = vor.u32 %v10096_v4, %v8864_v63  ;;  %v10060_v9 = vld [vmem:[#allocation6 + $0xc8c] sm:$0xf0]  ;;  %v6858_v24 = vld [vmem:[%s12145_s0 + $0x74] sm:$0xf0] }
  0x81   :  { %4360 = vmatmul.bf16.gmra.mxu2 %v10563_v47  ;;  %4610 = vmatpush.bf16.msrb.mxu3 %v9121_v60  ;;  %v8720_v8 = vld [vmem:[#allocation6 + $0xc80] sm:$0xf]  ;;  %v8977_v11 = vor.u32 %v10124_v7, %v8976_v5  ;;  %v10156_v14 = vld [vmem:[#allocation6 + $0xf8c] sm:$0xf0]  ;;  %12309 = vst [vmem:[#allocation40_spill] sm:$0xff] %v10667_v29  ;;  %v10673_v42 = vor.u32 %v9587_v23, %v6858_v24 }
  0x82   :  { %4389 = vmatmul.bf16.gmra.mxu3 %v10565_v49  ;;  %v8721_v12 = vor.u32 %v10060_v9, %v8720_v8  ;;  %v9104_v13 = vld [vmem:[#allocation6 + $0xf80] sm:$0xf]  ;;  %v6850_v15 = vld [vmem:[%s12145_s0 + $0x6c] sm:$0xf0]  ;;  %4552 = vmatpush.bf16.msrb.mxu1 %v8865_v6  ;;  %12311 = vst [vmem:[#allocation42_spill] sm:$0xff] %v10671_v40 }
  0x83   :  { %v9105_v22 = vor.u32 %v10156_v14, %v9104_v13  ;;  %4582 = vmatpush.bf16.msrb.mxu2 %v8977_v11  ;;  %v10669_v31 = vor.u32 %v9586_v10, %v6850_v15  ;;  %12312 = vst [vmem:[#allocation43_spill] sm:$0xff] %v10673_v42  ;;  %v8848_v52 = vld [vmem:[#allocation6 + $0xd80] sm:$0xf]  ;;  %v10092_v55 = vld [vmem:[#allocation6 + $0xd8c] sm:$0xf0] }
  0x84   :  { %4524 = vmatpush.bf16.msrb.mxu0 %v8721_v12  ;;  %v8849_v58 = vor.u32 %v10092_v55, %v8848_v52  ;;  %v8960_v59 = vld [vmem:[#allocation6 + $0xe60] sm:$0xf]  ;;  %v10120_v60 = vld [vmem:[#allocation6 + $0xe6c] sm:$0xf0]  ;;  %v6924_v15 = vld [vmem:[%s12145_s0 + $0xb8] sm:$0xf] }
  0x85   :  { %4611 = vmatpush.bf16.msrb.mxu3 %v9105_v22  ;;  %12310 = vst [vmem:[#allocation41_spill] sm:$0xff] %v10669_v31  ;;  %v8961_v61 = vor.u32 %v10120_v60, %v8960_v59  ;;  %v8704_v62 = vld [vmem:[#allocation6 + $0xc60] sm:$0xf]  ;;  %v10056_v63 = vld [vmem:[#allocation6 + $0xc6c] sm:$0xf0] }
  0x86   :  { %4553 = vmatpush.bf16.msrb.mxu1 %v8849_v58  ;;  %v9088_v4 = vld [vmem:[#allocation6 + $0xf60] sm:$0xf]  ;;  %v8705_v6 = vor.u32 %v10056_v63, %v8704_v62  ;;  %v10152_v7 = vld [vmem:[#allocation6 + $0xf6c] sm:$0xf0]  ;;  %v9614_v20 = vld [vmem:[%s12145_s0 + $0x100] sm:$0xf0] }
  0x87   :  { %4583 = vmatpush.bf16.msrb.mxu2 %v8961_v61  ;;  %v9089_v11 = vor.u32 %v10152_v7, %v9088_v4  ;;  %v8832_v21 = vld [vmem:[#allocation6 + $0xd60] sm:$0xf]  ;;  %v10088_v22 = vld [vmem:[#allocation6 + $0xd6c] sm:$0xf0]  ;;  %v9605_v52 = vld [vmem:[%s12145_s0 + $0xbc] sm:$0xf] }
  0x88   :  { %4525 = vmatpush.bf16.msrb.mxu0 %v8705_v6  ;;  %v8944_v23 = vld [vmem:[#allocation6 + $0xe40] sm:$0xf]  ;;  %v8833_v24 = vor.u32 %v10088_v22, %v8832_v21  ;;  %v10148_v60 = vld [vmem:[#allocation6 + $0xf4c] sm:$0xf0]  ;;  %v6926_v61 = vld [vmem:[%s12145_s0 + $0x104] sm:$0xf0] }
  0x89   :  { %4612 = vmatpush.bf16.msrb.mxu3 %v9089_v11  ;;  %v9072_v59 = vld [vmem:[#allocation6 + $0xf40] sm:$0xf]  ;;  %v9615_v63 = vld [vmem:[%s12145_s0 + $0x108] sm:$0xf0]  ;;  %v6934_v6 = vld [vmem:[%s12145_s0 + $0x10c] sm:$0xf0] }
  0x8a   :  { %v6932_v62 = vld [vmem:[%s12145_s0 + $0xc0] sm:$0xf]  ;;  %4554 = vmatpush.bf16.msrb.mxu1 %v8833_v24  ;;  %v9073_v4 = vor.u32 %v10148_v60, %v9072_v59 }
  0x8b   :  { %v10709_v21 = vor.u32 %v9615_v63, %v6932_v62  ;;  %v9056_v59 = vld [vmem:[#allocation6 + $0xf20] sm:$0xf]  ;;  %v10144_v62 = vld [vmem:[#allocation6 + $0xf2c] sm:$0xf0] }
  0x8d   :  { %4613 = vmatpush.bf16.msrb.mxu3 %v9073_v4  ;;  %12315 = vst [vmem:[#allocation46_spill] sm:$0xff] %v10709_v21 }
  0x90   :  { %4307 = vmatmul.bf16.gmra.mxu0 %v10595_v32  ;;  %4336 = vmatmul.bf16.gmra.mxu1 %v10597_v33 }
  0x91   :  { %4365 = vmatmul.bf16.gmra.mxu2 %v10599_v34 }
  0x92   :  { %4394 = vmatmul.bf16.gmra.mxu3 %v10601_v35 }
  0xa0   :  { %4312 = vmatmul.bf16.gmra.mxu0 %v10631_v25  ;;  %4341 = vmatmul.bf16.gmra.mxu1 %v10633_v26 }
  0xa1   :  { %4370 = vmatmul.bf16.gmra.mxu2 %v10635_v27  ;;  %v10220_v27 = vld [vmem:[#allocation6 + $0x118c] sm:$0xf0] }
  0xa2   :  { %4399 = vmatmul.bf16.gmra.mxu3 %v10637_v28 }
  0xab   :  { %v4182_v30 = vpop.f32.mrf.mxu0  ;;  %v4211_v41 = vpop.f32.mrf.mxu1 }
  0xac   :  { %v4212_v43 = vadd.f32 %v4211_v41, %v4182_v30  ;;  %v10116_v30 = vld [vmem:[#allocation6 + $0xe4c] sm:$0xf0]  ;;  %v8688_v41 = vld [vmem:[#allocation6 + $0xc40] sm:$0xf] }
  0xad   :  { %v8945_v55 = vor.u32 %v10116_v30, %v8944_v23 }
  0xaf   :  { %4584 = vmatpush.bf16.msrb.mxu2 %v8945_v55  ;;  %v8672_v55 = vld [vmem:[#allocation6 + $0xc20] sm:$0xf] }
  0xb0   :  { %4413 = vmatmul.bf16.vlgmr.msra.gmra.mxu0 %v10667_v29  ;;  %4442 = vmatmul.bf16.vlgmr.msra.gmra.mxu1 %v10669_v31  ;;  %v9392_v31 = vld [vmem:[#allocation6 + $0x11c0] sm:$0xf] }
  0xb1   :  { %4471 = vmatmul.bf16.vlgmr.msra.gmra.mxu2 %v10671_v40 }
  0xb2   :  { %4500 = vmatmul.bf16.vlgmr.msra.gmra.mxu3 %v10673_v42  ;;  %v4240_v5 = vpop.f32.mrf.mxu2 }
  0xb3   :  { %v4241_v8 = vadd.f32 %v4240_v5, %v4212_v43  ;;  %v4269_v9 = vpop.f32.mrf.mxu3  ;;  %v4184_v10 = vpop.f32.mrf.mxu0  ;;  %v10052_v43 = vld [vmem:[#allocation6 + $0xc4c] sm:$0xf0]  ;;  %v9606_v5 = vld [vmem:[%s12145_s0 + $0xc4] sm:$0xf] }
  0xb4   :  { %v4213_v12 = vpop.f32.mrf.mxu1  ;;  %v8689_v58 = vor.u32 %v10052_v43, %v8688_v41  ;;  %v10711_v23 = vor.u32 %v9606_v5, %v6934_v6  ;;  %v8816_v41 = vld [vmem:[#allocation6 + $0xd40] sm:$0xf]  ;;  %v10084_v43 = vld [vmem:[#allocation6 + $0xd4c] sm:$0xf0]  ;;  %v9057_v6 = vor.u32 %v10144_v62, %v9056_v59 }
  0xb5   :  { %v10679_v13 = vadd.f32 %v4269_v9, %v4241_v8  ;;  %v4214_v14 = vadd.f32 %v4213_v12, %v4184_v10  ;;  %v10705_v8 = vor.u32 %v9614_v20, %v6924_v15  ;;  %v10707_v12 = vor.u32 %v9605_v52, %v6926_v61  ;;  %v10112_v20 = vld [vmem:[#allocation6 + $0xe2c] sm:$0xf0]  ;;  %v7002_v62 = vld [vmem:[%s12145_s0 + $0x19c] sm:$0xf0] }
  0xb6   :  { %4526 = vmatpush.bf16.msrb.mxu0 %v8689_v58  ;;  %12316 = vst [vmem:[#allocation47_spill] sm:$0xff] %v10711_v23  ;;  %v8817_v15 = vor.u32 %v10084_v43, %v8816_v41  ;;  %v10048_v58 = vld [vmem:[#allocation6 + $0xc2c] sm:$0xf0]  ;;  %4614 = vmatpush.bf16.msrb.mxu3 %v9057_v6  ;;  %v8800_v41 = vld [vmem:[#allocation6 + $0xd20] sm:$0xf] }
  0xb7   :  { %12313 = vst [vmem:[#allocation44_spill] sm:$0xff] %v10705_v8  ;;  %v8673_v61 = vor.u32 %v10048_v58, %v8672_v55  ;;  %v8912_v43 = vld [vmem:[#allocation6 + $0xe00] sm:$0xf]  ;;  %v9624_v55 = vld [vmem:[%s12145_s0 + $0x154] sm:$0xf] }
  0xb8   :  { %12314 = vst [vmem:[#allocation45_spill] sm:$0xff] %v10707_v12  ;;  %4555 = vmatpush.bf16.msrb.mxu1 %v8817_v15  ;;  %v9625_v6 = vld [vmem:[%s12145_s0 + $0x15c] sm:$0xf] }
  0xba   :  { %v4242_v7 = vpop.f32.mrf.mxu2  ;;  %4527 = vmatpush.bf16.msrb.mxu0 %v8673_v61  ;;  %v10140_v61 = vld [vmem:[#allocation6 + $0xf0c] sm:$0xf0] }
  0xbb   :  { %v4243_v9 = vadd.f32 %v4242_v7, %v4214_v14  ;;  %v4271_v10 = vpop.f32.mrf.mxu3  ;;  %v4187_v11 = vpop.f32.mrf.mxu0  ;;  %v8928_v14 = vld [vmem:[#allocation6 + $0xe20] sm:$0xf] }
  0xbc   :  { %v4216_v22 = vpop.f32.mrf.mxu1  ;;  %v8929_v52 = vor.u32 %v10112_v20, %v8928_v14  ;;  %v10108_v14 = vld [vmem:[#allocation6 + $0xe0c] sm:$0xf0]  ;;  %v8656_v20 = vld [vmem:[#allocation6 + $0xc00] sm:$0xf] }
  0xbd   :  { %v10713_v24 = vadd.f32 %v4271_v10, %v4243_v9  ;;  %v4217_v30 = vadd.f32 %v4216_v22, %v4187_v11  ;;  %v7000_v11 = vld [vmem:[%s12145_s0 + $0x150] sm:$0xf]  ;;  %v9633_v22 = vld [vmem:[%s12145_s0 + $0x198] sm:$0xf0]  ;;  %v8913_v58 = vor.u32 %v10108_v14, %v8912_v43  ;;  %v8784_v43 = vld [vmem:[#allocation6 + $0xd00] sm:$0xf] }
  0xbe   :  { %4585 = vmatpush.bf16.msrb.mxu2 %v8929_v52  ;;  %v10044_v52 = vld [vmem:[#allocation6 + $0xc0c] sm:$0xf0] }
  0xbf   :  { %v8657_v59 = vor.u32 %v10044_v52, %v8656_v20  ;;  %v10076_v14 = vld [vmem:[#allocation6 + $0xd0c] sm:$0xf0] }
  0xc0   :  { %4418 = vmatmul.bf16.gmra.mxu0 %v10705_v8  ;;  %4447 = vmatmul.bf16.gmra.mxu1 %v10707_v12 }
  0xc1   :  { %4476 = vmatmul.bf16.gmra.mxu2 %v10709_v21  ;;  %4528 = vmatpush.bf16.msrb.mxu0 %v8657_v59  ;;  %v10200_v59 = vld [vmem:[#allocation6 + $0x10ec] sm:$0xf0] }
  0xc2   :  { %4505 = vmatmul.bf16.gmra.mxu3 %v10711_v23  ;;  %4586 = vmatpush.bf16.msrb.mxu2 %v8913_v58  ;;  %v8785_v23 = vor.u32 %v10076_v14, %v8784_v43 }
  0xc3   :  { %v4189_v5 = vpop.f32.mrf.mxu0 }
  0xc4   :  { %v4245_v60 = vpop.f32.mrf.mxu2  ;;  %v4218_v7 = vpop.f32.mrf.mxu1 }
  0xc5   :  { %v4246_v63 = vadd.f32 %v4245_v60, %v4217_v30  ;;  %v4274_v4 = vpop.f32.mrf.mxu3  ;;  %v4219_v10 = vadd.f32 %v4218_v7, %v4189_v5  ;;  %v10080_v30 = vld [vmem:[#allocation6 + $0xd2c] sm:$0xf0]  ;;  %v9040_v60 = vld [vmem:[#allocation6 + $0xf00] sm:$0xf]  ;;  %v7010_v7 = vld [vmem:[%s12145_s0 + $0x1a4] sm:$0xf0] }
  0xc6   :  { %v8801_v15 = vor.u32 %v10080_v30, %v8800_v41  ;;  %v9041_v5 = vor.u32 %v10140_v61, %v9040_v60  ;;  %v10745_v30 = vor.u32 %v9633_v22, %v7000_v11  ;;  %v10747_v60 = vor.u32 %v9624_v55, %v7002_v62  ;;  %v10264_v11 = vld [vmem:[#allocation6 + $0x12ec] sm:$0xf0]  ;;  %v9280_v22 = vld [vmem:[#allocation6 + $0x10e0] sm:$0xf]  ;;  %v9686_v62 = vld [vmem:[#allocation6 + $0xe4] sm:$0xf] }
  0xc7   :  { %v10719_v9 = vadd.f32 %v4274_v4, %v4246_v63  ;;  %v7008_v63 = vld [vmem:[%s12145_s0 + $0x158] sm:$0xf]  ;;  %v9634_v4 = vld [vmem:[%s12145_s0 + $0x1a0] sm:$0xf0]  ;;  %v10751_v12 = vor.u32 %v9625_v6, %v7010_v7 }
  0xc8   :  { %4556 = vmatpush.bf16.msrb.mxu1 %v8801_v15  ;;  %12317 = vst [vmem:[#allocation48_spill] sm:$0xff] %v10745_v30  ;;  %4615 = vmatpush.bf16.msrb.mxu3 %v9041_v5  ;;  %v10749_v61 = vor.u32 %v9634_v4, %v7008_v63  ;;  %v7234_v63 = vld [vmem:[#allocation6 + $0xf0] sm:$0xf0]  ;;  %v9281_v5 = vor.u32 %v10200_v59, %v9280_v22  ;;  %v9520_v22 = vld [vmem:[#allocation6 + $0x12c0] sm:$0xf] }
  0xc9   :  { %12318 = vst [vmem:[#allocation49_spill] sm:$0xff] %v10747_v60  ;;  %v7237_v6 = vor.u32 %v9686_v62, %v7234_v63  ;;  %v9264_v59 = vld [vmem:[#allocation6 + $0x10c0] sm:$0xf]  ;;  %v10196_v63 = vld [vmem:[#allocation6 + $0x10cc] sm:$0xf0] }
  0xca   :  { %12319 = vst [vmem:[#allocation50_spill] sm:$0xff] %v10749_v61  ;;  %4637 = vmatpush.bf16.msra.mxu0 %v9281_v5  ;;  %v7218_v5 = vld [vmem:[#allocation6 + $0xd0] sm:$0xf0] }
  0xcb   :  { %12320 = vst [vmem:[#allocation51_spill] sm:$0xff] %v10751_v12 }
  0xcc   :  { %v4247_v41 = vpop.f32.mrf.mxu2  ;;  %4557 = vmatpush.bf16.msrb.mxu1 %v8785_v23  ;;  %4724 = vmatpush.bf16.msra.mxu3 %v7237_v6  ;;  %v7078_v6 = vld [vmem:[%s12145_s0 + $0x234] sm:$0xf0] }
  0xcd   :  { %v4248_v20 = vadd.f32 %v4247_v41, %v4219_v10  ;;  %v4276_v52 = vpop.f32.mrf.mxu3  ;;  %v4192_v15 = vpop.f32.mrf.mxu0  ;;  %v9536_v10 = vld [vmem:[#allocation6 + $0x12e0] sm:$0xf] }
  0xce   :  { %v4221_v21 = vpop.f32.mrf.mxu1  ;;  %v9537_v55 = vor.u32 %v10264_v11, %v9536_v10  ;;  %v10232_v10 = vld [vmem:[#allocation6 + $0x11ec] sm:$0xf0] }
  0xcf   :  { %v10753_v42 = vadd.f32 %v4276_v52, %v4248_v20  ;;  %v4222_v58 = vadd.f32 %v4221_v21, %v4192_v15  ;;  %v7076_v20 = vld [vmem:[%s12145_s0 + $0x1e8] sm:$0xf]  ;;  %v9652_v52 = vld [vmem:[%s12145_s0 + $0x230] sm:$0xf0]  ;;  %v9408_v15 = vld [vmem:[#allocation6 + $0x11e0] sm:$0xf] }
  0xd0   :  { %4423 = vmatmul.bf16.gmra.mxu0 %v10745_v30  ;;  %4452 = vmatmul.bf16.gmra.mxu1 %v10747_v60  ;;  %v9409_v11 = vor.u32 %v10232_v10, %v9408_v15  ;;  %v9644_v15 = vld [vmem:[%s12145_s0 + $0x1f4] sm:$0xf]  ;;  %v7086_v10 = vld [vmem:[%s12145_s0 + $0x23c] sm:$0xf0] }
  0xd1   :  { %4481 = vmatmul.bf16.gmra.mxu2 %v10749_v61 }
  0xd2   :  { %4510 = vmatmul.bf16.gmra.mxu3 %v10751_v12  ;;  %4695 = vmatpush.bf16.msra.mxu2 %v9537_v55  ;;  %v10260_v55 = vld [vmem:[#allocation6 + $0x12cc] sm:$0xf0] }
  0xd3   :  { %v9521_v62 = vor.u32 %v10260_v55, %v9520_v22  ;;  %4666 = vmatpush.bf16.msra.mxu1 %v9409_v11  ;;  %v10785_v55 = vor.u32 %v9652_v52, %v7076_v20  ;;  %v10256_v52 = vld [vmem:[#allocation6 + $0x12ac] sm:$0xf0] }
  0xd4   :  { %v4250_v4 = vpop.f32.mrf.mxu2 }
  0xd5   :  { %v4251_v21 = vadd.f32 %v4250_v4, %v4222_v58  ;;  %v4279_v23 = vpop.f32.mrf.mxu3  ;;  %v4194_v7 = vpop.f32.mrf.mxu0  ;;  %v9643_v58 = vld [vmem:[%s12145_s0 + $0x1ec] sm:$0xf]  ;;  %v9682_v4 = vld [vmem:[#allocation6 + $0xc4] sm:$0xf]  ;;  %12321 = vst [vmem:[#allocation52_spill] sm:$0xff] %v10785_v55 }
  0xd6   :  { %v4223_v41 = vpop.f32.mrf.mxu1  ;;  %4696 = vmatpush.bf16.msra.mxu2 %v9521_v62  ;;  %v10787_v11 = vor.u32 %v9643_v58, %v7078_v6  ;;  %v10228_v62 = vld [vmem:[#allocation6 + $0x11cc] sm:$0xf0]  ;;  %v9248_v6 = vld [vmem:[#allocation6 + $0x10a0] sm:$0xf] }
  0xd7   :  { %v10759_v43 = vadd.f32 %v4279_v23, %v4251_v21  ;;  %v4224_v14 = vadd.f32 %v4223_v41, %v4194_v7  ;;  %v7084_v21 = vld [vmem:[%s12145_s0 + $0x1f0] sm:$0xf]  ;;  %v9653_v23 = vld [vmem:[%s12145_s0 + $0x238] sm:$0xf0]  ;;  %v9265_v7 = vor.u32 %v10196_v63, %v9264_v59  ;;  %v7221_v41 = vor.u32 %v9682_v4, %v7218_v5 }
  0xd8   :  { %12322 = vst [vmem:[#allocation53_spill] sm:$0xff] %v10787_v11  ;;  %v10789_v59 = vor.u32 %v9653_v23, %v7084_v21  ;;  %v10791_v4 = vor.u32 %v9644_v15, %v7086_v10  ;;  %v9393_v20 = vor.u32 %v10228_v62, %v9392_v31  ;;  %v10192_v21 = vld [vmem:[#allocation6 + $0x10ac] sm:$0xf0]  ;;  %v7202_v23 = vld [vmem:[#allocation6 + $0xb0] sm:$0xf0] }
  0xd9   :  { %4638 = vmatpush.bf16.msra.mxu0 %v9265_v7  ;;  %4725 = vmatpush.bf16.msra.mxu3 %v7221_v41  ;;  %v6864_v62 = vld [vmem:[%s12145_s0 + $0x30] sm:$0xf] }
  0xda   :  { %12323 = vst [vmem:[#allocation54_spill] sm:$0xff] %v10789_v59  ;;  %4667 = vmatpush.bf16.msra.mxu1 %v9393_v20  ;;  %v9597_v20 = vld [vmem:[%s12145_s0 + $0x78] sm:$0xf0] }
  0xdb   :  { %12324 = vst [vmem:[#allocation55_spill] sm:$0xff] %v10791_v4 }
  0xdc   :  { %v4252_v22 = vpop.f32.mrf.mxu2 }
  0xdd   :  { %v4253_v12 = vadd.f32 %v4252_v22, %v4224_v14  ;;  %v4281_v61 = vpop.f32.mrf.mxu3  ;;  %v4197_v60 = vpop.f32.mrf.mxu0  ;;  %v9504_v14 = vld [vmem:[#allocation6 + $0x12a0] sm:$0xf] }
  0xde   :  { %v4226_v63 = vpop.f32.mrf.mxu1  ;;  %v9505_v58 = vor.u32 %v10256_v52, %v9504_v14  ;;  %v9376_v14 = vld [vmem:[#allocation6 + $0x11a0] sm:$0xf]  ;;  %v9588_v52 = vld [vmem:[%s12145_s0 + $0x34] sm:$0xf] }
  0xdf   :  { %v10793_v5 = vadd.f32 %v4281_v61, %v4253_v12  ;;  %v4227_v40 = vadd.f32 %v4226_v63, %v4197_v60  ;;  %v9678_v12 = vld [vmem:[#allocation6 + $0xa4] sm:$0xf]  ;;  %v9249_v60 = vor.u32 %v10192_v21, %v9248_v6  ;;  %v9488_v6 = vld [vmem:[#allocation6 + $0x1280] sm:$0xf]  ;;  %v10252_v21 = vld [vmem:[#allocation6 + $0x128c] sm:$0xf0] }
  0xe0   :  { %4428 = vmatmul.bf16.gmra.mxu0 %v10785_v55  ;;  %4457 = vmatmul.bf16.gmra.mxu1 %v10787_v11  ;;  %v7205_v31 = vor.u32 %v9678_v12, %v7202_v23  ;;  %v9232_v12 = vld [vmem:[#allocation6 + $0x1080] sm:$0xf]  ;;  %v9674_v23 = vld [vmem:[#allocation6 + $0x84] sm:$0xf] }
  0xe1   :  { %4486 = vmatmul.bf16.gmra.mxu2 %v10789_v59  ;;  %4639 = vmatpush.bf16.msra.mxu0 %v9249_v60  ;;  %v10188_v60 = vld [vmem:[#allocation6 + $0x108c] sm:$0xf0] }
  0xe2   :  { %4515 = vmatmul.bf16.gmra.mxu3 %v10791_v4  ;;  %4697 = vmatpush.bf16.msra.mxu2 %v9505_v58  ;;  %v10825_v4 = vor.u32 %v9597_v20, %v6864_v62 }
  0xe3   :  { %4726 = vmatpush.bf16.msra.mxu3 %v7205_v31  ;;  %v9598_v31 = vld [vmem:[%s12145_s0 + $0x80] sm:$0xf0] }
  0xe4   :  { %v4255_v61 = vpop.f32.mrf.mxu2  ;;  %12325 = vst [vmem:[#allocation56_spill] sm:$0xff] %v10825_v4 }
  0xe5   :  { %v4256_v7 = vadd.f32 %v4255_v61, %v4227_v40  ;;  %v4284_v41 = vpop.f32.mrf.mxu3  ;;  %v4199_v15 = vpop.f32.mrf.mxu0  ;;  %v10224_v40 = vld [vmem:[#allocation6 + $0x11ac] sm:$0xf0]  ;;  %v9489_v61 = vor.u32 %v10252_v21, %v9488_v6  ;;  %v6874_v6 = vld [vmem:[%s12145_s0 + $0x84] sm:$0xf0] }
  0xe6   :  { %v4228_v10 = vpop.f32.mrf.mxu1  ;;  %v9377_v58 = vor.u32 %v10224_v40, %v9376_v14  ;;  %v9589_v40 = vld [vmem:[%s12145_s0 + $0x3c] sm:$0xf] }
  0xe7   :  { %v10799_v22 = vadd.f32 %v4284_v41, %v4256_v7  ;;  %v4229_v63 = vadd.f32 %v4228_v10, %v4199_v15  ;;  %v7186_v7 = vld [vmem:[#allocation6 + $0x90] sm:$0xf0]  ;;  %v6866_v41 = vld [vmem:[%s12145_s0 + $0x7c] sm:$0xf0]  ;;  %v6872_v15 = vld [vmem:[%s12145_s0 + $0x38] sm:$0xf]  ;;  %v9233_v10 = vor.u32 %v10188_v60, %v9232_v12  ;;  %4698 = vmatpush.bf16.msra.mxu2 %v9489_v61 }
  0xe8   :  { %4668 = vmatpush.bf16.msra.mxu1 %v9377_v58  ;;  %v7189_v14 = vor.u32 %v9674_v23, %v7186_v7  ;;  %v10827_v58 = vor.u32 %v9588_v52, %v6866_v41  ;;  %v10829_v12 = vor.u32 %v9598_v31, %v6872_v15  ;;  %v10832_v7 = vor.u32 %v9589_v40, %v6874_v6  ;;  %v9360_v61 = vld [vmem:[#allocation6 + $0x1180] sm:$0xf]  ;;  %v10184_v41 = vld [vmem:[#allocation6 + $0x106c] sm:$0xf0]  ;;  %v7170_v31 = vld [vmem:[#allocation6 + $0x70] sm:$0xf0] }
  0xe9   :  { %4640 = vmatpush.bf16.msra.mxu0 %v9233_v10  ;;  %v9361_v20 = vor.u32 %v10220_v27, %v9360_v61  ;;  %v9216_v52 = vld [vmem:[#allocation6 + $0x1060] sm:$0xf]  ;;  %v9616_v61 = vld [vmem:[%s12145_s0 + $0x110] sm:$0xf0] }
  0xea   :  { %4727 = vmatpush.bf16.msra.mxu3 %v7189_v14  ;;  %12326 = vst [vmem:[#allocation57_spill] sm:$0xff] %v10827_v58  ;;  %v9217_v15 = vor.u32 %v10184_v41, %v9216_v52  ;;  %v10244_v52 = vld [vmem:[#allocation6 + $0x124c] sm:$0xf0]  ;;  %v9200_v41 = vld [vmem:[#allocation6 + $0x1040] sm:$0xf] }
  0xeb   :  { %12327 = vst [vmem:[#allocation58_spill] sm:$0xff] %v10829_v12 }
  0xec   :  { %v4257_v21 = vpop.f32.mrf.mxu2  ;;  %12328 = vst [vmem:[#allocation59_spill] sm:$0xff] %v10832_v7  ;;  %4669 = vmatpush.bf16.msra.mxu1 %v9361_v20  ;;  %v10216_v20 = vld [vmem:[#allocation6 + $0x116c] sm:$0xf0] }
  0xed   :  { %v4258_v59 = vadd.f32 %v4257_v21, %v4229_v63  ;;  %v4286_v11 = vpop.f32.mrf.mxu3  ;;  %v4298_v55 = vpop.f32.mrf.mxu0  ;;  %v9472_v63 = vld [vmem:[#allocation6 + $0x1260] sm:$0xf]  ;;  %4641 = vmatpush.bf16.msra.mxu0 %v9217_v15  ;;  %v9666_v15 = vld [vmem:[#allocation6 + $0x44] sm:$0xf] }
  0xee   :  { %v4299_v60 = vadd.f32 %v4298_v55, %v10679_v13  ;;  %v4327_v23 = vpop.f32.mrf.mxu1  ;;  %v10248_v13 = vld [vmem:[#allocation6 + $0x126c] sm:$0xf0] }
  0xef   :  { %v10834_v28 = vadd.f32 %v4286_v11, %v4258_v59  ;;  %v9473_v55 = vor.u32 %v10248_v13, %v9472_v63  ;;  %v9670_v11 = vld [vmem:[#allocation6 + $0x64] sm:$0xf] }
  0xf0   :  { %v4328_v62 = vadd.f32 %v4327_v23, %v4299_v60  ;;  %4529 = vmatmul.bf16.vlgmr.msrb.gmra.mxu0 %v10825_v4  ;;  %4558 = vmatmul.bf16.vlgmr.msrb.gmra.mxu1 %v10827_v58  ;;  %v7173_v27 = vor.u32 %v9670_v11, %v7170_v31  ;;  %v6940_v23 = vld [vmem:[%s12145_s0 + $0xc8] sm:$0xf]  ;;  %v7154_v31 = vld [vmem:[#allocation6 + $0x50] sm:$0xf0]  ;;  %v10212_v4 = vld [vmem:[#allocation6 + $0x114c] sm:$0xf0] }
  0xf1   :  { %4587 = vmatmul.bf16.vlgmr.msrb.gmra.mxu2 %v10829_v12 }
  0xf2   :  { %4616 = vmatmul.bf16.vlgmr.msrb.gmra.mxu3 %v10832_v7  ;;  %4699 = vmatpush.bf16.msra.mxu2 %v9473_v55  ;;  %v9456_v55 = vld [vmem:[#allocation6 + $0x1240] sm:$0xf] }
  0xf3   :  { %4728 = vmatpush.bf16.msra.mxu3 %v7173_v27  ;;  %v9457_v11 = vor.u32 %v10244_v52, %v9456_v55  ;;  %v10867_v55 = vor.u32 %v9616_v61, %v6940_v23 }
  0xf4   :  { %v4356_v59 = vpop.f32.mrf.mxu2 }
  0xf5   :  { %v4357_v10 = vadd.f32 %v4356_v59, %v4328_v62  ;;  %v4385_v14 = vpop.f32.mrf.mxu3  ;;  %v4300_v40 = vpop.f32.mrf.mxu0  ;;  %v9344_v62 = vld [vmem:[#allocation6 + $0x1160] sm:$0xf]  ;;  %v10180_v59 = vld [vmem:[#allocation6 + $0x104c] sm:$0xf0]  ;;  %12329 = vst [vmem:[#allocation60_spill] sm:$0xff] %v10867_v55 }
  0xf6   :  { %v4301_v6 = vadd.f32 %v4300_v40, %v10713_v24  ;;  %v4329_v21 = vpop.f32.mrf.mxu1  ;;  %v9607_v24 = vld [vmem:[%s12145_s0 + $0xcc] sm:$0xf]  ;;  %v9345_v13 = vor.u32 %v10216_v20, %v9344_v62  ;;  %v9617_v40 = vld [vmem:[%s12145_s0 + $0x118] sm:$0xf0]  ;;  %v9201_v27 = vor.u32 %v10180_v59, %v9200_v41  ;;  %v6950_v62 = vld [vmem:[%s12145_s0 + $0x11c] sm:$0xf0]  ;;  %4700 = vmatpush.bf16.msra.mxu2 %v9457_v11 }
  0xf7   :  { %v10841_v60 = vadd.f32 %v4385_v14, %v4357_v10  ;;  %v6942_v10 = vld [vmem:[%s12145_s0 + $0x114] sm:$0xf0]  ;;  %v6948_v14 = vld [vmem:[%s12145_s0 + $0xd0] sm:$0xf]  ;;  %v9328_v11 = vld [vmem:[#allocation6 + $0x1140] sm:$0xf] }
  0xf8   :  { %v4330_v63 = vadd.f32 %v4329_v21, %v4301_v6  ;;  %4670 = vmatpush.bf16.msra.mxu1 %v9345_v13  ;;  %v7157_v6 = vor.u32 %v9666_v15, %v7154_v31  ;;  %v9608_v21 = vld [vmem:[%s12145_s0 + $0xd4] sm:$0xf]  ;;  %4642 = vmatpush.bf16.msra.mxu0 %v9201_v27  ;;  %v10869_v13 = vor.u32 %v9607_v24, %v6942_v10  ;;  %v9184_v24 = vld [vmem:[#allocation6 + $0x1020] sm:$0xf]  ;;  %v10176_v10 = vld [vmem:[#allocation6 + $0x102c] sm:$0xf0] }
  0xf9   :  { %v10871_v41 = vor.u32 %v9617_v40, %v6948_v14  ;;  %v10874_v31 = vor.u32 %v9608_v21, %v6950_v62  ;;  %v9329_v61 = vor.u32 %v10212_v4, %v9328_v11  ;;  %v9185_v40 = vor.u32 %v10176_v10, %v9184_v24  ;;  %v7138_v27 = vld [vmem:[#allocation6 + $0x30] sm:$0xf0]  ;;  %v9635_v11 = vld [vmem:[%s12145_s0 + $0x1a8] sm:$0xf0]  ;;  %v10236_v24 = vld [vmem:[#allocation6 + $0x120c] sm:$0xf0] }
  0xfa   :  { %4729 = vmatpush.bf16.msra.mxu3 %v7157_v6  ;;  %12330 = vst [vmem:[#allocation61_spill] sm:$0xff] %v10869_v13  ;;  %v9168_v10 = vld [vmem:[#allocation6 + $0x1000] sm:$0xf] }
  0xfb   :  { %12331 = vst [vmem:[#allocation62_spill] sm:$0xff] %v10871_v41 }
  0xfc   :  { %v4358_v20 = vpop.f32.mrf.mxu2  ;;  %12332 = vst [vmem:[#allocation63_spill] sm:$0xff] %v10874_v31  ;;  %4671 = vmatpush.bf16.msra.mxu1 %v9329_v61  ;;  %4643 = vmatpush.bf16.msra.mxu0 %v9185_v40  ;;  %v10208_v61 = vld [vmem:[#allocation6 + $0x112c] sm:$0xf0]  ;;  %v9658_v40 = vld [vmem:[#allocation6 + $0x4] sm:$0xf] }
  0xfd   :  { %v4359_v52 = vadd.f32 %v4358_v20, %v4330_v63  ;;  %v4387_v7 = vpop.f32.mrf.mxu3  ;;  %v4303_v12 = vpop.f32.mrf.mxu0  ;;  %v9440_v63 = vld [vmem:[#allocation6 + $0x1220] sm:$0xf] }
  0xfe   :  { %v4304_v59 = vadd.f32 %v4303_v12, %v10719_v9  ;;  %v4332_v15 = vpop.f32.mrf.mxu1  ;;  %v10240_v9 = vld [vmem:[#allocation6 + $0x122c] sm:$0xf0] }
  0xff   :  { %v10876_v58 = vadd.f32 %v4387_v7, %v4359_v52  ;;  %v9441_v12 = vor.u32 %v10240_v9, %v9440_v63  ;;  %v9662_v7 = vld [vmem:[#allocation6 + $0x24] sm:$0xf] }
 0x100   :  { %v4333_v23 = vadd.f32 %v4332_v15, %v4304_v59  ;;  %4534 = vmatmul.bf16.gmra.mxu0 %v10867_v55  ;;  %4563 = vmatmul.bf16.gmra.mxu1 %v10869_v13  ;;  %v7141_v4 = vor.u32 %v9662_v7, %v7138_v27  ;;  %v7016_v15 = vld [vmem:[%s12145_s0 + $0x160] sm:$0xf]  ;;  %v7122_v27 = vld [vmem:[#allocation6 + $0x10] sm:$0xf0] }
 0x101   :  { %4592 = vmatmul.bf16.gmra.mxu2 %v10871_v41 }
 0x102   :  { %4621 = vmatmul.bf16.gmra.mxu3 %v10874_v31  ;;  %4701 = vmatpush.bf16.msra.mxu2 %v9441_v12  ;;  %v9424_v12 = vld [vmem:[#allocation6 + $0x1200] sm:$0xf]  ;;  %v10204_v31 = vld [vmem:[#allocation6 + $0x110c] sm:$0xf0] }
 0x103   :  { %4730 = vmatpush.bf16.msra.mxu3 %v7141_v4  ;;  %v9425_v7 = vor.u32 %v10236_v24, %v9424_v12  ;;  %v10909_v12 = vor.u32 %v9635_v11, %v7016_v15  ;;  %v9296_v24 = vld [vmem:[#allocation6 + $0x1100] sm:$0xf]  ;;  %v9782_v11 = vld [vmem:[#allocation6 + $0x3e4] sm:$0xf] }
 0x104   :  { %v4361_v14 = vpop.f32.mrf.mxu2 }
 0x105   :  { %v4362_v6 = vadd.f32 %v4361_v14, %v4333_v23  ;;  %v4390_v21 = vpop.f32.mrf.mxu3  ;;  %v4305_v62 = vpop.f32.mrf.mxu0  ;;  %v9312_v23 = vld [vmem:[#allocation6 + $0x1120] sm:$0xf]  ;;  %v10172_v14 = vld [vmem:[#allocation6 + $0x100c] sm:$0xf0]  ;;  %12333 = vst [vmem:[#allocation64_spill] sm:$0xff] %v10909_v12 }
 0x106   :  { %v4306_v20 = vadd.f32 %v4305_v62, %v10753_v42  ;;  %v4334_v52 = vpop.f32.mrf.mxu1  ;;  %v9626_v42 = vld [vmem:[%s12145_s0 + $0x164] sm:$0xf]  ;;  %v9313_v9 = vor.u32 %v10208_v61, %v9312_v23  ;;  %v9636_v62 = vld [vmem:[%s12145_s0 + $0x1b0] sm:$0xf0]  ;;  %v9169_v4 = vor.u32 %v10172_v14, %v9168_v10  ;;  %v7026_v23 = vld [vmem:[%s12145_s0 + $0x1b4] sm:$0xf0]  ;;  %4702 = vmatpush.bf16.msra.mxu2 %v9425_v7 }
 0x107   :  { %v10883_v59 = vadd.f32 %v4390_v21, %v4362_v6  ;;  %v7018_v6 = vld [vmem:[%s12145_s0 + $0x1ac] sm:$0xf0]  ;;  %v7024_v21 = vld [vmem:[%s12145_s0 + $0x168] sm:$0xf] }
 0x108   :  { %v4335_v63 = vadd.f32 %v4334_v52, %v4306_v20  ;;  %4672 = vmatpush.bf16.msra.mxu1 %v9313_v9  ;;  %v7125_v20 = vor.u32 %v9658_v40, %v7122_v27  ;;  %v9627_v52 = vld [vmem:[%s12145_s0 + $0x16c] sm:$0xf]  ;;  %4644 = vmatpush.bf16.msra.mxu0 %v9169_v4  ;;  %v10911_v14 = vor.u32 %v9626_v42, %v7018_v6  ;;  %v9814_v6 = vld [vmem:[#allocation6 + $0x4e4] sm:$0xf] }
 0x109   :  { %v10913_v40 = vor.u32 %v9636_v62, %v7024_v21  ;;  %v9297_v27 = vor.u32 %v10204_v31, %v9296_v24  ;;  %v10916_v26 = vor.u32 %v9627_v52, %v7026_v23  ;;  %v9718_v31 = vld [vmem:[#allocation6 + $0x1e4] sm:$0xf]  ;;  %v7746_v21 = vld [vmem:[#allocation6 + $0x4f0] sm:$0xf0]  ;;  %v7092_v24 = vld [vmem:[%s12145_s0 + $0x1f8] sm:$0xf] }
 0x10a   :  { %4731 = vmatpush.bf16.msra.mxu3 %v7125_v20  ;;  %12334 = vst [vmem:[#allocation65_spill] sm:$0xff] %v10911_v14  ;;  %v7749_v4 = vor.u32 %v9814_v6, %v7746_v21  ;;  %v7346_v6 = vld [vmem:[#allocation6 + $0x1d0] sm:$0xf0]  ;;  %v9810_v21 = vld [vmem:[#allocation6 + $0x4c4] sm:$0xf] }
 0x10b   :  { %12335 = vst [vmem:[#allocation66_spill] sm:$0xff] %v10913_v40 }
 0x10c   :  { %v4363_v61 = vpop.f32.mrf.mxu2  ;;  %12336 = vst [vmem:[#allocation67_spill] sm:$0xff] %v10916_v26  ;;  %4673 = vmatpush.bf16.msra.mxu1 %v9297_v27  ;;  %v7490_v27 = vld [vmem:[#allocation6 + $0x2f0] sm:$0xf0] }
 0x10d   :  { %v4364_v41 = vadd.f32 %v4363_v61, %v4335_v63  ;;  %v4392_v9 = vpop.f32.mrf.mxu3  ;;  %v4308_v10 = vpop.f32.mrf.mxu0  ;;  %v7618_v63 = vld [vmem:[#allocation6 + $0x3f0] sm:$0xf0] }
 0x10e   :  { %v4309_v13 = vadd.f32 %v4308_v10, %v10759_v43  ;;  %v4337_v55 = vpop.f32.mrf.mxu1  ;;  %v7621_v42 = vor.u32 %v9782_v11, %v7618_v63  ;;  %v7362_v43 = vld [vmem:[#allocation6 + $0x1f0] sm:$0xf0]  ;;  %4840 = vmatpush.bf16.msrb.mxu3 %v7749_v4  ;;  %v9750_v10 = vld [vmem:[#allocation6 + $0x2e4] sm:$0xf]  ;;  %v7100_v4 = vld [vmem:[%s12145_s0 + $0x200] sm:$0xf] }
 0x10f   :  { %v10918_v7 = vadd.f32 %v4392_v9, %v4364_v41  ;;  %v7365_v41 = vor.u32 %v9718_v31, %v7362_v43  ;;  %v9654_v9 = vld [vmem:[%s12145_s0 + $0x240] sm:$0xf0]  ;;  %v7493_v11 = vor.u32 %v9750_v10, %v7490_v27  ;;  %v7602_v31 = vld [vmem:[#allocation6 + $0x3d0] sm:$0xf0] }
 0x110   :  { %v4338_v15 = vadd.f32 %v4337_v55, %v4309_v13  ;;  %4539 = vmatmul.bf16.gmra.mxu0 %v10909_v12  ;;  %4568 = vmatmul.bf16.gmra.mxu1 %v10911_v14  ;;  %v9778_v63 = vld [vmem:[#allocation6 + $0x3c4] sm:$0xf]  ;;  %v10951_v27 = vor.u32 %v9654_v9, %v7092_v24  ;;  %v7474_v14 = vld [vmem:[#allocation6 + $0x2d0] sm:$0xf0] }
 0x111   :  { %4597 = vmatmul.bf16.gmra.mxu2 %v10913_v40  ;;  %4753 = vmatpush.bf16.msrb.mxu0 %v7365_v41  ;;  %v7605_v43 = vor.u32 %v9778_v63, %v7602_v31  ;;  %v7094_v41 = vld [vmem:[%s12145_s0 + $0x244] sm:$0xf0] }
 0x112   :  { %4626 = vmatmul.bf16.gmra.mxu3 %v10916_v26  ;;  %4811 = vmatpush.bf16.msrb.mxu2 %v7621_v42  ;;  %v9714_v42 = vld [vmem:[#allocation6 + $0x1c4] sm:$0xf]  ;;  %12337 = vst [vmem:[#allocation68_spill] sm:$0xff] %v10951_v27 }
 0x113   :  { %4782 = vmatpush.bf16.msrb.mxu1 %v7493_v11 }
 0x114   :  { %v4366_v62 = vpop.f32.mrf.mxu2 }
 0x115   :  { %v4367_v20 = vadd.f32 %v4366_v62, %v4338_v15  ;;  %v4395_v55 = vpop.f32.mrf.mxu3  ;;  %v4310_v13 = vpop.f32.mrf.mxu0  ;;  %v7730_v62 = vld [vmem:[#allocation6 + $0x4d0] sm:$0xf0] }
 0x116   :  { %v4311_v52 = vadd.f32 %v4310_v13, %v10793_v5  ;;  %v4339_v23 = vpop.f32.mrf.mxu1  ;;  %v9645_v5 = vld [vmem:[%s12145_s0 + $0x1fc] sm:$0xf]  ;;  %v7733_v13 = vor.u32 %v9810_v21, %v7730_v62  ;;  %4812 = vmatpush.bf16.msrb.mxu2 %v7605_v43  ;;  %v9746_v43 = vld [vmem:[#allocation6 + $0x2c4] sm:$0xf] }
 0x117   :  { %v10925_v61 = vadd.f32 %v4395_v55, %v4367_v20  ;;  %v9655_v20 = vld [vmem:[%s12145_s0 + $0x248] sm:$0xf0]  ;;  %v7349_v55 = vor.u32 %v9714_v42, %v7346_v6  ;;  %v10953_v11 = vor.u32 %v9645_v5, %v7094_v41  ;;  %v7477_v9 = vor.u32 %v9746_v43, %v7474_v14  ;;  %v7330_v41 = vld [vmem:[#allocation6 + $0x1b0] sm:$0xf0] }
 0x118   :  { %v4340_v15 = vadd.f32 %v4339_v23, %v4311_v52  ;;  %v9646_v52 = vld [vmem:[%s12145_s0 + $0x204] sm:$0xf]  ;;  %v7102_v23 = vld [vmem:[%s12145_s0 + $0x24c] sm:$0xf0]  ;;  %4841 = vmatpush.bf16.msrb.mxu3 %v7733_v13  ;;  %v10955_v42 = vor.u32 %v9655_v20, %v7100_v4  ;;  %v7714_v20 = vld [vmem:[#allocation6 + $0x4b0] sm:$0xf0] }
 0x119   :  { %4754 = vmatpush.bf16.msrb.mxu0 %v7349_v55  ;;  %12338 = vst [vmem:[#allocation69_spill] sm:$0xff] %v10953_v11  ;;  %v10958_v62 = vor.u32 %v9646_v52, %v7102_v23  ;;  %4783 = vmatpush.bf16.msrb.mxu1 %v7477_v9  ;;  %v9806_v4 = vld [vmem:[#allocation6 + $0x4a4] sm:$0xf]  ;;  %v9599_v43 = vld [vmem:[%s12145_s0 + $0x88] sm:$0xf0] }
 0x11a   :  { %12339 = vst [vmem:[#allocation70_spill] sm:$0xff] %v10955_v42  ;;  %v7717_v52 = vor.u32 %v9806_v4, %v7714_v20  ;;  %v9742_v9 = vld [vmem:[#allocation6 + $0x2a4] sm:$0xf]  ;;  %v7314_v20 = vld [vmem:[#allocation6 + $0x190] sm:$0xf0] }
 0x11b   :  { %12340 = vst [vmem:[#allocation71_spill] sm:$0xff] %v10958_v62 }
 0x11c   :  { %v4368_v10 = vpop.f32.mrf.mxu2  ;;  %4842 = vmatpush.bf16.msrb.mxu3 %v7717_v52  ;;  %v6882_v52 = vld [vmem:[%s12145_s0 + $0x8c] sm:$0xf0] }
 0x11d   :  { %v4369_v63 = vadd.f32 %v4368_v10, %v4340_v15  ;;  %v4397_v31 = vpop.f32.mrf.mxu3  ;;  %v4313_v26 = vpop.f32.mrf.mxu0  ;;  %v9774_v15 = vld [vmem:[#allocation6 + $0x3a4] sm:$0xf] }
 0x11e   :  { %v4314_v6 = vadd.f32 %v4313_v26, %v10799_v22  ;;  %v4342_v21 = vpop.f32.mrf.mxu1  ;;  %v7586_v26 = vld [vmem:[#allocation6 + $0x3b0] sm:$0xf0]  ;;  %v9710_v22 = vld [vmem:[#allocation6 + $0x1a4] sm:$0xf] }
 0x11f   :  { %v10960_v40 = vadd.f32 %v4397_v31, %v4369_v63  ;;  %v7589_v5 = vor.u32 %v9774_v15, %v7586_v26  ;;  %v7333_v13 = vor.u32 %v9710_v22, %v7330_v41  ;;  %v9770_v22 = vld [vmem:[#allocation6 + $0x384] sm:$0xf] }
 0x120   :  { %v4343_v24 = vadd.f32 %v4342_v21, %v4314_v6  ;;  %4544 = vmatmul.bf16.gmra.mxu0 %v10951_v27  ;;  %4573 = vmatmul.bf16.gmra.mxu1 %v10953_v11  ;;  %v6880_v21 = vld [vmem:[%s12145_s0 + $0x40] sm:$0xf]  ;;  %v9706_v41 = vld [vmem:[#allocation6 + $0x184] sm:$0xf] }
 0x121   :  { %4602 = vmatmul.bf16.gmra.mxu2 %v10955_v42  ;;  %4755 = vmatpush.bf16.msrb.mxu0 %v7333_v13  ;;  %v7698_v13 = vld [vmem:[#allocation6 + $0x490] sm:$0xf0] }
 0x122   :  { %4631 = vmatmul.bf16.gmra.mxu3 %v10958_v62  ;;  %4813 = vmatpush.bf16.msrb.mxu2 %v7589_v5  ;;  %v7570_v5 = vld [vmem:[#allocation6 + $0x390] sm:$0xf0] }
 0x123   :  { %v7573_v4 = vor.u32 %v9770_v22, %v7570_v5 }
 0x124   :  { %v4371_v55 = vpop.f32.mrf.mxu2 }
 0x125   :  { %v4372_v23 = vadd.f32 %v4371_v55, %v4343_v24  ;;  %v4400_v10 = vpop.f32.mrf.mxu3  ;;  %v4315_v14 = vpop.f32.mrf.mxu0  ;;  %v7458_v24 = vld [vmem:[#allocation6 + $0x2b0] sm:$0xf0]  ;;  %v9802_v55 = vld [vmem:[#allocation6 + $0x484] sm:$0xf] }
 0x126   :  { %v4316_v63 = vadd.f32 %v4315_v14, %v10834_v28  ;;  %v4344_v31 = vpop.f32.mrf.mxu1  ;;  %v9590_v28 = vld [vmem:[%s12145_s0 + $0x44] sm:$0xf]  ;;  %v7461_v26 = vor.u32 %v9742_v9, %v7458_v24  ;;  %v7317_v14 = vor.u32 %v9706_v41, %v7314_v20  ;;  %4814 = vmatpush.bf16.msrb.mxu2 %v7573_v4  ;;  %v10987_v9 = vor.u32 %v9599_v43, %v6880_v21  ;;  %v7442_v41 = vld [vmem:[#allocation6 + $0x290] sm:$0xf0] }
 0x127   :  { %v10967_v6 = vadd.f32 %v4400_v10, %v4372_v23  ;;  %v6888_v23 = vld [vmem:[%s12145_s0 + $0x48] sm:$0xf]  ;;  %v9600_v10 = vld [vmem:[%s12145_s0 + $0x90] sm:$0xf0]  ;;  %v10989_v62 = vor.u32 %v9590_v28, %v6882_v52  ;;  %v9766_v43 = vld [vmem:[#allocation6 + $0x364] sm:$0xf] }
 0x128   :  { %v4345_v15 = vadd.f32 %v4344_v31, %v4316_v63  ;;  %4784 = vmatpush.bf16.msrb.mxu1 %v7461_v26  ;;  %v7701_v63 = vor.u32 %v9802_v55, %v7698_v13  ;;  %12341 = vst [vmem:[#allocation72_spill] sm:$0xff] %v10987_v9  ;;  %4756 = vmatpush.bf16.msrb.mxu0 %v7317_v14  ;;  %v9738_v26 = vld [vmem:[#allocation6 + $0x284] sm:$0xf]  ;;  %v7298_v20 = vld [vmem:[#allocation6 + $0x170] sm:$0xf0] }
 0x129   :  { %12342 = vst [vmem:[#allocation73_spill] sm:$0xff] %v10989_v62  ;;  %v10991_v42 = vor.u32 %v9600_v10, %v6888_v23  ;;  %v7445_v21 = vor.u32 %v9738_v26, %v7442_v41  ;;  %v9702_v28 = vld [vmem:[#allocation6 + $0x164] sm:$0xf]  ;;  %v7682_v13 = vld [vmem:[#allocation6 + $0x470] sm:$0xf0] }
 0x12a   :  { %4843 = vmatpush.bf16.msrb.mxu3 %v7701_v63  ;;  %v9798_v55 = vld [vmem:[#allocation6 + $0x464] sm:$0xf]  ;;  %v7301_v23 = vor.u32 %v9702_v28, %v7298_v20  ;;  %v7426_v41 = vld [vmem:[#allocation6 + $0x270] sm:$0xf0] }
 0x12b   :  { %12343 = vst [vmem:[#allocation74_spill] sm:$0xff] %v10991_v42  ;;  %v9734_v26 = vld [vmem:[#allocation6 + $0x264] sm:$0xf]  ;;  %v7282_v20 = vld [vmem:[#allocation6 + $0x150] sm:$0xf0] }
 0x12c   :  { %v4373_v31 = vpop.f32.mrf.mxu2  ;;  %4785 = vmatpush.bf16.msrb.mxu1 %v7445_v21  ;;  %4757 = vmatpush.bf16.msrb.mxu0 %v7301_v23  ;;  %v7429_v21 = vor.u32 %v9734_v26, %v7426_v41  ;;  %v9698_v28 = vld [vmem:[#allocation6 + $0x144] sm:$0xf]  ;;  %v6964_v23 = vld [vmem:[%s12145_s0 + $0xe0] sm:$0xf] }
 0x12d   :  { %v4374_v24 = vadd.f32 %v4373_v31, %v4345_v15  ;;  %v4402_v22 = vpop.f32.mrf.mxu3  ;;  %v4414_v5 = vpop.f32.mrf.mxu0  ;;  %v7554_v15 = vld [vmem:[#allocation6 + $0x370] sm:$0xf0] }
 0x12e   :  { %v4415_v11 = vadd.f32 %v4414_v5, %v10841_v60  ;;  %v4443_v27 = vpop.f32.mrf.mxu1  ;;  %v7557_v60 = vor.u32 %v9766_v43, %v7554_v15  ;;  %v9618_v5 = vld [vmem:[%s12145_s0 + $0x120] sm:$0xf0]  ;;  %v7538_v15 = vld [vmem:[#allocation6 + $0x350] sm:$0xf0] }
 0x12f   :  { %v10994_v12 = vadd.f32 %v4402_v22, %v4374_v24  ;;  %v6956_v22 = vld [vmem:[%s12145_s0 + $0xd8] sm:$0xf]  ;;  %v9762_v43 = vld [vmem:[#allocation6 + $0x344] sm:$0xf] }
 0x130   :  { %v4444_v4 = vadd.f32 %v4443_v27, %v4415_v11  ;;  %4645 = vmatmul.bf16.vlgmr.msra.gmra.mxu0 %v10987_v9  ;;  %4674 = vmatmul.bf16.vlgmr.msra.gmra.mxu1 %v10989_v62  ;;  %v7685_v27 = vor.u32 %v9798_v55, %v7682_v13  ;;  %v9794_v55 = vld [vmem:[#allocation6 + $0x444] sm:$0xf]  ;;  %v7666_v13 = vld [vmem:[#allocation6 + $0x450] sm:$0xf0] }
 0x131   :  { %4703 = vmatmul.bf16.vlgmr.msra.gmra.mxu2 %v10991_v42  ;;  %4786 = vmatpush.bf16.msrb.mxu1 %v7429_v21  ;;  %v9730_v21 = vld [vmem:[#allocation6 + $0x244] sm:$0xf] }
 0x132   :  { %4732 = vmatmul.bf16.vlgmr.msra.gmra.mxu3 %v10379_v48  ;;  %4815 = vmatpush.bf16.msrb.mxu2 %v7557_v60  ;;  %v7541_v60 = vor.u32 %v9762_v43, %v7538_v15 }
 0x133   :  { %4844 = vmatpush.bf16.msrb.mxu3 %v7685_v27  ;;  %v9619_v27 = vld [vmem:[%s12145_s0 + $0x128] sm:$0xf0] }
 0x134   :  { %v4472_v52 = vpop.f32.mrf.mxu2  ;;  %v11025_v15 = vor.u32 %v9619_v27, %v6964_v23 }
 0x135   :  { %v4473_v11 = vadd.f32 %v4472_v52, %v4444_v4  ;;  %v4501_v10 = vpop.f32.mrf.mxu3  ;;  %v4416_v14 = vpop.f32.mrf.mxu0  ;;  %v6958_v52 = vld [vmem:[%s12145_s0 + $0x124] sm:$0xf0] }
 0x136   :  { %v4417_v63 = vadd.f32 %v4416_v14, %v10876_v58  ;;  %v4445_v31 = vpop.f32.mrf.mxu1  ;;  %v9609_v58 = vld [vmem:[%s12145_s0 + $0xdc] sm:$0xf]  ;;  %4816 = vmatpush.bf16.msrb.mxu2 %v7541_v60  ;;  %12346 = vst [vmem:[#allocation77_spill] sm:$0xff] %v11025_v15 }
 0x137   :  { %v11001_v24 = vadd.f32 %v4501_v10, %v4473_v11  ;;  %v7285_v11 = vor.u32 %v9698_v28, %v7282_v20  ;;  %v7669_v10 = vor.u32 %v9794_v55, %v7666_v13  ;;  %v11023_v43 = vor.u32 %v9609_v58, %v6958_v52  ;;  %v7410_v28 = vld [vmem:[#allocation6 + $0x250] sm:$0xf0]  ;;  %v9694_v58 = vld [vmem:[#allocation6 + $0x124] sm:$0xf] }
 0x138   :  { %v4446_v4 = vadd.f32 %v4445_v31, %v4417_v63  ;;  %v11021_v63 = vor.u32 %v9618_v5, %v6956_v22  ;;  %v7413_v22 = vor.u32 %v9730_v21, %v7410_v28  ;;  %v9758_v5 = vld [vmem:[#allocation6 + $0x324] sm:$0xf]  ;;  %v7266_v20 = vld [vmem:[#allocation6 + $0x130] sm:$0xf0] }
 0x139   :  { %4758 = vmatpush.bf16.msrb.mxu0 %v7285_v11  ;;  %4845 = vmatpush.bf16.msrb.mxu3 %v7669_v10  ;;  %12345 = vst [vmem:[#allocation76_spill] sm:$0xff] %v11023_v43  ;;  %v9790_v55 = vld [vmem:[#allocation6 + $0x424] sm:$0xf]  ;;  %v7650_v13 = vld [vmem:[#allocation6 + $0x430] sm:$0xf0]  ;;  %v7269_v23 = vor.u32 %v9694_v58, %v7266_v20 }
 0x13a   :  { %12344 = vst [vmem:[#allocation75_spill] sm:$0xff] %v11021_v63  ;;  %4787 = vmatpush.bf16.msrb.mxu1 %v7413_v22  ;;  %v9726_v21 = vld [vmem:[#allocation6 + $0x224] sm:$0xf]  ;;  %v7394_v28 = vld [vmem:[#allocation6 + $0x230] sm:$0xf0] }
 0x13b   :  { %v7397_v22 = vor.u32 %v9726_v21, %v7394_v28  ;;  %v9690_v58 = vld [vmem:[#allocation6 + $0x104] sm:$0xf]  ;;  %v7250_v20 = vld [vmem:[#allocation6 + $0x110] sm:$0xf0] }
 0x13c   :  { %v4474_v14 = vpop.f32.mrf.mxu2  ;;  %v7378_v21 = vld [vmem:[#allocation6 + $0x210] sm:$0xf0] }
 0x13d   :  { %v4475_v31 = vadd.f32 %v4474_v14, %v4446_v4  ;;  %v4503_v26 = vpop.f32.mrf.mxu3  ;;  %v4419_v41 = vpop.f32.mrf.mxu0  ;;  %v7522_v4 = vld [vmem:[#allocation6 + $0x330] sm:$0xf0]  ;;  %4759 = vmatpush.bf16.msrb.mxu0 %v7269_v23  ;;  %v7040_v23 = vld [vmem:[%s12145_s0 + $0x178] sm:$0xf] }
 0x13e   :  { %v4420_v48 = vadd.f32 %v4419_v41, %v10883_v59  ;;  %v4448_v42 = vpop.f32.mrf.mxu1  ;;  %v7525_v59 = vor.u32 %v9758_v5, %v7522_v4  ;;  %v9637_v41 = vld [vmem:[%s12145_s0 + $0x1b8] sm:$0xf0]  ;;  %v9754_v5 = vld [vmem:[#allocation6 + $0x304] sm:$0xf]  ;;  %v7506_v4 = vld [vmem:[#allocation6 + $0x310] sm:$0xf0]  ;;  %4788 = vmatpush.bf16.msrb.mxu1 %v7397_v22 }
 0x13f   :  { %v11028_v62 = vadd.f32 %v4503_v26, %v4475_v31  ;;  %v7032_v26 = vld [vmem:[%s12145_s0 + $0x170] sm:$0xf] }
 0x140   :  { %v4449_v60 = vadd.f32 %v4448_v42, %v4420_v48  ;;  %4650 = vmatmul.bf16.gmra.mxu0 %v11021_v63  ;;  %4679 = vmatmul.bf16.gmra.mxu1 %v11023_v43  ;;  %v7653_v48 = vor.u32 %v9790_v55, %v7650_v13  ;;  %v9786_v55 = vld [vmem:[#allocation6 + $0x404] sm:$0xf]  ;;  %v7634_v13 = vld [vmem:[#allocation6 + $0x410] sm:$0xf0] }
 0x141   :  { %4708 = vmatmul.bf16.gmra.mxu2 %v11025_v15 }
 0x142   :  { %4737 = vmatmul.bf16.gmra.mxu3 %v10415_v44  ;;  %4817 = vmatpush.bf16.msrb.mxu2 %v7525_v59  ;;  %v7509_v59 = vor.u32 %v9754_v5, %v7506_v4 }
 0x143   :  { %4846 = vmatpush.bf16.msrb.mxu3 %v7653_v48  ;;  %v9638_v48 = vld [vmem:[%s12145_s0 + $0x1c0] sm:$0xf0] }
 0x144   :  { %v4477_v52 = vpop.f32.mrf.mxu2  ;;  %v11059_v15 = vor.u32 %v9638_v48, %v7040_v23 }
 0x145   :  { %v4478_v42 = vadd.f32 %v4477_v52, %v4449_v60  ;;  %v4506_v27 = vpop.f32.mrf.mxu3  ;;  %v4421_v11 = vpop.f32.mrf.mxu0  ;;  %v7034_v52 = vld [vmem:[%s12145_s0 + $0x1bc] sm:$0xf0] }
 0x146   :  { %v4422_v10 = vadd.f32 %v4421_v11, %v10918_v7  ;;  %v4450_v14 = vpop.f32.mrf.mxu1  ;;  %v9628_v7 = vld [vmem:[%s12145_s0 + $0x174] sm:$0xf]  ;;  %4818 = vmatpush.bf16.msrb.mxu2 %v7509_v59  ;;  %12349 = vst [vmem:[#allocation80_spill] sm:$0xff] %v11059_v15 }
 0x147   :  { %v11035_v31 = vadd.f32 %v4506_v27, %v4478_v42  ;;  %v7253_v42 = vor.u32 %v9690_v58, %v7250_v20  ;;  %v7637_v27 = vor.u32 %v9786_v55, %v7634_v13  ;;  %v11057_v44 = vor.u32 %v9628_v7, %v7034_v52  ;;  %v9846_v7 = vld [vmem:[#allocation6 + $0x5e4] sm:$0xf]  ;;  %v7874_v55 = vld [vmem:[#allocation6 + $0x5f0] sm:$0xf0] }
 0x148   :  { %v4451_v60 = vadd.f32 %v4450_v14, %v4422_v10  ;;  %v11055_v10 = vor.u32 %v9637_v41, %v7032_v26  ;;  %v9722_v14 = vld [vmem:[#allocation6 + $0x204] sm:$0xf]  ;;  %v7877_v23 = vor.u32 %v9846_v7, %v7874_v55  ;;  %v7858_v55 = vld [vmem:[#allocation6 + $0x5d0] sm:$0xf0] }
 0x149   :  { %4760 = vmatpush.bf16.msrb.mxu0 %v7253_v42  ;;  %4847 = vmatpush.bf16.msrb.mxu3 %v7637_v27  ;;  %12348 = vst [vmem:[#allocation79_spill] sm:$0xff] %v11057_v44  ;;  %v7381_v43 = vor.u32 %v9722_v14, %v7378_v21  ;;  %v9910_v41 = vld [vmem:[#allocation6 + $0x7e4] sm:$0xf] }
 0x14a   :  { %12347 = vst [vmem:[#allocation78_spill] sm:$0xff] %v11055_v10  ;;  %v9942_v13 = vld [vmem:[#allocation6 + $0x8e4] sm:$0xf] }
 0x14b   :  { %4789 = vmatpush.bf16.msrb.mxu1 %v7381_v43  ;;  %v9842_v7 = vld [vmem:[#allocation6 + $0x5c4] sm:$0xf] }
 0x14c   :  { %v4479_v11 = vpop.f32.mrf.mxu2 }
 0x14d   :  { %v4480_v28 = vadd.f32 %v4479_v11, %v4451_v60  ;;  %v4508_v5 = vpop.f32.mrf.mxu3  ;;  %v4424_v4 = vpop.f32.mrf.mxu0  ;;  %v8130_v60 = vld [vmem:[#allocation6 + $0x7f0] sm:$0xf0]  ;;  %4869 = vmatpush.bf16.msra.mxu0 %v7877_v23  ;;  %v7116_v23 = vld [vmem:[%s12145_s0 + $0x210] sm:$0xf] }
 0x14e   :  { %v4425_v22 = vadd.f32 %v4424_v4, %v10925_v61  ;;  %v4453_v58 = vpop.f32.mrf.mxu1  ;;  %v8133_v59 = vor.u32 %v9910_v41, %v8130_v60  ;;  %v8258_v61 = vld [vmem:[#allocation6 + $0x8f0] sm:$0xf0]  ;;  %v9878_v4 = vld [vmem:[#allocation6 + $0x6e4] sm:$0xf] }
 0x14f   :  { %v11062_v20 = vadd.f32 %v4508_v5, %v4480_v28  ;;  %v8261_v48 = vor.u32 %v9942_v13, %v8258_v61  ;;  %v7108_v28 = vld [vmem:[%s12145_s0 + $0x208] sm:$0xf]  ;;  %v9656_v5 = vld [vmem:[%s12145_s0 + $0x250] sm:$0xf0]  ;;  %v9906_v41 = vld [vmem:[#allocation6 + $0x7c4] sm:$0xf] }
 0x150   :  { %v4454_v26 = vadd.f32 %v4453_v58, %v4425_v22  ;;  %4655 = vmatmul.bf16.gmra.mxu0 %v11055_v10  ;;  %4684 = vmatmul.bf16.gmra.mxu1 %v11057_v44  ;;  %v8002_v22 = vld [vmem:[#allocation6 + $0x6f0] sm:$0xf0]  ;;  %v9938_v13 = vld [vmem:[#allocation6 + $0x8c4] sm:$0xf] }
 0x151   :  { %4713 = vmatmul.bf16.gmra.mxu2 %v11059_v15  ;;  %4956 = vmatpush.bf16.msra.mxu3 %v8261_v48  ;;  %v8114_v60 = vld [vmem:[#allocation6 + $0x7d0] sm:$0xf0]  ;;  %v9657_v48 = vld [vmem:[%s12145_s0 + $0x258] sm:$0xf0] }
 0x152   :  { %4742 = vmatmul.bf16.gmra.mxu3 %v10451_v36  ;;  %4927 = vmatpush.bf16.msra.mxu2 %v8133_v59  ;;  %v8117_v59 = vor.u32 %v9906_v41, %v8114_v60  ;;  %v8242_v61 = vld [vmem:[#allocation6 + $0x8d0] sm:$0xf0]  ;;  %v11093_v60 = vor.u32 %v9657_v48, %v7116_v23 }
 0x154   :  { %v4482_v52 = vpop.f32.mrf.mxu2  ;;  %12352 = vst [vmem:[#allocation83_spill] sm:$0xff] %v11093_v60 }
 0x155   :  { %v4483_v43 = vadd.f32 %v4482_v52, %v4454_v26  ;;  %v4511_v42 = vpop.f32.mrf.mxu3  ;;  %v4426_v27 = vpop.f32.mrf.mxu0  ;;  %v8005_v26 = vor.u32 %v9878_v4, %v8002_v22  ;;  %v7110_v52 = vld [vmem:[%s12145_s0 + $0x254] sm:$0xf0] }
 0x156   :  { %v4427_v11 = vadd.f32 %v4426_v27, %v10960_v40  ;;  %v4455_v14 = vpop.f32.mrf.mxu1  ;;  %v9647_v40 = vld [vmem:[%s12145_s0 + $0x20c] sm:$0xf]  ;;  %4928 = vmatpush.bf16.msra.mxu2 %v8117_v59 }
 0x157   :  { %v11069_v21 = vadd.f32 %v4511_v42, %v4483_v43  ;;  %4898 = vmatpush.bf16.msra.mxu1 %v8005_v26  ;;  %v7861_v43 = vor.u32 %v9842_v7, %v7858_v55  ;;  %v8245_v42 = vor.u32 %v9938_v13, %v8242_v61  ;;  %v11091_v41 = vor.u32 %v9647_v40, %v7110_v52  ;;  %v9874_v26 = vld [vmem:[#allocation6 + $0x6c4] sm:$0xf]  ;;  %v7986_v7 = vld [vmem:[#allocation6 + $0x6d0] sm:$0xf0] }
 0x158   :  { %v4456_v58 = vadd.f32 %v4455_v14, %v4427_v11  ;;  %v11089_v11 = vor.u32 %v9656_v5, %v7108_v28  ;;  %v7989_v28 = vor.u32 %v9874_v26, %v7986_v7  ;;  %v9902_v5 = vld [vmem:[#allocation6 + $0x7a4] sm:$0xf]  ;;  %v7842_v55 = vld [vmem:[#allocation6 + $0x5b0] sm:$0xf0] }
 0x159   :  { %4870 = vmatpush.bf16.msra.mxu0 %v7861_v43  ;;  %4957 = vmatpush.bf16.msra.mxu3 %v8245_v42  ;;  %12351 = vst [vmem:[#allocation82_spill] sm:$0xff] %v11091_v41  ;;  %v9838_v40 = vld [vmem:[#allocation6 + $0x5a4] sm:$0xf]  ;;  %v8226_v61 = vld [vmem:[#allocation6 + $0x8b0] sm:$0xf0] }
 0x15a   :  { %12350 = vst [vmem:[#allocation81_spill] sm:$0xff] %v11089_v11  ;;  %v9934_v13 = vld [vmem:[#allocation6 + $0x8a4] sm:$0xf]  ;;  %v7845_v23 = vor.u32 %v9838_v40, %v7842_v55  ;;  %v7826_v55 = vld [vmem:[#allocation6 + $0x590] sm:$0xf0] }
 0x15b   :  { %4899 = vmatpush.bf16.msra.mxu1 %v7989_v28  ;;  %v9898_v28 = vld [vmem:[#allocation6 + $0x784] sm:$0xf] }
 0x15c   :  { %v4484_v27 = vpop.f32.mrf.mxu2 }
 0x15d   :  { %v4485_v14 = vadd.f32 %v4484_v27, %v4456_v58  ;;  %v4513_v4 = vpop.f32.mrf.mxu3  ;;  %v4429_v22 = vpop.f32.mrf.mxu0  ;;  %v8098_v58 = vld [vmem:[#allocation6 + $0x7b0] sm:$0xf0]  ;;  %4871 = vmatpush.bf16.msra.mxu0 %v7845_v23 }
 0x15e   :  { %v4430_v36 = vadd.f32 %v4429_v22, %v10967_v6  ;;  %v4458_v15 = vpop.f32.mrf.mxu1  ;;  %v8101_v6 = vor.u32 %v9902_v5, %v8098_v58  ;;  %v7970_v22 = vld [vmem:[#allocation6 + $0x6b0] sm:$0xf0]  ;;  %v9834_v58 = vld [vmem:[#allocation6 + $0x584] sm:$0xf] }
 0x15f   :  { %v11096_v44 = vadd.f32 %v4513_v4, %v4485_v14  ;;  %v9870_v4 = vld [vmem:[#allocation6 + $0x6a4] sm:$0xf]  ;;  %v8082_v5 = vld [vmem:[#allocation6 + $0x790] sm:$0xf0] }
 0x160   :  { %v4459_v59 = vadd.f32 %v4458_v15, %v4430_v36  ;;  %4660 = vmatmul.bf16.gmra.mxu0 %v11089_v11  ;;  %4689 = vmatmul.bf16.gmra.mxu1 %v11091_v41  ;;  %v8229_v36 = vor.u32 %v9934_v13, %v8226_v61  ;;  %v7973_v7 = vor.u32 %v9870_v4, %v7970_v22  ;;  %v8210_v13 = vld [vmem:[#allocation6 + $0x890] sm:$0xf0] }
 0x161   :  { %4718 = vmatmul.bf16.gmra.mxu2 %v11093_v60  ;;  %v8085_v40 = vor.u32 %v9898_v28, %v8082_v5  ;;  %v9830_v28 = vld [vmem:[#allocation6 + $0x564] sm:$0xf]  ;;  %v7810_v5 = vld [vmem:[#allocation6 + $0x570] sm:$0xf0] }
 0x162   :  { %4747 = vmatmul.bf16.gmra.mxu3 %v10487_v16  ;;  %4929 = vmatpush.bf16.msra.mxu2 %v8101_v6  ;;  %v7829_v6 = vor.u32 %v9834_v58, %v7826_v55  ;;  %v9926_v58 = vld [vmem:[#allocation6 + $0x864] sm:$0xf] }
 0x163   :  { %4958 = vmatpush.bf16.msra.mxu3 %v8229_v36  ;;  %4900 = vmatpush.bf16.msra.mxu1 %v7973_v7  ;;  %v8066_v7 = vld [vmem:[#allocation6 + $0x770] sm:$0xf0] }
 0x164   :  { %v4487_v52 = vpop.f32.mrf.mxu2  ;;  %4872 = vmatpush.bf16.msra.mxu0 %v7829_v6 }
 0x165   :  { %v4488_v15 = vadd.f32 %v4487_v52, %v4459_v59  ;;  %v4516_v48 = vpop.f32.mrf.mxu3  ;;  %v4431_v43 = vpop.f32.mrf.mxu0  ;;  %v9930_v59 = vld [vmem:[#allocation6 + $0x884] sm:$0xf] }
 0x166   :  { %v4432_v42 = vadd.f32 %v4431_v43, %v10994_v12  ;;  %v4460_v27 = vpop.f32.mrf.mxu1  ;;  %v8213_v61 = vor.u32 %v9930_v59, %v8210_v13  ;;  %4930 = vmatpush.bf16.msra.mxu2 %v8085_v40  ;;  %v8194_v40 = vld [vmem:[#allocation6 + $0x870] sm:$0xf0]  ;;  %v7813_v59 = vor.u32 %v9830_v28, %v7810_v5 }
 0x167   :  { %v11103_v14 = vadd.f32 %v4516_v48, %v4488_v15  ;;  %v8197_v13 = vor.u32 %v9926_v58, %v8194_v40  ;;  %v7794_v5 = vld [vmem:[#allocation6 + $0x550] sm:$0xf0] }
 0x168   :  { %v4461_v26 = vadd.f32 %v4460_v27, %v4432_v42  ;;  %4959 = vmatpush.bf16.msra.mxu3 %v8213_v61  ;;  %v9866_v42 = vld [vmem:[#allocation6 + $0x684] sm:$0xf]  ;;  %v7954_v27 = vld [vmem:[#allocation6 + $0x690] sm:$0xf0]  ;;  %4873 = vmatpush.bf16.msra.mxu0 %v7813_v59 }
 0x169   :  { %v7957_v22 = vor.u32 %v9866_v42, %v7954_v27  ;;  %v8178_v58 = vld [vmem:[#allocation6 + $0x850] sm:$0xf0] }
 0x16b   :  { %4901 = vmatpush.bf16.msra.mxu1 %v7957_v22  ;;  %v9890_v22 = vld [vmem:[#allocation6 + $0x744] sm:$0xf] }
 0x16c   :  { %v4489_v12 = vpop.f32.mrf.mxu2  ;;  %4960 = vmatpush.bf16.msra.mxu3 %v8197_v13 }
 0x16d   :  { %v4490_v52 = vadd.f32 %v4489_v12, %v4461_v26  ;;  %v4518_v23 = vpop.f32.mrf.mxu3  ;;  %v4530_v36 = vpop.f32.mrf.mxu0  ;;  %v9894_v26 = vld [vmem:[#allocation6 + $0x764] sm:$0xf] }
 0x16e   :  { %v4531_v15 = vadd.f32 %v4530_v36, %v11001_v24  ;;  %v4559_v48 = vpop.f32.mrf.mxu1  ;;  %v8069_v24 = vor.u32 %v9894_v26, %v8066_v7  ;;  %v8050_v26 = vld [vmem:[#allocation6 + $0x750] sm:$0xf0]  ;;  %v9826_v7 = vld [vmem:[#allocation6 + $0x544] sm:$0xf] }
 0x16f   :  { %v11106_v43 = vadd.f32 %v4518_v23, %v4490_v52  ;;  %v8053_v28 = vor.u32 %v9890_v22, %v8050_v26  ;;  %v9822_v22 = vld [vmem:[#allocation6 + $0x524] sm:$0xf]  ;;  %v7778_v26 = vld [vmem:[#allocation6 + $0x530] sm:$0xf0] }
 0x170   :  { %v4560_v4 = vadd.f32 %v4559_v48, %v4531_v15  ;;  %4761 = vmatmul.bf16.vlgmr.msrb.gmra.mxu0 %v10381_v53  ;;  %4790 = vmatmul.bf16.vlgmr.msrb.gmra.mxu1 %v10383_v54  ;;  %v9862_v15 = vld [vmem:[#allocation6 + $0x664] sm:$0xf]  ;;  %v7938_v48 = vld [vmem:[#allocation6 + $0x670] sm:$0xf0] }
 0x171   :  { %4819 = vmatmul.bf16.vlgmr.msrb.gmra.mxu2 %v10385_v57  ;;  %v7941_v27 = vor.u32 %v9862_v15, %v7938_v48 }
 0x172   :  { %4848 = vmatmul.bf16.vlgmr.msrb.gmra.mxu3 %v10523_v0  ;;  %4931 = vmatpush.bf16.msra.mxu2 %v8069_v24  ;;  %v7797_v24 = vor.u32 %v9826_v7, %v7794_v5  ;;  %v9918_v7 = vld [vmem:[#allocation6 + $0x824] sm:$0xf] }
 0x173   :  { %4902 = vmatpush.bf16.msra.mxu1 %v7941_v27  ;;  %v8034_v27 = vld [vmem:[#allocation6 + $0x730] sm:$0xf0] }
 0x174   :  { %v4588_v55 = vpop.f32.mrf.mxu2  ;;  %4874 = vmatpush.bf16.msra.mxu0 %v7797_v24 }
 0x175   :  { %v4589_v6 = vadd.f32 %v4588_v55, %v4560_v4  ;;  %v4617_v61 = vpop.f32.mrf.mxu3  ;;  %v4532_v12 = vpop.f32.mrf.mxu0  ;;  %v9922_v4 = vld [vmem:[#allocation6 + $0x844] sm:$0xf] }
 0x176   :  { %v4533_v52 = vadd.f32 %v4532_v12, %v11028_v62  ;;  %v4561_v23 = vpop.f32.mrf.mxu1  ;;  %v8181_v40 = vor.u32 %v9922_v4, %v8178_v58  ;;  %4932 = vmatpush.bf16.msra.mxu2 %v8053_v28  ;;  %v8162_v28 = vld [vmem:[#allocation6 + $0x830] sm:$0xf0]  ;;  %v7781_v4 = vor.u32 %v9822_v22, %v7778_v26 }
 0x177   :  { %v11113_v36 = vadd.f32 %v4617_v61, %v4589_v6  ;;  %v8165_v58 = vor.u32 %v9918_v7, %v8162_v28  ;;  %v7762_v26 = vld [vmem:[#allocation6 + $0x510] sm:$0xf0] }
 0x178   :  { %v4562_v42 = vadd.f32 %v4561_v23, %v4533_v52  ;;  %4961 = vmatpush.bf16.msra.mxu3 %v8181_v40  ;;  %v9858_v52 = vld [vmem:[#allocation6 + $0x644] sm:$0xf]  ;;  %v7922_v23 = vld [vmem:[#allocation6 + $0x650] sm:$0xf0]  ;;  %4875 = vmatpush.bf16.msra.mxu0 %v7781_v4 }
 0x179   :  { %v7925_v48 = vor.u32 %v9858_v52, %v7922_v23  ;;  %v8146_v7 = vld [vmem:[#allocation6 + $0x810] sm:$0xf0] }
 0x17a   :  { %v7890_v4 = vld [vmem:[#allocation6 + $0x610] sm:$0xf0] }
 0x17b   :  { %4903 = vmatpush.bf16.msra.mxu1 %v7925_v48  ;;  %v9882_v48 = vld [vmem:[#allocation6 + $0x704] sm:$0xf] }
 0x17c   :  { %v4590_v62 = vpop.f32.mrf.mxu2  ;;  %4962 = vmatpush.bf16.msra.mxu3 %v8165_v58 }
 0x17d   :  { %v4591_v55 = vadd.f32 %v4590_v62, %v4562_v42  ;;  %v4619_v59 = vpop.f32.mrf.mxu3  ;;  %v4535_v13 = vpop.f32.mrf.mxu0  ;;  %v9886_v42 = vld [vmem:[#allocation6 + $0x724] sm:$0xf] }
 0x17e   :  { %v4536_v6 = vadd.f32 %v4535_v13, %v11035_v31  ;;  %v4564_v61 = vpop.f32.mrf.mxu1  ;;  %v8037_v31 = vor.u32 %v9886_v42, %v8034_v27  ;;  %v8018_v42 = vld [vmem:[#allocation6 + $0x710] sm:$0xf0]  ;;  %v9818_v27 = vld [vmem:[#allocation6 + $0x504] sm:$0xf] }
 0x17f   :  { %v11116_v12 = vadd.f32 %v4619_v59, %v4591_v55  ;;  %v8021_v22 = vor.u32 %v9882_v48, %v8018_v42  ;;  %v9974_v48 = vld [vmem:[#allocation6 + $0x9e4] sm:$0xf] }
 0x180   :  { %v4565_v15 = vadd.f32 %v4564_v61, %v4536_v6  ;;  %4766 = vmatmul.bf16.gmra.mxu0 %v10417_v50  ;;  %4795 = vmatmul.bf16.gmra.mxu1 %v10419_v51  ;;  %v9854_v6 = vld [vmem:[#allocation6 + $0x624] sm:$0xf]  ;;  %v7906_v61 = vld [vmem:[#allocation6 + $0x630] sm:$0xf0] }
 0x181   :  { %4824 = vmatmul.bf16.gmra.mxu2 %v10421_v56  ;;  %v7909_v23 = vor.u32 %v9854_v6, %v7906_v61 }
 0x182   :  { %4853 = vmatmul.bf16.gmra.mxu3 %v10559_v45  ;;  %4933 = vmatpush.bf16.msra.mxu2 %v8037_v31  ;;  %v7765_v31 = vor.u32 %v9818_v27, %v7762_v26  ;;  %v8386_v27 = vld [vmem:[#allocation6 + $0x9f0] sm:$0xf0] }
 0x183   :  { %4904 = vmatpush.bf16.msra.mxu1 %v7909_v23  ;;  %v10038_v23 = vld [vmem:[#allocation6 + $0xbe4] sm:$0xf] }
 0x184   :  { %v4593_v5 = vpop.f32.mrf.mxu2  ;;  %4876 = vmatpush.bf16.msra.mxu0 %v7765_v31 }
 0x185   :  { %v4594_v24 = vadd.f32 %v4593_v5, %v4565_v15  ;;  %v4622_v40 = vpop.f32.mrf.mxu3  ;;  %v4537_v62 = vpop.f32.mrf.mxu0  ;;  %v9914_v15 = vld [vmem:[#allocation6 + $0x804] sm:$0xf] }
 0x186   :  { %v4538_v55 = vadd.f32 %v4537_v62, %v11062_v20  ;;  %v4566_v59 = vpop.f32.mrf.mxu1  ;;  %v8149_v28 = vor.u32 %v9914_v15, %v8146_v7  ;;  %4934 = vmatpush.bf16.msra.mxu2 %v8021_v22  ;;  %v9850_v5 = vld [vmem:[#allocation6 + $0x604] sm:$0xf]  ;;  %v8389_v15 = vor.u32 %v9974_v48, %v8386_v27  ;;  %v8370_v48 = vld [vmem:[#allocation6 + $0x9d0] sm:$0xf0] }
 0x187   :  { %v11123_v13 = vadd.f32 %v4622_v40, %v4594_v24  ;;  %v7893_v62 = vor.u32 %v9850_v5, %v7890_v4  ;;  %v10070_v22 = vld [vmem:[#allocation6 + $0xce4] sm:$0xf] }
 0x188   :  { %v4567_v52 = vadd.f32 %v4566_v59, %v4538_v55  ;;  %4963 = vmatpush.bf16.msra.mxu3 %v8149_v28  ;;  %4985 = vmatpush.bf16.msrb.mxu0 %v8389_v15 }
 0x189   :  { %4905 = vmatpush.bf16.msra.mxu1 %v7893_v62  ;;  %v8514_v62 = vld [vmem:[#allocation6 + $0xaf0] sm:$0xf0] }
 0x18c   :  { %v4595_v20 = vpop.f32.mrf.mxu2 }
 0x18d   :  { %v4596_v58 = vadd.f32 %v4595_v20, %v4567_v52  ;;  %v4624_v24 = vpop.f32.mrf.mxu3  ;;  %v4540_v40 = vpop.f32.mrf.mxu0  ;;  %v8642_v52 = vld [vmem:[#allocation6 + $0xbf0] sm:$0xf0] }
 0x18e   :  { %v4541_v55 = vadd.f32 %v4540_v40, %v11069_v21  ;;  %v4569_v59 = vpop.f32.mrf.mxu1  ;;  %v8645_v42 = vor.u32 %v10038_v23, %v8642_v52  ;;  %v8770_v21 = vld [vmem:[#allocation6 + $0xcf0] sm:$0xf0]  ;;  %v10006_v40 = vld [vmem:[#allocation6 + $0xae4] sm:$0xf] }
 0x18f   :  { %v11126_v6 = vadd.f32 %v4624_v24, %v4596_v58  ;;  %v8773_v7 = vor.u32 %v10070_v22, %v8770_v21  ;;  %v8626_v23 = vld [vmem:[#allocation6 + $0xbd0] sm:$0xf0]  ;;  %v9970_v52 = vld [vmem:[#allocation6 + $0x9c4] sm:$0xf] }
 0x190   :  { %v4570_v61 = vadd.f32 %v4569_v59, %v4541_v55  ;;  %4771 = vmatmul.bf16.gmra.mxu0 %v10453_v37  ;;  %4800 = vmatmul.bf16.gmra.mxu1 %v10455_v38  ;;  %v10034_v55 = vld [vmem:[#allocation6 + $0xbc4] sm:$0xf]  ;;  %v8517_v59 = vor.u32 %v10006_v40, %v8514_v62  ;;  %v8754_v21 = vld [vmem:[#allocation6 + $0xcd0] sm:$0xf0] }
 0x191   :  { %4829 = vmatmul.bf16.gmra.mxu2 %v10457_v39  ;;  %5072 = vmatpush.bf16.msrb.mxu3 %v8773_v7  ;;  %v8629_v27 = vor.u32 %v10034_v55, %v8626_v23  ;;  %v10066_v22 = vld [vmem:[#allocation6 + $0xcc4] sm:$0xf]  ;;  %v8498_v40 = vld [vmem:[#allocation6 + $0xad0] sm:$0xf0] }
 0x192   :  { %4858 = vmatmul.bf16.gmra.mxu3 %v10595_v32  ;;  %5043 = vmatpush.bf16.msrb.mxu2 %v8645_v42  ;;  %v10030_v62 = vld [vmem:[#allocation6 + $0xba4] sm:$0xf]  ;;  %v8610_v55 = vld [vmem:[#allocation6 + $0xbb0] sm:$0xf0] }
 0x193   :  { %5014 = vmatpush.bf16.msrb.mxu1 %v8517_v59  ;;  %v9966_v59 = vld [vmem:[#allocation6 + $0x9a4] sm:$0xf]  ;;  %v8354_v23 = vld [vmem:[#allocation6 + $0x9b0] sm:$0xf0] }
 0x194   :  { %v4598_v26 = vpop.f32.mrf.mxu2 }
 0x195   :  { %v4599_v31 = vadd.f32 %v4598_v26, %v4570_v61  ;;  %v4627_v28 = vpop.f32.mrf.mxu3  ;;  %v4542_v20 = vpop.f32.mrf.mxu0  ;;  %v8373_v61 = vor.u32 %v9970_v52, %v8370_v48  ;;  %v10062_v52 = vld [vmem:[#allocation6 + $0xca4] sm:$0xf]  ;;  %v8738_v48 = vld [vmem:[#allocation6 + $0xcb0] sm:$0xf0] }
 0x196   :  { %v4543_v5 = vadd.f32 %v4542_v20, %v11096_v44  ;;  %v4571_v4 = vpop.f32.mrf.mxu1  ;;  %v8757_v44 = vor.u32 %v10066_v22, %v8754_v21  ;;  %5044 = vmatpush.bf16.msrb.mxu2 %v8629_v27  ;;  %v8741_v22 = vor.u32 %v10062_v52, %v8738_v48  ;;  %v9962_v48 = vld [vmem:[#allocation6 + $0x984] sm:$0xf] }
 0x197   :  { %v11133_v58 = vadd.f32 %v4627_v28, %v4599_v31  ;;  %4986 = vmatpush.bf16.msrb.mxu0 %v8373_v61  ;;  %v8357_v61 = vor.u32 %v9966_v59, %v8354_v23  ;;  %v10026_v59 = vld [vmem:[#allocation6 + $0xb84] sm:$0xf] }
 0x198   :  { %v4572_v24 = vadd.f32 %v4571_v4, %v4543_v5  ;;  %5073 = vmatpush.bf16.msrb.mxu3 %v8757_v44  ;;  %v10002_v4 = vld [vmem:[#allocation6 + $0xac4] sm:$0xf] }
 0x19b   :  { %4987 = vmatpush.bf16.msrb.mxu0 %v8357_v61 }
 0x19c   :  { %v4600_v42 = vpop.f32.mrf.mxu2  ;;  %5074 = vmatpush.bf16.msrb.mxu3 %v8741_v22 }
 0x19d   :  { %v4601_v26 = vadd.f32 %v4600_v42, %v4572_v24  ;;  %v4629_v15 = vpop.f32.mrf.mxu3  ;;  %v4545_v7 = vpop.f32.mrf.mxu0  ;;  %v8501_v24 = vor.u32 %v10002_v4, %v8498_v40 }
 0x19e   :  { %v4546_v31 = vadd.f32 %v4545_v7, %v11103_v14  ;;  %v4574_v28 = vpop.f32.mrf.mxu1  ;;  %v8613_v14 = vor.u32 %v10030_v62, %v8610_v55  ;;  %v9998_v55 = vld [vmem:[#allocation6 + $0xaa4] sm:$0xf] }
 0x19f   :  { %v11136_v20 = vadd.f32 %v4629_v15, %v4601_v26  ;;  %5015 = vmatpush.bf16.msrb.mxu1 %v8501_v24  ;;  %v8482_v24 = vld [vmem:[#allocation6 + $0xab0] sm:$0xf0] }
 0x1a0   :  { %v4575_v5 = vadd.f32 %v4574_v28, %v4546_v31  ;;  %4776 = vmatmul.bf16.gmra.mxu0 %v10489_v17  ;;  %4805 = vmatmul.bf16.gmra.mxu1 %v10491_v18  ;;  %v8485_v52 = vor.u32 %v9998_v55, %v8482_v24  ;;  %v8322_v55 = vld [vmem:[#allocation6 + $0x970] sm:$0xf0]  ;;  %v10054_v24 = vld [vmem:[#allocation6 + $0xc64] sm:$0xf] }
 0x1a1   :  { %4834 = vmatmul.bf16.gmra.mxu2 %v10493_v19 }
 0x1a2   :  { %4863 = vmatmul.bf16.gmra.mxu3 %v10631_v25  ;;  %5045 = vmatpush.bf16.msrb.mxu2 %v8613_v14  ;;  %v8594_v14 = vld [vmem:[#allocation6 + $0xb90] sm:$0xf0] }
 0x1a3   :  { %v8597_v61 = vor.u32 %v10026_v59, %v8594_v14  ;;  %5016 = vmatpush.bf16.msrb.mxu1 %v8485_v52  ;;  %v8706_v59 = vld [vmem:[#allocation6 + $0xc70] sm:$0xf0] }
 0x1a4   :  { %v4603_v27 = vpop.f32.mrf.mxu2  ;;  %v8709_v52 = vor.u32 %v10054_v24, %v8706_v59  ;;  %v8562_v24 = vld [vmem:[#allocation6 + $0xb50] sm:$0xf0]  ;;  %v9954_v59 = vld [vmem:[#allocation6 + $0x944] sm:$0xf] }
 0x1a5   :  { %v4604_v21 = vadd.f32 %v4603_v27, %v4575_v5  ;;  %v4632_v42 = vpop.f32.mrf.mxu3  ;;  %v4547_v44 = vpop.f32.mrf.mxu0 }
 0x1a6   :  { %v4548_v26 = vadd.f32 %v4547_v44, %v11106_v43  ;;  %v4576_v15 = vpop.f32.mrf.mxu1  ;;  %v8338_v43 = vld [vmem:[#allocation6 + $0x990] sm:$0xf0]  ;;  %5046 = vmatpush.bf16.msrb.mxu2 %v8597_v61 }
 0x1a7   :  { %v11143_v7 = vadd.f32 %v4632_v42, %v4604_v21  ;;  %v8341_v22 = vor.u32 %v9962_v48, %v8338_v43  ;;  %v10058_v21 = vld [vmem:[#allocation6 + $0xc84] sm:$0xf]  ;;  %v8722_v42 = vld [vmem:[#allocation6 + $0xc90] sm:$0xf0] }
 0x1a8   :  { %v4577_v31 = vadd.f32 %v4576_v15, %v4548_v26  ;;  %v8725_v26 = vor.u32 %v10058_v21, %v8722_v42  ;;  %v8466_v15 = vld [vmem:[#allocation6 + $0xa90] sm:$0xf0] }
 0x1a9   :  { %4988 = vmatpush.bf16.msrb.mxu0 %v8341_v22 }
 0x1aa   :  { %5075 = vmatpush.bf16.msrb.mxu3 %v8725_v26 }
 0x1ac   :  { %v4605_v28 = vpop.f32.mrf.mxu2 }
 0x1ad   :  { %v4606_v4 = vadd.f32 %v4605_v28, %v4577_v31  ;;  %v4634_v40 = vpop.f32.mrf.mxu3  ;;  %v4646_v62 = vpop.f32.mrf.mxu0  ;;  %v10022_v28 = vld [vmem:[#allocation6 + $0xb64] sm:$0xf] }
 0x1ae   :  { %v4647_v5 = vadd.f32 %v4646_v62, %v11113_v36  ;;  %v4675_v23 = vpop.f32.mrf.mxu1  ;;  %v9994_v36 = vld [vmem:[#allocation6 + $0xa84] sm:$0xf]  ;;  %5076 = vmatpush.bf16.msrb.mxu3 %v8709_v52 }
 0x1af   :  { %v11146_v27 = vadd.f32 %v4634_v40, %v4606_v4  ;;  %v8469_v31 = vor.u32 %v9994_v36, %v8466_v15  ;;  %v8578_v4 = vld [vmem:[#allocation6 + $0xb70] sm:$0xf0]  ;;  %v9958_v40 = vld [vmem:[#allocation6 + $0x964] sm:$0xf] }
 0x1b0   :  { %v4676_v44 = vadd.f32 %v4675_v23, %v4647_v5  ;;  %4877 = vmatmul.bf16.vlgmr.msra.gmra.mxu0 %v10525_v1  ;;  %4906 = vmatmul.bf16.vlgmr.msra.gmra.mxu1 %v10527_v2  ;;  %v8581_v62 = vor.u32 %v10022_v28, %v8578_v4  ;;  %v8325_v23 = vor.u32 %v9958_v40, %v8322_v55  ;;  %v9990_v28 = vld [vmem:[#allocation6 + $0xa64] sm:$0xf] }
 0x1b1   :  { %4935 = vmatmul.bf16.vlgmr.msra.gmra.mxu2 %v10529_v3  ;;  %5017 = vmatpush.bf16.msrb.mxu1 %v8469_v31  ;;  %v10018_v4 = vld [vmem:[#allocation6 + $0xb44] sm:$0xf] }
 0x1b2   :  { %4964 = vmatmul.bf16.vlgmr.msra.gmra.mxu3 %v10667_v29  ;;  %5047 = vmatpush.bf16.msrb.mxu2 %v8581_v62 }
 0x1b3   :  { %4989 = vmatpush.bf16.msrb.mxu0 %v8325_v23 }
 0x1b4   :  { %v4704_v5 = vpop.f32.mrf.mxu2 }
 0x1b5   :  { %v11152_v14 = vadd.f32 %v4704_v5, %v4676_v44  ;;  %v11154_v48 = vpop.f32.mrf.mxu3  ;;  %v4648_v43 = vpop.f32.mrf.mxu0  ;;  %v8306_v5 = vld [vmem:[#allocation6 + $0x950] sm:$0xf0] }
 0x1b6   :  { %v4649_v61 = vadd.f32 %v4648_v43, %v11116_v12  ;;  %v4677_v21 = vpop.f32.mrf.mxu1  ;;  %v8450_v12 = vld [vmem:[#allocation6 + $0xa70] sm:$0xf0]  ;;  %v8565_v43 = vor.u32 %v10018_v4, %v8562_v24  ;;  %v10046_v4 = vld [vmem:[#allocation6 + $0xc24] sm:$0xf] }
 0x1b7   :  { %12353 = vst [vmem:[#allocation84_spill] sm:$0xff] %v11152_v14  ;;  %vm6460_vm0 = vcmp.ge.f32.partialorder %v11152_v14, 1.25  ;;  %v6492_v26 = vmul.f32 0.75, %v11152_v14  ;;  %v8453_v55 = vor.u32 %v9990_v28, %v8450_v12  ;;  %v9950_v28 = vld [vmem:[#allocation6 + $0x924] sm:$0xf] }
 0x1b8   :  { %v4678_v22 = vadd.f32 %v4677_v21, %v4649_v61  ;;  %v6464_v42 = vsel %vm6460_vm0, 0.0, %v11152_v14  ;;  %v8309_v61 = vor.u32 %v9954_v59, %v8306_v5  ;;  %v10050_v21 = vld [vmem:[#allocation6 + $0xc44] sm:$0xf]  ;;  %v8690_v14 = vld [vmem:[#allocation6 + $0xc50] sm:$0xf0]  ;;  %5048 = vmatpush.bf16.msrb.mxu2 %v8565_v43 }
 0x1b9   :  { %v6500_v23 = vmul.f32 0.97, %v6464_v42  ;;  %5018 = vmatpush.bf16.msrb.mxu1 %v8453_v55  ;;  %v8290_v12 = vld [vmem:[#allocation6 + $0x930] sm:$0xf0] }
 0x1ba   :  { %4990 = vmatpush.bf16.msrb.mxu0 %v8309_v61  ;;  %v8293_v55 = vor.u32 %v9950_v28, %v8290_v12  ;;  %v8674_v24 = vld [vmem:[#allocation6 + $0xc30] sm:$0xf0] }
 0x1bc   :  { %v4706_v44 = vpop.f32.mrf.mxu2 }
 0x1bd   :  { %v4707_v36 = vadd.f32 %v4706_v44, %v4678_v22  ;;  %v11162_v15 = vpop.f32.mrf.mxu3  ;;  %v4651_v31 = vpop.f32.mrf.mxu0  ;;  %v8693_v44 = vor.u32 %v10050_v21, %v8690_v14  ;;  %v8677_v21 = vor.u32 %v10046_v4, %v8674_v24  ;;  %v9946_v24 = vld [vmem:[#allocation6 + $0x904] sm:$0xf] }
 0x1be   :  { %v4652_v40 = vadd.f32 %v4651_v31, %v11123_v13  ;;  %v4680_v62 = vpop.f32.mrf.mxu1  ;;  %v9986_v13 = vld [vmem:[#allocation6 + $0xa44] sm:$0xf]  ;;  %v8434_v31 = vld [vmem:[#allocation6 + $0xa50] sm:$0xf0]  ;;  %4991 = vmatpush.bf16.msrb.mxu0 %v8293_v55 }
 0x1bf   :  { %v6496_v52 = vadd.f32 %v6492_v26, %v4707_v36  ;;  %v8437_v42 = vor.u32 %v9986_v13, %v8434_v31  ;;  %v10014_v26 = vld [vmem:[#allocation6 + $0xb24] sm:$0xf]  ;;  %v8546_v36 = vld [vmem:[#allocation6 + $0xb30] sm:$0xf0]  ;;  %5077 = vmatpush.bf16.msrb.mxu3 %v8693_v44 }
 0x1c0   :  { %v4681_v22 = vadd.f32 %v4680_v62, %v4652_v40  ;;  %4882 = vmatmul.bf16.gmra.mxu0 %v10561_v46  ;;  %4911 = vmatmul.bf16.gmra.mxu1 %v10563_v47  ;;  %v8549_v14 = vor.u32 %v10014_v26, %v8546_v36  ;;  %v9982_v36 = vld [vmem:[#allocation6 + $0xa24] sm:$0xf] }
 0x1c1   :  { %v11166_v29 = vadd.f32 %v6500_v23, %v6496_v52  ;;  %4940 = vmatmul.bf16.gmra.mxu2 %v10565_v49  ;;  %5019 = vmatpush.bf16.msrb.mxu1 %v8437_v42  ;;  %v6536_v5 = vmul.f32 0.75, %v6496_v52 }
 0x1c2   :  { %4969 = vmatmul.bf16.gmra.mxu3 %v10705_v8  ;;  %5049 = vmatpush.bf16.msrb.mxu2 %v8549_v14  ;;  %v8418_v8 = vld [vmem:[#allocation6 + $0xa30] sm:$0xf0] }
 0x1c3   :  { %vm6508_vm1 = vcmp.ge.f32.partialorder %v11166_v29, 1.25  ;;  %5078 = vmatpush.bf16.msrb.mxu3 %v8677_v21  ;;  %v8421_v28 = vor.u32 %v9982_v36, %v8418_v8  ;;  %v8530_v14 = vld [vmem:[#allocation6 + $0xb10] sm:$0xf0]  ;;  %v10042_v21 = vld [vmem:[#allocation6 + $0xc04] sm:$0xf] }
 0x1c4   :  { %v4709_v40 = vpop.f32.mrf.mxu2  ;;  %v6512_v62 = vsel %vm6508_vm1, 0.0, %v11166_v29 }
 0x1c5   :  { %v4710_v59 = vadd.f32 %v4709_v40, %v4681_v22  ;;  %v11175_v23 = vpop.f32.mrf.mxu3  ;;  %v4653_v43 = vpop.f32.mrf.mxu0  ;;  %v6544_v31 = vmul.f32 0.97, %v6512_v62  ;;  %5020 = vmatpush.bf16.msrb.mxu1 %v8421_v28  ;;  %v10010_v22 = vld [vmem:[#allocation6 + $0xb04] sm:$0xf] }
 0x1c6   :  { %v4654_v61 = vadd.f32 %v4653_v43, %v11126_v6  ;;  %v4682_v44 = vpop.f32.mrf.mxu1  ;;  %v8533_v55 = vor.u32 %v10010_v22, %v8530_v14  ;;  %v10166_v22 = vld [vmem:[#allocation6 + $0xfe4] sm:$0xf] }
 0x1c7   :  { %v6540_v13 = vadd.f32 %v6536_v5, %v4710_v59  ;;  %v8274_v59 = vld [vmem:[#allocation6 + $0x910] sm:$0xf0] }
 0x1c8   :  { %v4683_v26 = vadd.f32 %v4682_v44, %v4654_v61  ;;  %v8277_v43 = vor.u32 %v9946_v24, %v8274_v59  ;;  %v8658_v61 = vld [vmem:[#allocation6 + $0xc10] sm:$0xf0]  ;;  %v9978_v44 = vld [vmem:[#allocation6 + $0xa04] sm:$0xf]  ;;  %5050 = vmatpush.bf16.msrb.mxu2 %v8533_v55 }
 0x1c9   :  { %v11178_v42 = vadd.f32 %v6544_v31, %v6540_v13  ;;  %v6580_v12 = vmul.f32 0.75, %v6540_v13  ;;  %v8661_v28 = vor.u32 %v10042_v21, %v8658_v61  ;;  %v10102_v24 = vld [vmem:[#allocation6 + $0xde4] sm:$0xf]  ;;  %v8898_v59 = vld [vmem:[#allocation6 + $0xdf0] sm:$0xf0] }
 0x1ca   :  { %4992 = vmatpush.bf16.msrb.mxu0 %v8277_v43  ;;  %v8901_v43 = vor.u32 %v10102_v24, %v8898_v59  ;;  %v10198_v21 = vld [vmem:[#allocation6 + $0x10e4] sm:$0xf]  ;;  %v9282_v61 = vld [vmem:[#allocation6 + $0x10f0] sm:$0xf0] }
 0x1cb   :  { %12354 = vst [vmem:[#allocation85_spill] sm:$0xff] %v11178_v42  ;;  %vm6552_vm2 = vcmp.ge.f32.partialorder %v11178_v42, 1.25  ;;  %5079 = vmatpush.bf16.msrb.mxu3 %v8661_v28  ;;  %v9285_v28 = vor.u32 %v10198_v21, %v9282_v61  ;;  %v10194_v24 = vld [vmem:[#allocation6 + $0x10c4] sm:$0xf] }
 0x1cc   :  { %v6556_v52 = vsel %vm6552_vm2, 0.0, %v11178_v42  ;;  %v4711_v6 = vpop.f32.mrf.mxu2  ;;  %v8402_v42 = vld [vmem:[#allocation6 + $0xa10] sm:$0xf0] }
 0x1cd   :  { %v4712_v4 = vadd.f32 %v4711_v6, %v4683_v26  ;;  %v11184_v40 = vpop.f32.mrf.mxu3  ;;  %v4656_v62 = vpop.f32.mrf.mxu0  ;;  %v6588_v31 = vmul.f32 0.97, %v6556_v52  ;;  %v8405_v26 = vor.u32 %v9978_v44, %v8402_v42  ;;  %v9154_v42 = vld [vmem:[#allocation6 + $0xff0] sm:$0xf0] }
 0x1ce   :  { %v4657_v8 = vadd.f32 %v4656_v62, %v11133_v58  ;;  %v4685_v5 = vpop.f32.mrf.mxu1  ;;  %v9157_v55 = vor.u32 %v10166_v22, %v9154_v42  ;;  %5101 = vmatpush.bf16.msra.mxu0 %v8901_v43  ;;  %v10098_v22 = vld [vmem:[#allocation6 + $0xdc4] sm:$0xf] }
 0x1cf   :  { %v6584_v36 = vadd.f32 %v6580_v12, %v4712_v4  ;;  %5021 = vmatpush.bf16.msrb.mxu1 %v8405_v26  ;;  %v10134_v26 = vld [vmem:[#allocation6 + $0xee4] sm:$0xf]  ;;  %5188 = vmatpush.bf16.msra.mxu3 %v9285_v28 }
 0x1d0   :  { %v4686_v13 = vadd.f32 %v4685_v5, %v4657_v8  ;;  %4887 = vmatmul.bf16.gmra.mxu0 %v10597_v33  ;;  %4916 = vmatmul.bf16.gmra.mxu1 %v10599_v34  ;;  %v10130_v28 = vld [vmem:[#allocation6 + $0xec4] sm:$0xf]  ;;  %v8850_v34 = vld [vmem:[#allocation6 + $0xd90] sm:$0xf0] }
 0x1d1   :  { %v11188_v6 = vadd.f32 %v6588_v31, %v6584_v36  ;;  %4945 = vmatmul.bf16.gmra.mxu2 %v10601_v35  ;;  %v6624_v12 = vmul.f32 0.75, %v6584_v36  ;;  %v9138_v35 = vld [vmem:[#allocation6 + $0xfd0] sm:$0xf0] }
 0x1d2   :  { %4974 = vmatmul.bf16.gmra.mxu3 %v10745_v30  ;;  %5159 = vmatpush.bf16.msra.mxu2 %v9157_v55  ;;  %v9026_v30 = vld [vmem:[#allocation6 + $0xef0] sm:$0xf0] }
 0x1d3   :  { %vm6596_vm3 = vcmp.ge.f32.partialorder %v11188_v6, 1.25  ;;  %v9029_v36 = vor.u32 %v10134_v26, %v9026_v30  ;;  %v9010_v26 = vld [vmem:[#allocation6 + $0xed0] sm:$0xf0] }
 0x1d4   :  { %v4714_v58 = vpop.f32.mrf.mxu2  ;;  %v6600_v52 = vsel %vm6596_vm3, 0.0, %v11188_v6  ;;  %v8408_v6 = vld [vmem:[#allocation6 + $0xa08] sm:$0xf] }
 0x1d5   :  { %v4715_v14 = vadd.f32 %v4714_v58, %v4686_v13  ;;  %v11197_v4 = vpop.f32.mrf.mxu3  ;;  %v4658_v62 = vpop.f32.mrf.mxu0  ;;  %v6632_v31 = vmul.f32 0.97, %v6600_v52  ;;  %v10162_v58 = vld [vmem:[#allocation6 + $0xfc4] sm:$0xf]  ;;  %5130 = vmatpush.bf16.msra.mxu1 %v9029_v36 }
 0x1d6   :  { %v4659_v8 = vadd.f32 %v4658_v62, %v11136_v20  ;;  %v4687_v5 = vpop.f32.mrf.mxu1  ;;  %v9141_v20 = vor.u32 %v10162_v58, %v9138_v35  ;;  %v8882_v62 = vld [vmem:[#allocation6 + $0xdd0] sm:$0xf0]  ;;  %v12356_v58 = vld [vmem:[#allocation37_spill] sm:$0xff] }
 0x1d7   :  { %v6628_v44 = vadd.f32 %v6624_v12, %v4715_v14  ;;  %v8885_v59 = vor.u32 %v10098_v22, %v8882_v62  ;;  %v9266_v14 = vld [vmem:[#allocation6 + $0x10d0] sm:$0xf0]  ;;  %v9013_v22 = vor.u32 %v10130_v28, %v9010_v26 }
 0x1d8   :  { %v4688_v13 = vadd.f32 %v4687_v5, %v4659_v8  ;;  %5160 = vmatpush.bf16.msra.mxu2 %v9141_v20  ;;  %v9269_v52 = vor.u32 %v10194_v24, %v9266_v14  ;;  %v12358_v62 = vld [vmem:[#allocation38_spill] sm:$0xff]  ;;  %v10158_v24 = vld [vmem:[#allocation6 + $0xfa4] sm:$0xf] }
 0x1d9   :  { %v11200_v42 = vadd.f32 %v6632_v31, %v6628_v44  ;;  %5102 = vmatpush.bf16.msra.mxu0 %v8885_v59  ;;  %v6668_v55 = vmul.f32 0.75, %v6628_v44  ;;  %v12359_v44 = vld [vmem:[#allocation39_spill] sm:$0xff]  ;;  %5131 = vmatpush.bf16.msra.mxu1 %v9013_v22  ;;  %v10094_v59 = vld [vmem:[#allocation6 + $0xda4] sm:$0xf] }
 0x1da   :  { %5189 = vmatpush.bf16.msra.mxu3 %v9269_v52  ;;  %v8866_v52 = vld [vmem:[#allocation6 + $0xdb0] sm:$0xf0] }
 0x1db   :  { %12355 = vst [vmem:[#allocation86_spill] sm:$0xff] %v11200_v42  ;;  %vm6640_vm4 = vcmp.ge.f32.partialorder %v11200_v42, 1.25 }
 0x1dc   :  { %v6644_v30 = vsel %vm6640_vm4, 0.0, %v11200_v42  ;;  %v4716_v12 = vpop.f32.mrf.mxu2 }
 0x1dd   :  { %v4717_v8 = vadd.f32 %v4716_v12, %v4688_v13  ;;  %v11206_v5 = vpop.f32.mrf.mxu3  ;;  %v4661_v35 = vpop.f32.mrf.mxu0  ;;  %v6676_v61 = vmul.f32 0.97, %v6644_v30  ;;  %v12360_v13 = vld [vmem:[#allocation52_spill] sm:$0xff] }
 0x1de   :  { %v4662_v43 = vadd.f32 %v4661_v35, %v11143_v7  ;;  %v4690_v21 = vpop.f32.mrf.mxu1  ;;  %v9122_v7 = vld [vmem:[#allocation6 + $0xfb0] sm:$0xf0]  ;;  %v10190_v30 = vld [vmem:[#allocation6 + $0x10a4] sm:$0xf] }
 0x1df   :  { %v6672_v31 = vadd.f32 %v6668_v55, %v4717_v8  ;;  %v9125_v14 = vor.u32 %v10158_v24, %v9122_v7  ;;  %v8869_v8 = vor.u32 %v10094_v59, %v8866_v52  ;;  %v9250_v35 = vld [vmem:[#allocation6 + $0x10b0] sm:$0xf0]  ;;  %v10154_v59 = vld [vmem:[#allocation6 + $0xf84] sm:$0xf] }
 0x1e0   :  { %v4691_v36 = vadd.f32 %v4690_v21, %v4662_v43  ;;  %4892 = vmatmul.bf16.gmra.mxu0 %v12356_v58  ;;  %4921 = vmatmul.bf16.gmra.mxu1 %v12358_v62  ;;  %v9253_v26 = vor.u32 %v10190_v30, %v9250_v35  ;;  %v8994_v62 = vld [vmem:[#allocation6 + $0xeb0] sm:$0xf0] }
 0x1e1   :  { %v11210_v20 = vadd.f32 %v6676_v61, %v6672_v31  ;;  %4950 = vmatmul.bf16.gmra.mxu2 %v12359_v44  ;;  %v6712_v21 = vmul.f32 0.75, %v6672_v31  ;;  %5103 = vmatpush.bf16.msra.mxu0 %v8869_v8  ;;  %v10126_v44 = vld [vmem:[#allocation6 + $0xea4] sm:$0xf]  ;;  %v9106_v52 = vld [vmem:[#allocation6 + $0xf90] sm:$0xf0] }
 0x1e2   :  { %4979 = vmatmul.bf16.gmra.mxu3 %v12360_v13  ;;  %5161 = vmatpush.bf16.msra.mxu2 %v9125_v14  ;;  %v10186_v14 = vld [vmem:[#allocation6 + $0x1084] sm:$0xf] }
 0x1e3   :  { %12357 = vst [vmem:[#allocation87_spill] sm:$0xff] %v11210_v20  ;;  %vm6684_vm5 = vcmp.ge.f32.partialorder %v11210_v20, 1.25  ;;  %5190 = vmatpush.bf16.msra.mxu3 %v9253_v26  ;;  %v10122_v26 = vld [vmem:[#allocation6 + $0xe84] sm:$0xf] }
 0x1e4   :  { %v4719_v12 = vpop.f32.mrf.mxu2  ;;  %v6688_v55 = vsel %vm6684_vm5, 0.0, %v11210_v20  ;;  %v8997_v20 = vor.u32 %v10126_v44, %v8994_v62 }
 0x1e5   :  { %v4720_v43 = vadd.f32 %v4719_v12, %v4691_v36  ;;  %v11219_v61 = vpop.f32.mrf.mxu3  ;;  %v4663_v28 = vpop.f32.mrf.mxu0  ;;  %v6720_v7 = vmul.f32 0.97, %v6688_v55  ;;  %v10090_v36 = vld [vmem:[#allocation6 + $0xd84] sm:$0xf]  ;;  %v9109_v12 = vor.u32 %v10154_v59, %v9106_v52  ;;  %v12362_v59 = vld [vmem:[#allocation41_spill] sm:$0xff] }
 0x1e6   :  { %v4664_v22 = vadd.f32 %v4663_v28, %v11146_v27  ;;  %v4692_v13 = vpop.f32.mrf.mxu1  ;;  %5132 = vmatpush.bf16.msra.mxu1 %v8997_v20  ;;  %v8853_v30 = vor.u32 %v10090_v36, %v8850_v34  ;;  %v9234_v27 = vld [vmem:[#allocation6 + $0x1090] sm:$0xf0] }
 0x1e7   :  { %v6716_v24 = vadd.f32 %v6712_v21, %v4720_v43  ;;  %5162 = vmatpush.bf16.msra.mxu2 %v9109_v12  ;;  %v9237_v55 = vor.u32 %v10186_v14, %v9234_v27  ;;  %v12364_v12 = vld [vmem:[#allocation42_spill] sm:$0xff]  ;;  %v10150_v14 = vld [vmem:[#allocation6 + $0xf64] sm:$0xf] }
 0x1e8   :  { %v4693_v42 = vadd.f32 %v4692_v13, %v4664_v22  ;;  %5104 = vmatpush.bf16.msra.mxu0 %v8853_v30  ;;  %v8978_v22 = vld [vmem:[#allocation6 + $0xe90] sm:$0xf0]  ;;  %v10086_v30 = vld [vmem:[#allocation6 + $0xd64] sm:$0xf] }
 0x1e9   :  { %v11222_v31 = vadd.f32 %v6720_v7, %v6716_v24  ;;  %v6756_v44 = vmul.f32 0.75, %v6716_v24  ;;  %5191 = vmatpush.bf16.msra.mxu3 %v9237_v55  ;;  %v8981_v52 = vor.u32 %v10122_v26, %v8978_v22  ;;  %v12366_v24 = vld [vmem:[#allocation56_spill] sm:$0xff]  ;;  %v8834_v55 = vld [vmem:[#allocation6 + $0xd70] sm:$0xf0] }
 0x1eb   :  { %12361 = vst [vmem:[#allocation88_spill] sm:$0xff] %v11222_v31  ;;  %vm6728_vm6 = vcmp.ge.f32.partialorder %v11222_v31, 1.25  ;;  %5133 = vmatpush.bf16.msra.mxu1 %v8981_v52  ;;  %v10118_v52 = vld [vmem:[#allocation6 + $0xe64] sm:$0xf] }
 0x1ec   :  { %v6732_v13 = vsel %vm6728_vm6, 0.0, %v11222_v31  ;;  %v4721_v62 = vpop.f32.mrf.mxu2  ;;  %v10074_v31 = vld [vmem:[#allocation6 + $0xd04] sm:$0xf] }
 0x1ed   :  { %v4722_v8 = vadd.f32 %v4721_v62, %v4693_v42  ;;  %v11228_v35 = vpop.f32.mrf.mxu3  ;;  %v4762_v43 = vpop.f32.mrf.mxu0  ;;  %v6764_v21 = vmul.f32 0.97, %v6732_v13  ;;  %v12365_v42 = vld [vmem:[#allocation43_spill] sm:$0xff]  ;;  %v10182_v13 = vld [vmem:[#allocation6 + $0x1064] sm:$0xf] }
 0x1ee   :  { %v4763_v20 = vadd.f32 %v4762_v43, %v11154_v48  ;;  %v4791_v34 = vpop.f32.mrf.mxu1  ;;  %v9090_v48 = vld [vmem:[#allocation6 + $0xf70] sm:$0xf0] }
 0x1ef   :  { %v6760_v28 = vadd.f32 %v6756_v44, %v4722_v8  ;;  %v9093_v27 = vor.u32 %v10150_v14, %v9090_v48  ;;  %v8837_v44 = vor.u32 %v10086_v30, %v8834_v55  ;;  %v9218_v8 = vld [vmem:[#allocation6 + $0x1070] sm:$0xf0]  ;;  %v10082_v30 = vld [vmem:[#allocation6 + $0xd44] sm:$0xf] }
 0x1f0   :  { %v4792_v7 = vadd.f32 %v4791_v34, %v4763_v20  ;;  %4993 = vmatmul.bf16.vlgmr.msrb.gmra.mxu0 %v12362_v59  ;;  %5022 = vmatmul.bf16.vlgmr.msrb.gmra.mxu1 %v12364_v12  ;;  %v9074_v12 = vld [vmem:[#allocation6 + $0xf50] sm:$0xf0] }
 0x1f1   :  { %v11232_v36 = vadd.f32 %v6764_v21, %v6760_v28  ;;  %5051 = vmatmul.bf16.vlgmr.msrb.gmra.mxu2 %v12365_v42  ;;  %v9221_v21 = vor.u32 %v10182_v13, %v9218_v8  ;;  %5105 = vmatpush.bf16.msra.mxu0 %v8837_v44  ;;  %v10146_v42 = vld [vmem:[#allocation6 + $0xf44] sm:$0xf] }
 0x1f2   :  { %5080 = vmatmul.bf16.vlgmr.msrb.gmra.mxu3 %v12366_v24  ;;  %5163 = vmatpush.bf16.msra.mxu2 %v9093_v27  ;;  %v8962_v24 = vld [vmem:[#allocation6 + $0xe70] sm:$0xf0]  ;;  %v9077_v55 = vor.u32 %v10146_v42, %v9074_v12 }
 0x1f3   :  { %12363 = vst [vmem:[#allocation41_spill] sm:$0xff] %v11232_v36  ;;  %5192 = vmatpush.bf16.msra.mxu3 %v9221_v21  ;;  %v8965_v48 = vor.u32 %v10118_v52, %v8962_v24  ;;  %v9202_v36 = vld [vmem:[#allocation6 + $0x1050] sm:$0xf0]  ;;  %v10114_v21 = vld [vmem:[#allocation6 + $0xe44] sm:$0xf] }
 0x1f4   :  { %v4820_v62 = vpop.f32.mrf.mxu2  ;;  %v8946_v12 = vld [vmem:[#allocation6 + $0xe50] sm:$0xf0] }
 0x1f5   :  { %v4821_v43 = vadd.f32 %v4820_v62, %v4792_v7  ;;  %v4849_v20 = vpop.f32.mrf.mxu3  ;;  %v4764_v34 = vpop.f32.mrf.mxu0  ;;  %v8818_v7 = vld [vmem:[#allocation6 + $0xd50] sm:$0xf0]  ;;  %v10178_v62 = vld [vmem:[#allocation6 + $0x1044] sm:$0xf]  ;;  %5134 = vmatpush.bf16.msra.mxu1 %v8965_v48 }
 0x1f6   :  { %v4765_v28 = vadd.f32 %v4764_v34, %v11162_v15  ;;  %v4793_v26 = vpop.f32.mrf.mxu1  ;;  %v8821_v27 = vor.u32 %v10082_v30, %v8818_v7  ;;  %v9205_v13 = vor.u32 %v10178_v62, %v9202_v36  ;;  %5164 = vmatpush.bf16.msra.mxu2 %v9077_v55  ;;  %v12368_v52 = vld [vmem:[#allocation46_spill] sm:$0xff]  ;;  %v12369_v36 = vld [vmem:[#allocation47_spill] sm:$0xff]  ;;  %v12370_v48 = vld [vmem:[#allocation60_spill] sm:$0xff] }
 0x1f7   :  { %v11238_v22 = vadd.f32 %v4849_v20, %v4821_v43  ;;  %v9058_v30 = vld [vmem:[#allocation6 + $0xf30] sm:$0xf0]  ;;  %v10078_v55 = vld [vmem:[#allocation6 + $0xd24] sm:$0xf] }
 0x1f8   :  { %v4794_v14 = vadd.f32 %v4793_v26, %v4765_v28  ;;  %5106 = vmatpush.bf16.msra.mxu0 %v8821_v27  ;;  %5193 = vmatpush.bf16.msra.mxu3 %v9205_v13  ;;  %v12367_v28 = vld [vmem:[#allocation45_spill] sm:$0xff]  ;;  %v8949_v26 = vor.u32 %v10114_v21, %v8946_v12  ;;  %v8802_v7 = vld [vmem:[#allocation6 + $0xd30] sm:$0xf0]  ;;  %v10174_v62 = vld [vmem:[#allocation6 + $0x1024] sm:$0xf] }
 0x1f9   :  { %v9186_v27 = vld [vmem:[#allocation6 + $0x1030] sm:$0xf0] }
 0x1fa   :  { %5135 = vmatpush.bf16.msra.mxu1 %v8949_v26  ;;  %v10110_v26 = vld [vmem:[#allocation6 + $0xe24] sm:$0xf] }
 0x1fc   :  { %v4822_v15 = vpop.f32.mrf.mxu2 }
 0x1fd   :  { %v4823_v44 = vadd.f32 %v4822_v15, %v4794_v14  ;;  %v4851_v8 = vpop.f32.mrf.mxu3  ;;  %v4767_v43 = vpop.f32.mrf.mxu0  ;;  %v10142_v14 = vld [vmem:[#allocation6 + $0xf24] sm:$0xf]  ;;  %v8805_v15 = vor.u32 %v10078_v55, %v8802_v7  ;;  %v8786_v7 = vld [vmem:[#allocation6 + $0xd10] sm:$0xf0] }
 0x1fe   :  { %v4768_v20 = vadd.f32 %v4767_v43, %v11175_v23  ;;  %v4796_v24 = vpop.f32.mrf.mxu1  ;;  %v9061_v23 = vor.u32 %v10142_v14, %v9058_v30 }
 0x1ff   :  { %v11241_v34 = vadd.f32 %v4851_v8, %v4823_v44  ;;  %v9189_v44 = vor.u32 %v10174_v62, %v9186_v27  ;;  %5107 = vmatpush.bf16.msra.mxu0 %v8805_v15  ;;  %v9170_v62 = vld [vmem:[#allocation6 + $0x1010] sm:$0xf0] }
 0x200   :  { %v4797_v42 = vadd.f32 %v4796_v24, %v4768_v20  ;;  %4998 = vmatmul.bf16.gmra.mxu0 %v12367_v28  ;;  %5027 = vmatmul.bf16.gmra.mxu1 %v12368_v52  ;;  %v9042_v52 = vld [vmem:[#allocation6 + $0xf10] sm:$0xf0] }
 0x201   :  { %5056 = vmatmul.bf16.gmra.mxu2 %v12369_v36  ;;  %5194 = vmatpush.bf16.msra.mxu3 %v9189_v44  ;;  %v10138_v36 = vld [vmem:[#allocation6 + $0xf04] sm:$0xf]  ;;  %v8914_v15 = vld [vmem:[#allocation6 + $0xe10] sm:$0xf0] }
 0x202   :  { %5085 = vmatmul.bf16.gmra.mxu3 %v12370_v48  ;;  %5165 = vmatpush.bf16.msra.mxu2 %v9061_v23  ;;  %v8930_v48 = vld [vmem:[#allocation6 + $0xe30] sm:$0xf0]  ;;  %v9045_v55 = vor.u32 %v10138_v36, %v9042_v52  ;;  %v8789_v23 = vor.u32 %v10074_v31, %v8786_v7  ;;  %v10230_v7 = vld [vmem:[#allocation6 + $0x11e4] sm:$0xf] }
 0x203   :  { %v8933_v30 = vor.u32 %v10110_v26, %v8930_v48  ;;  %v12372_v31 = vld [vmem:[#allocation50_spill] sm:$0xff]  ;;  %v12373_v26 = vld [vmem:[#allocation51_spill] sm:$0xff] }
 0x204   :  { %v4825_v13 = vpop.f32.mrf.mxu2  ;;  %5108 = vmatpush.bf16.msra.mxu0 %v8789_v23  ;;  %v7368_v23 = vld [vmem:[#allocation6 + $0x1e8] sm:$0xf] }
 0x205   :  { %v4826_v8 = vadd.f32 %v4825_v13, %v4797_v42  ;;  %v4854_v43 = vpop.f32.mrf.mxu3  ;;  %v4769_v20 = vpop.f32.mrf.mxu0  ;;  %v10170_v42 = vld [vmem:[#allocation6 + $0x1004] sm:$0xf]  ;;  %5136 = vmatpush.bf16.msra.mxu1 %v8933_v30 }
 0x206   :  { %v4770_v24 = vadd.f32 %v4769_v20, %v11184_v40  ;;  %v4798_v21 = vpop.f32.mrf.mxu1  ;;  %v9173_v27 = vor.u32 %v10170_v42, %v9170_v62  ;;  %5166 = vmatpush.bf16.msra.mxu2 %v9045_v55  ;;  %v10106_v13 = vld [vmem:[#allocation6 + $0xe04] sm:$0xf]  ;;  %v7240_v55 = vld [vmem:[#allocation6 + $0xe8] sm:$0xf]  ;;  %v9410_v62 = vld [vmem:[#allocation6 + $0x11f0] sm:$0xf0] }
 0x207   :  { %v11248_v12 = vadd.f32 %v4854_v43, %v4826_v8  ;;  %v8917_v48 = vor.u32 %v10106_v13, %v8914_v15  ;;  %v12374_v30 = vld [vmem:[#allocation64_spill] sm:$0xff] }
 0x208   :  { %v4799_v14 = vadd.f32 %v4798_v21, %v4770_v24  ;;  %5195 = vmatpush.bf16.msra.mxu3 %v9173_v27  ;;  %v12371_v21 = vld [vmem:[#allocation49_spill] sm:$0xff] }
 0x209   :  { %5137 = vmatpush.bf16.msra.mxu1 %v8917_v48 }
 0x20c   :  { %v4827_v40 = vpop.f32.mrf.mxu2 }
 0x20d   :  { %v4828_v44 = vadd.f32 %v4827_v40, %v4799_v14  ;;  %v4856_v8 = vpop.f32.mrf.mxu3  ;;  %v4772_v43 = vpop.f32.mrf.mxu0  ;;  %v9689_v14 = vld [vmem:[#allocation6 + $0xf4] sm:$0xf0]  ;;  %v9413_v40 = vor.u32 %v10230_v7, %v9410_v62  ;;  %v9394_v62 = vld [vmem:[#allocation6 + $0x11d0] sm:$0xf0] }
 0x20e   :  { %v4773_v20 = vadd.f32 %v4772_v43, %v11197_v4  ;;  %v4801_v24 = vpop.f32.mrf.mxu1  ;;  %v7241_v42 = vor.u32 %v9689_v14, %v7240_v55  ;;  %v9721_v4 = vld [vmem:[#allocation6 + $0x1f4] sm:$0xf0] }
 0x20f   :  { %v11251_v52 = vadd.f32 %v4856_v8, %v4828_v44  ;;  %v7369_v13 = vor.u32 %v9721_v4, %v7368_v23  ;;  %5217 = vmatpush.bf16.msrb.mxu0 %v9413_v40  ;;  %v9717_v23 = vld [vmem:[#allocation6 + $0x1d4] sm:$0xf0] }
 0x210   :  { %v4802_v36 = vadd.f32 %v4801_v24, %v4773_v20  ;;  %5003 = vmatmul.bf16.gmra.mxu0 %v12371_v21  ;;  %5032 = vmatmul.bf16.gmra.mxu1 %v12372_v31  ;;  %v10262_v24 = vld [vmem:[#allocation6 + $0x12e4] sm:$0xf]  ;;  %v9685_v31 = vld [vmem:[#allocation6 + $0xd4] sm:$0xf0] }
 0x211   :  { %5061 = vmatmul.bf16.gmra.mxu2 %v12373_v26  ;;  %5304 = vmatpush.bf16.msrb.mxu3 %v7369_v13  ;;  %v7224_v26 = vld [vmem:[#allocation6 + $0xc8] sm:$0xf]  ;;  %v10226_v21 = vld [vmem:[#allocation6 + $0x11c4] sm:$0xf] }
 0x212   :  { %5090 = vmatmul.bf16.gmra.mxu3 %v12374_v30  ;;  %5275 = vmatpush.bf16.msrb.mxu2 %v7241_v42  ;;  %v9538_v30 = vld [vmem:[#allocation6 + $0x12f0] sm:$0xf0]  ;;  %v7225_v7 = vor.u32 %v9685_v31, %v7224_v26  ;;  %v9397_v42 = vor.u32 %v10226_v21, %v9394_v62  ;;  %v10222_v62 = vld [vmem:[#allocation6 + $0x11a4] sm:$0xf] }
 0x213   :  { %v9541_v14 = vor.u32 %v10262_v24, %v9538_v30  ;;  %v9522_v31 = vld [vmem:[#allocation6 + $0x12d0] sm:$0xf0]  ;;  %v12377_v24 = vld [vmem:[#allocation55_spill] sm:$0xff] }
 0x214   :  { %v4830_v27 = vpop.f32.mrf.mxu2  ;;  %5218 = vmatpush.bf16.msrb.mxu0 %v9397_v42  ;;  %v12376_v21 = vld [vmem:[#allocation54_spill] sm:$0xff] }
 0x215   :  { %v4831_v15 = vadd.f32 %v4830_v27, %v4802_v36  ;;  %v4859_v44 = vpop.f32.mrf.mxu3  ;;  %v4774_v8 = vpop.f32.mrf.mxu0  ;;  %v7352_v36 = vld [vmem:[#allocation6 + $0x1c8] sm:$0xf]  ;;  %5246 = vmatpush.bf16.msrb.mxu1 %v9541_v14  ;;  %v9713_v42 = vld [vmem:[#allocation6 + $0x1b4] sm:$0xf0] }
 0x216   :  { %v4775_v43 = vadd.f32 %v4774_v8, %v11206_v5  ;;  %v4803_v48 = vpop.f32.mrf.mxu1  ;;  %v7353_v4 = vor.u32 %v9717_v23, %v7352_v36  ;;  %5276 = vmatpush.bf16.msrb.mxu2 %v7225_v7  ;;  %v10258_v8 = vld [vmem:[#allocation6 + $0x12c4] sm:$0xf]  ;;  %v9681_v7 = vld [vmem:[#allocation6 + $0xb4] sm:$0xf0]  ;;  %v9378_v36 = vld [vmem:[#allocation6 + $0x11b0] sm:$0xf0] }
 0x217   :  { %v11258_v20 = vadd.f32 %v4859_v44, %v4831_v15  ;;  %v12378_v14 = vld [vmem:[#allocation68_spill] sm:$0xff] }
 0x218   :  { %v4804_v55 = vadd.f32 %v4803_v48, %v4775_v43  ;;  %5305 = vmatpush.bf16.msrb.mxu3 %v7353_v4  ;;  %v12375_v43 = vld [vmem:[#allocation53_spill] sm:$0xff]  ;;  %v9525_v48 = vor.u32 %v10258_v8, %v9522_v31  ;;  %v7336_v23 = vld [vmem:[#allocation6 + $0x1a8] sm:$0xf] }
 0x21a   :  { %5247 = vmatpush.bf16.msrb.mxu1 %v9525_v48  ;;  %v10254_v48 = vld [vmem:[#allocation6 + $0x12a4] sm:$0xf] }
 0x21c   :  { %v4832_v5 = vpop.f32.mrf.mxu2 }
 0x21d   :  { %v4833_v27 = vadd.f32 %v4832_v5, %v4804_v55  ;;  %v4861_v40 = vpop.f32.mrf.mxu3  ;;  %v4777_v13 = vpop.f32.mrf.mxu0  ;;  %v7208_v55 = vld [vmem:[#allocation6 + $0xa8] sm:$0xf]  ;;  %v9381_v5 = vor.u32 %v10222_v62, %v9378_v36  ;;  %v9362_v36 = vld [vmem:[#allocation6 + $0x1190] sm:$0xf0] }
 0x21e   :  { %v4778_v15 = vadd.f32 %v4777_v13, %v11219_v61  ;;  %v4806_v30 = vpop.f32.mrf.mxu1  ;;  %v7209_v61 = vor.u32 %v9681_v7, %v7208_v55 }
 0x21f   :  { %v11261_v44 = vadd.f32 %v4861_v40, %v4833_v27  ;;  %v7337_v27 = vor.u32 %v9713_v42, %v7336_v23  ;;  %5219 = vmatpush.bf16.msrb.mxu0 %v9381_v5  ;;  %v9709_v23 = vld [vmem:[#allocation6 + $0x194] sm:$0xf0] }
 0x220   :  { %v4807_v26 = vadd.f32 %v4806_v30, %v4778_v15  ;;  %5008 = vmatmul.bf16.gmra.mxu0 %v12375_v43  ;;  %5037 = vmatmul.bf16.gmra.mxu1 %v12376_v21  ;;  %v9677_v21 = vld [vmem:[#allocation6 + $0x94] sm:$0xf0]  ;;  %v10218_v43 = vld [vmem:[#allocation6 + $0x1184] sm:$0xf] }
 0x221   :  { %5066 = vmatmul.bf16.gmra.mxu2 %v12377_v24  ;;  %5306 = vmatpush.bf16.msrb.mxu3 %v7337_v27  ;;  %v7192_v24 = vld [vmem:[#allocation6 + $0x88] sm:$0xf] }
 0x222   :  { %5095 = vmatmul.bf16.gmra.mxu3 %v12378_v14  ;;  %5277 = vmatpush.bf16.msrb.mxu2 %v7209_v61  ;;  %v9506_v14 = vld [vmem:[#allocation6 + $0x12b0] sm:$0xf0]  ;;  %v7193_v62 = vor.u32 %v9677_v21, %v7192_v24  ;;  %v9365_v61 = vor.u32 %v10218_v43, %v9362_v36 }
 0x223   :  { %v9509_v7 = vor.u32 %v10254_v48, %v9506_v14  ;;  %v9490_v21 = vld [vmem:[#allocation6 + $0x1290] sm:$0xf0]  ;;  %v12381_v48 = vld [vmem:[#allocation59_spill] sm:$0xff] }
 0x224   :  { %v4835_v4 = vpop.f32.mrf.mxu2  ;;  %5220 = vmatpush.bf16.msrb.mxu0 %v9365_v61  ;;  %v12380_v43 = vld [vmem:[#allocation58_spill] sm:$0xff] }
 0x225   :  { %v4836_v40 = vadd.f32 %v4835_v4, %v4807_v26  ;;  %v4864_v13 = vpop.f32.mrf.mxu3  ;;  %v4779_v15 = vpop.f32.mrf.mxu0  ;;  %v7320_v26 = vld [vmem:[#allocation6 + $0x188] sm:$0xf]  ;;  %5248 = vmatpush.bf16.msrb.mxu1 %v9509_v7  ;;  %v9673_v7 = vld [vmem:[#allocation6 + $0x74] sm:$0xf0]  ;;  %v9346_v36 = vld [vmem:[#allocation6 + $0x1170] sm:$0xf0] }
 0x226   :  { %v4780_v30 = vadd.f32 %v4779_v15, %v11228_v35  ;;  %v4808_v8 = vpop.f32.mrf.mxu1  ;;  %v7321_v42 = vor.u32 %v9709_v23, %v7320_v26  ;;  %5278 = vmatpush.bf16.msrb.mxu2 %v7193_v62  ;;  %v10250_v15 = vld [vmem:[#allocation6 + $0x1284] sm:$0xf]  ;;  %v7304_v26 = vld [vmem:[#allocation6 + $0x168] sm:$0xf]  ;;  %v9705_v23 = vld [vmem:[#allocation6 + $0x174] sm:$0xf0] }
 0x227   :  { %v11268_v31 = vadd.f32 %v4864_v13, %v4836_v40  ;;  %v10214_v62 = vld [vmem:[#allocation6 + $0x1164] sm:$0xf] }
 0x228   :  { %v4809_v55 = vadd.f32 %v4808_v8, %v4780_v30  ;;  %5307 = vmatpush.bf16.msrb.mxu3 %v7321_v42  ;;  %v12379_v30 = vld [vmem:[#allocation57_spill] sm:$0xff]  ;;  %v9493_v8 = vor.u32 %v10250_v15, %v9490_v21  ;;  %v9349_v42 = vor.u32 %v10214_v62, %v9346_v36  ;;  %v10246_v21 = vld [vmem:[#allocation6 + $0x1264] sm:$0xf]  ;;  %v9330_v36 = vld [vmem:[#allocation6 + $0x1150] sm:$0xf0] }
 0x22a   :  { %5249 = vmatpush.bf16.msrb.mxu1 %v9493_v8  ;;  %5221 = vmatpush.bf16.msrb.mxu0 %v9349_v42  ;;  %v9474_v8 = vld [vmem:[#allocation6 + $0x1270] sm:$0xf0] }
 0x22c   :  { %v4837_v35 = vpop.f32.mrf.mxu2 }
 0x22d   :  { %v4838_v4 = vadd.f32 %v4837_v35, %v4809_v55  ;;  %v4866_v5 = vpop.f32.mrf.mxu3  ;;  %v4878_v27 = vpop.f32.mrf.mxu0  ;;  %v7176_v55 = vld [vmem:[#allocation6 + $0x68] sm:$0xf]  ;;  %v7305_v35 = vor.u32 %v9705_v23, %v7304_v26  ;;  %v9701_v26 = vld [vmem:[#allocation6 + $0x154] sm:$0xf0] }
 0x22e   :  { %v4879_v40 = vadd.f32 %v4878_v27, %v11238_v22  ;;  %v4907_v14 = vpop.f32.mrf.mxu1  ;;  %v7177_v22 = vor.u32 %v9673_v7, %v7176_v55  ;;  %v9477_v7 = vor.u32 %v10246_v21, %v9474_v8  ;;  %v12384_v8 = vld [vmem:[#allocation63_spill] sm:$0xff] }
 0x22f   :  { %v11271_v13 = vadd.f32 %v4866_v5, %v4838_v4  ;;  %5308 = vmatpush.bf16.msrb.mxu3 %v7305_v35 }
 0x230   :  { %v4908_v24 = vadd.f32 %v4907_v14, %v4879_v40  ;;  %5109 = vmatmul.bf16.vlgmr.msra.gmra.mxu0 %v12379_v30  ;;  %5138 = vmatmul.bf16.vlgmr.msra.gmra.mxu1 %v12380_v43  ;;  %v10210_v43 = vld [vmem:[#allocation6 + $0x1144] sm:$0xf] }
 0x231   :  { %5167 = vmatmul.bf16.vlgmr.msra.gmra.mxu2 %v12381_v48  ;;  %v9669_v48 = vld [vmem:[#allocation6 + $0x54] sm:$0xf0]  ;;  %5250 = vmatpush.bf16.msrb.mxu1 %v9477_v7 }
 0x232   :  { %5196 = vmatmul.bf16.vlgmr.msra.gmra.mxu3 %v10987_v9  ;;  %5279 = vmatpush.bf16.msrb.mxu2 %v7177_v22  ;;  %v7160_v9 = vld [vmem:[#allocation6 + $0x48] sm:$0xf]  ;;  %v9333_v22 = vor.u32 %v10210_v43, %v9330_v36  ;;  %v12383_v43 = vld [vmem:[#allocation62_spill] sm:$0xff] }
 0x233   :  { %v7161_v62 = vor.u32 %v9669_v48, %v7160_v9  ;;  %v9458_v9 = vld [vmem:[#allocation6 + $0x1250] sm:$0xf0]  ;;  %v9665_v7 = vld [vmem:[#allocation6 + $0x34] sm:$0xf0] }
 0x234   :  { %v4936_v61 = vpop.f32.mrf.mxu2  ;;  %5222 = vmatpush.bf16.msrb.mxu0 %v9333_v22  ;;  %v9314_v36 = vld [vmem:[#allocation6 + $0x1130] sm:$0xf0] }
 0x235   :  { %v4937_v4 = vadd.f32 %v4936_v61, %v4908_v24  ;;  %v4965_v5 = vpop.f32.mrf.mxu3  ;;  %v4880_v27 = vpop.f32.mrf.mxu0  ;;  %v7288_v24 = vld [vmem:[#allocation6 + $0x148] sm:$0xf] }
 0x236   :  { %v4881_v40 = vadd.f32 %v4880_v27, %v11241_v34  ;;  %v4909_v14 = vpop.f32.mrf.mxu1  ;;  %v7289_v23 = vor.u32 %v9701_v26, %v7288_v24  ;;  %5280 = vmatpush.bf16.msrb.mxu2 %v7161_v62  ;;  %v10206_v62 = vld [vmem:[#allocation6 + $0x1124] sm:$0xf]  ;;  %v7272_v24 = vld [vmem:[#allocation6 + $0x128] sm:$0xf]  ;;  %v9697_v26 = vld [vmem:[#allocation6 + $0x134] sm:$0xf0] }
 0x237   :  { %v11278_v15 = vadd.f32 %v4965_v5, %v4937_v4 }
 0x238   :  { %v4910_v55 = vadd.f32 %v4909_v14, %v4881_v40  ;;  %5309 = vmatpush.bf16.msrb.mxu3 %v7289_v23  ;;  %v10242_v40 = vld [vmem:[#allocation6 + $0x1244] sm:$0xf]  ;;  %v12382_v14 = vld [vmem:[#allocation61_spill] sm:$0xff]  ;;  %v9317_v23 = vor.u32 %v10206_v62, %v9314_v36  ;;  %v9298_v36 = vld [vmem:[#allocation6 + $0x1110] sm:$0xf0] }
 0x239   :  { %v9461_v21 = vor.u32 %v10242_v40, %v9458_v9  ;;  %v10238_v9 = vld [vmem:[#allocation6 + $0x1224] sm:$0xf] }
 0x23a   :  { %5223 = vmatpush.bf16.msrb.mxu0 %v9317_v23  ;;  %v9426_v23 = vld [vmem:[#allocation6 + $0x1210] sm:$0xf0] }
 0x23b   :  { %5251 = vmatpush.bf16.msrb.mxu1 %v9461_v21  ;;  %v9442_v21 = vld [vmem:[#allocation6 + $0x1230] sm:$0xf0] }
 0x23c   :  { %v4938_v34 = vpop.f32.mrf.mxu2 }
 0x23d   :  { %v4939_v61 = vadd.f32 %v4938_v34, %v4910_v55  ;;  %v4967_v42 = vpop.f32.mrf.mxu3  ;;  %v4883_v35 = vpop.f32.mrf.mxu0  ;;  %v7144_v55 = vld [vmem:[#allocation6 + $0x28] sm:$0xf]  ;;  %v7273_v34 = vor.u32 %v9697_v26, %v7272_v24  ;;  %v9693_v24 = vld [vmem:[#allocation6 + $0x114] sm:$0xf0] }
 0x23e   :  { %v4884_v4 = vadd.f32 %v4883_v35, %v11248_v12  ;;  %v4912_v5 = vpop.f32.mrf.mxu1  ;;  %v7145_v12 = vor.u32 %v9665_v7, %v7144_v55  ;;  %v9445_v7 = vor.u32 %v10238_v9, %v9442_v21  ;;  %v12385_v9 = vld [vmem:[#allocation65_spill] sm:$0xff]  ;;  %v12387_v21 = vld [vmem:[#allocation67_spill] sm:$0xff] }
 0x23f   :  { %v11281_v27 = vadd.f32 %v4967_v42, %v4939_v61  ;;  %5310 = vmatpush.bf16.msrb.mxu3 %v7273_v34 }
 0x240   :  { %v4913_v48 = vadd.f32 %v4912_v5, %v4884_v4  ;;  %5114 = vmatmul.bf16.gmra.mxu0 %v12382_v14  ;;  %5143 = vmatmul.bf16.gmra.mxu1 %v12383_v43  ;;  %v10202_v43 = vld [vmem:[#allocation6 + $0x1104] sm:$0xf]  ;;  %v8616_v14 = vld [vmem:[#allocation6 + $0xba8] sm:$0xf] }
 0x241   :  { %5172 = vmatmul.bf16.gmra.mxu2 %v12384_v8  ;;  %v9661_v8 = vld [vmem:[#allocation6 + $0x14] sm:$0xf0]  ;;  %5252 = vmatpush.bf16.msrb.mxu1 %v9445_v7  ;;  %v7752_v7 = vld [vmem:[#allocation6 + $0x4e8] sm:$0xf] }
 0x242   :  { %5201 = vmatmul.bf16.gmra.mxu3 %v11021_v63  ;;  %5281 = vmatpush.bf16.msrb.mxu2 %v7145_v12  ;;  %v7128_v63 = vld [vmem:[#allocation6 + $0x8] sm:$0xf]  ;;  %v9301_v12 = vor.u32 %v10202_v43, %v9298_v36  ;;  %v12386_v43 = vld [vmem:[#allocation66_spill] sm:$0xff] }
 0x243   :  { %v7129_v62 = vor.u32 %v9661_v8, %v7128_v63 }
 0x244   :  { %v4941_v22 = vpop.f32.mrf.mxu2  ;;  %5224 = vmatpush.bf16.msrb.mxu0 %v9301_v12 }
 0x245   :  { %v4942_v61 = vadd.f32 %v4941_v22, %v4913_v48  ;;  %v4970_v42 = vpop.f32.mrf.mxu3  ;;  %v4885_v35 = vpop.f32.mrf.mxu0  ;;  %v7256_v48 = vld [vmem:[#allocation6 + $0x108] sm:$0xf]  ;;  %v10234_v22 = vld [vmem:[#allocation6 + $0x1204] sm:$0xf] }
 0x246   :  { %v4886_v4 = vadd.f32 %v4885_v35, %v11251_v52  ;;  %v4914_v5 = vpop.f32.mrf.mxu1  ;;  %v7257_v26 = vor.u32 %v9693_v24, %v7256_v48  ;;  %5282 = vmatpush.bf16.msrb.mxu2 %v7129_v62  ;;  %v9429_v35 = vor.u32 %v10234_v22, %v9426_v23  ;;  %v7496_v62 = vld [vmem:[#allocation6 + $0x2e8] sm:$0xf]  ;;  %v9753_v48 = vld [vmem:[#allocation6 + $0x2f4] sm:$0xf0] }
 0x247   :  { %v11288_v40 = vadd.f32 %v4970_v42, %v4942_v61  ;;  %v7880_v24 = vld [vmem:[#allocation6 + $0x5e8] sm:$0xf] }
 0x248   :  { %v4915_v55 = vadd.f32 %v4914_v5, %v4886_v4  ;;  %5311 = vmatpush.bf16.msrb.mxu3 %v7257_v26  ;;  %5253 = vmatpush.bf16.msrb.mxu1 %v9429_v35  ;;  %v7497_v26 = vor.u32 %v9753_v48, %v7496_v62  ;;  %v9749_v48 = vld [vmem:[#allocation6 + $0x2d4] sm:$0xf0] }
 0x24a   :  { %5333 = vmatpush.bf16.msra.mxu0 %v7497_v26 }
 0x24c   :  { %v4943_v52 = vpop.f32.mrf.mxu2 }
 0x24d   :  { %v4944_v34 = vadd.f32 %v4943_v52, %v4915_v55  ;;  %v4972_v61 = vpop.f32.mrf.mxu3  ;;  %v4888_v42 = vpop.f32.mrf.mxu0  ;;  %v9817_v55 = vld [vmem:[#allocation6 + $0x4f4] sm:$0xf0] }
 0x24e   :  { %v4889_v4 = vadd.f32 %v4888_v42, %v11258_v20  ;;  %v4917_v5 = vpop.f32.mrf.mxu1  ;;  %v7753_v36 = vor.u32 %v9817_v55, %v7752_v7  ;;  %v9849_v20 = vld [vmem:[#allocation6 + $0x5f4] sm:$0xf0] }
 0x24f   :  { %v11291_v63 = vadd.f32 %v4972_v61, %v4944_v34  ;;  %v7881_v52 = vor.u32 %v9849_v20, %v7880_v24  ;;  %v9845_v24 = vld [vmem:[#allocation6 + $0x5d4] sm:$0xf0] }
 0x250   :  { %v4918_v8 = vadd.f32 %v4917_v5, %v4889_v4  ;;  %5119 = vmatmul.bf16.gmra.mxu0 %v12385_v9  ;;  %5148 = vmatmul.bf16.gmra.mxu1 %v12386_v43  ;;  %v7624_v4 = vld [vmem:[#allocation6 + $0x3e8] sm:$0xf]  ;;  %v9785_v5 = vld [vmem:[#allocation6 + $0x3f4] sm:$0xf0] }
 0x251   :  { %5177 = vmatmul.bf16.gmra.mxu2 %v12387_v21  ;;  %5420 = vmatpush.bf16.msra.mxu3 %v7881_v52  ;;  %v7625_v55 = vor.u32 %v9785_v5, %v7624_v4  ;;  %v9813_v21 = vld [vmem:[#allocation6 + $0x4d4] sm:$0xf0]  ;;  %v7480_v43 = vld [vmem:[#allocation6 + $0x2c8] sm:$0xf]  ;;  %v12390_v5 = vld [vmem:[#allocation71_spill] sm:$0xff] }
 0x252   :  { %5206 = vmatmul.bf16.gmra.mxu3 %v11055_v10  ;;  %5391 = vmatpush.bf16.msra.mxu2 %v7753_v36  ;;  %v7736_v10 = vld [vmem:[#allocation6 + $0x4c8] sm:$0xf]  ;;  %v7481_v36 = vor.u32 %v9749_v48, %v7480_v43  ;;  %v12389_v43 = vld [vmem:[#allocation70_spill] sm:$0xff] }
 0x253   :  { %v7737_v62 = vor.u32 %v9813_v21, %v7736_v10  ;;  %5362 = vmatpush.bf16.msra.mxu1 %v7625_v55  ;;  %v9781_v10 = vld [vmem:[#allocation6 + $0x3d4] sm:$0xf0] }
 0x254   :  { %v4946_v12 = vpop.f32.mrf.mxu2  ;;  %5334 = vmatpush.bf16.msra.mxu0 %v7481_v36  ;;  %v9809_v55 = vld [vmem:[#allocation6 + $0x4b4] sm:$0xf0] }
 0x255   :  { %v4947_v22 = vadd.f32 %v4946_v12, %v4918_v8  ;;  %v4975_v23 = vpop.f32.mrf.mxu3  ;;  %v4890_v34 = vpop.f32.mrf.mxu0  ;;  %v7864_v8 = vld [vmem:[#allocation6 + $0x5c8] sm:$0xf]  ;;  %v9745_v48 = vld [vmem:[#allocation6 + $0x2b4] sm:$0xf0] }
 0x256   :  { %v4891_v61 = vadd.f32 %v4890_v34, %v11261_v44  ;;  %v4919_v42 = vpop.f32.mrf.mxu1  ;;  %v7865_v20 = vor.u32 %v9845_v24, %v7864_v8  ;;  %5392 = vmatpush.bf16.msra.mxu2 %v7737_v62  ;;  %v7464_v62 = vld [vmem:[#allocation6 + $0x2a8] sm:$0xf]  ;;  %v9841_v24 = vld [vmem:[#allocation6 + $0x5b4] sm:$0xf0] }
 0x257   :  { %v11298_v35 = vadd.f32 %v4975_v23, %v4947_v22  ;;  %v7848_v8 = vld [vmem:[#allocation6 + $0x5a8] sm:$0xf] }
 0x258   :  { %v4920_v7 = vadd.f32 %v4919_v42, %v4891_v61  ;;  %5421 = vmatpush.bf16.msra.mxu3 %v7865_v20  ;;  %v7608_v61 = vld [vmem:[#allocation6 + $0x3c8] sm:$0xf]  ;;  %v12388_v42 = vld [vmem:[#allocation69_spill] sm:$0xff]  ;;  %v7465_v20 = vor.u32 %v9745_v48, %v7464_v62  ;;  %v9741_v48 = vld [vmem:[#allocation6 + $0x294] sm:$0xf0] }
 0x259   :  { %v7609_v4 = vor.u32 %v9781_v10, %v7608_v61  ;;  %v7592_v10 = vld [vmem:[#allocation6 + $0x3a8] sm:$0xf] }
 0x25a   :  { %5335 = vmatpush.bf16.msra.mxu0 %v7465_v20 }
 0x25b   :  { %5363 = vmatpush.bf16.msra.mxu1 %v7609_v4  ;;  %v9777_v4 = vld [vmem:[#allocation6 + $0x3b4] sm:$0xf0] }
 0x25c   :  { %v4948_v44 = vpop.f32.mrf.mxu2 }
 0x25d   :  { %v4949_v12 = vadd.f32 %v4948_v44, %v4920_v7  ;;  %v4977_v26 = vpop.f32.mrf.mxu3  ;;  %v4893_v52 = vpop.f32.mrf.mxu0  ;;  %v7720_v7 = vld [vmem:[#allocation6 + $0x4a8] sm:$0xf]  ;;  %v7849_v44 = vor.u32 %v9841_v24, %v7848_v8  ;;  %v9837_v8 = vld [vmem:[#allocation6 + $0x594] sm:$0xf0] }
 0x25e   :  { %v4894_v22 = vadd.f32 %v4893_v52, %v11268_v31  ;;  %v4922_v23 = vpop.f32.mrf.mxu1  ;;  %v7721_v31 = vor.u32 %v9809_v55, %v7720_v7  ;;  %v7593_v55 = vor.u32 %v9777_v4, %v7592_v10  ;;  %v12393_v4 = vld [vmem:[#allocation12_spill] sm:$0xff] }
 0x25f   :  { %v11301_v34 = vadd.f32 %v4977_v26, %v4949_v12  ;;  %5422 = vmatpush.bf16.msra.mxu3 %v7849_v44 }
 0x260   :  { %v4923_v21 = vadd.f32 %v4922_v23, %v4894_v22  ;;  %5124 = vmatmul.bf16.gmra.mxu0 %v12388_v42  ;;  %5153 = vmatmul.bf16.gmra.mxu1 %v12389_v43  ;;  %v7448_v43 = vld [vmem:[#allocation6 + $0x288] sm:$0xf] }
 0x261   :  { %5182 = vmatmul.bf16.gmra.mxu2 %v12390_v5  ;;  %v9805_v5 = vld [vmem:[#allocation6 + $0x494] sm:$0xf0]  ;;  %5364 = vmatpush.bf16.msra.mxu1 %v7593_v55 }
 0x262   :  { %5211 = vmatmul.bf16.gmra.mxu3 %v11089_v11  ;;  %5393 = vmatpush.bf16.msra.mxu2 %v7721_v31  ;;  %v7704_v11 = vld [vmem:[#allocation6 + $0x488] sm:$0xf]  ;;  %v7449_v31 = vor.u32 %v9741_v48, %v7448_v43  ;;  %v12392_v43 = vld [vmem:[#allocation74_spill] sm:$0xff] }
 0x263   :  { %v7705_v62 = vor.u32 %v9805_v5, %v7704_v11  ;;  %v9773_v11 = vld [vmem:[#allocation6 + $0x394] sm:$0xf0] }
 0x264   :  { %v4951_v36 = vpop.f32.mrf.mxu2  ;;  %5336 = vmatpush.bf16.msra.mxu0 %v7449_v31  ;;  %v9801_v55 = vld [vmem:[#allocation6 + $0x474] sm:$0xf0] }
 0x265   :  { %v4952_v12 = vadd.f32 %v4951_v36, %v4923_v21  ;;  %v4980_v26 = vpop.f32.mrf.mxu3  ;;  %v4895_v52 = vpop.f32.mrf.mxu0  ;;  %v7832_v21 = vld [vmem:[#allocation6 + $0x588] sm:$0xf]  ;;  %v9737_v48 = vld [vmem:[#allocation6 + $0x274] sm:$0xf0] }
 0x266   :  { %v4896_v22 = vadd.f32 %v4895_v52, %v11271_v13  ;;  %v4924_v23 = vpop.f32.mrf.mxu1  ;;  %v7833_v24 = vor.u32 %v9837_v8, %v7832_v21  ;;  %5394 = vmatpush.bf16.msra.mxu2 %v7705_v62  ;;  %v7432_v62 = vld [vmem:[#allocation6 + $0x268] sm:$0xf]  ;;  %v9833_v8 = vld [vmem:[#allocation6 + $0x574] sm:$0xf0] }
 0x267   :  { %v11308_v61 = vadd.f32 %v4980_v26, %v4952_v12  ;;  %v7816_v21 = vld [vmem:[#allocation6 + $0x568] sm:$0xf] }
 0x268   :  { %v4925_v7 = vadd.f32 %v4924_v23, %v4896_v22  ;;  %5423 = vmatpush.bf16.msra.mxu3 %v7833_v24  ;;  %v7576_v22 = vld [vmem:[#allocation6 + $0x388] sm:$0xf]  ;;  %v12391_v23 = vld [vmem:[#allocation73_spill] sm:$0xff]  ;;  %v7433_v24 = vor.u32 %v9737_v48, %v7432_v62  ;;  %v9733_v48 = vld [vmem:[#allocation6 + $0x254] sm:$0xf0] }
 0x269   :  { %v7577_v10 = vor.u32 %v9773_v11, %v7576_v22  ;;  %v7560_v11 = vld [vmem:[#allocation6 + $0x368] sm:$0xf] }
 0x26a   :  { %5337 = vmatpush.bf16.msra.mxu0 %v7433_v24 }
 0x26b   :  { %5365 = vmatpush.bf16.msra.mxu1 %v7577_v10  ;;  %v9769_v10 = vld [vmem:[#allocation6 + $0x374] sm:$0xf0] }
 0x26c   :  { %v4953_v13 = vpop.f32.mrf.mxu2 }
 0x26d   :  { %v4954_v36 = vadd.f32 %v4953_v13, %v4925_v7  ;;  %v4982_v20 = vpop.f32.mrf.mxu3  ;;  %v4994_v44 = vpop.f32.mrf.mxu0  ;;  %v7688_v7 = vld [vmem:[#allocation6 + $0x468] sm:$0xf]  ;;  %v7817_v13 = vor.u32 %v9833_v8, %v7816_v21  ;;  %v9829_v21 = vld [vmem:[#allocation6 + $0x554] sm:$0xf0] }
 0x26e   :  { %v4995_v12 = vadd.f32 %v4994_v44, %v11278_v15  ;;  %v5023_v26 = vpop.f32.mrf.mxu1  ;;  %v7689_v15 = vor.u32 %v9801_v55, %v7688_v7  ;;  %v7561_v55 = vor.u32 %v9769_v10, %v7560_v11  ;;  %v12396_v10 = vld [vmem:[#allocation16_spill] sm:$0xff] }
 0x26f   :  { %v11311_v52 = vadd.f32 %v4982_v20, %v4954_v36  ;;  %5424 = vmatpush.bf16.msra.mxu3 %v7817_v13 }
 0x270   :  { %v5024_v5 = vadd.f32 %v5023_v26, %v4995_v12  ;;  %5225 = vmatmul.bf16.vlgmr.msrb.gmra.mxu0 %v12391_v23  ;;  %5254 = vmatmul.bf16.vlgmr.msrb.gmra.mxu1 %v12392_v43  ;;  %v7416_v43 = vld [vmem:[#allocation6 + $0x248] sm:$0xf] }
 0x271   :  { %5283 = vmatmul.bf16.vlgmr.msrb.gmra.mxu2 %v12393_v4  ;;  %v9797_v4 = vld [vmem:[#allocation6 + $0x454] sm:$0xf0]  ;;  %5366 = vmatpush.bf16.msra.mxu1 %v7561_v55 }
 0x272   :  { %5312 = vmatmul.bf16.vlgmr.msrb.gmra.mxu3 %v10381_v53  ;;  %5395 = vmatpush.bf16.msra.mxu2 %v7689_v15  ;;  %v7672_v53 = vld [vmem:[#allocation6 + $0x448] sm:$0xf]  ;;  %v7417_v15 = vor.u32 %v9733_v48, %v7416_v43  ;;  %v12395_v43 = vld [vmem:[#allocation77_spill] sm:$0xff]  ;;  %v9793_v55 = vld [vmem:[#allocation6 + $0x434] sm:$0xf0] }
 0x273   :  { %v7673_v62 = vor.u32 %v9797_v4, %v7672_v53  ;;  %v9765_v53 = vld [vmem:[#allocation6 + $0x354] sm:$0xf0] }
 0x274   :  { %v5052_v31 = vpop.f32.mrf.mxu2  ;;  %5338 = vmatpush.bf16.msra.mxu0 %v7417_v15  ;;  %v9729_v48 = vld [vmem:[#allocation6 + $0x234] sm:$0xf0] }
 0x275   :  { %v5053_v36 = vadd.f32 %v5052_v31, %v5024_v5  ;;  %v5081_v20 = vpop.f32.mrf.mxu3  ;;  %v4996_v44 = vpop.f32.mrf.mxu0  ;;  %v7800_v5 = vld [vmem:[#allocation6 + $0x548] sm:$0xf] }
 0x276   :  { %v4997_v12 = vadd.f32 %v4996_v44, %v11281_v27  ;;  %v5025_v26 = vpop.f32.mrf.mxu1  ;;  %v7801_v8 = vor.u32 %v9829_v21, %v7800_v5  ;;  %5396 = vmatpush.bf16.msra.mxu2 %v7673_v62  ;;  %v7400_v62 = vld [vmem:[#allocation6 + $0x228] sm:$0xf]  ;;  %v9825_v21 = vld [vmem:[#allocation6 + $0x534] sm:$0xf0] }
 0x277   :  { %v11318_v22 = vadd.f32 %v5081_v20, %v5053_v36  ;;  %v7784_v5 = vld [vmem:[#allocation6 + $0x528] sm:$0xf] }
 0x278   :  { %v5026_v7 = vadd.f32 %v5025_v26, %v4997_v12  ;;  %5425 = vmatpush.bf16.msra.mxu3 %v7801_v8  ;;  %v7544_v12 = vld [vmem:[#allocation6 + $0x348] sm:$0xf]  ;;  %v7401_v8 = vor.u32 %v9729_v48, %v7400_v62  ;;  %v9725_v48 = vld [vmem:[#allocation6 + $0x214] sm:$0xf0] }
 0x279   :  { %v12394_v26 = vld [vmem:[#allocation76_spill] sm:$0xff]  ;;  %v7545_v11 = vor.u32 %v9765_v53, %v7544_v12 }
 0x27a   :  { %5339 = vmatpush.bf16.msra.mxu0 %v7401_v8  ;;  %v7528_v53 = vld [vmem:[#allocation6 + $0x328] sm:$0xf]  ;;  %v9757_v8 = vld [vmem:[#allocation6 + $0x314] sm:$0xf0] }
 0x27b   :  { %5367 = vmatpush.bf16.msra.mxu1 %v7545_v11  ;;  %v9761_v11 = vld [vmem:[#allocation6 + $0x334] sm:$0xf0] }
 0x27c   :  { %v5054_v27 = vpop.f32.mrf.mxu2 }
 0x27d   :  { %v5055_v31 = vadd.f32 %v5054_v27, %v5026_v7  ;;  %v5083_v24 = vpop.f32.mrf.mxu3  ;;  %v4999_v13 = vpop.f32.mrf.mxu0  ;;  %v7656_v7 = vld [vmem:[#allocation6 + $0x428] sm:$0xf]  ;;  %v7785_v27 = vor.u32 %v9825_v21, %v7784_v5  ;;  %v9821_v5 = vld [vmem:[#allocation6 + $0x514] sm:$0xf0] }
 0x27e   :  { %v5000_v36 = vadd.f32 %v4999_v13, %v11288_v40  ;;  %v5028_v20 = vpop.f32.mrf.mxu1  ;;  %v7657_v40 = vor.u32 %v9793_v55, %v7656_v7  ;;  %v7529_v55 = vor.u32 %v9761_v11, %v7528_v53  ;;  %v12397_v53 = vld [vmem:[#allocation79_spill] sm:$0xff]  ;;  %v12399_v11 = vld [vmem:[#allocation20_spill] sm:$0xff] }
 0x27f   :  { %v11321_v44 = vadd.f32 %v5083_v24, %v5055_v31  ;;  %5426 = vmatpush.bf16.msra.mxu3 %v7785_v27 }
 0x280   :  { %v5029_v4 = vadd.f32 %v5028_v20, %v5000_v36  ;;  %5230 = vmatmul.bf16.gmra.mxu0 %v12394_v26  ;;  %5259 = vmatmul.bf16.gmra.mxu1 %v12395_v43  ;;  %v7384_v43 = vld [vmem:[#allocation6 + $0x208] sm:$0xf] }
 0x281   :  { %5288 = vmatmul.bf16.gmra.mxu2 %v12396_v10  ;;  %v9789_v10 = vld [vmem:[#allocation6 + $0x414] sm:$0xf0]  ;;  %5368 = vmatpush.bf16.msra.mxu1 %v7529_v55  ;;  %v8264_v55 = vld [vmem:[#allocation6 + $0x8e8] sm:$0xf] }
 0x282   :  { %5317 = vmatmul.bf16.gmra.mxu3 %v10417_v50  ;;  %5397 = vmatpush.bf16.msra.mxu2 %v7657_v40  ;;  %v7640_v50 = vld [vmem:[#allocation6 + $0x408] sm:$0xf]  ;;  %v7385_v40 = vor.u32 %v9725_v48, %v7384_v43 }
 0x283   :  { %v7641_v62 = vor.u32 %v9789_v10, %v7640_v50  ;;  %v12398_v43 = vld [vmem:[#allocation80_spill] sm:$0xff] }
 0x284   :  { %v5057_v15 = vpop.f32.mrf.mxu2  ;;  %5340 = vmatpush.bf16.msra.mxu0 %v7385_v40 }
 0x285   :  { %v5058_v31 = vadd.f32 %v5057_v15, %v5029_v4  ;;  %v5086_v24 = vpop.f32.mrf.mxu3  ;;  %v5001_v13 = vpop.f32.mrf.mxu0  ;;  %v7768_v4 = vld [vmem:[#allocation6 + $0x508] sm:$0xf] }
 0x286   :  { %v5002_v36 = vadd.f32 %v5001_v13, %v11291_v63  ;;  %v5030_v20 = vpop.f32.mrf.mxu1  ;;  %v7769_v21 = vor.u32 %v9821_v5, %v7768_v4  ;;  %5398 = vmatpush.bf16.msra.mxu2 %v7641_v62  ;;  %v7512_v15 = vld [vmem:[#allocation6 + $0x308] sm:$0xf]  ;;  %v9881_v4 = vld [vmem:[#allocation6 + $0x6f4] sm:$0xf0] }
 0x287   :  { %v11328_v12 = vadd.f32 %v5086_v24, %v5058_v31  ;;  %v7513_v13 = vor.u32 %v9757_v8, %v7512_v15  ;;  %v8008_v62 = vld [vmem:[#allocation6 + $0x6e8] sm:$0xf] }
 0x288   :  { %v5031_v7 = vadd.f32 %v5030_v20, %v5002_v36  ;;  %5427 = vmatpush.bf16.msra.mxu3 %v7769_v21  ;;  %v8392_v5 = vld [vmem:[#allocation6 + $0x9e8] sm:$0xf]  ;;  %v8009_v21 = vor.u32 %v9881_v4, %v8008_v62  ;;  %v9877_v4 = vld [vmem:[#allocation6 + $0x6d4] sm:$0xf0] }
 0x289   :  { %5369 = vmatpush.bf16.msra.mxu1 %v7513_v13 }
 0x28a   :  { %5449 = vmatpush.bf16.msrb.mxu0 %v8009_v21 }
 0x28c   :  { %v5059_v63 = vpop.f32.mrf.mxu2 }
 0x28d   :  { %v5060_v27 = vadd.f32 %v5059_v63, %v5031_v7  ;;  %v5088_v31 = vpop.f32.mrf.mxu3  ;;  %v5004_v24 = vpop.f32.mrf.mxu0  ;;  %v9945_v7 = vld [vmem:[#allocation6 + $0x8f4] sm:$0xf0] }
 0x28e   :  { %v5005_v36 = vadd.f32 %v5004_v24, %v11298_v35  ;;  %v5033_v20 = vpop.f32.mrf.mxu1  ;;  %v8265_v48 = vor.u32 %v9945_v7, %v8264_v55  ;;  %v9977_v35 = vld [vmem:[#allocation6 + $0x9f4] sm:$0xf0] }
 0x28f   :  { %v11331_v50 = vadd.f32 %v5088_v31, %v5060_v27  ;;  %v8393_v63 = vor.u32 %v9977_v35, %v8392_v5  ;;  %v9973_v5 = vld [vmem:[#allocation6 + $0x9d4] sm:$0xf0] }
 0x290   :  { %v5034_v10 = vadd.f32 %v5033_v20, %v5005_v36  ;;  %5235 = vmatmul.bf16.gmra.mxu0 %v12397_v53  ;;  %5264 = vmatmul.bf16.gmra.mxu1 %v12398_v43  ;;  %v8136_v36 = vld [vmem:[#allocation6 + $0x7e8] sm:$0xf]  ;;  %v9913_v20 = vld [vmem:[#allocation6 + $0x7f4] sm:$0xf0] }
 0x291   :  { %5293 = vmatmul.bf16.gmra.mxu2 %v12399_v11  ;;  %5536 = vmatpush.bf16.msrb.mxu3 %v8393_v63  ;;  %v8137_v7 = vor.u32 %v9913_v20, %v8136_v36  ;;  %v9941_v11 = vld [vmem:[#allocation6 + $0x8d4] sm:$0xf0]  ;;  %v7992_v43 = vld [vmem:[#allocation6 + $0x6c8] sm:$0xf] }
 0x292   :  { %5322 = vmatmul.bf16.gmra.mxu3 %v10453_v37  ;;  %5507 = vmatpush.bf16.msrb.mxu2 %v8265_v48  ;;  %v8248_v37 = vld [vmem:[#allocation6 + $0x8c8] sm:$0xf]  ;;  %v7993_v48 = vor.u32 %v9877_v4, %v7992_v43  ;;  %v9937_v36 = vld [vmem:[#allocation6 + $0x8b4] sm:$0xf0] }
 0x293   :  { %v8249_v62 = vor.u32 %v9941_v11, %v8248_v37  ;;  %5478 = vmatpush.bf16.msrb.mxu1 %v8137_v7  ;;  %v9909_v37 = vld [vmem:[#allocation6 + $0x7d4] sm:$0xf0]  ;;  %v8232_v43 = vld [vmem:[#allocation6 + $0x8a8] sm:$0xf] }
 0x294   :  { %v5062_v40 = vpop.f32.mrf.mxu2  ;;  %5450 = vmatpush.bf16.msrb.mxu0 %v7993_v48  ;;  %v7976_v20 = vld [vmem:[#allocation6 + $0x6a8] sm:$0xf] }
 0x295   :  { %v5063_v15 = vadd.f32 %v5062_v40, %v5034_v10  ;;  %v5091_v8 = vpop.f32.mrf.mxu3  ;;  %v5006_v27 = vpop.f32.mrf.mxu0  ;;  %v8376_v10 = vld [vmem:[#allocation6 + $0x9c8] sm:$0xf] }
 0x296   :  { %v5007_v31 = vadd.f32 %v5006_v27, %v11301_v34  ;;  %v5035_v24 = vpop.f32.mrf.mxu1  ;;  %v8377_v35 = vor.u32 %v9973_v5, %v8376_v10  ;;  %5508 = vmatpush.bf16.msrb.mxu2 %v8249_v62  ;;  %v8360_v7 = vld [vmem:[#allocation6 + $0x9a8] sm:$0xf]  ;;  %v9969_v62 = vld [vmem:[#allocation6 + $0x9b4] sm:$0xf0] }
 0x297   :  { %v11338_v13 = vadd.f32 %v5091_v8, %v5063_v15  ;;  %v8361_v5 = vor.u32 %v9969_v62, %v8360_v7  ;;  %v9965_v7 = vld [vmem:[#allocation6 + $0x994] sm:$0xf0]  ;;  %v8504_v53 = vld [vmem:[#allocation6 + $0xac8] sm:$0xf] }
 0x298   :  { %v5036_v55 = vadd.f32 %v5035_v24, %v5007_v31  ;;  %5537 = vmatpush.bf16.msrb.mxu3 %v8377_v35  ;;  %v8120_v31 = vld [vmem:[#allocation6 + $0x7c8] sm:$0xf] }
 0x299   :  { %v8121_v24 = vor.u32 %v9909_v37, %v8120_v31 }
 0x29b   :  { %5479 = vmatpush.bf16.msrb.mxu1 %v8121_v24  ;;  %v8216_v24 = vld [vmem:[#allocation6 + $0x888] sm:$0xf] }
 0x29c   :  { %v5064_v34 = vpop.f32.mrf.mxu2  ;;  %5538 = vmatpush.bf16.msrb.mxu3 %v8361_v5 }
 0x29d   :  { %v5065_v40 = vadd.f32 %v5064_v34, %v5036_v55  ;;  %v5093_v21 = vpop.f32.mrf.mxu3  ;;  %v5009_v63 = vpop.f32.mrf.mxu0  ;;  %v9873_v55 = vld [vmem:[#allocation6 + $0x6b4] sm:$0xf0] }
 0x29e   :  { %v5010_v15 = vadd.f32 %v5009_v63, %v11308_v61  ;;  %v5038_v8 = vpop.f32.mrf.mxu1  ;;  %v8233_v61 = vor.u32 %v9937_v36, %v8232_v43  ;;  %v7977_v10 = vor.u32 %v9873_v55, %v7976_v20  ;;  %v9933_v43 = vld [vmem:[#allocation6 + $0x894] sm:$0xf0]  ;;  %v7960_v36 = vld [vmem:[#allocation6 + $0x688] sm:$0xf] }
 0x29f   :  { %v11341_v27 = vadd.f32 %v5093_v21, %v5065_v40  ;;  %v8217_v20 = vor.u32 %v9933_v43, %v8216_v24  ;;  %v9869_v55 = vld [vmem:[#allocation6 + $0x694] sm:$0xf0]  ;;  %v8328_v43 = vld [vmem:[#allocation6 + $0x968] sm:$0xf] }
 0x2a0   :  { %v5039_v11 = vadd.f32 %v5038_v8, %v5010_v15  ;;  %5240 = vmatmul.bf16.gmra.mxu0 %v11091_v41  ;;  %5269 = vmatmul.bf16.gmra.mxu1 %v11093_v60  ;;  %v8104_v15 = vld [vmem:[#allocation6 + $0x7a8] sm:$0xf]  ;;  %v9905_v8 = vld [vmem:[#allocation6 + $0x7b4] sm:$0xf0] }
 0x2a1   :  { %5298 = vmatmul.bf16.gmra.mxu2 %v10487_v16  ;;  %5451 = vmatpush.bf16.msrb.mxu0 %v7977_v10  ;;  %v8105_v37 = vor.u32 %v9905_v8, %v8104_v15  ;;  %v8200_v15 = vld [vmem:[#allocation6 + $0x868] sm:$0xf]  ;;  %v9929_v8 = vld [vmem:[#allocation6 + $0x874] sm:$0xf0] }
 0x2a2   :  { %5327 = vmatmul.bf16.gmra.mxu3 %v10489_v17  ;;  %5509 = vmatpush.bf16.msrb.mxu2 %v8233_v61  ;;  %v7961_v61 = vor.u32 %v9869_v55, %v7960_v36  ;;  %v9865_v24 = vld [vmem:[#allocation6 + $0x674] sm:$0xf0]  ;;  %v8280_v60 = vld [vmem:[#allocation6 + $0x908] sm:$0xf] }
 0x2a3   :  { %5480 = vmatpush.bf16.msrb.mxu1 %v8105_v37  ;;  %v8201_v37 = vor.u32 %v9929_v8, %v8200_v15  ;;  %v9961_v36 = vld [vmem:[#allocation6 + $0x974] sm:$0xf0] }
 0x2a4   :  { %v5067_v4 = vpop.f32.mrf.mxu2  ;;  %v9861_v8 = vld [vmem:[#allocation6 + $0x654] sm:$0xf0] }
 0x2a5   :  { %v5068_v48 = vadd.f32 %v5067_v4, %v5039_v11  ;;  %v5096_v35 = vpop.f32.mrf.mxu3  ;;  %v5011_v34 = vpop.f32.mrf.mxu0  ;;  %v8344_v11 = vld [vmem:[#allocation6 + $0x988] sm:$0xf]  ;;  %5452 = vmatpush.bf16.msrb.mxu0 %v7961_v61  ;;  %v9853_v16 = vld [vmem:[#allocation6 + $0x614] sm:$0xf0] }
 0x2a6   :  { %v5012_v40 = vadd.f32 %v5011_v34, %v11311_v52  ;;  %v5040_v21 = vpop.f32.mrf.mxu1  ;;  %v8345_v62 = vor.u32 %v9965_v7, %v8344_v11  ;;  %5510 = vmatpush.bf16.msrb.mxu2 %v8217_v20  ;;  %v8088_v34 = vld [vmem:[#allocation6 + $0x788] sm:$0xf]  ;;  %v8329_v11 = vor.u32 %v9961_v36, %v8328_v43  ;;  %v10069_v41 = vld [vmem:[#allocation6 + $0xcd4] sm:$0xf0] }
 0x2a7   :  { %v11348_v63 = vadd.f32 %v5096_v35, %v5068_v48 }
 0x2a8   :  { %v5041_v31 = vadd.f32 %v5040_v21, %v5012_v40  ;;  %5539 = vmatpush.bf16.msrb.mxu3 %v8345_v62  ;;  %v9901_v40 = vld [vmem:[#allocation6 + $0x794] sm:$0xf0] }
 0x2a9   :  { %v8089_v21 = vor.u32 %v9901_v40, %v8088_v34  ;;  %v8184_v34 = vld [vmem:[#allocation6 + $0x848] sm:$0xf]  ;;  %v9925_v40 = vld [vmem:[#allocation6 + $0x854] sm:$0xf0] }
 0x2aa   :  { %5511 = vmatpush.bf16.msrb.mxu2 %v8201_v37  ;;  %v8185_v15 = vor.u32 %v9925_v40, %v8184_v34  ;;  %v7912_v40 = vld [vmem:[#allocation6 + $0x628] sm:$0xf] }
 0x2ab   :  { %5481 = vmatpush.bf16.msrb.mxu1 %v8089_v21  ;;  %v7928_v21 = vld [vmem:[#allocation6 + $0x648] sm:$0xf] }
 0x2ac   :  { %v5069_v52 = vpop.f32.mrf.mxu2  ;;  %5540 = vmatpush.bf16.msrb.mxu3 %v8329_v11 }
 0x2ad   :  { %v5070_v4 = vadd.f32 %v5069_v52, %v5041_v31  ;;  %v5098_v10 = vpop.f32.mrf.mxu3  ;;  %v11350_v5 = vpop.f32.mrf.mxu0  ;;  %v7944_v31 = vld [vmem:[#allocation6 + $0x668] sm:$0xf] }
 0x2ae   :  { %v11352_v48 = vpop.f32.mrf.mxu1  ;;  %v7945_v55 = vor.u32 %v9865_v24, %v7944_v31  ;;  %v8072_v52 = vld [vmem:[#allocation6 + $0x768] sm:$0xf]  ;;  %v9957_v31 = vld [vmem:[#allocation6 + $0x954] sm:$0xf0]  ;;  %v7929_v24 = vor.u32 %v9861_v8, %v7928_v21  ;;  %5512 = vmatpush.bf16.msrb.mxu2 %v8185_v15 }
 0x2af   :  { %v11354_v35 = vadd.f32 %v5098_v10, %v5070_v4  ;;  %v9897_v4 = vld [vmem:[#allocation6 + $0x774] sm:$0xf0]  ;;  %v8296_v8 = vld [vmem:[#allocation6 + $0x928] sm:$0xf] }
 0x2b0   :  { %5341 = vmatmul.bf16.vlgmr.msra.gmra.mxu0 %v10383_v54  ;;  %5370 = vmatmul.bf16.vlgmr.msra.gmra.mxu1 %v10385_v57  ;;  %v8073_v10 = vor.u32 %v9897_v4, %v8072_v52  ;;  %v8056_v52 = vld [vmem:[#allocation6 + $0x748] sm:$0xf]  ;;  %v9893_v4 = vld [vmem:[#allocation6 + $0x754] sm:$0xf0] }
 0x2b1   :  { %5399 = vmatmul.bf16.vlgmr.msra.gmra.mxu2 %v10523_v0  ;;  %5453 = vmatpush.bf16.msrb.mxu0 %v7945_v55  ;;  %v8057_v34 = vor.u32 %v9893_v4, %v8056_v52  ;;  %v9857_v15 = vld [vmem:[#allocation6 + $0x634] sm:$0xf0]  ;;  %v8760_v54 = vld [vmem:[#allocation6 + $0xcc8] sm:$0xf] }
 0x2b2   :  { %5428 = vmatmul.bf16.vlgmr.msra.gmra.mxu3 %v10525_v1  ;;  %v8312_v1 = vld [vmem:[#allocation6 + $0x948] sm:$0xf]  ;;  %5482 = vmatpush.bf16.msrb.mxu1 %v8073_v10  ;;  %v9921_v10 = vld [vmem:[#allocation6 + $0x834] sm:$0xf0] }
 0x2b3   :  { %v8313_v43 = vor.u32 %v9957_v31, %v8312_v1  ;;  %v8168_v1 = vld [vmem:[#allocation6 + $0x828] sm:$0xf]  ;;  %v9953_v31 = vld [vmem:[#allocation6 + $0x934] sm:$0xf0] }
 0x2b4   :  { %v11360_v20 = vpop.f32.mrf.mxu2  ;;  %v8169_v21 = vor.u32 %v9921_v10, %v8168_v1  ;;  %v8297_v0 = vor.u32 %v9953_v31, %v8296_v8  ;;  %v8152_v1 = vld [vmem:[#allocation6 + $0x808] sm:$0xf]  ;;  %v9917_v10 = vld [vmem:[#allocation6 + $0x814] sm:$0xf0] }
 0x2b5   :  { %v11362_v7 = vpop.f32.mrf.mxu3  ;;  %v11364_v61 = vpop.f32.mrf.mxu0  ;;  %5454 = vmatpush.bf16.msrb.mxu0 %v7929_v24  ;;  %5541 = vmatpush.bf16.msrb.mxu3 %v8313_v43  ;;  %v7913_v43 = vor.u32 %v9857_v15, %v7912_v40  ;;  %v8153_v17 = vor.u32 %v9917_v10, %v8152_v1  ;;  %v9949_v40 = vld [vmem:[#allocation6 + $0x914] sm:$0xf0]  ;;  %v8520_v10 = vld [vmem:[#allocation6 + $0xae8] sm:$0xf] }
 0x2b6   :  { %v11366_v62 = vpop.f32.mrf.mxu1  ;;  %5483 = vmatpush.bf16.msrb.mxu1 %v8057_v34  ;;  %5513 = vmatpush.bf16.msrb.mxu2 %v8169_v21  ;;  %v8040_v34 = vld [vmem:[#allocation6 + $0x728] sm:$0xf]  ;;  %v8281_v8 = vor.u32 %v9949_v40, %v8280_v60  ;;  %v10073_v1 = vld [vmem:[#allocation6 + $0xcf4] sm:$0xf0] }
 0x2b7   :  { %v8024_v21 = vld [vmem:[#allocation6 + $0x708] sm:$0xf] }
 0x2b8   :  { %v8776_v60 = vld [vmem:[#allocation6 + $0xce8] sm:$0xf] }
 0x2b9   :  { %5455 = vmatpush.bf16.msrb.mxu0 %v7913_v43  ;;  %5542 = vmatpush.bf16.msrb.mxu3 %v8297_v0  ;;  %v9885_v0 = vld [vmem:[#allocation6 + $0x714] sm:$0xf0]  ;;  %v8777_v40 = vor.u32 %v10073_v1, %v8776_v60  ;;  %v8761_v60 = vor.u32 %v10069_v41, %v8760_v54  ;;  %v5111_v54 = vadd.f32 %v11350_v5, %v11318_v22  ;;  %v6409_v41 = vld [vmem:[#allocation8] sm:$0xf] }
 0x2ba   :  { %5514 = vmatpush.bf16.msrb.mxu2 %v8153_v17  ;;  %v10005_v1 = vld [vmem:[#allocation6 + $0xad4] sm:$0xf0]  ;;  %v5113_v22 = vadd.f32 %v11364_v61, %v11321_v44  ;;  %v8872_v61 = vld [vmem:[#allocation6 + $0xda8] sm:$0xf] }
 0x2bb   :  { %v10001_v44 = vld [vmem:[#allocation6 + $0xab4] sm:$0xf0] }
 0x2bc   :  { %v11368_v36 = vpop.f32.mrf.mxu2 }
 0x2bd   :  { %v11370_v37 = vpop.f32.mrf.mxu3  ;;  %v11372_v55 = vpop.f32.mrf.mxu0  ;;  %5543 = vmatpush.bf16.msrb.mxu3 %v8281_v8  ;;  %v8904_v8 = vld [vmem:[#allocation6 + $0xde8] sm:$0xf] }
 0x2be   :  { %v11374_v11 = vpop.f32.mrf.mxu1  ;;  %5623 = vmatpush.bf16.msra.mxu2 %v8777_v40  ;;  %v8505_v40 = vor.u32 %v10005_v1, %v8504_v53 }
 0x2c0   :  { %5346 = vmatmul.bf16.gmra.mxu0 %v10419_v51  ;;  %5375 = vmatmul.bf16.gmra.mxu1 %v10421_v56  ;;  %v7896_v56 = vld [vmem:[#allocation6 + $0x608] sm:$0xf] }
 0x2c1   :  { %5404 = vmatmul.bf16.gmra.mxu2 %v10559_v45  ;;  %v7897_v15 = vor.u32 %v9853_v16, %v7896_v56 }
 0x2c2   :  { %5433 = vmatmul.bf16.gmra.mxu3 %v10561_v46  ;;  %v9889_v46 = vld [vmem:[#allocation6 + $0x734] sm:$0xf0]  ;;  %5624 = vmatpush.bf16.msra.mxu2 %v8761_v60  ;;  %v5140_v60 = vadd.f32 %v11352_v48, %v5111_v54  ;;  %v8488_v54 = vld [vmem:[#allocation6 + $0xaa8] sm:$0xf] }
 0x2c3   :  { %v8041_v45 = vor.u32 %v9889_v46, %v8040_v34  ;;  %5456 = vmatpush.bf16.msrb.mxu0 %v7897_v15  ;;  %v8025_v34 = vor.u32 %v9885_v0, %v8024_v21  ;;  %v10009_v15 = vld [vmem:[#allocation6 + $0xaf4] sm:$0xf0]  ;;  %v8489_v42 = vor.u32 %v10001_v44, %v8488_v54 }
 0x2c4   :  { %v11380_v24 = vpop.f32.mrf.mxu2  ;;  %v10105_v21 = vld [vmem:[#allocation6 + $0xdf4] sm:$0xf0]  ;;  %v8521_v0 = vor.u32 %v10009_v15, %v8520_v10  ;;  %v8888_v10 = vld [vmem:[#allocation6 + $0xdc8] sm:$0xf] }
 0x2c5   :  { %v11382_v57 = vpop.f32.mrf.mxu3  ;;  %v11384_v52 = vpop.f32.mrf.mxu0  ;;  %5484 = vmatpush.bf16.msrb.mxu1 %v8041_v45  ;;  %v10101_v15 = vld [vmem:[#allocation6 + $0xdd4] sm:$0xf0] }
 0x2c6   :  { %v11386_v4 = vpop.f32.mrf.mxu1 }
 0x2c7   :  { %5565 = vmatpush.bf16.msra.mxu0 %v8521_v0 }
 0x2c9   :  { %5485 = vmatpush.bf16.msrb.mxu1 %v8025_v34  ;;  %v8905_v34 = vor.u32 %v10105_v21, %v8904_v8  ;;  %v10037_v21 = vld [vmem:[#allocation6 + $0xbd4] sm:$0xf0] }
 0x2cb   :  { %5652 = vmatpush.bf16.msra.mxu3 %v8905_v34  ;;  %5566 = vmatpush.bf16.msra.mxu0 %v8505_v40 }
 0x2cc   :  { %v11388_v31 = vpop.f32.mrf.mxu2 }
 0x2cd   :  { %v11390_v43 = vpop.f32.mrf.mxu3  ;;  %v11392_v46 = vpop.f32.mrf.mxu0 }
 0x2ce   :  { %v11394_v51 = vpop.f32.mrf.mxu1 }
 0x2cf   :  { %5567 = vmatpush.bf16.msra.mxu0 %v8489_v42 }
 0x2d0   :  { %5351 = vmatmul.bf16.gmra.mxu0 %v10455_v38  ;;  %5380 = vmatmul.bf16.gmra.mxu1 %v10457_v39  ;;  %v10041_v39 = vld [vmem:[#allocation6 + $0xbf4] sm:$0xf0] }
 0x2d1   :  { %5409 = vmatmul.bf16.gmra.mxu2 %v10595_v32  ;;  %v8648_v32 = vld [vmem:[#allocation6 + $0xbe8] sm:$0xf] }
 0x2d2   :  { %5438 = vmatmul.bf16.gmra.mxu3 %v10597_v33  ;;  %v8649_v33 = vor.u32 %v10041_v39, %v8648_v32  ;;  %v8889_v39 = vor.u32 %v10101_v15, %v8888_v10  ;;  %v8632_v32 = vld [vmem:[#allocation6 + $0xbc8] sm:$0xf]  ;;  %v6411_v10 = vperm.slane %v6409_v41, 0  ;;  %v6412_v15 = vperm.slane %v6409_v41, 1 }
 0x2d3   :  { %v8633_v0 = vor.u32 %v10037_v21, %v8632_v32  ;;  %v8744_v21 = vld [vmem:[#allocation6 + $0xca8] sm:$0xf] }
 0x2d4   :  { %v11400_v56 = vpop.f32.mrf.mxu2  ;;  %5594 = vmatpush.bf16.msra.mxu1 %v8649_v33  ;;  %5653 = vmatpush.bf16.msra.mxu3 %v8889_v39  ;;  %v5169_v39 = vadd.f32 %v11360_v20, %v5140_v60  ;;  %vm11434_vm7 = vcmp.eq.f32.partialorder %v6411_v10, 2.0  ;;  %vm11438_vm8 = vcmp.eq.f32.partialorder %v6412_v15, 2.0  ;;  %vm11450_vm9 = vcmp.eq.f32.partialorder %v6411_v10, 1.0 }
 0x2d5   :  { %v11402_v16 = vpop.f32.mrf.mxu3  ;;  %v11404_v17 = vpop.f32.mrf.mxu0  ;;  %vm11454_vm10 = vcmp.eq.f32.partialorder %v6412_v15, 1.0  ;;  %vm11472_vm12 = vmpackc.low %vm11438_vm8, %vm11434_vm7 }
 0x2d6   :  { %v11406_v45 = vpop.f32.mrf.mxu1  ;;  %v5198_v32 = vadd.f32 %v11362_v7, %v5169_v39  ;;  %v10033_v7 = vld [vmem:[#allocation6 + $0xbb4] sm:$0xf0]  ;;  %v8728_v39 = vld [vmem:[#allocation6 + $0xc88] sm:$0xf]  ;;  %vm11483_vm13 = vmpackc.low %vm11454_vm10, %vm11450_vm9 }
 0x2d7   :  { %v8617_v30 = vor.u32 %v10033_v7, %v8616_v14  ;;  %v12412_v14 = vld [vmem:[#allocation40_spill] sm:$0xff] }
 0x2d8   :  { %5595 = vmatpush.bf16.msra.mxu1 %v8633_v0  ;;  %v10065_v0 = vld [vmem:[#allocation6 + $0xcb4] sm:$0xf0] }
 0x2d9   :  { %v8745_v60 = vor.u32 %v10065_v0, %v8744_v21 }
 0x2db   :  { %5625 = vmatpush.bf16.msra.mxu2 %v8745_v60 }
 0x2dc   :  { %v11408_v38 = vpop.f32.mrf.mxu2  ;;  %5596 = vmatpush.bf16.msra.mxu1 %v8617_v30 }
 0x2dd   :  { %v11410_v26 = vpop.f32.mrf.mxu3  ;;  %v11412_v23 = vpop.f32.mrf.mxu0 }
 0x2de   :  { %v11414_v8 = vpop.f32.mrf.mxu1 }
 0x2e0   :  { %5356 = vmatmul.bf16.gmra.mxu0 %v10491_v18  ;;  %5385 = vmatmul.bf16.gmra.mxu1 %v10493_v19 }
 0x2e1   :  { %5414 = vmatmul.bf16.gmra.mxu2 %v10631_v25  ;;  %v5142_v25 = vadd.f32 %v11366_v62, %v5113_v22  ;;  %v8856_v62 = vld [vmem:[#allocation6 + $0xd88] sm:$0xf]  ;;  %v10093_v22 = vld [vmem:[#allocation6 + $0xd94] sm:$0xf0] }
 0x2e2   :  { %5443 = vmatmul.bf16.gmra.mxu3 %v12356_v58  ;;  %v10097_v58 = vld [vmem:[#allocation6 + $0xdb4] sm:$0xf0] }
 0x2e3   :  { %v8873_v9 = vor.u32 %v10097_v58, %v8872_v61 }
 0x2e4   :  { %v11422_v33 = vpop.f32.mrf.mxu2 }
 0x2e5   :  { %v11424_v53 = vpop.f32.mrf.mxu3  ;;  %v11426_v34 = vpop.f32.mrf.mxu0  ;;  %5654 = vmatpush.bf16.msra.mxu3 %v8873_v9 }
 0x2e6   :  { %12400 = vst [vmem:[#allocation45_spill] sm:$0xff] %v11424_v53  ;;  %v11429_v1 = vpop.f32.mrf.mxu1  ;;  %v9997_v53 = vld [vmem:[#allocation6 + $0xa94] sm:$0xf0] }
 0x2e7   :  { %12401 = vst [vmem:[#allocation89_spill] sm:$0xff] %v11429_v1  ;;  %v8472_v1 = vld [vmem:[#allocation6 + $0xa88] sm:$0xf] }
 0x2e8   :  { %v8473_v9 = vor.u32 %v9997_v53, %v8472_v1 }
 0x2ea   :  { %5568 = vmatpush.bf16.msra.mxu0 %v8473_v9  ;;  %v10057_v9 = vld [vmem:[#allocation6 + $0xc74] sm:$0xf0] }
 0x2ec   :  { %v11443_v48 = vpop.f32.mrf.mxu2 }
 0x2ed   :  { %12406 = vst [vmem:[#allocation90_spill] sm:$0xff] %v11443_v48  ;;  %v11445_v41 = vpop.f32.mrf.mxu3  ;;  %v5226_v20 = vpop.f32.mrf.mxu0  ;;  %v10061_v48 = vld [vmem:[#allocation6 + $0xc94] sm:$0xf0] }
 0x2ee   :  { %12407 = vst [vmem:[#allocation91_spill] sm:$0xff] %v11445_v41  ;;  %v5227_v19 = vadd.f32 %v5226_v20, %v5198_v32  ;;  %v5255_v18 = vpop.f32.mrf.mxu1  ;;  %v5171_v41 = vadd.f32 %v11368_v36, %v5142_v25  ;;  %v8729_v0 = vor.u32 %v10061_v48, %v8728_v39  ;;  %v8600_v32 = vld [vmem:[#allocation6 + $0xb88] sm:$0xf]  ;;  %v5116_v25 = vadd.f32 %v11372_v55, %v11328_v12 }
 0x2ef   :  { %v12279_v36 = vmov 0.0  }
 0x2f0   :  { %v5256_v21 = vadd.f32 %v5255_v18, %v5227_v19  ;;  %5457 = vmatmul.bf16.vlgmr.msrb.gmra.mxu0 %v10527_v2  ;;  %5486 = vmatmul.bf16.vlgmr.msrb.gmra.mxu1 %v10529_v3  ;;  %v8857_v18 = vor.u32 %v10093_v22, %v8856_v62  ;;  %v10029_v19 = vld [vmem:[#allocation6 + $0xb94] sm:$0xf0]  ;;  %v9550_v15 = vsel %vm6460_vm0, 1.0, %v12279_v36  ;;  %v5200_v12 = vadd.f32 %v11370_v37, %v5171_v41 }
 0x2f1   :  { %5515 = vmatmul.bf16.vlgmr.msrb.gmra.mxu2 %v12412_v14  ;;  %v8601_v42 = vor.u32 %v10029_v19, %v8600_v32  ;;  %v5145_v30 = vadd.f32 %v11374_v11, %v5116_v25  ;;  %v5118_v62 = vadd.f32 %v11384_v52, %v11331_v50  ;;  %v9554_v58 = vsel %vm6508_vm1, 1.0, %v12279_v36  ;;  %v8712_v25 = vld [vmem:[#allocation6 + $0xc68] sm:$0xf]  ;;  %v9993_v50 = vld [vmem:[#allocation6 + $0xa74] sm:$0xf0] }
 0x2f2   :  { %vm6461_vm11 = vcmp.ge.f32.partialorder %v5256_v21, 1.25  ;;  %5544 = vmatmul.bf16.vlgmr.msrb.gmra.mxu3 %v12362_v59  ;;  %5626 = vmatpush.bf16.msra.mxu2 %v8729_v0  ;;  %v6493_v11 = vmul.f32 0.75, %v5256_v21  ;;  %v8840_v52 = vld [vmem:[#allocation6 + $0xd68] sm:$0xf] }
 0x2f3   :  { %v9551_v48 = vsel %vm6461_vm11, 1.0, %v12279_v36  ;;  %5655 = vmatpush.bf16.msra.mxu3 %v8857_v18  ;;  %v6465_v61 = vsel %vm6461_vm11, 0.0, %v5256_v21  ;;  %5597 = vmatpush.bf16.msra.mxu1 %v8601_v42  ;;  %v5174_v39 = vadd.f32 %v11380_v24, %v5145_v30  ;;  %v5147_v10 = vadd.f32 %v11386_v4, %v5118_v62  ;;  %v8456_v42 = vld [vmem:[#allocation6 + $0xa68] sm:$0xf]  ;;  %v10053_v62 = vld [vmem:[#allocation6 + $0xc54] sm:$0xf0] }
 0x2f4   :  { %v11477_v55 = vpack.c.bf16 %v9551_v48, %v9550_v15  ;;  %v5284_v1 = vpop.f32.mrf.mxu2  ;;  %v6501_v22 = vmul.f32 0.97, %v6465_v61  ;;  %v8713_v48 = vor.u32 %v10057_v9, %v8712_v25  ;;  %v8696_v61 = vld [vmem:[#allocation6 + $0xc48] sm:$0xf]  ;;  %v5121_v25 = vadd.f32 %v11392_v46, %v11338_v13 }
 0x2f5   :  { %v5313_v5 = vpop.f32.mrf.mxu3  ;;  %v5228_v40 = vpop.f32.mrf.mxu0  ;;  %v5203_v54 = vadd.f32 %v11382_v57, %v5174_v39  ;;  %v10089_v57 = vld [vmem:[#allocation6 + $0xd74] sm:$0xf0]  ;;  %v5176_v30 = vadd.f32 %v11388_v31, %v5147_v10  ;;  %v8697_v31 = vor.u32 %v10053_v62, %v8696_v61  ;;  %v5123_v62 = vadd.f32 %v11404_v17, %v11341_v27 }
 0x2f6   :  { %v6480_v37 = vsel %vm11472_vm12, 0, %v11477_v55  ;;  %v11491_v41 = vadd.f32 %v5313_v5, %v5284_v1  ;;  %v5229_v60 = vadd.f32 %v5228_v40, %v5200_v12  ;;  %v5257_v44 = vpop.f32.mrf.mxu1  ;;  %v8457_v5 = vor.u32 %v9993_v50, %v8456_v42  ;;  %v8584_v40 = vld [vmem:[#allocation6 + $0xb68] sm:$0xf]  ;;  %5627 = vmatpush.bf16.msra.mxu2 %v8713_v48 }
 0x2f7   :  { %v6484_v7 = vsel %vm11483_vm13, 0, %v6480_v37  ;;  %v8841_v4 = vor.u32 %v10089_v57, %v8840_v52  ;;  %v5205_v13 = vadd.f32 %v11390_v43, %v5176_v30  ;;  %v9558_v43 = vsel %vm6552_vm2, 1.0, %v12279_v36 }
 0x2f8   :  { %6486 = vst [vmem:[%s12148_s3] sm:$0xff] %v6484_v7  ;;  %v5258_v0 = vadd.f32 %v5257_v44, %v5229_v60  ;;  %v10025_v44 = vld [vmem:[#allocation6 + $0xb74] sm:$0xf0]  ;;  %5569 = vmatpush.bf16.msra.mxu0 %v8457_v5 }
 0x2f9   :  { %5656 = vmatpush.bf16.msra.mxu3 %v8841_v4 }
 0x2fa   :  { %v6497_v32 = vadd.f32 %v6493_v11, %v5258_v0  ;;  %v8585_v0 = vor.u32 %v10025_v44, %v8584_v40  ;;  %5628 = vmatpush.bf16.msra.mxu2 %v8697_v31  ;;  %v8424_v31 = vld [vmem:[#allocation6 + $0xa28] sm:$0xf] }
 0x2fc   :  { %v6505_v18 = vadd.f32 %v6501_v22, %v6497_v32  ;;  %v5286_v19 = vpop.f32.mrf.mxu2  ;;  %v6537_v24 = vmul.f32 0.75, %v6497_v32  ;;  %v8440_v22 = vld [vmem:[#allocation6 + $0xa48] sm:$0xf]  ;;  %5598 = vmatpush.bf16.msra.mxu1 %v8585_v0  ;;  %v10049_v0 = vld [vmem:[#allocation6 + $0xc34] sm:$0xf0] }
 0x2fd   :  { %v5315_v21 = vpop.f32.mrf.mxu3  ;;  %v5231_v15 = vpop.f32.mrf.mxu0  ;;  %v12418_v32 = vld [vmem:[#allocation44_spill] sm:$0xff] }
 0x2fe   :  { %v11507_v12 = vadd.f32 %v5315_v21, %v5286_v19  ;;  %v5232_v1 = vadd.f32 %v5231_v15, %v5203_v54  ;;  %v5260_v29 = vpop.f32.mrf.mxu1  ;;  %vm6509_vm14 = vcmp.ge.f32.partialorder %v6505_v18, 1.25  ;;  %v9989_v54 = vld [vmem:[#allocation6 + $0xa54] sm:$0xf0]  ;;  %v8568_v21 = vld [vmem:[#allocation6 + $0xb48] sm:$0xf] }
 0x2ff   :  { %v6513_v37 = vsel %vm6509_vm14, 0.0, %v6505_v18  ;;  %v9555_v60 = vsel %vm6509_vm14, 1.0, %v12279_v36  ;;  %v8824_v18 = vld [vmem:[#allocation6 + $0xd48] sm:$0xf]  ;;  %v10085_v19 = vld [vmem:[#allocation6 + $0xd54] sm:$0xf0]  ;;  %v8441_v10 = vor.u32 %v9989_v54, %v8440_v22 }
 0x300   :  { %v5261_v7 = vadd.f32 %v5260_v29, %v5232_v1  ;;  %v11511_v39 = vpack.c.bf16 %v9555_v60, %v9554_v58  ;;  %v6545_v11 = vmul.f32 0.97, %v6513_v37  ;;  %5462 = vmatmul.bf16.gmra.mxu0 %v10563_v47  ;;  %5491 = vmatmul.bf16.gmra.mxu1 %v10565_v49  ;;  %v10021_v15 = vld [vmem:[#allocation6 + $0xb54] sm:$0xf0]  ;;  %v8825_v42 = vor.u32 %v10085_v19, %v8824_v18  ;;  %v8808_v18 = vld [vmem:[#allocation6 + $0xd28] sm:$0xf] }
 0x301   :  { %5520 = vmatmul.bf16.gmra.mxu2 %v12418_v32  ;;  %v8569_v50 = vor.u32 %v10021_v15, %v8568_v21  ;;  %v5150_v29 = vadd.f32 %v11394_v51, %v5121_v25  ;;  %5570 = vmatpush.bf16.msra.mxu0 %v8441_v10  ;;  %v9985_v54 = vld [vmem:[#allocation6 + $0xa34] sm:$0xf0]  ;;  %v9562_v15 = vsel %vm6596_vm3, 1.0, %v12279_v36 }
 0x302   :  { %v6526_v58 = vsel %vm11472_vm12, 0, %v11511_v39  ;;  %v6541_v9 = vadd.f32 %v6537_v24, %v5261_v7  ;;  %5549 = vmatmul.bf16.gmra.mxu3 %v12367_v28  ;;  %v10017_v10 = vld [vmem:[#allocation6 + $0xb34] sm:$0xf0] }
 0x303   :  { %v6528_v48 = vsel %vm11483_vm13, %v11477_v55, %v6526_v58  ;;  %5657 = vmatpush.bf16.msra.mxu3 %v8825_v42  ;;  %5599 = vmatpush.bf16.msra.mxu1 %v8569_v50  ;;  %v5179_v44 = vadd.f32 %v11400_v56, %v5150_v29  ;;  %v8425_v56 = vor.u32 %v9985_v54, %v8424_v31  ;;  %v10081_v58 = vld [vmem:[#allocation6 + $0xd34] sm:$0xf0]  ;;  %v8664_v50 = vld [vmem:[#allocation6 + $0xc08] sm:$0xf] }
 0x304   :  { %6530 = vst [vmem:[%s12148_s3 + $0x10] sm:$0xff] %v6528_v48  ;;  %v6549_v46 = vadd.f32 %v6545_v11, %v6541_v9  ;;  %v5289_v24 = vpop.f32.mrf.mxu2  ;;  %v6581_v4 = vmul.f32 0.75, %v6541_v9  ;;  %v8680_v11 = vld [vmem:[#allocation6 + $0xc28] sm:$0xf]  ;;  %v8809_v27 = vor.u32 %v10081_v58, %v8808_v18  ;;  %v9981_v29 = vld [vmem:[#allocation6 + $0xa14] sm:$0xf0]  ;;  %v5126_v54 = vadd.f32 %v11412_v23, %v11348_v63 }
 0x305   :  { %v5318_v52 = vpop.f32.mrf.mxu3  ;;  %v5233_v1 = vpop.f32.mrf.mxu0  ;;  %v8681_v22 = vor.u32 %v10049_v0, %v8680_v11  ;;  %v8552_v9 = vld [vmem:[#allocation6 + $0xb28] sm:$0xf]  ;;  %v5208_v48 = vadd.f32 %v11402_v16, %v5179_v44  ;;  %5571 = vmatpush.bf16.msra.mxu0 %v8425_v56  ;;  %v12421_v18 = vld [vmem:[#allocation35_spill] sm:$0xff]  ;;  %v9566_v63 = vsel %vm6640_vm4, 1.0, %v12279_v36 }
 0x306   :  { %vm6553_vm15 = vcmp.ge.f32.partialorder %v6549_v46, 1.25  ;;  %v11530_v5 = vadd.f32 %v5318_v52, %v5289_v24  ;;  %v5234_v57 = vadd.f32 %v5233_v1, %v5205_v13  ;;  %v5262_v40 = vpop.f32.mrf.mxu1  ;;  %v8553_v17 = vor.u32 %v10017_v10, %v8552_v9  ;;  %v10045_v13 = vld [vmem:[#allocation6 + $0xc14] sm:$0xf0]  ;;  %v12423_v9 = vld [vmem:[#allocation49_spill] sm:$0xff] }
 0x307   :  { %v6557_v30 = vsel %vm6553_vm15, 0.0, %v6549_v46  ;;  %v9559_v60 = vsel %vm6553_vm15, 1.0, %v12279_v36  ;;  %5629 = vmatpush.bf16.msra.mxu2 %v8681_v22  ;;  %v5152_v46 = vadd.f32 %v11406_v45, %v5123_v62  ;;  %5658 = vmatpush.bf16.msra.mxu3 %v8809_v27  ;;  %v8665_v1 = vor.u32 %v10045_v13, %v8664_v50  ;;  %v12420_v22 = vld [vmem:[#allocation34_spill] sm:$0xff]  ;;  %v9288_v27 = vld [vmem:[#allocation6 + $0x10e8] sm:$0xf] }
 0x308   :  { %v11537_v61 = vpack.c.bf16 %v9559_v60, %v9558_v43  ;;  %v6589_v51 = vmul.f32 0.97, %v6557_v30  ;;  %v5263_v7 = vadd.f32 %v5262_v40, %v5234_v57  ;;  %5600 = vmatpush.bf16.msra.mxu1 %v8553_v17  ;;  %v8792_v57 = vld [vmem:[#allocation6 + $0xd08] sm:$0xf]  ;;  %v8409_v43 = vor.u32 %v9981_v29, %v8408_v6  ;;  %v10077_v30 = vld [vmem:[#allocation6 + $0xd14] sm:$0xf0] }
 0x309   :  { %v8536_v60 = vld [vmem:[#allocation6 + $0xb08] sm:$0xf]  ;;  %v10201_v17 = vld [vmem:[#allocation6 + $0x10f4] sm:$0xf0] }
 0x30a   :  { %v6570_v19 = vsel %vm11472_vm12, %v11477_v55, %v11537_v61  ;;  %v6585_v25 = vadd.f32 %v6581_v4, %v5263_v7  ;;  %v5181_v4 = vadd.f32 %v11408_v38, %v5152_v46  ;;  %v10013_v7 = vld [vmem:[#allocation6 + $0xb14] sm:$0xf0]  ;;  %5572 = vmatpush.bf16.msra.mxu0 %v8409_v43  ;;  %v9032_v50 = vld [vmem:[#allocation6 + $0xee8] sm:$0xf] }
 0x30b   :  { %v6572_v21 = vsel %vm11483_vm13, %v11511_v39, %v6570_v19  ;;  %5630 = vmatpush.bf16.msra.mxu2 %v8665_v1  ;;  %v8537_v31 = vor.u32 %v10013_v7, %v8536_v60  ;;  %v12422_v19 = vld [vmem:[#allocation48_spill] sm:$0xff]  ;;  %v10137_v13 = vld [vmem:[#allocation6 + $0xef4] sm:$0xf0]  ;;  %v5128_v7 = vadd.f32 %v11426_v34, %v11354_v35  ;;  %v12425_v34 = vld [vmem:[#allocation45_spill] sm:$0xff] }
 0x30c   :  { %6574 = vst [vmem:[%s12148_s3 + $0x20] sm:$0xff] %v6572_v21  ;;  %v6593_v55 = vadd.f32 %v6589_v51, %v6585_v25  ;;  %v5291_v42 = vpop.f32.mrf.mxu2  ;;  %v8793_v51 = vor.u32 %v10077_v30, %v8792_v57  ;;  %v6625_v62 = vmul.f32 0.75, %v6585_v25  ;;  %v5210_v10 = vadd.f32 %v11410_v26, %v5181_v4  ;;  %v9416_v46 = vld [vmem:[#allocation6 + $0x11e8] sm:$0xf]  ;;  %v10233_v6 = vld [vmem:[#allocation6 + $0x11f4] sm:$0xf0] }
 0x30d   :  { %v5320_v24 = vpop.f32.mrf.mxu3  ;;  %v5236_v52 = vpop.f32.mrf.mxu0  ;;  %5601 = vmatpush.bf16.msra.mxu1 %v8537_v31  ;;  %v9033_v1 = vor.u32 %v10137_v13, %v9032_v50  ;;  %v10169_v43 = vld [vmem:[#allocation6 + $0xff4] sm:$0xf0]  ;;  %v9400_v31 = vld [vmem:[#allocation6 + $0x11c8] sm:$0xf] }
 0x30e   :  { %v11556_v16 = vadd.f32 %v5320_v24, %v5291_v42  ;;  %v5237_v40 = vadd.f32 %v5236_v52, %v5208_v48  ;;  %v5265_v37 = vpop.f32.mrf.mxu1  ;;  %vm6597_vm0 = vcmp.ge.f32.partialorder %v6593_v55, 1.25  ;;  %5659 = vmatpush.bf16.msra.mxu3 %v8793_v51  ;;  %v9289_v42 = vor.u32 %v10201_v17, %v9288_v27  ;;  %v10197_v51 = vld [vmem:[#allocation6 + $0x10d4] sm:$0xf0] }
 0x30f   :  { %v6601_v44 = vsel %vm6597_vm0, 0.0, %v6593_v55  ;;  %v9563_v45 = vsel %vm6597_vm0, 1.0, %v12279_v36  ;;  %5681 = vmatpush.bf16.msrb.mxu0 %v9033_v1  ;;  %v12428_v13 = vld [vmem:[#allocation90_spill] sm:$0xff]  ;;  %v9144_v1 = vld [vmem:[#allocation6 + $0xfc8] sm:$0xf] }
 0x310   :  { %v5266_v11 = vadd.f32 %v5265_v37, %v5237_v40  ;;  %v11560_v0 = vpack.c.bf16 %v9563_v45, %v9562_v15  ;;  %5467 = vmatmul.bf16.gmra.mxu0 %v12420_v22  ;;  %5496 = vmatmul.bf16.gmra.mxu1 %v12421_v18  ;;  %v6633_v58 = vmul.f32 0.97, %v6601_v44  ;;  %v5155_v15 = vadd.f32 %v11414_v8, %v5126_v54  ;;  %v9160_v37 = vld [vmem:[#allocation6 + $0xfe8] sm:$0xf] }
 0x311   :  { %5525 = vmatmul.bf16.gmra.mxu2 %v12422_v19  ;;  %v9417_v8 = vor.u32 %v10233_v6, %v9416_v46  ;;  %v9161_v44 = vor.u32 %v10169_v43, %v9160_v37  ;;  %v9272_v45 = vld [vmem:[#allocation6 + $0x10c8] sm:$0xf]  ;;  %v10165_v6 = vld [vmem:[#allocation6 + $0xfd4] sm:$0xf0] }
 0x312   :  { %v6614_v38 = vsel %vm11472_vm12, %v11511_v39, %v11560_v0  ;;  %v6629_v56 = vadd.f32 %v6625_v62, %v5266_v11  ;;  %5554 = vmatmul.bf16.gmra.mxu3 %v12423_v9  ;;  %v5184_v29 = vadd.f32 %v11422_v33, %v5155_v15  ;;  %5739 = vmatpush.bf16.msrb.mxu2 %v9289_v42  ;;  %v9016_v11 = vld [vmem:[#allocation6 + $0xec8] sm:$0xf]  ;;  %v10133_v62 = vld [vmem:[#allocation6 + $0xed4] sm:$0xf0] }
 0x313   :  { %v6616_v25 = vsel %vm11483_vm13, %v11537_v61, %v6614_v38  ;;  %5768 = vmatpush.bf16.msrb.mxu3 %v9417_v8  ;;  %v9273_v33 = vor.u32 %v10197_v51, %v9272_v45  ;;  %5710 = vmatpush.bf16.msrb.mxu1 %v9161_v44  ;;  %v12429_v8 = vld [vmem:[#allocation38_spill] sm:$0xff]  ;;  %v9145_v37 = vor.u32 %v10165_v6, %v9144_v1  ;;  %v12432_v51 = vld [vmem:[#allocation53_spill] sm:$0xff]  ;;  %v9240_v1 = vld [vmem:[#allocation6 + $0x1088] sm:$0xf] }
 0x314   :  { %6618 = vst [vmem:[%s12148_s3 + $0x30] sm:$0xff] %v6616_v25  ;;  %v6637_v39 = vadd.f32 %v6633_v58, %v6629_v56  ;;  %v5294_v21 = vpop.f32.mrf.mxu2  ;;  %v6669_v60 = vmul.f32 0.75, %v6629_v56  ;;  %v9017_v58 = vor.u32 %v10133_v62, %v9016_v11  ;;  %v10229_v25 = vld [vmem:[#allocation6 + $0x11d4] sm:$0xf0]  ;;  %v9000_v11 = vld [vmem:[#allocation6 + $0xea8] sm:$0xf] }
 0x315   :  { %v5323_v48 = vpop.f32.mrf.mxu3  ;;  %v5238_v55 = vpop.f32.mrf.mxu0  ;;  %v9401_v35 = vor.u32 %v10229_v25, %v9400_v31  ;;  %v10189_v6 = vld [vmem:[#allocation6 + $0x1094] sm:$0xf0] }
 0x316   :  { %vm6641_vm1 = vcmp.ge.f32.partialorder %v6637_v39, 1.25  ;;  %v11583_v24 = vadd.f32 %v5323_v48, %v5294_v21  ;;  %v5239_v26 = vadd.f32 %v5238_v55, %v5210_v10  ;;  %v5267_v52 = vpop.f32.mrf.mxu1  ;;  %5740 = vmatpush.bf16.msrb.mxu2 %v9273_v33  ;;  %5682 = vmatpush.bf16.msrb.mxu0 %v9017_v58  ;;  %v9570_v48 = vsel %vm6684_vm5, 1.0, %v12279_v36  ;;  %v10193_v33 = vld [vmem:[#allocation6 + $0x10b4] sm:$0xf0]  ;;  %v12433_v58 = vld [vmem:[#allocation91_spill] sm:$0xff] }
 0x317   :  { %v6645_v57 = vsel %vm6641_vm1, 0.0, %v6637_v39  ;;  %v9567_v40 = vsel %vm6641_vm1, 1.0, %v12279_v36  ;;  %5769 = vmatpush.bf16.msrb.mxu3 %v9401_v35  ;;  %5711 = vmatpush.bf16.msrb.mxu1 %v9145_v37  ;;  %v10125_v37 = vld [vmem:[#allocation6 + $0xe94] sm:$0xf0] }
 0x318   :  { %v11587_v30 = vpack.c.bf16 %v9567_v40, %v9566_v63  ;;  %v5268_v4 = vadd.f32 %v5267_v52, %v5239_v26  ;;  %v6677_v38 = vmul.f32 0.97, %v6645_v57  ;;  %v5213_v63 = vadd.f32 %v12425_v34, %v5184_v29 }
 0x31a   :  { %v6658_v54 = vsel %vm11472_vm12, %v11537_v61, %v11587_v30  ;;  %v6673_v56 = vadd.f32 %v6669_v60, %v5268_v4  ;;  %v12426_v61 = vld [vmem:[#allocation89_spill] sm:$0xff]  ;;  %v12430_v60 = vld [vmem:[#allocation39_spill] sm:$0xff]  ;;  %v12431_v4 = vld [vmem:[#allocation52_spill] sm:$0xff] }
 0x31b   :  { %v6660_v23 = vsel %vm11483_vm13, %v11560_v0, %v6658_v54  ;;  %v5157_v21 = vadd.f32 %v12426_v61, %v5128_v7  ;;  %v9256_v7 = vld [vmem:[#allocation6 + $0x10a8] sm:$0xf]  ;;  %v10129_v54 = vld [vmem:[#allocation6 + $0xeb4] sm:$0xf0]  ;;  %v9574_v61 = vsel %vm6728_vm6, 1.0, %v12279_v36 }
 0x31c   :  { %6662 = vst [vmem:[%s12148_s3 + $0x40] sm:$0xff] %v6660_v23  ;;  %v6681_v10 = vadd.f32 %v6677_v38, %v6673_v56  ;;  %v5296_v39 = vpop.f32.mrf.mxu2  ;;  %v6713_v40 = vmul.f32 0.75, %v6673_v56  ;;  %v9257_v31 = vor.u32 %v10193_v33, %v9256_v7  ;;  %v9384_v38 = vld [vmem:[#allocation6 + $0x11a8] sm:$0xf]  ;;  %v10225_v56 = vld [vmem:[#allocation6 + $0x11b4] sm:$0xf0]  ;;  %v9001_v35 = vor.u32 %v10129_v54, %v9000_v11 }
 0x31d   :  { %v5325_v27 = vpop.f32.mrf.mxu3  ;;  %v5241_v17 = vpop.f32.mrf.mxu0  ;;  %v5186_v46 = vadd.f32 %v12428_v13, %v5157_v21  ;;  %v9385_v34 = vor.u32 %v10225_v56, %v9384_v38  ;;  %v12435_v54 = vld [vmem:[#allocation41_spill] sm:$0xff] }
 0x31e   :  { %v11606_v55 = vadd.f32 %v5325_v27, %v5296_v39  ;;  %v5242_v42 = vadd.f32 %v5241_v17, %v5213_v63  ;;  %v5270_v50 = vpop.f32.mrf.mxu1  ;;  %vm6685_vm2 = vcmp.ge.f32.partialorder %v6681_v10, 1.25  ;;  %5741 = vmatpush.bf16.msrb.mxu2 %v9257_v31  ;;  %5683 = vmatpush.bf16.msrb.mxu0 %v9001_v35  ;;  %vm6772_vm4 = vcmp.ge.f32.partialorder %v12435_v54, 1.25  ;;  %v9208_v54 = vld [vmem:[#allocation6 + $0x1048] sm:$0xf] }
 0x31f   :  { %v6689_v26 = vsel %vm6685_vm2, 0.0, %v6681_v10  ;;  %v9571_v52 = vsel %vm6685_vm2, 1.0, %v12279_v36  ;;  %v5215_v25 = vadd.f32 %v12433_v58, %v5186_v46  ;;  %5770 = vmatpush.bf16.msrb.mxu3 %v9385_v34  ;;  %v9578_v35 = vsel %vm6772_vm4, 1.0, %v12279_v36 }
 0x320   :  { %v5271_v29 = vadd.f32 %v5270_v50, %v5242_v42  ;;  %v11610_v57 = vpack.c.bf16 %v9571_v52, %v9570_v48  ;;  %5472 = vmatmul.bf16.gmra.mxu0 %v12429_v8  ;;  %v6721_v43 = vmul.f32 0.97, %v6689_v26  ;;  %5501 = vmatmul.bf16.gmra.mxu1 %v12430_v60  ;;  %v9128_v42 = vld [vmem:[#allocation6 + $0xfa8] sm:$0xf]  ;;  %v10161_v50 = vld [vmem:[#allocation6 + $0xfb4] sm:$0xf0] }
 0x321   :  { %5530 = vmatmul.bf16.gmra.mxu2 %v12431_v4  ;;  %v9129_v52 = vor.u32 %v10161_v50, %v9128_v42  ;;  %v12439_v42 = vld [vmem:[#allocation57_spill] sm:$0xff]  ;;  %v9224_v50 = vld [vmem:[#allocation6 + $0x1068] sm:$0xf] }
 0x322   :  { %v6702_v44 = vsel %vm11472_vm12, %v11560_v0, %v11610_v57  ;;  %v6717_v45 = vadd.f32 %v6713_v40, %v5271_v29  ;;  %5559 = vmatmul.bf16.gmra.mxu3 %v12432_v51  ;;  %v9241_v29 = vor.u32 %v10189_v6, %v9240_v1  ;;  %v8984_v40 = vld [vmem:[#allocation6 + $0xe88] sm:$0xf]  ;;  %v10121_v6 = vld [vmem:[#allocation6 + $0xe74] sm:$0xf0] }
 0x323   :  { %v6704_v62 = vsel %vm11483_vm13, %v11587_v30, %v6702_v44  ;;  %5712 = vmatpush.bf16.msrb.mxu1 %v9129_v52  ;;  %v8985_v11 = vor.u32 %v10125_v37, %v8984_v40  ;;  %v10217_v40 = vld [vmem:[#allocation6 + $0x1174] sm:$0xf0] }
 0x324   :  { %6706 = vst [vmem:[%s12148_s3 + $0x50] sm:$0xff] %v6704_v62  ;;  %v6725_v0 = vadd.f32 %v6721_v43, %v6717_v45  ;;  %v5299_v23 = vpop.f32.mrf.mxu2  ;;  %v6757_v46 = vmul.f32 0.75, %v6717_v45  ;;  %v9368_v43 = vld [vmem:[#allocation6 + $0x1188] sm:$0xf]  ;;  %v10221_v62 = vld [vmem:[#allocation6 + $0x1194] sm:$0xf0]  ;;  %5742 = vmatpush.bf16.msrb.mxu2 %v9241_v29 }
 0x325   :  { %v5328_v63 = vpop.f32.mrf.mxu3  ;;  %v5243_v10 = vpop.f32.mrf.mxu0  ;;  %v9369_v31 = vor.u32 %v10221_v62, %v9368_v43  ;;  %5684 = vmatpush.bf16.msrb.mxu0 %v8985_v11  ;;  %v9352_v29 = vld [vmem:[#allocation6 + $0x1168] sm:$0xf]  ;;  %v10153_v62 = vld [vmem:[#allocation6 + $0xf74] sm:$0xf0] }
 0x326   :  { %vm6729_vm3 = vcmp.ge.f32.partialorder %v6725_v0, 1.25  ;;  %v11630_v21 = vadd.f32 %v5328_v63, %v5299_v23  ;;  %v5244_v27 = vadd.f32 %v5243_v10, %v5215_v25  ;;  %v5272_v17 = vpop.f32.mrf.mxu1  ;;  %v9112_v63 = vld [vmem:[#allocation6 + $0xf88] sm:$0xf]  ;;  %v10157_v10 = vld [vmem:[#allocation6 + $0xf94] sm:$0xf0] }
 0x327   :  { %v6733_v15 = vsel %vm6729_vm3, 0.0, %v6725_v0  ;;  %v9575_v48 = vsel %vm6729_vm3, 1.0, %v12279_v36  ;;  %5771 = vmatpush.bf16.msrb.mxu3 %v9369_v31 }
 0x328   :  { %v6744_v13 = vpack.c.bf16 %v9575_v48, %v9574_v61  ;;  %v5273_v26 = vadd.f32 %v5272_v17, %v5244_v27  ;;  %v6765_v7 = vmul.f32 0.97, %v6733_v15  ;;  %v12436_v27 = vld [vmem:[#allocation42_spill] sm:$0xff]  ;;  %v9113_v17 = vor.u32 %v10157_v10, %v9112_v63  ;;  %v12437_v15 = vld [vmem:[#allocation43_spill] sm:$0xff]  ;;  %v12438_v48 = vld [vmem:[#allocation56_spill] sm:$0xff] }
 0x32a   :  { %v6746_v44 = vsel %vm11472_vm12, %v11587_v30, %v6744_v13  ;;  %v6761_v33 = vadd.f32 %v6757_v46, %v5273_v26  ;;  %5713 = vmatpush.bf16.msrb.mxu1 %v9113_v17  ;;  %v10185_v46 = vld [vmem:[#allocation6 + $0x1074] sm:$0xf0]  ;;  %v8968_v26 = vld [vmem:[#allocation6 + $0xe68] sm:$0xf] }
 0x32b   :  { %v6748_v45 = vsel %vm11483_vm13, %v11610_v57, %v6746_v44  ;;  %v9225_v1 = vor.u32 %v10185_v46, %v9224_v50  ;;  %v8969_v20 = vor.u32 %v10121_v6, %v8968_v26  ;;  %v9080_v50 = vld [vmem:[#allocation6 + $0xf48] sm:$0xf]  ;;  %v10149_v46 = vld [vmem:[#allocation6 + $0xf54] sm:$0xf0]  ;;  %v12441_v6 = vld [vmem:[#allocation47_spill] sm:$0xff] }
 0x32c   :  { %6750 = vst [vmem:[%s12148_s3 + $0x60] sm:$0xff] %v6748_v45  ;;  %v6769_v38 = vadd.f32 %v6765_v7, %v6761_v33  ;;  %v5301_v56 = vpop.f32.mrf.mxu2 }
 0x32d   :  { %v5330_v30 = vpop.f32.mrf.mxu3  ;;  %v5342_v58 = vpop.f32.mrf.mxu0  ;;  %5743 = vmatpush.bf16.msrb.mxu2 %v9225_v1  ;;  %5685 = vmatpush.bf16.msrb.mxu0 %v8969_v20  ;;  %v9081_v1 = vor.u32 %v10149_v46, %v9080_v50  ;;  %v10177_v20 = vld [vmem:[#allocation6 + $0x1034] sm:$0xf0]  ;;  %v9048_v46 = vld [vmem:[#allocation6 + $0xf08] sm:$0xf] }
 0x32e   :  { %vm6773_vm5 = vcmp.ge.f32.partialorder %v6769_v38, 1.25  ;;  %v11643_v25 = vadd.f32 %v5330_v30, %v5301_v56  ;;  %v5343_v0 = vadd.f32 %v5342_v58, %v11491_v41  ;;  %v5371_v23 = vpop.f32.mrf.mxu1  ;;  %v10181_v38 = vld [vmem:[#allocation6 + $0x1054] sm:$0xf0]  ;;  %v8952_v56 = vld [vmem:[#allocation6 + $0xe48] sm:$0xf] }
 0x32f   :  { %v9579_v34 = vsel %vm6773_vm5, 1.0, %v12279_v36  ;;  %v9209_v30 = vor.u32 %v10181_v38, %v9208_v54  ;;  %v10117_v58 = vld [vmem:[#allocation6 + $0xe54] sm:$0xf0]  ;;  %v7290_v36 = vld [vmem:[#allocation6 + $0x158] sm:$0xf0] }
 0x330   :  { %v6788_v39 = vpack.c.bf16 %v9579_v34, %v9578_v35  ;;  %v5372_v61 = vadd.f32 %v5371_v23, %v5343_v0  ;;  %5573 = vmatmul.bf16.vlgmr.msra.gmra.mxu0 %v12436_v27  ;;  %5602 = vmatmul.bf16.vlgmr.msra.gmra.mxu1 %v12437_v15  ;;  %v9336_v0 = vld [vmem:[#allocation6 + $0x1148] sm:$0xf]  ;;  %v10213_v23 = vld [vmem:[#allocation6 + $0x1154] sm:$0xf0]  ;;  %v8953_v35 = vor.u32 %v10117_v58, %v8952_v56 }
 0x331   :  { %5631 = vmatmul.bf16.vlgmr.msra.gmra.mxu2 %v12438_v48  ;;  %v9337_v34 = vor.u32 %v10213_v23, %v9336_v0  ;;  %v10145_v58 = vld [vmem:[#allocation6 + $0xf34] sm:$0xf0] }
 0x332   :  { %v6790_v41 = vsel %vm11472_vm12, %v11610_v57, %v6788_v39  ;;  %5660 = vmatmul.bf16.vlgmr.msra.gmra.mxu3 %v12439_v42  ;;  %v9353_v57 = vor.u32 %v10217_v40, %v9352_v29  ;;  %5744 = vmatpush.bf16.msrb.mxu2 %v9209_v30  ;;  %v12442_v29 = vld [vmem:[#allocation60_spill] sm:$0xff]  ;;  %v12443_v40 = vld [vmem:[#allocation61_spill] sm:$0xff] }
 0x333   :  { %v6792_v52 = vsel %vm11483_vm13, %v6744_v13, %v6790_v41  ;;  %v9096_v13 = vld [vmem:[#allocation6 + $0xf68] sm:$0xf]  ;;  %5686 = vmatpush.bf16.msrb.mxu0 %v8953_v35 }
 0x334   :  { %6794 = vst [vmem:[%s12148_s3 + $0x70] sm:$0xff] %v6792_v52  ;;  %v5400_v37 = vpop.f32.mrf.mxu2  ;;  %5772 = vmatpush.bf16.msrb.mxu3 %v9353_v57  ;;  %v9097_v31 = vor.u32 %v10153_v62, %v9096_v13  ;;  %v12440_v52 = vld [vmem:[#allocation46_spill] sm:$0xff]  ;;  %v8936_v57 = vld [vmem:[#allocation6 + $0xe28] sm:$0xf] }
 0x335   :  { %v5401_v43 = vadd.f32 %v5400_v37, %v5372_v61  ;;  %v5429_v44 = vpop.f32.mrf.mxu3  ;;  %v5344_v7 = vpop.f32.mrf.mxu0  ;;  %v9192_v37 = vld [vmem:[#allocation6 + $0x1028] sm:$0xf] }
 0x336   :  { %v5345_v33 = vadd.f32 %v5344_v7, %v11507_v12  ;;  %v5373_v11 = vpop.f32.mrf.mxu1  ;;  %5714 = vmatpush.bf16.msrb.mxu1 %v9097_v31  ;;  %v10209_v7 = vld [vmem:[#allocation6 + $0x1134] sm:$0xf0]  ;;  %v9064_v30 = vld [vmem:[#allocation6 + $0xf28] sm:$0xf] }
 0x337   :  { %v11661_v53 = vadd.f32 %v5429_v44, %v5401_v43  ;;  %v10113_v43 = vld [vmem:[#allocation6 + $0xe34] sm:$0xf0]  ;;  %v9320_v44 = vld [vmem:[#allocation6 + $0x1128] sm:$0xf]  ;;  %v9065_v23 = vor.u32 %v10145_v58, %v9064_v30  ;;  %v9751_v58 = vld [vmem:[#allocation6 + $0x2ec] sm:$0xf] }
 0x338   :  { %v5374_v45 = vadd.f32 %v5373_v11, %v5345_v33  ;;  %5773 = vmatpush.bf16.msrb.mxu3 %v9337_v34  ;;  %v8937_v11 = vor.u32 %v10113_v43, %v8936_v57  ;;  %v9321_v13 = vor.u32 %v10209_v7, %v9320_v44  ;;  %v9176_v35 = vld [vmem:[#allocation6 + $0x1008] sm:$0xf]  ;;  %v10173_v34 = vld [vmem:[#allocation6 + $0x1014] sm:$0xf0] }
 0x339   :  { %v10265_v30 = vld [vmem:[#allocation6 + $0x12f4] sm:$0xf0] }
 0x33a   :  { %5715 = vmatpush.bf16.msrb.mxu1 %v9081_v1  ;;  %5687 = vmatpush.bf16.msrb.mxu0 %v8937_v11  ;;  %v12445_v11 = vld [vmem:[#allocation51_spill] sm:$0xff] }
 0x33c   :  { %v5402_v12 = vpop.f32.mrf.mxu2  ;;  %5774 = vmatpush.bf16.msrb.mxu3 %v9321_v13  ;;  %v12446_v13 = vld [vmem:[#allocation64_spill] sm:$0xff] }
 0x33d   :  { %v5403_v63 = vadd.f32 %v5402_v12, %v5374_v45  ;;  %v5431_v10 = vpop.f32.mrf.mxu3  ;;  %v5347_v39 = vpop.f32.mrf.mxu0  ;;  %v8920_v12 = vld [vmem:[#allocation6 + $0xe08] sm:$0xf] }
 0x33e   :  { %v5348_v61 = vadd.f32 %v5347_v39, %v11530_v5  ;;  %v5376_v17 = vpop.f32.mrf.mxu1  ;;  %v9193_v5 = vor.u32 %v10177_v20, %v9192_v37  ;;  %v9304_v39 = vld [vmem:[#allocation6 + $0x1108] sm:$0xf]  ;;  %5716 = vmatpush.bf16.msrb.mxu1 %v9065_v23 }
 0x33f   :  { %v11664_v41 = vadd.f32 %v5431_v10, %v5403_v63  ;;  %v9177_v63 = vor.u32 %v10173_v34, %v9176_v35  ;;  %v10109_v10 = vld [vmem:[#allocation6 + $0xe14] sm:$0xf0] }
 0x340   :  { %v5377_v26 = vadd.f32 %v5376_v17, %v5348_v61  ;;  %5578 = vmatmul.bf16.gmra.mxu0 %v12440_v52  ;;  %5607 = vmatmul.bf16.gmra.mxu1 %v12441_v6  ;;  %v10205_v61 = vld [vmem:[#allocation6 + $0x1114] sm:$0xf0]  ;;  %v8921_v17 = vor.u32 %v10109_v10, %v8920_v12 }
 0x341   :  { %5636 = vmatmul.bf16.gmra.mxu2 %v12442_v29  ;;  %v9305_v50 = vor.u32 %v10205_v61, %v9304_v39 }
 0x342   :  { %5665 = vmatmul.bf16.gmra.mxu3 %v12443_v40  ;;  %5745 = vmatpush.bf16.msrb.mxu2 %v9193_v5 }
 0x343   :  { %5688 = vmatpush.bf16.msrb.mxu0 %v8921_v17  ;;  %5775 = vmatpush.bf16.msrb.mxu3 %v9305_v50  ;;  %v9687_v17 = vld [vmem:[#allocation6 + $0xec] sm:$0xf]  ;;  %v7242_v50 = vld [vmem:[#allocation6 + $0xf8] sm:$0xf0] }
 0x344   :  { %v5405_v33 = vpop.f32.mrf.mxu2 }
 0x345   :  { %v5406_v62 = vadd.f32 %v5405_v33, %v5377_v26  ;;  %v5434_v45 = vpop.f32.mrf.mxu3  ;;  %v5349_v31 = vpop.f32.mrf.mxu0  ;;  %v10141_v26 = vld [vmem:[#allocation6 + $0xf14] sm:$0xf0] }
 0x346   :  { %v5350_v54 = vadd.f32 %v5349_v31, %v11556_v16  ;;  %v5378_v38 = vpop.f32.mrf.mxu1  ;;  %5746 = vmatpush.bf16.msrb.mxu2 %v9177_v63  ;;  %v9049_v57 = vor.u32 %v10141_v26, %v9048_v46  ;;  %v12444_v33 = vld [vmem:[#allocation50_spill] sm:$0xff]  ;;  %v7370_v31 = vld [vmem:[#allocation6 + $0x1f8] sm:$0xf0]  ;;  %v7245_v46 = vor.u32 %v9687_v17, %v7242_v50  ;;  %v9715_v26 = vld [vmem:[#allocation6 + $0x1cc] sm:$0xf] }
 0x347   :  { %v11671_v56 = vadd.f32 %v5434_v45, %v5406_v62  ;;  %v12447_v62 = vld [vmem:[#allocation65_spill] sm:$0xff]  ;;  %v7338_v50 = vld [vmem:[#allocation6 + $0x1b8] sm:$0xf0] }
 0x348   :  { %v5379_v0 = vadd.f32 %v5378_v38, %v5350_v54  ;;  %5717 = vmatpush.bf16.msrb.mxu1 %v9049_v57  ;;  %v9719_v45 = vld [vmem:[#allocation6 + $0x1ec] sm:$0xf]  ;;  %v9544_v54 = vld [vmem:[#allocation6 + $0x12e8] sm:$0xf]  ;;  %v10261_v57 = vld [vmem:[#allocation6 + $0x12d4] sm:$0xf0] }
 0x349   :  { %v7373_v38 = vor.u32 %v9719_v45, %v7370_v31  ;;  %v9545_v23 = vor.u32 %v10265_v30, %v9544_v54  ;;  %v9711_v17 = vld [vmem:[#allocation6 + $0x1ac] sm:$0xf] }
 0x34b   :  { %5855 = vmatpush.bf16.msra.mxu2 %v7373_v38  ;;  %5797 = vmatpush.bf16.msra.mxu0 %v9545_v23  ;;  %v7226_v23 = vld [vmem:[#allocation6 + $0xd8] sm:$0xf0] }
 0x34c   :  { %v5407_v16 = vpop.f32.mrf.mxu2  ;;  %5826 = vmatpush.bf16.msra.mxu1 %v7245_v46  ;;  %v10257_v46 = vld [vmem:[#allocation6 + $0x12b4] sm:$0xf0] }
 0x34d   :  { %v5408_v1 = vadd.f32 %v5407_v16, %v5379_v0  ;;  %v5436_v37 = vpop.f32.mrf.mxu3  ;;  %v5352_v20 = vpop.f32.mrf.mxu0 }
 0x34e   :  { %v5353_v5 = vadd.f32 %v5352_v20, %v11583_v24  ;;  %v5381_v43 = vpop.f32.mrf.mxu1  ;;  %v7498_v24 = vld [vmem:[#allocation6 + $0x2f8] sm:$0xf0] }
 0x34f   :  { %v11674_v44 = vadd.f32 %v5436_v37, %v5408_v1  ;;  %v7501_v35 = vor.u32 %v9751_v58, %v7498_v24  ;;  %v7354_v1 = vld [vmem:[#allocation6 + $0x1d8] sm:$0xf0]  ;;  %v9528_v37 = vld [vmem:[#allocation6 + $0x12c8] sm:$0xf] }
 0x350   :  { %v5382_v7 = vadd.f32 %v5381_v43, %v5353_v5  ;;  %5583 = vmatmul.bf16.gmra.mxu0 %v12444_v33  ;;  %5612 = vmatmul.bf16.gmra.mxu1 %v12445_v11  ;;  %v7357_v20 = vor.u32 %v9715_v26, %v7354_v1  ;;  %v9747_v5 = vld [vmem:[#allocation6 + $0x2cc] sm:$0xf]  ;;  %v7482_v43 = vld [vmem:[#allocation6 + $0x2d8] sm:$0xf0] }
 0x351   :  { %5641 = vmatmul.bf16.gmra.mxu2 %v12446_v13  ;;  %5884 = vmatpush.bf16.msra.mxu3 %v7501_v35  ;;  %v7485_v45 = vor.u32 %v9747_v5, %v7482_v43  ;;  %v9743_v26 = vld [vmem:[#allocation6 + $0x2ac] sm:$0xf]  ;;  %v7466_v1 = vld [vmem:[#allocation6 + $0x2b8] sm:$0xf0] }
 0x352   :  { %5670 = vmatmul.bf16.gmra.mxu3 %v12447_v62  ;;  %5856 = vmatpush.bf16.msra.mxu2 %v7357_v20 }
 0x354   :  { %v5410_v0 = vpop.f32.mrf.mxu2 }
 0x355   :  { %v5411_v34 = vadd.f32 %v5410_v0, %v5382_v7  ;;  %v5439_v12 = vpop.f32.mrf.mxu3  ;;  %v5354_v63 = vpop.f32.mrf.mxu0  ;;  %v9529_v7 = vor.u32 %v10261_v57, %v9528_v37  ;;  %5885 = vmatpush.bf16.msra.mxu3 %v7485_v45  ;;  %v9683_v0 = vld [vmem:[#allocation6 + $0xcc] sm:$0xf]  ;;  %v7469_v57 = vor.u32 %v9743_v26, %v7466_v1 }
 0x356   :  { %v5355_v10 = vadd.f32 %v5354_v63, %v11606_v55  ;;  %v5383_v39 = vpop.f32.mrf.mxu1  ;;  %v12449_v63 = vld [vmem:[#allocation55_spill] sm:$0xff] }
 0x357   :  { %v11681_v61 = vadd.f32 %v5439_v12, %v5411_v34  ;;  %5798 = vmatpush.bf16.msra.mxu0 %v9529_v7  ;;  %v12448_v34 = vld [vmem:[#allocation54_spill] sm:$0xff]  ;;  %v7229_v12 = vor.u32 %v9683_v0, %v7226_v23  ;;  %v9707_v0 = vld [vmem:[#allocation6 + $0x18c] sm:$0xf]  ;;  %v7322_v23 = vld [vmem:[#allocation6 + $0x198] sm:$0xf0] }
 0x358   :  { %v5384_v16 = vadd.f32 %v5383_v39, %v5355_v10  ;;  %v12450_v10 = vld [vmem:[#allocation68_spill] sm:$0xff]  ;;  %v12451_v39 = vld [vmem:[#allocation69_spill] sm:$0xff] }
 0x359   :  { %5827 = vmatpush.bf16.msra.mxu1 %v7229_v12  ;;  %5886 = vmatpush.bf16.msra.mxu3 %v7469_v57  ;;  %v9496_v12 = vld [vmem:[#allocation6 + $0x1288] sm:$0xf] }
 0x35c   :  { %v5412_v55 = vpop.f32.mrf.mxu2 }
 0x35d   :  { %v5413_v31 = vadd.f32 %v5412_v55, %v5384_v16  ;;  %v5441_v54 = vpop.f32.mrf.mxu3  ;;  %v5357_v38 = vpop.f32.mrf.mxu0  ;;  %v9512_v16 = vld [vmem:[#allocation6 + $0x12a8] sm:$0xf] }
 0x35e   :  { %v5358_v30 = vadd.f32 %v5357_v38, %v11630_v21  ;;  %v5386_v58 = vpop.f32.mrf.mxu1  ;;  %v7341_v21 = vor.u32 %v9711_v17, %v7338_v50  ;;  %v9513_v20 = vor.u32 %v10257_v46, %v9512_v16  ;;  %v7210_v38 = vld [vmem:[#allocation6 + $0xb8] sm:$0xf0]  ;;  %v7325_v17 = vor.u32 %v9707_v0, %v7322_v23  ;;  %v10253_v50 = vld [vmem:[#allocation6 + $0x1294] sm:$0xf0]  ;;  %v12455_v0 = vld [vmem:[#allocation73_spill] sm:$0xff] }
 0x35f   :  { %v11684_v24 = vadd.f32 %v5441_v54, %v5413_v31  ;;  %v9679_v54 = vld [vmem:[#allocation6 + $0xac] sm:$0xf]  ;;  %v7450_v16 = vld [vmem:[#allocation6 + $0x298] sm:$0xf0] }
 0x360   :  { %v5387_v35 = vadd.f32 %v5386_v58, %v5358_v30  ;;  %5588 = vmatmul.bf16.gmra.mxu0 %v12448_v34  ;;  %5617 = vmatmul.bf16.gmra.mxu1 %v12449_v63  ;;  %v7213_v58 = vor.u32 %v9679_v54, %v7210_v38  ;;  %v12453_v38 = vld [vmem:[#allocation59_spill] sm:$0xff] }
 0x361   :  { %5646 = vmatmul.bf16.gmra.mxu2 %v12450_v10  ;;  %5799 = vmatpush.bf16.msra.mxu0 %v9513_v20  ;;  %v7306_v23 = vld [vmem:[#allocation6 + $0x178] sm:$0xf0] }
 0x362   :  { %5675 = vmatmul.bf16.gmra.mxu3 %v12451_v39  ;;  %5857 = vmatpush.bf16.msra.mxu2 %v7341_v21  ;;  %v9497_v21 = vor.u32 %v10253_v50, %v9496_v12  ;;  %v9480_v12 = vld [vmem:[#allocation6 + $0x1268] sm:$0xf]  ;;  %v9735_v50 = vld [vmem:[#allocation6 + $0x26c] sm:$0xf] }
 0x363   :  { %5828 = vmatpush.bf16.msra.mxu1 %v7213_v58  ;;  %v12454_v58 = vld [vmem:[#allocation72_spill] sm:$0xff] }
 0x364   :  { %v5415_v37 = vpop.f32.mrf.mxu2 }
 0x365   :  { %v5416_v5 = vadd.f32 %v5415_v37, %v5387_v35  ;;  %v5444_v43 = vpop.f32.mrf.mxu3  ;;  %v5359_v7 = vpop.f32.mrf.mxu0  ;;  %v9739_v35 = vld [vmem:[#allocation6 + $0x28c] sm:$0xf]  ;;  %5800 = vmatpush.bf16.msra.mxu0 %v9497_v21 }
 0x366   :  { %v5360_v45 = vadd.f32 %v5359_v7, %v11643_v25  ;;  %v5388_v55 = vpop.f32.mrf.mxu1  ;;  %v7453_v46 = vor.u32 %v9739_v35, %v7450_v16  ;;  %5858 = vmatpush.bf16.msra.mxu2 %v7325_v17  ;;  %v7194_v7 = vld [vmem:[#allocation6 + $0x98] sm:$0xf0]  ;;  %v10249_v17 = vld [vmem:[#allocation6 + $0x1274] sm:$0xf0] }
 0x367   :  { %v11691_v31 = vadd.f32 %v5444_v43, %v5416_v5  ;;  %v9675_v43 = vld [vmem:[#allocation6 + $0x8c] sm:$0xf]  ;;  %v7434_v35 = vld [vmem:[#allocation6 + $0x278] sm:$0xf0]  ;;  %v9481_v21 = vor.u32 %v10249_v17, %v9480_v12  ;;  %v10245_v17 = vld [vmem:[#allocation6 + $0x1254] sm:$0xf0] }
 0x368   :  { %v5389_v30 = vadd.f32 %v5388_v55, %v5360_v45  ;;  %5887 = vmatpush.bf16.msra.mxu3 %v7453_v46  ;;  %v12452_v55 = vld [vmem:[#allocation58_spill] sm:$0xff]  ;;  %v7197_v54 = vor.u32 %v9675_v43, %v7194_v7  ;;  %v7437_v46 = vor.u32 %v9735_v50, %v7434_v35  ;;  %v9671_v43 = vld [vmem:[#allocation6 + $0x6c] sm:$0xf]  ;;  %v7178_v7 = vld [vmem:[#allocation6 + $0x78] sm:$0xf0] }
 0x369   :  { %5801 = vmatpush.bf16.msra.mxu0 %v9481_v21  ;;  %v7418_v50 = vld [vmem:[#allocation6 + $0x258] sm:$0xf0] }
 0x36a   :  { %5829 = vmatpush.bf16.msra.mxu1 %v7197_v54 }
 0x36c   :  { %v5417_v25 = vpop.f32.mrf.mxu2  ;;  %5888 = vmatpush.bf16.msra.mxu3 %v7437_v46 }
 0x36d   :  { %v5418_v26 = vadd.f32 %v5417_v25, %v5389_v30  ;;  %v5446_v1 = vpop.f32.mrf.mxu3  ;;  %v5458_v37 = vpop.f32.mrf.mxu0  ;;  %v9703_v30 = vld [vmem:[#allocation6 + $0x16c] sm:$0xf] }
 0x36e   :  { %v5459_v20 = vadd.f32 %v5458_v37, %v11661_v53  ;;  %v5487_v57 = vpop.f32.mrf.mxu1  ;;  %v7309_v53 = vor.u32 %v9703_v30, %v7306_v23  ;;  %v7181_v30 = vor.u32 %v9671_v43, %v7178_v7  ;;  %v9699_v23 = vld [vmem:[#allocation6 + $0x14c] sm:$0xf]  ;;  %v12456_v43 = vld [vmem:[#allocation62_spill] sm:$0xff] }
 0x36f   :  { %v11694_v5 = vadd.f32 %v5446_v1, %v5418_v26  ;;  %v7293_v12 = vor.u32 %v9699_v23, %v7290_v36  ;;  %v7162_v36 = vld [vmem:[#allocation6 + $0x58] sm:$0xf0]  ;;  %v12459_v23 = vld [vmem:[#allocation76_spill] sm:$0xff] }
 0x370   :  { %v5488_v45 = vadd.f32 %v5487_v57, %v5459_v20  ;;  %5689 = vmatmul.bf16.vlgmr.msrb.gmra.mxu0 %v12452_v55  ;;  %5718 = vmatmul.bf16.vlgmr.msrb.gmra.mxu1 %v12453_v38  ;;  %v9779_v38 = vld [vmem:[#allocation6 + $0x3cc] sm:$0xf] }
 0x371   :  { %5747 = vmatmul.bf16.vlgmr.msrb.gmra.mxu2 %v12454_v58  ;;  %5830 = vmatpush.bf16.msra.mxu1 %v7181_v30  ;;  %v12458_v30 = vld [vmem:[#allocation75_spill] sm:$0xff]  ;;  %v9432_v58 = vld [vmem:[#allocation6 + $0x1208] sm:$0xf] }
 0x372   :  { %5776 = vmatmul.bf16.vlgmr.msrb.gmra.mxu3 %v12455_v0  ;;  %5859 = vmatpush.bf16.msra.mxu2 %v7309_v53  ;;  %v9464_v0 = vld [vmem:[#allocation6 + $0x1248] sm:$0xf] }
 0x373   :  { %v9465_v53 = vor.u32 %v10245_v17, %v9464_v0  ;;  %v12457_v0 = vld [vmem:[#allocation63_spill] sm:$0xff]  ;;  %v9448_v17 = vld [vmem:[#allocation6 + $0x1228] sm:$0xf] }
 0x374   :  { %v5516_v16 = vpop.f32.mrf.mxu2 }
 0x375   :  { %v5517_v25 = vadd.f32 %v5516_v16, %v5488_v45  ;;  %v5545_v26 = vpop.f32.mrf.mxu3  ;;  %v5460_v1 = vpop.f32.mrf.mxu0  ;;  %v9731_v45 = vld [vmem:[#allocation6 + $0x24c] sm:$0xf]  ;;  %5802 = vmatpush.bf16.msra.mxu0 %v9465_v53  ;;  %v7402_v53 = vld [vmem:[#allocation6 + $0x238] sm:$0xf0] }
 0x376   :  { %v5461_v37 = vadd.f32 %v5460_v1, %v11664_v41  ;;  %v5489_v20 = vpop.f32.mrf.mxu1  ;;  %v7421_v35 = vor.u32 %v9731_v45, %v7418_v50  ;;  %5860 = vmatpush.bf16.msra.mxu2 %v7293_v12  ;;  %v7274_v12 = vld [vmem:[#allocation6 + $0x138] sm:$0xf0]  ;;  %v10241_v45 = vld [vmem:[#allocation6 + $0x1234] sm:$0xf0]  ;;  %v9727_v50 = vld [vmem:[#allocation6 + $0x22c] sm:$0xf] }
 0x377   :  { %v11701_v57 = vadd.f32 %v5545_v26, %v5517_v25 }
 0x378   :  { %v5490_v54 = vadd.f32 %v5489_v20, %v5461_v37  ;;  %5889 = vmatpush.bf16.msra.mxu3 %v7421_v35  ;;  %v9667_v37 = vld [vmem:[#allocation6 + $0x4c] sm:$0xf] }
 0x379   :  { %v7165_v7 = vor.u32 %v9667_v37, %v7162_v36 }
 0x37b   :  { %5831 = vmatpush.bf16.msra.mxu1 %v7165_v7  ;;  %v9663_v7 = vld [vmem:[#allocation6 + $0x2c] sm:$0xf] }
 0x37c   :  { %v5518_v41 = vpop.f32.mrf.mxu2 }
 0x37d   :  { %v5519_v16 = vadd.f32 %v5518_v41, %v5490_v54  ;;  %v5547_v21 = vpop.f32.mrf.mxu3  ;;  %v5463_v46 = vpop.f32.mrf.mxu0  ;;  %v9695_v54 = vld [vmem:[#allocation6 + $0x12c] sm:$0xf]  ;;  %v9449_v41 = vor.u32 %v10241_v45, %v9448_v17  ;;  %v10237_v45 = vld [vmem:[#allocation6 + $0x1214] sm:$0xf0] }
 0x37e   :  { %v5464_v25 = vadd.f32 %v5463_v46, %v11671_v56  ;;  %v5492_v26 = vpop.f32.mrf.mxu1  ;;  %v7277_v56 = vor.u32 %v9695_v54, %v7274_v12 }
 0x37f   :  { %v11704_v1 = vadd.f32 %v5547_v21, %v5519_v16  ;;  %v7405_v16 = vor.u32 %v9727_v50, %v7402_v53  ;;  %5803 = vmatpush.bf16.msra.mxu0 %v9449_v41  ;;  %v7386_v50 = vld [vmem:[#allocation6 + $0x218] sm:$0xf0] }
 0x380   :  { %v5493_v20 = vadd.f32 %v5492_v26, %v5464_v25  ;;  %5694 = vmatmul.bf16.gmra.mxu0 %v12456_v43  ;;  %5723 = vmatmul.bf16.gmra.mxu1 %v12457_v0  ;;  %v7258_v0 = vld [vmem:[#allocation6 + $0x118] sm:$0xf0] }
 0x381   :  { %5752 = vmatmul.bf16.gmra.mxu2 %v12458_v30  ;;  %5890 = vmatpush.bf16.msra.mxu3 %v7405_v16  ;;  %v9691_v30 = vld [vmem:[#allocation6 + $0x10c] sm:$0xf]  ;;  %v7130_v41 = vld [vmem:[#allocation6 + $0x18] sm:$0xf0] }
 0x382   :  { %5781 = vmatmul.bf16.gmra.mxu3 %v12459_v23  ;;  %5861 = vmatpush.bf16.msra.mxu2 %v7277_v56  ;;  %v7146_v23 = vld [vmem:[#allocation6 + $0x38] sm:$0xf0]  ;;  %v7261_v17 = vor.u32 %v9691_v30, %v7258_v0  ;;  %v9433_v56 = vor.u32 %v10237_v45, %v9432_v58  ;;  %v9783_v45 = vld [vmem:[#allocation6 + $0x3ec] sm:$0xf] }
 0x383   :  { %v7149_v12 = vor.u32 %v9663_v7, %v7146_v23  ;;  %v12461_v58 = vld [vmem:[#allocation67_spill] sm:$0xff]  ;;  %v12462_v7 = vld [vmem:[#allocation78_spill] sm:$0xff] }
 0x384   :  { %v5521_v35 = vpop.f32.mrf.mxu2  ;;  %5804 = vmatpush.bf16.msra.mxu0 %v9433_v56  ;;  %v9879_v56 = vld [vmem:[#allocation6 + $0x6ec] sm:$0xf] }
 0x385   :  { %v5522_v21 = vadd.f32 %v5521_v35, %v5493_v20  ;;  %v5550_v46 = vpop.f32.mrf.mxu3  ;;  %v5465_v25 = vpop.f32.mrf.mxu0  ;;  %v9723_v20 = vld [vmem:[#allocation6 + $0x20c] sm:$0xf]  ;;  %5832 = vmatpush.bf16.msra.mxu1 %v7149_v12  ;;  %v12463_v12 = vld [vmem:[#allocation79_spill] sm:$0xff] }
 0x386   :  { %v5466_v26 = vadd.f32 %v5465_v25, %v11674_v44  ;;  %v5494_v37 = vpop.f32.mrf.mxu1  ;;  %v7389_v53 = vor.u32 %v9723_v20, %v7386_v50  ;;  %5862 = vmatpush.bf16.msra.mxu2 %v7261_v17  ;;  %v9659_v35 = vld [vmem:[#allocation6 + $0xc] sm:$0xf]  ;;  %v7626_v50 = vld [vmem:[#allocation6 + $0x3f8] sm:$0xf0] }
 0x387   :  { %v11711_v36 = vadd.f32 %v5550_v46, %v5522_v21  ;;  %v7133_v23 = vor.u32 %v9659_v35, %v7130_v41  ;;  %v9847_v17 = vld [vmem:[#allocation6 + $0x5ec] sm:$0xf] }
 0x388   :  { %v5495_v54 = vadd.f32 %v5494_v37, %v5466_v26  ;;  %5891 = vmatpush.bf16.msra.mxu3 %v7389_v53  ;;  %v12460_v37 = vld [vmem:[#allocation66_spill] sm:$0xff] }
 0x389   :  { %5833 = vmatpush.bf16.msra.mxu1 %v7133_v23 }
 0x38c   :  { %v5523_v44 = vpop.f32.mrf.mxu2 }
 0x38d   :  { %v5524_v16 = vadd.f32 %v5523_v44, %v5495_v54  ;;  %v5552_v21 = vpop.f32.mrf.mxu3  ;;  %v5468_v46 = vpop.f32.mrf.mxu0  ;;  %v7882_v54 = vld [vmem:[#allocation6 + $0x5f8] sm:$0xf0]  ;;  %v7629_v44 = vor.u32 %v9783_v45, %v7626_v50 }
 0x38e   :  { %v5469_v25 = vadd.f32 %v5468_v46, %v11681_v61  ;;  %v5497_v26 = vpop.f32.mrf.mxu1  ;;  %v7885_v20 = vor.u32 %v9847_v17, %v7882_v54  ;;  %v8010_v61 = vld [vmem:[#allocation6 + $0x6f8] sm:$0xf0] }
 0x38f   :  { %v11714_v0 = vadd.f32 %v5552_v21, %v5524_v16  ;;  %v8013_v35 = vor.u32 %v9879_v56, %v8010_v61  ;;  %5913 = vmatpush.bf16.msrb.mxu0 %v7629_v44  ;;  %v7610_v50 = vld [vmem:[#allocation6 + $0x3d8] sm:$0xf0] }
 0x390   :  { %v5498_v30 = vadd.f32 %v5497_v26, %v5469_v25  ;;  %5699 = vmatmul.bf16.gmra.mxu0 %v12460_v37  ;;  %5728 = vmatmul.bf16.gmra.mxu1 %v12461_v58  ;;  %v9815_v26 = vld [vmem:[#allocation6 + $0x4ec] sm:$0xf]  ;;  %v7866_v58 = vld [vmem:[#allocation6 + $0x5d8] sm:$0xf0] }
 0x391   :  { %5757 = vmatmul.bf16.gmra.mxu2 %v12462_v7  ;;  %6000 = vmatpush.bf16.msrb.mxu3 %v8013_v35  ;;  %v9843_v7 = vld [vmem:[#allocation6 + $0x5cc] sm:$0xf]  ;;  %v7994_v56 = vld [vmem:[#allocation6 + $0x6d8] sm:$0xf0] }
 0x392   :  { %5786 = vmatmul.bf16.gmra.mxu3 %v12463_v12  ;;  %5971 = vmatpush.bf16.msrb.mxu2 %v7885_v20  ;;  %v7754_v12 = vld [vmem:[#allocation6 + $0x4f8] sm:$0xf0]  ;;  %v7869_v45 = vor.u32 %v9843_v7, %v7866_v58  ;;  %v7613_v20 = vor.u32 %v9779_v38, %v7610_v50  ;;  %v9775_v50 = vld [vmem:[#allocation6 + $0x3ac] sm:$0xf] }
 0x393   :  { %v7757_v54 = vor.u32 %v9815_v26, %v7754_v12  ;;  %v7738_v58 = vld [vmem:[#allocation6 + $0x4d8] sm:$0xf0]  ;;  %v12466_v26 = vld [vmem:[#allocation81_spill] sm:$0xff] }
 0x394   :  { %v5526_v53 = vpop.f32.mrf.mxu2  ;;  %5914 = vmatpush.bf16.msrb.mxu0 %v7613_v20  ;;  %v12465_v38 = vld [vmem:[#allocation71_spill] sm:$0xff] }
 0x395   :  { %v5527_v41 = vadd.f32 %v5526_v53, %v5498_v30  ;;  %v5555_v16 = vpop.f32.mrf.mxu3  ;;  %v5470_v21 = vpop.f32.mrf.mxu0  ;;  %v9875_v30 = vld [vmem:[#allocation6 + $0x6cc] sm:$0xf]  ;;  %5942 = vmatpush.bf16.msrb.mxu1 %v7757_v54  ;;  %v12467_v54 = vld [vmem:[#allocation82_spill] sm:$0xff]  ;;  %v7978_v20 = vld [vmem:[#allocation6 + $0x6b8] sm:$0xf0] }
 0x396   :  { %v5471_v46 = vadd.f32 %v5470_v21, %v11684_v24  ;;  %v5499_v23 = vpop.f32.mrf.mxu1  ;;  %v7997_v61 = vor.u32 %v9875_v30, %v7994_v56  ;;  %5972 = vmatpush.bf16.msrb.mxu2 %v7869_v45  ;;  %v9811_v21 = vld [vmem:[#allocation6 + $0x4cc] sm:$0xf]  ;;  %v7850_v45 = vld [vmem:[#allocation6 + $0x5b8] sm:$0xf0] }
 0x397   :  { %v11721_v25 = vadd.f32 %v5555_v16, %v5527_v41  ;;  %v7594_v30 = vld [vmem:[#allocation6 + $0x3b8] sm:$0xf0]  ;;  %v9871_v56 = vld [vmem:[#allocation6 + $0x6ac] sm:$0xf] }
 0x398   :  { %v5500_v17 = vadd.f32 %v5499_v23, %v5471_v46  ;;  %6001 = vmatpush.bf16.msrb.mxu3 %v7997_v61  ;;  %v12464_v46 = vld [vmem:[#allocation70_spill] sm:$0xff]  ;;  %v7741_v23 = vor.u32 %v9811_v21, %v7738_v58 }
 0x39a   :  { %5943 = vmatpush.bf16.msrb.mxu1 %v7741_v23  ;;  %v9807_v23 = vld [vmem:[#allocation6 + $0x4ac] sm:$0xf] }
 0x39c   :  { %v5528_v24 = vpop.f32.mrf.mxu2 }
 0x39d   :  { %v5529_v53 = vadd.f32 %v5528_v24, %v5500_v17  ;;  %v5557_v44 = vpop.f32.mrf.mxu3  ;;  %v5473_v35 = vpop.f32.mrf.mxu0  ;;  %v9839_v17 = vld [vmem:[#allocation6 + $0x5ac] sm:$0xf]  ;;  %v7597_v24 = vor.u32 %v9775_v50, %v7594_v30  ;;  %v7578_v30 = vld [vmem:[#allocation6 + $0x398] sm:$0xf0] }
 0x39e   :  { %v5474_v41 = vadd.f32 %v5473_v35, %v11691_v31  ;;  %v5502_v12 = vpop.f32.mrf.mxu1  ;;  %v7853_v31 = vor.u32 %v9839_v17, %v7850_v45 }
 0x39f   :  { %v11724_v16 = vadd.f32 %v5557_v44, %v5529_v53  ;;  %v7981_v53 = vor.u32 %v9871_v56, %v7978_v20  ;;  %5915 = vmatpush.bf16.msrb.mxu0 %v7597_v24  ;;  %v7962_v56 = vld [vmem:[#allocation6 + $0x698] sm:$0xf0] }
 0x3a0   :  { %v5503_v7 = vadd.f32 %v5502_v12, %v5474_v41  ;;  %5704 = vmatmul.bf16.gmra.mxu0 %v12464_v46  ;;  %5733 = vmatmul.bf16.gmra.mxu1 %v12465_v38  ;;  %v7834_v38 = vld [vmem:[#allocation6 + $0x598] sm:$0xf0]  ;;  %v9771_v46 = vld [vmem:[#allocation6 + $0x38c] sm:$0xf] }
 0x3a1   :  { %5762 = vmatmul.bf16.gmra.mxu2 %v12466_v26  ;;  %6002 = vmatpush.bf16.msrb.mxu3 %v7981_v53  ;;  %v9835_v26 = vld [vmem:[#allocation6 + $0x58c] sm:$0xf] }
 0x3a2   :  { %5791 = vmatmul.bf16.gmra.mxu3 %v12467_v54  ;;  %5973 = vmatpush.bf16.msrb.mxu2 %v7853_v31  ;;  %v7722_v54 = vld [vmem:[#allocation6 + $0x4b8] sm:$0xf0]  ;;  %v7837_v50 = vor.u32 %v9835_v26, %v7834_v38  ;;  %v7581_v31 = vor.u32 %v9771_v46, %v7578_v30  ;;  %v12469_v46 = vld [vmem:[#allocation12_spill] sm:$0xff]  ;;  %v9767_v30 = vld [vmem:[#allocation6 + $0x36c] sm:$0xf] }
 0x3a3   :  { %v7725_v45 = vor.u32 %v9807_v23, %v7722_v54  ;;  %v7706_v38 = vld [vmem:[#allocation6 + $0x498] sm:$0xf0]  ;;  %v12470_v23 = vld [vmem:[#allocation13_spill] sm:$0xff] }
 0x3a4   :  { %v5531_v61 = vpop.f32.mrf.mxu2  ;;  %5916 = vmatpush.bf16.msrb.mxu0 %v7581_v31  ;;  %v7946_v31 = vld [vmem:[#allocation6 + $0x678] sm:$0xf0] }
 0x3a5   :  { %v5532_v44 = vadd.f32 %v5531_v61, %v5503_v7  ;;  %v5560_v35 = vpop.f32.mrf.mxu3  ;;  %v5475_v41 = vpop.f32.mrf.mxu0  ;;  %v9867_v7 = vld [vmem:[#allocation6 + $0x68c] sm:$0xf]  ;;  %5944 = vmatpush.bf16.msrb.mxu1 %v7725_v45  ;;  %v12471_v45 = vld [vmem:[#allocation14_spill] sm:$0xff] }
 0x3a6   :  { %v5476_v12 = vadd.f32 %v5475_v41, %v11694_v5  ;;  %v5504_v21 = vpop.f32.mrf.mxu1  ;;  %v7965_v20 = vor.u32 %v9867_v7, %v7962_v56  ;;  %5974 = vmatpush.bf16.msrb.mxu2 %v7837_v50  ;;  %v9803_v41 = vld [vmem:[#allocation6 + $0x48c] sm:$0xf]  ;;  %v7818_v50 = vld [vmem:[#allocation6 + $0x578] sm:$0xf0] }
 0x3a7   :  { %v11731_v58 = vadd.f32 %v5560_v35, %v5532_v44  ;;  %v7562_v7 = vld [vmem:[#allocation6 + $0x378] sm:$0xf0]  ;;  %v9863_v56 = vld [vmem:[#allocation6 + $0x66c] sm:$0xf] }
 0x3a8   :  { %v5505_v17 = vadd.f32 %v5504_v21, %v5476_v12  ;;  %6003 = vmatpush.bf16.msrb.mxu3 %v7965_v20  ;;  %v12468_v12 = vld [vmem:[#allocation74_spill] sm:$0xff]  ;;  %v7709_v21 = vor.u32 %v9803_v41, %v7706_v38 }
 0x3aa   :  { %5945 = vmatpush.bf16.msrb.mxu1 %v7709_v21  ;;  %v9799_v21 = vld [vmem:[#allocation6 + $0x46c] sm:$0xf] }
 0x3ac   :  { %v5533_v5 = vpop.f32.mrf.mxu2 }
 0x3ad   :  { %v5534_v61 = vadd.f32 %v5533_v5, %v5505_v17  ;;  %v5562_v24 = vpop.f32.mrf.mxu3  ;;  %v5574_v53 = vpop.f32.mrf.mxu0  ;;  %v9831_v17 = vld [vmem:[#allocation6 + $0x56c] sm:$0xf]  ;;  %v7565_v5 = vor.u32 %v9767_v30, %v7562_v7  ;;  %v7546_v7 = vld [vmem:[#allocation6 + $0x358] sm:$0xf0] }
 0x3ae   :  { %v5575_v44 = vadd.f32 %v5574_v53, %v11701_v57  ;;  %v5603_v54 = vpop.f32.mrf.mxu1  ;;  %v7821_v57 = vor.u32 %v9831_v17, %v7818_v50  ;;  %v9827_v17 = vld [vmem:[#allocation6 + $0x54c] sm:$0xf]  ;;  %v7802_v50 = vld [vmem:[#allocation6 + $0x558] sm:$0xf0] }
 0x3af   :  { %v11734_v35 = vadd.f32 %v5562_v24, %v5534_v61  ;;  %v7949_v61 = vor.u32 %v9863_v56, %v7946_v31  ;;  %5917 = vmatpush.bf16.msrb.mxu0 %v7565_v5  ;;  %v7805_v30 = vor.u32 %v9827_v17, %v7802_v50  ;;  %v7930_v56 = vld [vmem:[#allocation6 + $0x658] sm:$0xf0]  ;;  %v12474_v17 = vld [vmem:[#allocation17_spill] sm:$0xff]  ;;  %v12475_v50 = vld [vmem:[#allocation18_spill] sm:$0xff] }
 0x3b0   :  { %v5604_v26 = vadd.f32 %v5603_v54, %v5575_v44  ;;  %5805 = vmatmul.bf16.vlgmr.msra.gmra.mxu0 %v12468_v12  ;;  %5834 = vmatmul.bf16.vlgmr.msra.gmra.mxu1 %v12469_v46  ;;  %v7690_v46 = vld [vmem:[#allocation6 + $0x478] sm:$0xf0]  ;;  %v9763_v12 = vld [vmem:[#allocation6 + $0x34c] sm:$0xf] }
 0x3b1   :  { %5863 = vmatmul.bf16.vlgmr.msra.gmra.mxu2 %v12470_v23  ;;  %6004 = vmatpush.bf16.msrb.mxu3 %v7949_v61 }
 0x3b2   :  { %5892 = vmatmul.bf16.vlgmr.msra.gmra.mxu3 %v12471_v45  ;;  %5975 = vmatpush.bf16.msrb.mxu2 %v7821_v57  ;;  %v7693_v45 = vor.u32 %v9799_v21, %v7690_v46  ;;  %v7549_v57 = vor.u32 %v9763_v12, %v7546_v7  ;;  %v12472_v46 = vld [vmem:[#allocation77_spill] sm:$0xff]  ;;  %v12473_v12 = vld [vmem:[#allocation16_spill] sm:$0xff] }
 0x3b3   :  { %v9759_v7 = vld [vmem:[#allocation6 + $0x32c] sm:$0xf] }
 0x3b4   :  { %v5632_v20 = vpop.f32.mrf.mxu2  ;;  %5946 = vmatpush.bf16.msrb.mxu1 %v7693_v45  ;;  %5918 = vmatpush.bf16.msrb.mxu0 %v7549_v57  ;;  %v7914_v57 = vld [vmem:[#allocation6 + $0x638] sm:$0xf0] }
 0x3b5   :  { %v5633_v24 = vadd.f32 %v5632_v20, %v5604_v26  ;;  %v5661_v53 = vpop.f32.mrf.mxu3  ;;  %v5576_v44 = vpop.f32.mrf.mxu0  ;;  %v9859_v26 = vld [vmem:[#allocation6 + $0x64c] sm:$0xf] }
 0x3b6   :  { %v5577_v54 = vadd.f32 %v5576_v44, %v11704_v1  ;;  %v5605_v41 = vpop.f32.mrf.mxu1  ;;  %v7933_v31 = vor.u32 %v9859_v26, %v7930_v56  ;;  %5976 = vmatpush.bf16.msrb.mxu2 %v7805_v30  ;;  %v7786_v30 = vld [vmem:[#allocation6 + $0x538] sm:$0xf0]  ;;  %v9855_v56 = vld [vmem:[#allocation6 + $0x62c] sm:$0xf] }
 0x3b7   :  { %v11741_v38 = vadd.f32 %v5661_v53, %v5633_v24  ;;  %v7530_v26 = vld [vmem:[#allocation6 + $0x338] sm:$0xf0] }
 0x3b8   :  { %v5606_v23 = vadd.f32 %v5605_v41, %v5577_v54  ;;  %6005 = vmatpush.bf16.msrb.mxu3 %v7933_v31  ;;  %v9795_v54 = vld [vmem:[#allocation6 + $0x44c] sm:$0xf]  ;;  %v7674_v41 = vld [vmem:[#allocation6 + $0x458] sm:$0xf0] }
 0x3b9   :  { %v7677_v45 = vor.u32 %v9795_v54, %v7674_v41 }
 0x3bb   :  { %5947 = vmatpush.bf16.msrb.mxu1 %v7677_v45  ;;  %v9791_v45 = vld [vmem:[#allocation6 + $0x42c] sm:$0xf] }
 0x3bc   :  { %v5634_v1 = vpop.f32.mrf.mxu2 }
 0x3bd   :  { %v5635_v20 = vadd.f32 %v5634_v1, %v5606_v23  ;;  %v5663_v5 = vpop.f32.mrf.mxu3  ;;  %v5579_v61 = vpop.f32.mrf.mxu0  ;;  %v9823_v23 = vld [vmem:[#allocation6 + $0x52c] sm:$0xf]  ;;  %v7533_v1 = vor.u32 %v9759_v7, %v7530_v26  ;;  %v7514_v26 = vld [vmem:[#allocation6 + $0x318] sm:$0xf0] }
 0x3be   :  { %v5580_v24 = vadd.f32 %v5579_v61, %v11711_v36  ;;  %v5608_v53 = vpop.f32.mrf.mxu1  ;;  %v7789_v36 = vor.u32 %v9823_v23, %v7786_v30  ;;  %v9819_v23 = vld [vmem:[#allocation6 + $0x50c] sm:$0xf]  ;;  %v7770_v30 = vld [vmem:[#allocation6 + $0x518] sm:$0xf0] }
 0x3bf   :  { %v11744_v44 = vadd.f32 %v5663_v5, %v5635_v20  ;;  %v7917_v20 = vor.u32 %v9855_v56, %v7914_v57  ;;  %5919 = vmatpush.bf16.msrb.mxu0 %v7533_v1  ;;  %v7773_v7 = vor.u32 %v9819_v23, %v7770_v30  ;;  %v7898_v56 = vld [vmem:[#allocation6 + $0x618] sm:$0xf0]  ;;  %v12478_v23 = vld [vmem:[#allocation21_spill] sm:$0xff]  ;;  %v12479_v30 = vld [vmem:[#allocation22_spill] sm:$0xff] }
 0x3c0   :  { %v5609_v21 = vadd.f32 %v5608_v53, %v5580_v24  ;;  %5810 = vmatmul.bf16.gmra.mxu0 %v12472_v46  ;;  %5839 = vmatmul.bf16.gmra.mxu1 %v12473_v12  ;;  %v7658_v12 = vld [vmem:[#allocation6 + $0x438] sm:$0xf0]  ;;  %v9755_v46 = vld [vmem:[#allocation6 + $0x30c] sm:$0xf] }
 0x3c1   :  { %5868 = vmatmul.bf16.gmra.mxu2 %v12474_v17  ;;  %6006 = vmatpush.bf16.msrb.mxu3 %v7917_v20  ;;  %v7642_v1 = vld [vmem:[#allocation6 + $0x418] sm:$0xf0] }
 0x3c2   :  { %5897 = vmatmul.bf16.gmra.mxu3 %v12475_v50  ;;  %5977 = vmatpush.bf16.msrb.mxu2 %v7789_v36  ;;  %v7661_v50 = vor.u32 %v9791_v45, %v7658_v12  ;;  %v7517_v36 = vor.u32 %v9755_v46, %v7514_v26  ;;  %v12477_v46 = vld [vmem:[#allocation20_spill] sm:$0xff]  ;;  %v9911_v26 = vld [vmem:[#allocation6 + $0x7ec] sm:$0xf] }
 0x3c4   :  { %v5637_v31 = vpop.f32.mrf.mxu2  ;;  %5948 = vmatpush.bf16.msrb.mxu1 %v7661_v50  ;;  %5920 = vmatpush.bf16.msrb.mxu0 %v7517_v36  ;;  %v12476_v50 = vld [vmem:[#allocation80_spill] sm:$0xff]  ;;  %v10007_v36 = vld [vmem:[#allocation6 + $0xaec] sm:$0xf] }
 0x3c5   :  { %v5638_v5 = vadd.f32 %v5637_v31, %v5609_v21  ;;  %v5666_v61 = vpop.f32.mrf.mxu3  ;;  %v5581_v24 = vpop.f32.mrf.mxu0  ;;  %v9851_v21 = vld [vmem:[#allocation6 + $0x60c] sm:$0xf] }
 0x3c6   :  { %v5582_v53 = vadd.f32 %v5581_v24, %v11714_v0  ;;  %v5610_v54 = vpop.f32.mrf.mxu1  ;;  %v7901_v57 = vor.u32 %v9851_v21, %v7898_v56  ;;  %5978 = vmatpush.bf16.msrb.mxu2 %v7773_v7  ;;  %v9787_v31 = vld [vmem:[#allocation6 + $0x40c] sm:$0xf]  ;;  %v8138_v56 = vld [vmem:[#allocation6 + $0x7f8] sm:$0xf0] }
 0x3c7   :  { %v11751_v41 = vadd.f32 %v5666_v61, %v5638_v5  ;;  %v7645_v24 = vor.u32 %v9787_v31, %v7642_v1  ;;  %v9975_v7 = vld [vmem:[#allocation6 + $0x9ec] sm:$0xf] }
 0x3c8   :  { %v5611_v17 = vadd.f32 %v5610_v54, %v5582_v53  ;;  %6007 = vmatpush.bf16.msrb.mxu3 %v7901_v57 }
 0x3c9   :  { %5949 = vmatpush.bf16.msrb.mxu1 %v7645_v24 }
 0x3cc   :  { %v5639_v0 = vpop.f32.mrf.mxu2 }
 0x3cd   :  { %v5640_v20 = vadd.f32 %v5639_v0, %v5611_v17  ;;  %v5668_v5 = vpop.f32.mrf.mxu3  ;;  %v5584_v61 = vpop.f32.mrf.mxu0  ;;  %v8394_v17 = vld [vmem:[#allocation6 + $0x9f8] sm:$0xf0]  ;;  %v8141_v0 = vor.u32 %v9911_v26, %v8138_v56 }
 0x3ce   :  { %v5585_v53 = vadd.f32 %v5584_v61, %v11721_v25  ;;  %v5613_v54 = vpop.f32.mrf.mxu1  ;;  %v8397_v21 = vor.u32 %v9975_v7, %v8394_v17  ;;  %v8522_v25 = vld [vmem:[#allocation6 + $0xaf8] sm:$0xf0]  ;;  %v9971_v7 = vld [vmem:[#allocation6 + $0x9cc] sm:$0xf] }
 0x3cf   :  { %v11754_v45 = vadd.f32 %v5668_v5, %v5640_v20  ;;  %v8525_v31 = vor.u32 %v10007_v36, %v8522_v25  ;;  %6029 = vmatpush.bf16.msra.mxu0 %v8141_v0  ;;  %v8378_v17 = vld [vmem:[#allocation6 + $0x9d8] sm:$0xf0] }
 0x3d0   :  { %v5614_v12 = vadd.f32 %v5613_v54, %v5585_v53  ;;  %5815 = vmatmul.bf16.gmra.mxu0 %v12476_v50  ;;  %5844 = vmatmul.bf16.gmra.mxu1 %v12477_v46  ;;  %v9943_v54 = vld [vmem:[#allocation6 + $0x8ec] sm:$0xf]  ;;  %v8266_v46 = vld [vmem:[#allocation6 + $0x8f8] sm:$0xf0]  ;;  %v8381_v26 = vor.u32 %v9971_v7, %v8378_v17  ;;  %v12483_v17 = vld [vmem:[#allocation26_spill] sm:$0xff] }
 0x3d1   :  { %5873 = vmatmul.bf16.gmra.mxu2 %v12478_v23  ;;  %6116 = vmatpush.bf16.msra.mxu3 %v8525_v31  ;;  %v9907_v50 = vld [vmem:[#allocation6 + $0x7cc] sm:$0xf]  ;;  %v8122_v56 = vld [vmem:[#allocation6 + $0x7d8] sm:$0xf0] }
 0x3d2   :  { %5902 = vmatmul.bf16.gmra.mxu3 %v12479_v30  ;;  %6087 = vmatpush.bf16.msra.mxu2 %v8397_v21  ;;  %v8269_v30 = vor.u32 %v9943_v54, %v8266_v46  ;;  %v8506_v36 = vld [vmem:[#allocation6 + $0xad8] sm:$0xf0]  ;;  %v8125_v21 = vor.u32 %v9907_v50, %v8122_v56  ;;  %v12481_v50 = vld [vmem:[#allocation24_spill] sm:$0xff]  ;;  %v12482_v7 = vld [vmem:[#allocation25_spill] sm:$0xff] }
 0x3d3   :  { %v12480_v46 = vld [vmem:[#allocation83_spill] sm:$0xff]  ;;  %v9903_v56 = vld [vmem:[#allocation6 + $0x7ac] sm:$0xf] }
 0x3d4   :  { %v5642_v57 = vpop.f32.mrf.mxu2  ;;  %6058 = vmatpush.bf16.msra.mxu1 %v8269_v30  ;;  %6030 = vmatpush.bf16.msra.mxu0 %v8125_v21  ;;  %v8490_v21 = vld [vmem:[#allocation6 + $0xab8] sm:$0xf0] }
 0x3d5   :  { %v5643_v1 = vadd.f32 %v5642_v57, %v5614_v12  ;;  %v5671_v20 = vpop.f32.mrf.mxu3  ;;  %v5586_v5 = vpop.f32.mrf.mxu0  ;;  %v10003_v12 = vld [vmem:[#allocation6 + $0xacc] sm:$0xf] }
 0x3d6   :  { %v5587_v61 = vadd.f32 %v5586_v5, %v11724_v16  ;;  %v5615_v24 = vpop.f32.mrf.mxu1  ;;  %v8509_v25 = vor.u32 %v10003_v12, %v8506_v36  ;;  %6088 = vmatpush.bf16.msra.mxu2 %v8381_v26  ;;  %v8362_v26 = vld [vmem:[#allocation6 + $0x9b8] sm:$0xf0]  ;;  %v9999_v36 = vld [vmem:[#allocation6 + $0xaac] sm:$0xf] }
 0x3d7   :  { %v11761_v53 = vadd.f32 %v5671_v20, %v5643_v1  ;;  %v8106_v12 = vld [vmem:[#allocation6 + $0x7b8] sm:$0xf0] }
 0x3d8   :  { %v5616_v23 = vadd.f32 %v5615_v24, %v5587_v61  ;;  %6117 = vmatpush.bf16.msra.mxu3 %v8509_v25  ;;  %v9939_v61 = vld [vmem:[#allocation6 + $0x8cc] sm:$0xf]  ;;  %v8250_v24 = vld [vmem:[#allocation6 + $0x8d8] sm:$0xf0] }
 0x3d9   :  { %v8253_v30 = vor.u32 %v9939_v61, %v8250_v24 }
 0x3db   :  { %6059 = vmatpush.bf16.msra.mxu1 %v8253_v30  ;;  %v9935_v30 = vld [vmem:[#allocation6 + $0x8ac] sm:$0xf] }
 0x3dc   :  { %v5644_v16 = vpop.f32.mrf.mxu2 }
 0x3dd   :  { %v5645_v57 = vadd.f32 %v5644_v16, %v5616_v23  ;;  %v5673_v0 = vpop.f32.mrf.mxu3  ;;  %v5589_v31 = vpop.f32.mrf.mxu0  ;;  %v9967_v23 = vld [vmem:[#allocation6 + $0x9ac] sm:$0xf]  ;;  %v8109_v16 = vor.u32 %v9903_v56, %v8106_v12  ;;  %v8090_v12 = vld [vmem:[#allocation6 + $0x798] sm:$0xf0] }
 0x3de   :  { %v5590_v1 = vadd.f32 %v5589_v31, %v11731_v58  ;;  %v5618_v20 = vpop.f32.mrf.mxu1  ;;  %v8365_v58 = vor.u32 %v9967_v23, %v8362_v26  ;;  %v9963_v23 = vld [vmem:[#allocation6 + $0x98c] sm:$0xf]  ;;  %v8346_v26 = vld [vmem:[#allocation6 + $0x998] sm:$0xf0] }
 0x3df   :  { %v11764_v5 = vadd.f32 %v5673_v0, %v5645_v57  ;;  %v8493_v57 = vor.u32 %v9999_v36, %v8490_v21  ;;  %6031 = vmatpush.bf16.msra.mxu0 %v8109_v16  ;;  %v8349_v56 = vor.u32 %v9963_v23, %v8346_v26  ;;  %v8474_v36 = vld [vmem:[#allocation6 + $0xa98] sm:$0xf0]  ;;  %v12486_v23 = vld [vmem:[#allocation29_spill] sm:$0xff] }
 0x3e0   :  { %v5619_v54 = vadd.f32 %v5618_v20, %v5590_v1  ;;  %5820 = vmatmul.bf16.gmra.mxu0 %v12480_v46  ;;  %5849 = vmatmul.bf16.gmra.mxu1 %v12481_v50  ;;  %v8234_v50 = vld [vmem:[#allocation6 + $0x8b8] sm:$0xf0]  ;;  %v9899_v46 = vld [vmem:[#allocation6 + $0x78c] sm:$0xf] }
 0x3e1   :  { %5878 = vmatmul.bf16.gmra.mxu2 %v12482_v7  ;;  %6118 = vmatpush.bf16.msra.mxu3 %v8493_v57  ;;  %v8330_v26 = vld [vmem:[#allocation6 + $0x978] sm:$0xf0] }
 0x3e2   :  { %5907 = vmatmul.bf16.gmra.mxu3 %v12483_v17  ;;  %6089 = vmatpush.bf16.msra.mxu2 %v8365_v58  ;;  %v8237_v17 = vor.u32 %v9935_v30, %v8234_v50  ;;  %v8093_v58 = vor.u32 %v9899_v46, %v8090_v12  ;;  %v12484_v50 = vld [vmem:[#allocation15_spill] sm:$0xff]  ;;  %v12485_v46 = vld [vmem:[#allocation28_spill] sm:$0xff] }
 0x3e3   :  { %v8074_v12 = vld [vmem:[#allocation6 + $0x778] sm:$0xf0] }
 0x3e4   :  { %v5647_v25 = vpop.f32.mrf.mxu2  ;;  %6060 = vmatpush.bf16.msra.mxu1 %v8237_v17  ;;  %6032 = vmatpush.bf16.msra.mxu0 %v8093_v58 }
 0x3e5   :  { %v5648_v0 = vadd.f32 %v5647_v25, %v5619_v54  ;;  %v5676_v31 = vpop.f32.mrf.mxu3  ;;  %v5591_v1 = vpop.f32.mrf.mxu0  ;;  %v9995_v54 = vld [vmem:[#allocation6 + $0xa8c] sm:$0xf] }
 0x3e6   :  { %v5592_v20 = vadd.f32 %v5591_v1, %v11734_v35  ;;  %v5620_v61 = vpop.f32.mrf.mxu1  ;;  %v8477_v21 = vor.u32 %v9995_v54, %v8474_v36  ;;  %6090 = vmatpush.bf16.msra.mxu2 %v8349_v56  ;;  %v9895_v56 = vld [vmem:[#allocation6 + $0x76c] sm:$0xf]  ;;  %v8458_v36 = vld [vmem:[#allocation6 + $0xa78] sm:$0xf0] }
 0x3e7   :  { %v11771_v24 = vadd.f32 %v5676_v31, %v5648_v0  ;;  %v9991_v54 = vld [vmem:[#allocation6 + $0xa6c] sm:$0xf] }
 0x3e8   :  { %v5621_v7 = vadd.f32 %v5620_v61, %v5592_v20  ;;  %6119 = vmatpush.bf16.msra.mxu3 %v8477_v21  ;;  %v9931_v20 = vld [vmem:[#allocation6 + $0x88c] sm:$0xf]  ;;  %v8218_v61 = vld [vmem:[#allocation6 + $0x898] sm:$0xf0]  ;;  %v8077_v21 = vor.u32 %v9895_v56, %v8074_v12 }
 0x3e9   :  { %v8221_v17 = vor.u32 %v9931_v20, %v8218_v61  ;;  %v9927_v20 = vld [vmem:[#allocation6 + $0x86c] sm:$0xf]  ;;  %v8202_v61 = vld [vmem:[#allocation6 + $0x878] sm:$0xf0] }
 0x3ea   :  { %6033 = vmatpush.bf16.msra.mxu0 %v8077_v21  ;;  %v8058_v56 = vld [vmem:[#allocation6 + $0x758] sm:$0xf0] }
 0x3eb   :  { %6061 = vmatpush.bf16.msra.mxu1 %v8221_v17  ;;  %v8205_v17 = vor.u32 %v9927_v20, %v8202_v61  ;;  %v8442_v12 = vld [vmem:[#allocation6 + $0xa58] sm:$0xf0] }
 0x3ec   :  { %v5649_v35 = vpop.f32.mrf.mxu2  ;;  %v12487_v20 = vld [vmem:[#allocation19_spill] sm:$0xff] }
 0x3ed   :  { %v5650_v25 = vadd.f32 %v5649_v35, %v5621_v7  ;;  %v5678_v16 = vpop.f32.mrf.mxu3  ;;  %v5690_v57 = vpop.f32.mrf.mxu0  ;;  %v9959_v7 = vld [vmem:[#allocation6 + $0x96c] sm:$0xf]  ;;  %v8461_v35 = vor.u32 %v9991_v54, %v8458_v36 }
 0x3ee   :  { %v5691_v0 = vadd.f32 %v5690_v57, %v11741_v38  ;;  %v5719_v31 = vpop.f32.mrf.mxu1  ;;  %v8333_v38 = vor.u32 %v9959_v7, %v8330_v26  ;;  %v9891_v7 = vld [vmem:[#allocation6 + $0x74c] sm:$0xf] }
 0x3ef   :  { %v11774_v1 = vadd.f32 %v5678_v16, %v5650_v25  ;;  %6120 = vmatpush.bf16.msra.mxu3 %v8461_v35  ;;  %6062 = vmatpush.bf16.msra.mxu1 %v8205_v17  ;;  %v12488_v17 = vld [vmem:[#allocation30_spill] sm:$0xff] }
 0x3f0   :  { %v5720_v30 = vadd.f32 %v5719_v31, %v5691_v0  ;;  %5921 = vmatmul.bf16.vlgmr.msrb.gmra.mxu0 %v12484_v50  ;;  %5950 = vmatmul.bf16.vlgmr.msrb.gmra.mxu1 %v12485_v46  ;;  %v9955_v46 = vld [vmem:[#allocation6 + $0x94c] sm:$0xf] }
 0x3f1   :  { %5979 = vmatmul.bf16.vlgmr.msrb.gmra.mxu2 %v12486_v23  ;;  %v8314_v23 = vld [vmem:[#allocation6 + $0x958] sm:$0xf0] }
 0x3f2   :  { %6008 = vmatmul.bf16.vlgmr.msrb.gmra.mxu3 %v10527_v2  ;;  %6091 = vmatpush.bf16.msra.mxu2 %v8333_v38  ;;  %v8317_v26 = vor.u32 %v9955_v46, %v8314_v23  ;;  %v8061_v38 = vor.u32 %v9891_v7, %v8058_v56  ;;  %v12489_v46 = vld [vmem:[#allocation31_spill] sm:$0xff]  ;;  %v9887_v7 = vld [vmem:[#allocation6 + $0x72c] sm:$0xf] }
 0x3f3   :  { %v8298_v23 = vld [vmem:[#allocation6 + $0x938] sm:$0xf0]  ;;  %v9983_v56 = vld [vmem:[#allocation6 + $0xa2c] sm:$0xf] }
 0x3f4   :  { %v5748_v58 = vpop.f32.mrf.mxu2  ;;  %6034 = vmatpush.bf16.msra.mxu0 %v8061_v38 }
 0x3f5   :  { %v5749_v25 = vadd.f32 %v5748_v58, %v5720_v30  ;;  %v5777_v16 = vpop.f32.mrf.mxu3  ;;  %v5692_v57 = vpop.f32.mrf.mxu0  ;;  %v9987_v30 = vld [vmem:[#allocation6 + $0xa4c] sm:$0xf] }
 0x3f6   :  { %v5693_v0 = vadd.f32 %v5692_v57, %v11744_v44  ;;  %v5721_v31 = vpop.f32.mrf.mxu1  ;;  %v8445_v54 = vor.u32 %v9987_v30, %v8442_v12  ;;  %6092 = vmatpush.bf16.msra.mxu2 %v8317_v26  ;;  %v9923_v57 = vld [vmem:[#allocation6 + $0x84c] sm:$0xf]  ;;  %v8042_v26 = vld [vmem:[#allocation6 + $0x738] sm:$0xf0] }
 0x3f7   :  { %v11781_v2 = vadd.f32 %v5777_v16, %v5749_v25  ;;  %v8426_v30 = vld [vmem:[#allocation6 + $0xa38] sm:$0xf0]  ;;  %v8045_v38 = vor.u32 %v9887_v7, %v8042_v26 }
 0x3f8   :  { %v5722_v50 = vadd.f32 %v5721_v31, %v5693_v0  ;;  %6121 = vmatpush.bf16.msra.mxu3 %v8445_v54  ;;  %v8186_v0 = vld [vmem:[#allocation6 + $0x858] sm:$0xf0]  ;;  %v8429_v54 = vor.u32 %v9983_v56, %v8426_v30  ;;  %v9915_v56 = vld [vmem:[#allocation6 + $0x80c] sm:$0xf] }
 0x3f9   :  { %v8189_v61 = vor.u32 %v9923_v57, %v8186_v0  ;;  %6035 = vmatpush.bf16.msra.mxu0 %v8045_v38  ;;  %v8170_v57 = vld [vmem:[#allocation6 + $0x838] sm:$0xf0] }
 0x3fa   :  { %v8410_v7 = vld [vmem:[#allocation6 + $0xa18] sm:$0xf0] }
 0x3fb   :  { %6063 = vmatpush.bf16.msra.mxu1 %v8189_v61  ;;  %v9947_v61 = vld [vmem:[#allocation6 + $0x90c] sm:$0xf]  ;;  %v8154_v30 = vld [vmem:[#allocation6 + $0x818] sm:$0xf0] }
 0x3fc   :  { %v5750_v44 = vpop.f32.mrf.mxu2  ;;  %6122 = vmatpush.bf16.msra.mxu3 %v8429_v54 }
 0x3fd   :  { %v5751_v36 = vadd.f32 %v5750_v44, %v5722_v50  ;;  %v5779_v58 = vpop.f32.mrf.mxu3  ;;  %v5695_v21 = vpop.f32.mrf.mxu0  ;;  %v9951_v50 = vld [vmem:[#allocation6 + $0x92c] sm:$0xf] }
 0x3fe   :  { %v5696_v35 = vadd.f32 %v5695_v21, %v11751_v41  ;;  %v5724_v25 = vpop.f32.mrf.mxu1  ;;  %v8301_v41 = vor.u32 %v9951_v50, %v8298_v23  ;;  %v8026_v23 = vld [vmem:[#allocation6 + $0x718] sm:$0xf0] }
 0x3ff   :  { %v11784_v16 = vadd.f32 %v5779_v58, %v5751_v36 }
 0x400   :  { %v5725_v31 = vadd.f32 %v5724_v25, %v5696_v35  ;;  %5926 = vmatmul.bf16.gmra.mxu0 %v12487_v20  ;;  %5955 = vmatmul.bf16.gmra.mxu1 %v12488_v17  ;;  %v9919_v25 = vld [vmem:[#allocation6 + $0x82c] sm:$0xf]  ;;  %v8282_v17 = vld [vmem:[#allocation6 + $0x918] sm:$0xf0] }
 0x401   :  { %5984 = vmatmul.bf16.gmra.mxu2 %v12489_v46  ;;  %v8173_v20 = vor.u32 %v9919_v25, %v8170_v57  ;;  %v9883_v46 = vld [vmem:[#allocation6 + $0x70c] sm:$0xf]  ;;  %v8285_v50 = vor.u32 %v9947_v61, %v8282_v17  ;;  %v12490_v25 = vld [vmem:[#allocation23_spill] sm:$0xff]  ;;  %v12491_v57 = vld [vmem:[#allocation32_spill] sm:$0xff] }
 0x402   :  { %6013 = vmatmul.bf16.gmra.mxu3 %v10563_v47  ;;  %6093 = vmatpush.bf16.msra.mxu2 %v8301_v41  ;;  %v8029_v41 = vor.u32 %v9883_v46, %v8026_v23  ;;  %v10103_v61 = vld [vmem:[#allocation6 + $0xdec] sm:$0xf] }
 0x403   :  { %6064 = vmatpush.bf16.msra.mxu1 %v8173_v20  ;;  %v12492_v20 = vld [vmem:[#allocation33_spill] sm:$0xff] }
 0x404   :  { %v5753_v12 = vpop.f32.mrf.mxu2  ;;  %6036 = vmatpush.bf16.msra.mxu0 %v8029_v41  ;;  %v10039_v17 = vld [vmem:[#allocation6 + $0xbec] sm:$0xf] }
 0x405   :  { %v5754_v44 = vadd.f32 %v5753_v12, %v5725_v31  ;;  %v5782_v36 = vpop.f32.mrf.mxu3  ;;  %v5697_v58 = vpop.f32.mrf.mxu0  ;;  %v9979_v31 = vld [vmem:[#allocation6 + $0xa0c] sm:$0xf] }
 0x406   :  { %v5698_v21 = vadd.f32 %v5697_v58, %v11754_v45  ;;  %v5726_v35 = vpop.f32.mrf.mxu1  ;;  %v8413_v26 = vor.u32 %v9979_v31, %v8410_v7  ;;  %6094 = vmatpush.bf16.msra.mxu2 %v8285_v50  ;;  %v8650_v50 = vld [vmem:[#allocation6 + $0xbf8] sm:$0xf0]  ;;  %v10135_v23 = vld [vmem:[#allocation6 + $0xeec] sm:$0xf] }
 0x407   :  { %v11791_v47 = vadd.f32 %v5782_v36, %v5754_v44  ;;  %v8157_v44 = vor.u32 %v9915_v56, %v8154_v30  ;;  %v8653_v7 = vor.u32 %v10039_v17, %v8650_v50 }
 0x408   :  { %v5727_v0 = vadd.f32 %v5726_v35, %v5698_v21  ;;  %6123 = vmatpush.bf16.msra.mxu3 %v8413_v26 }
 0x409   :  { %6065 = vmatpush.bf16.msra.mxu1 %v8157_v44  ;;  %6145 = vmatpush.bf16.msrb.mxu0 %v8653_v7 }
 0x40c   :  { %v5755_v45 = vpop.f32.mrf.mxu2 }
 0x40d   :  { %v5756_v12 = vadd.f32 %v5755_v45, %v5727_v0  ;;  %v5784_v38 = vpop.f32.mrf.mxu3  ;;  %v5700_v54 = vpop.f32.mrf.mxu0  ;;  %v8906_v0 = vld [vmem:[#allocation6 + $0xdf8] sm:$0xf0] }
 0x40e   :  { %v5701_v36 = vadd.f32 %v5700_v54, %v11761_v53  ;;  %v5729_v58 = vpop.f32.mrf.mxu1  ;;  %v8909_v46 = vor.u32 %v10103_v61, %v8906_v0  ;;  %v9034_v53 = vld [vmem:[#allocation6 + $0xef8] sm:$0xf0]  ;;  %v10131_v61 = vld [vmem:[#allocation6 + $0xecc] sm:$0xf] }
 0x40f   :  { %v11794_v21 = vadd.f32 %v5784_v38, %v5756_v12  ;;  %v9037_v41 = vor.u32 %v10135_v23, %v9034_v53  ;;  %v10071_v38 = vld [vmem:[#allocation6 + $0xcec] sm:$0xf]  ;;  %v8778_v54 = vld [vmem:[#allocation6 + $0xcf8] sm:$0xf0] }
 0x410   :  { %v5730_v35 = vadd.f32 %v5729_v58, %v5701_v36  ;;  %5931 = vmatmul.bf16.gmra.mxu0 %v12490_v25  ;;  %5960 = vmatmul.bf16.gmra.mxu1 %v12491_v57  ;;  %v8781_v36 = vor.u32 %v10071_v38, %v8778_v54  ;;  %v10099_v58 = vld [vmem:[#allocation6 + $0xdcc] sm:$0xf]  ;;  %v8890_v25 = vld [vmem:[#allocation6 + $0xdd8] sm:$0xf0]  ;;  %v12494_v38 = vld [vmem:[#allocation36_spill] sm:$0xff] }
 0x411   :  { %5989 = vmatmul.bf16.gmra.mxu2 %v12492_v20  ;;  %6232 = vmatpush.bf16.msrb.mxu3 %v9037_v41  ;;  %v10035_v57 = vld [vmem:[#allocation6 + $0xbcc] sm:$0xf]  ;;  %v8893_v20 = vor.u32 %v10099_v58, %v8890_v25  ;;  %v9018_v0 = vld [vmem:[#allocation6 + $0xed8] sm:$0xf0] }
 0x412   :  { %6018 = vmatmul.bf16.gmra.mxu3 %v12420_v22  ;;  %6203 = vmatpush.bf16.msrb.mxu2 %v8909_v46  ;;  %v12495_v54 = vld [vmem:[#allocation37_spill] sm:$0xff] }
 0x413   :  { %6174 = vmatpush.bf16.msrb.mxu1 %v8781_v36 }
 0x414   :  { %v5758_v31 = vpop.f32.mrf.mxu2 }
 0x415   :  { %v5759_v26 = vadd.f32 %v5758_v31, %v5730_v35  ;;  %v5787_v45 = vpop.f32.mrf.mxu3  ;;  %v5702_v56 = vpop.f32.mrf.mxu0  ;;  %v8634_v35 = vld [vmem:[#allocation6 + $0xbd8] sm:$0xf0] }
 0x416   :  { %v5703_v30 = vadd.f32 %v5702_v56, %v11764_v5  ;;  %v5731_v12 = vpop.f32.mrf.mxu1  ;;  %v8637_v46 = vor.u32 %v10035_v57, %v8634_v35  ;;  %v9021_v5 = vor.u32 %v10131_v61, %v9018_v0  ;;  %6204 = vmatpush.bf16.msrb.mxu2 %v8893_v20  ;;  %v10095_v20 = vld [vmem:[#allocation6 + $0xdac] sm:$0xf]  ;;  %v8874_v35 = vld [vmem:[#allocation6 + $0xdb8] sm:$0xf0] }
 0x417   :  { %v11801_v22 = vadd.f32 %v5787_v45, %v5759_v26  ;;  %v10067_v26 = vld [vmem:[#allocation6 + $0xccc] sm:$0xf]  ;;  %v8762_v45 = vld [vmem:[#allocation6 + $0xcd8] sm:$0xf0] }
 0x418   :  { %v5732_v44 = vadd.f32 %v5731_v12, %v5703_v30  ;;  %6146 = vmatpush.bf16.msrb.mxu0 %v8637_v46  ;;  %6233 = vmatpush.bf16.msrb.mxu3 %v9021_v5  ;;  %v12493_v30 = vld [vmem:[#allocation27_spill] sm:$0xff]  ;;  %v8765_v12 = vor.u32 %v10067_v26, %v8762_v45  ;;  %v10031_v61 = vld [vmem:[#allocation6 + $0xbac] sm:$0xf] }
 0x419   :  { %v8618_v46 = vld [vmem:[#allocation6 + $0xbb8] sm:$0xf0]  ;;  %v10127_v5 = vld [vmem:[#allocation6 + $0xeac] sm:$0xf] }
 0x41a   :  { %6175 = vmatpush.bf16.msrb.mxu1 %v8765_v12  ;;  %v8858_v45 = vld [vmem:[#allocation6 + $0xd98] sm:$0xf0] }
 0x41b   :  { %v8602_v12 = vld [vmem:[#allocation6 + $0xb98] sm:$0xf0] }
 0x41c   :  { %v5760_v17 = vpop.f32.mrf.mxu2 }
 0x41d   :  { %v5761_v50 = vadd.f32 %v5760_v17, %v5732_v44  ;;  %v5789_v23 = vpop.f32.mrf.mxu3  ;;  %v5705_v53 = vpop.f32.mrf.mxu0  ;;  %v8877_v17 = vor.u32 %v10095_v20, %v8874_v35 }
 0x41e   :  { %v5706_v31 = vadd.f32 %v5705_v53, %v11771_v24  ;;  %v5734_v7 = vpop.f32.mrf.mxu1  ;;  %v8621_v53 = vor.u32 %v10031_v61, %v8618_v46  ;;  %v8730_v46 = vld [vmem:[#allocation6 + $0xc98] sm:$0xf0] }
 0x41f   :  { %v11804_v41 = vadd.f32 %v5789_v23, %v5761_v50  ;;  %v9002_v50 = vld [vmem:[#allocation6 + $0xeb8] sm:$0xf0]  ;;  %6205 = vmatpush.bf16.msrb.mxu2 %v8877_v17  ;;  %v10059_v17 = vld [vmem:[#allocation6 + $0xc8c] sm:$0xf] }
 0x420   :  { %v5735_v56 = vadd.f32 %v5734_v7, %v5706_v31  ;;  %5936 = vmatmul.bf16.gmra.mxu0 %v12493_v30  ;;  %5965 = vmatmul.bf16.gmra.mxu1 %v12494_v38  ;;  %v10063_v31 = vld [vmem:[#allocation6 + $0xcac] sm:$0xf]  ;;  %v8746_v7 = vld [vmem:[#allocation6 + $0xcb8] sm:$0xf0] }
 0x421   :  { %5994 = vmatmul.bf16.gmra.mxu2 %v12495_v54  ;;  %v8749_v26 = vor.u32 %v10063_v31, %v8746_v7  ;;  %6147 = vmatpush.bf16.msrb.mxu0 %v8621_v53  ;;  %v10123_v38 = vld [vmem:[#allocation6 + $0xe8c] sm:$0xf]  ;;  %v8986_v54 = vld [vmem:[#allocation6 + $0xe98] sm:$0xf0] }
 0x422   :  { %6023 = vmatmul.bf16.gmra.mxu3 %v12429_v8  ;;  %v9005_v8 = vor.u32 %v10127_v5, %v9002_v50  ;;  %v8733_v5 = vor.u32 %v10059_v17, %v8730_v46  ;;  %v10087_v7 = vld [vmem:[#allocation6 + $0xd6c] sm:$0xf]  ;;  %v8570_v46 = vld [vmem:[#allocation6 + $0xb58] sm:$0xf0] }
 0x423   :  { %6176 = vmatpush.bf16.msrb.mxu1 %v8749_v26  ;;  %v10023_v26 = vld [vmem:[#allocation6 + $0xb6c] sm:$0xf] }
 0x424   :  { %v5763_v44 = vpop.f32.mrf.mxu2  ;;  %6234 = vmatpush.bf16.msrb.mxu3 %v9005_v8  ;;  %v10019_v17 = vld [vmem:[#allocation6 + $0xb4c] sm:$0xf] }
 0x425   :  { %v5764_v24 = vadd.f32 %v5763_v44, %v5735_v56  ;;  %v5792_v36 = vpop.f32.mrf.mxu3  ;;  %v5707_v58 = vpop.f32.mrf.mxu0  ;;  %v10027_v56 = vld [vmem:[#allocation6 + $0xb8c] sm:$0xf] }
 0x426   :  { %v5708_v25 = vadd.f32 %v5707_v58, %v11774_v1  ;;  %v5736_v57 = vpop.f32.mrf.mxu1  ;;  %v10091_v1 = vld [vmem:[#allocation6 + $0xd8c] sm:$0xf] }
 0x427   :  { %v11811_v0 = vadd.f32 %v5792_v36, %v5764_v24  ;;  %v8861_v30 = vor.u32 %v10091_v1, %v8858_v45  ;;  %v8605_v24 = vor.u32 %v10027_v56, %v8602_v12  ;;  %v8989_v36 = vor.u32 %v10123_v38, %v8986_v54  ;;  %6177 = vmatpush.bf16.msrb.mxu1 %v8733_v5  ;;  %v8586_v45 = vld [vmem:[#allocation6 + $0xb78] sm:$0xf0]  ;;  %v10119_v56 = vld [vmem:[#allocation6 + $0xe6c] sm:$0xf] }
 0x428   :  { %v5737_v23 = vadd.f32 %v5736_v57, %v5708_v25  ;;  %v8589_v54 = vor.u32 %v10023_v26, %v8586_v45  ;;  %v10115_v5 = vld [vmem:[#allocation6 + $0xe4c] sm:$0xf] }
 0x429   :  { %6206 = vmatpush.bf16.msrb.mxu2 %v8861_v30  ;;  %6148 = vmatpush.bf16.msrb.mxu0 %v8605_v24  ;;  %v8970_v30 = vld [vmem:[#allocation6 + $0xe78] sm:$0xf0]  ;;  %v10055_v24 = vld [vmem:[#allocation6 + $0xc6c] sm:$0xf] }
 0x42a   :  { %6235 = vmatpush.bf16.msrb.mxu3 %v8989_v36  ;;  %v8714_v36 = vld [vmem:[#allocation6 + $0xc78] sm:$0xf0] }
 0x42c   :  { %v5765_v44 = vpop.f32.mrf.mxu2 }
 0x42d   :  { %v5766_v58 = vadd.f32 %v5765_v44, %v5737_v23  ;;  %v5794_v25 = vpop.f32.mrf.mxu3  ;;  %v5806_v57 = vpop.f32.mrf.mxu0  ;;  %v8973_v44 = vor.u32 %v10119_v56, %v8970_v30  ;;  %6149 = vmatpush.bf16.msrb.mxu0 %v8589_v54  ;;  %v10051_v56 = vld [vmem:[#allocation6 + $0xc4c] sm:$0xf]  ;;  %v8698_v30 = vld [vmem:[#allocation6 + $0xc58] sm:$0xf0] }
 0x42e   :  { %v11814_v20 = vadd.f32 %v5806_v57, %v11781_v2  ;;  %v5835_v35 = vpop.f32.mrf.mxu1  ;;  %v8826_v57 = vld [vmem:[#allocation6 + $0xd58] sm:$0xf0]  ;;  %v8701_v54 = vor.u32 %v10051_v56, %v8698_v30 }
 0x42f   :  { %v11816_v61 = vadd.f32 %v5794_v25, %v5766_v58  ;;  %v8717_v58 = vor.u32 %v10055_v24, %v8714_v36  ;;  %6236 = vmatpush.bf16.msrb.mxu3 %v8973_v44 }
 0x430   :  { %6037 = vmatmul.bf16.vlgmr.msra.gmra.mxu0 %v10529_v3  ;;  %6066 = vmatmul.bf16.vlgmr.msra.gmra.mxu1 %v12412_v14  ;;  %vm6462_vm6 = vcmp.ge.f32.partialorder %v11814_v20, 1.25  ;;  %v6494_v23 = vmul.f32 0.75, %v11814_v20 }
 0x431   :  { %6095 = vmatmul.bf16.vlgmr.msra.gmra.mxu2 %v12362_v59  ;;  %v6466_v50 = vsel %vm6462_vm6, 0.0, %v11814_v20  ;;  %v8842_v59 = vld [vmem:[#allocation6 + $0xd78] sm:$0xf0]  ;;  %6178 = vmatpush.bf16.msrb.mxu1 %v8717_v58 }
 0x432   :  { %6124 = vmatmul.bf16.vlgmr.msra.gmra.mxu3 %v12436_v27  ;;  %v8845_v27 = vor.u32 %v10087_v7, %v8842_v59  ;;  %v6502_v12 = vmul.f32 0.97, %v6466_v50  ;;  %v8573_v50 = vor.u32 %v10019_v17, %v8570_v46  ;;  %v10015_v46 = vld [vmem:[#allocation6 + $0xb2c] sm:$0xf] }
 0x434   :  { %v5864_v2 = vpop.f32.mrf.mxu2  ;;  %6207 = vmatpush.bf16.msrb.mxu2 %v8845_v27  ;;  %6150 = vmatpush.bf16.msrb.mxu0 %v8573_v50 }
 0x435   :  { %v5865_v53 = vadd.f32 %v5864_v2, %v5835_v35  ;;  %v5893_v8 = vpop.f32.mrf.mxu3  ;;  %v5808_v3 = vpop.f32.mrf.mxu0  ;;  %6179 = vmatpush.bf16.msrb.mxu1 %v8701_v54 }
 0x436   :  { %v5809_v31 = vadd.f32 %v5808_v3, %v11784_v16  ;;  %v5837_v14 = vpop.f32.mrf.mxu1  ;;  %v10083_v16 = vld [vmem:[#allocation6 + $0xd4c] sm:$0xf] }
 0x437   :  { %v11828_v1 = vadd.f32 %v5893_v8, %v5865_v53  ;;  %v8829_v35 = vor.u32 %v10083_v16, %v8826_v57  ;;  %v10079_v57 = vld [vmem:[#allocation6 + $0xd2c] sm:$0xf] }
 0x438   :  { %v6498_v38 = vadd.f32 %v6494_v23, %v5809_v31  ;;  %v8954_v23 = vld [vmem:[#allocation6 + $0xe58] sm:$0xf0] }
 0x439   :  { %6208 = vmatpush.bf16.msrb.mxu2 %v8829_v35  ;;  %v8957_v7 = vor.u32 %v10115_v5, %v8954_v23  ;;  %v8810_v35 = vld [vmem:[#allocation6 + $0xd38] sm:$0xf0] }
 0x43a   :  { %v11830_v25 = vadd.f32 %v6502_v12, %v6498_v38  ;;  %v6538_v26 = vmul.f32 0.75, %v6498_v38  ;;  %v8554_v5 = vld [vmem:[#allocation6 + $0xb38] sm:$0xf0] }
 0x43b   :  { %6237 = vmatpush.bf16.msrb.mxu3 %v8957_v7  ;;  %v8557_v23 = vor.u32 %v10015_v46, %v8554_v5 }
 0x43c   :  { %v5866_v2 = vpop.f32.mrf.mxu2  ;;  %vm6510_vm7 = vcmp.ge.f32.partialorder %v11830_v25, 1.25 }
 0x43d   :  { %v5867_v53 = vadd.f32 %v5866_v2, %v5837_v14  ;;  %v5895_v8 = vpop.f32.mrf.mxu3  ;;  %v5811_v3 = vpop.f32.mrf.mxu0  ;;  %v6514_v31 = vsel %vm6510_vm7, 0.0, %v11830_v25  ;;  %v10111_v2 = vld [vmem:[#allocation6 + $0xe2c] sm:$0xf]  ;;  %6151 = vmatpush.bf16.msrb.mxu0 %v8557_v23  ;;  %v9418_v23 = vld [vmem:[#allocation6 + $0x11f8] sm:$0xf0] }
 0x43e   :  { %v5812_v59 = vadd.f32 %v5811_v3, %v11791_v47  ;;  %v5840_v27 = vpop.f32.mrf.mxu1  ;;  %v6546_v14 = vmul.f32 0.97, %v6514_v31  ;;  %v8682_v3 = vld [vmem:[#allocation6 + $0xc38] sm:$0xf0] }
 0x43f   :  { %v11837_v45 = vadd.f32 %v5895_v8, %v5867_v53  ;;  %v8938_v53 = vld [vmem:[#allocation6 + $0xe38] sm:$0xf0]  ;;  %v10047_v8 = vld [vmem:[#allocation6 + $0xc2c] sm:$0xf] }
 0x440   :  { %v6542_v12 = vadd.f32 %v6538_v26, %v5812_v59  ;;  %6042 = vmatmul.bf16.gmra.mxu0 %v10565_v49  ;;  %6071 = vmatmul.bf16.gmra.mxu1 %v12418_v32  ;;  %v8941_v31 = vor.u32 %v10111_v2, %v8938_v53  ;;  %v8685_v7 = vor.u32 %v10047_v8, %v8682_v3  ;;  %v10075_v26 = vld [vmem:[#allocation6 + $0xd0c] sm:$0xf]  ;;  %v9162_v3 = vld [vmem:[#allocation6 + $0xff8] sm:$0xf0] }
 0x441   :  { %6100 = vmatmul.bf16.gmra.mxu2 %v12367_v28  ;;  %v10167_v8 = vld [vmem:[#allocation6 + $0xfec] sm:$0xf] }
 0x442   :  { %v11842_v44 = vadd.f32 %v6546_v14, %v6542_v12  ;;  %6129 = vmatmul.bf16.gmra.mxu3 %v12440_v52  ;;  %v6582_v24 = vmul.f32 0.75, %v6542_v12  ;;  %v8813_v52 = vor.u32 %v10079_v57, %v8810_v35  ;;  %6180 = vmatpush.bf16.msrb.mxu1 %v8685_v7  ;;  %v10043_v35 = vld [vmem:[#allocation6 + $0xc0c] sm:$0xf]  ;;  %v9165_v7 = vor.u32 %v10167_v8, %v9162_v3 }
 0x443   :  { %6238 = vmatpush.bf16.msrb.mxu3 %v8941_v31  ;;  %v10263_v31 = vld [vmem:[#allocation6 + $0x12ec] sm:$0xf] }
 0x444   :  { %vm6554_vm8 = vcmp.ge.f32.partialorder %v11842_v44, 1.25  ;;  %v5869_v47 = vpop.f32.mrf.mxu2  ;;  %6209 = vmatpush.bf16.msrb.mxu2 %v8813_v52  ;;  %v8666_v52 = vld [vmem:[#allocation6 + $0xc18] sm:$0xf0] }
 0x445   :  { %v6558_v38 = vsel %vm6554_vm8, 0.0, %v11842_v44  ;;  %v5870_v36 = vadd.f32 %v5869_v47, %v5840_v27  ;;  %v5898_v49 = vpop.f32.mrf.mxu3  ;;  %v5813_v58 = vpop.f32.mrf.mxu0  ;;  %v8794_v27 = vld [vmem:[#allocation6 + $0xd18] sm:$0xf0]  ;;  %v10011_v47 = vld [vmem:[#allocation6 + $0xb0c] sm:$0xf]  ;;  %v8669_v2 = vor.u32 %v10043_v35, %v8666_v52 }
 0x446   :  { %v6590_v16 = vmul.f32 0.97, %v6558_v38  ;;  %v5814_v32 = vadd.f32 %v5813_v58, %v11794_v21  ;;  %v5842_v28 = vpop.f32.mrf.mxu1  ;;  %v8797_v54 = vor.u32 %v10075_v26, %v8794_v27  ;;  %v8538_v38 = vld [vmem:[#allocation6 + $0xb18] sm:$0xf0]  ;;  %v10259_v35 = vld [vmem:[#allocation6 + $0x12cc] sm:$0xf] }
 0x447   :  { %v11850_v17 = vadd.f32 %v5898_v49, %v5870_v36  ;;  %v8541_v58 = vor.u32 %v10011_v47, %v8538_v38  ;;  %6181 = vmatpush.bf16.msrb.mxu1 %v8669_v2  ;;  %v10199_v47 = vld [vmem:[#allocation6 + $0x10ec] sm:$0xf]  ;;  %v9290_v38 = vld [vmem:[#allocation6 + $0x10f8] sm:$0xf0] }
 0x448   :  { %v6586_v50 = vadd.f32 %v6582_v24, %v5814_v32  ;;  %v8922_v32 = vld [vmem:[#allocation6 + $0xe18] sm:$0xf0]  ;;  %6210 = vmatpush.bf16.msrb.mxu2 %v8797_v54 }
 0x449   :  { %6152 = vmatpush.bf16.msrb.mxu0 %v8541_v58  ;;  %v10227_v58 = vld [vmem:[#allocation6 + $0x11cc] sm:$0xf]  ;;  %v9530_v52 = vld [vmem:[#allocation6 + $0x12d8] sm:$0xf0] }
 0x44a   :  { %v11852_v59 = vadd.f32 %v6590_v16, %v6586_v50  ;;  %v6626_v36 = vmul.f32 0.75, %v6586_v50  ;;  %v10107_v16 = vld [vmem:[#allocation6 + $0xe0c] sm:$0xf] }
 0x44b   :  { %v10231_v50 = vld [vmem:[#allocation6 + $0x11ec] sm:$0xf] }
 0x44c   :  { %v5871_v21 = vpop.f32.mrf.mxu2  ;;  %vm6598_vm9 = vcmp.ge.f32.partialorder %v11852_v59, 1.25  ;;  %v9421_v53 = vor.u32 %v10231_v50, %v9418_v23 }
 0x44d   :  { %v5872_v56 = vadd.f32 %v5871_v21, %v5842_v28  ;;  %v5900_v30 = vpop.f32.mrf.mxu3  ;;  %v5816_v12 = vpop.f32.mrf.mxu0  ;;  %v6602_v14 = vsel %vm6598_vm9, 0.0, %v11852_v59  ;;  %v8925_v28 = vor.u32 %v10107_v16, %v8922_v32  ;;  %6261 = vmatpush.bf16.msra.mxu0 %v9165_v7  ;;  %v9402_v16 = vld [vmem:[#allocation6 + $0x11d8] sm:$0xf0] }
 0x44e   :  { %v5817_v24 = vadd.f32 %v5816_v12, %v11801_v22  ;;  %v5845_v49 = vpop.f32.mrf.mxu1  ;;  %v6634_v5 = vmul.f32 0.97, %v6602_v14  ;;  %6319 = vmatpush.bf16.msra.mxu2 %v9421_v53  ;;  %v9405_v32 = vor.u32 %v10227_v58, %v9402_v16 }
 0x44f   :  { %v11859_v57 = vadd.f32 %v5900_v30, %v5872_v56  ;;  %6239 = vmatpush.bf16.msrb.mxu3 %v8925_v28  ;;  %v9146_v28 = vld [vmem:[#allocation6 + $0xfd8] sm:$0xf0] }
 0x450   :  { %v6630_v46 = vadd.f32 %v6626_v36, %v5817_v24  ;;  %6047 = vmatmul.bf16.gmra.mxu0 %v12421_v18  ;;  %6076 = vmatmul.bf16.gmra.mxu1 %v12422_v19  ;;  %v9546_v19 = vld [vmem:[#allocation6 + $0x12f8] sm:$0xf0]  ;;  %v9293_v36 = vor.u32 %v10199_v47, %v9290_v38  ;;  %v10255_v47 = vld [vmem:[#allocation6 + $0x12ac] sm:$0xf] }
 0x451   :  { %6105 = vmatmul.bf16.gmra.mxu2 %v12423_v9  ;;  %v9549_v27 = vor.u32 %v10263_v31, %v9546_v19  ;;  %v10195_v19 = vld [vmem:[#allocation6 + $0x10cc] sm:$0xf] }
 0x452   :  { %v11864_v22 = vadd.f32 %v6634_v5, %v6630_v46  ;;  %6134 = vmatmul.bf16.gmra.mxu3 %v12444_v33  ;;  %v6670_v56 = vmul.f32 0.75, %v6630_v46  ;;  %6290 = vmatpush.bf16.msra.mxu1 %v9293_v36  ;;  %v9533_v5 = vor.u32 %v10259_v35, %v9530_v52  ;;  %v10191_v52 = vld [vmem:[#allocation6 + $0x10ac] sm:$0xf] }
 0x453   :  { %6348 = vmatpush.bf16.msra.mxu3 %v9549_v27  ;;  %6320 = vmatpush.bf16.msra.mxu2 %v9405_v32 }
 0x454   :  { %vm6642_vm10 = vcmp.ge.f32.partialorder %v11864_v22, 1.25  ;;  %v5874_v18 = vpop.f32.mrf.mxu2 }
 0x455   :  { %v6646_v9 = vsel %vm6642_vm10, 0.0, %v11864_v22  ;;  %v5875_v21 = vadd.f32 %v5874_v18, %v5845_v49  ;;  %v5903_v33 = vpop.f32.mrf.mxu3  ;;  %v5818_v26 = vpop.f32.mrf.mxu0  ;;  %v10163_v49 = vld [vmem:[#allocation6 + $0xfcc] sm:$0xf] }
 0x456   :  { %v5819_v30 = vadd.f32 %v5818_v26, %v11804_v41  ;;  %v5847_v12 = vpop.f32.mrf.mxu1  ;;  %v6678_v14 = vmul.f32 0.97, %v6646_v9  ;;  %v9149_v41 = vor.u32 %v10163_v49, %v9146_v28  ;;  %v9274_v9 = vld [vmem:[#allocation6 + $0x10d8] sm:$0xf0] }
 0x457   :  { %v11872_v54 = vadd.f32 %v5903_v33, %v5875_v21  ;;  %6349 = vmatpush.bf16.msra.mxu3 %v9533_v5  ;;  %v9277_v26 = vor.u32 %v10195_v19, %v9274_v9 }
 0x458   :  { %v6674_v24 = vadd.f32 %v6670_v56, %v5819_v30  ;;  %6262 = vmatpush.bf16.msra.mxu0 %v9149_v41  ;;  %v9386_v56 = vld [vmem:[#allocation6 + $0x11b8] sm:$0xf0] }
 0x459   :  { %6291 = vmatpush.bf16.msra.mxu1 %v9277_v26  ;;  %v9258_v41 = vld [vmem:[#allocation6 + $0x10b8] sm:$0xf0] }
 0x45a   :  { %v11874_v46 = vadd.f32 %v6678_v14, %v6674_v24  ;;  %v6714_v31 = vmul.f32 0.75, %v6674_v24  ;;  %v9130_v14 = vld [vmem:[#allocation6 + $0xfb8] sm:$0xf0] }
 0x45b   :  { %v9514_v24 = vld [vmem:[#allocation6 + $0x12b8] sm:$0xf0] }
 0x45c   :  { %v5876_v2 = vpop.f32.mrf.mxu2  ;;  %vm6686_vm11 = vcmp.ge.f32.partialorder %v11874_v46, 1.25 }
 0x45d   :  { %v5877_v50 = vadd.f32 %v5876_v2, %v5847_v12  ;;  %v5905_v23 = vpop.f32.mrf.mxu3  ;;  %v5821_v53 = vpop.f32.mrf.mxu0  ;;  %v6690_v8 = vsel %vm6686_vm11, 0.0, %v11874_v46  ;;  %v10159_v12 = vld [vmem:[#allocation6 + $0xfac] sm:$0xf]  ;;  %v9261_v2 = vor.u32 %v10191_v52, %v9258_v41 }
 0x45e   :  { %v5822_v3 = vadd.f32 %v5821_v53, %v11811_v0  ;;  %v5850_v18 = vpop.f32.mrf.mxu1  ;;  %v6722_v33 = vmul.f32 0.97, %v6690_v8  ;;  %v10223_v0 = vld [vmem:[#allocation6 + $0x11ac] sm:$0xf] }
 0x45f   :  { %v11881_v7 = vadd.f32 %v5905_v23, %v5877_v50  ;;  %v9389_v30 = vor.u32 %v10223_v0, %v9386_v56  ;;  %v10219_v50 = vld [vmem:[#allocation6 + $0x118c] sm:$0xf]  ;;  %v9370_v23 = vld [vmem:[#allocation6 + $0x1198] sm:$0xf0]  ;;  %6292 = vmatpush.bf16.msra.mxu1 %v9261_v2 }
 0x460   :  { %v6718_v21 = vadd.f32 %v6714_v31, %v5822_v3  ;;  %6052 = vmatmul.bf16.gmra.mxu0 %v12430_v60  ;;  %6081 = vmatmul.bf16.gmra.mxu1 %v12431_v4  ;;  %v9133_v60 = vor.u32 %v10159_v12, %v9130_v14  ;;  %v10155_v53 = vld [vmem:[#allocation6 + $0xf8c] sm:$0xf]  ;;  %v9373_v8 = vor.u32 %v10219_v50, %v9370_v23  ;;  %v9114_v3 = vld [vmem:[#allocation6 + $0xf98] sm:$0xf0] }
 0x461   :  { %6110 = vmatmul.bf16.gmra.mxu2 %v12432_v51  ;;  %v10251_v31 = vld [vmem:[#allocation6 + $0x128c] sm:$0xf] }
 0x462   :  { %v11886_v27 = vadd.f32 %v6722_v33, %v6718_v21  ;;  %6139 = vmatmul.bf16.gmra.mxu3 %v12448_v34  ;;  %6321 = vmatpush.bf16.msra.mxu2 %v9389_v30  ;;  %v9517_v34 = vor.u32 %v10255_v47, %v9514_v24  ;;  %v6758_v16 = vmul.f32 0.75, %v6718_v21  ;;  %v10187_v14 = vld [vmem:[#allocation6 + $0x108c] sm:$0xf]  ;;  %v9242_v47 = vld [vmem:[#allocation6 + $0x1098] sm:$0xf0] }
 0x463   :  { %6263 = vmatpush.bf16.msra.mxu0 %v9133_v60  ;;  %v9245_v60 = vor.u32 %v10187_v14, %v9242_v47  ;;  %v10215_v24 = vld [vmem:[#allocation6 + $0x116c] sm:$0xf] }
 0x464   :  { %vm6730_vm12 = vcmp.ge.f32.partialorder %v11886_v27, 1.25  ;;  %v5879_v38 = vpop.f32.mrf.mxu2  ;;  %6350 = vmatpush.bf16.msra.mxu3 %v9517_v34  ;;  %v9482_v34 = vld [vmem:[#allocation6 + $0x1278] sm:$0xf0]  ;;  %v10183_v41 = vld [vmem:[#allocation6 + $0x106c] sm:$0xf] }
 0x465   :  { %v6734_v4 = vsel %vm6730_vm12, 0.0, %v11886_v27  ;;  %v5880_v51 = vadd.f32 %v5879_v38, %v5850_v18  ;;  %v5908_v36 = vpop.f32.mrf.mxu3  ;;  %v5823_v58 = vpop.f32.mrf.mxu0  ;;  %v9498_v18 = vld [vmem:[#allocation6 + $0x1298] sm:$0xf0]  ;;  %6293 = vmatpush.bf16.msra.mxu1 %v9245_v60  ;;  %v10211_v23 = vld [vmem:[#allocation6 + $0x114c] sm:$0xf] }
 0x466   :  { %v5824_v49 = vadd.f32 %v5823_v58, %v11816_v61  ;;  %v5852_v32 = vpop.f32.mrf.mxu1  ;;  %v6766_v28 = vmul.f32 0.97, %v6734_v4  ;;  %v9117_v61 = vor.u32 %v10155_v53, %v9114_v3  ;;  %v9501_v9 = vor.u32 %v10251_v31, %v9498_v18  ;;  %6322 = vmatpush.bf16.msra.mxu2 %v9373_v8  ;;  %v9354_v4 = vld [vmem:[#allocation6 + $0x1178] sm:$0xf0]  ;;  %v10247_v58 = vld [vmem:[#allocation6 + $0x126c] sm:$0xf] }
 0x467   :  { %v11894_v35 = vadd.f32 %v5908_v36, %v5880_v51  ;;  %v10151_v51 = vld [vmem:[#allocation6 + $0xf6c] sm:$0xf]  ;;  %v9098_v36 = vld [vmem:[#allocation6 + $0xf78] sm:$0xf0] }
 0x468   :  { %v6762_v5 = vadd.f32 %v6758_v16, %v5824_v49  ;;  %6264 = vmatpush.bf16.msra.mxu0 %v9117_v61  ;;  %6351 = vmatpush.bf16.msra.mxu3 %v9501_v9  ;;  %v9101_v49 = vor.u32 %v10151_v51, %v9098_v36  ;;  %v9338_v53 = vld [vmem:[#allocation6 + $0x1158] sm:$0xf0]  ;;  %v10147_v8 = vld [vmem:[#allocation6 + $0xf4c] sm:$0xf] }
 0x469   :  { %v9341_v3 = vor.u32 %v10211_v23, %v9338_v53  ;;  %v9082_v31 = vld [vmem:[#allocation6 + $0xf58] sm:$0xf0]  ;;  %v10243_v18 = vld [vmem:[#allocation6 + $0x124c] sm:$0xf] }
 0x46a   :  { %v11896_v19 = vadd.f32 %v6766_v28, %v6762_v5  ;;  %v9226_v5 = vld [vmem:[#allocation6 + $0x1078] sm:$0xf0]  ;;  %v9085_v9 = vor.u32 %v10147_v8, %v9082_v31  ;;  %v10179_v47 = vld [vmem:[#allocation6 + $0x104c] sm:$0xf] }
 0x46b   :  { %v9229_v50 = vor.u32 %v10183_v41, %v9226_v5  ;;  %v9466_v61 = vld [vmem:[#allocation6 + $0x1258] sm:$0xf0]  ;;  %v10203_v5 = vld [vmem:[#allocation6 + $0x110c] sm:$0xf] }
 0x46c   :  { %v5881_v21 = vpop.f32.mrf.mxu2  ;;  %6265 = vmatpush.bf16.msra.mxu0 %v9101_v49  ;;  %v9322_v51 = vld [vmem:[#allocation6 + $0x1138] sm:$0xf0]  ;;  %v10235_v8 = vld [vmem:[#allocation6 + $0x120c] sm:$0xf] }
 0x46d   :  { %v5882_v33 = vadd.f32 %v5881_v21, %v5852_v32  ;;  %v5910_v26 = vpop.f32.mrf.mxu3  ;;  %v5922_v0 = vpop.f32.mrf.mxu0  ;;  %v9485_v32 = vor.u32 %v10247_v58, %v9482_v34  ;;  %6294 = vmatpush.bf16.msra.mxu1 %v9229_v50  ;;  %v9469_v21 = vor.u32 %v10243_v18, %v9466_v61  ;;  %v9066_v36 = vld [vmem:[#allocation6 + $0xf38] sm:$0xf0]  ;;  %v10239_v58 = vld [vmem:[#allocation6 + $0x122c] sm:$0xf] }
 0x46e   :  { %v5923_v56 = vadd.f32 %v5922_v0, %v11828_v1  ;;  %v5951_v30 = vpop.f32.mrf.mxu1  ;;  %v9357_v1 = vor.u32 %v10215_v24, %v9354_v4  ;;  %v10207_v4 = vld [vmem:[#allocation6 + $0x112c] sm:$0xf]  ;;  %v9450_v34 = vld [vmem:[#allocation6 + $0x1238] sm:$0xf0] }
 0x46f   :  { %v11899_v12 = vadd.f32 %v5910_v26, %v5882_v33  ;;  %6352 = vmatpush.bf16.msra.mxu3 %v9485_v32  ;;  %v9453_v32 = vor.u32 %v10239_v58, %v9450_v34  ;;  %v10139_v50 = vld [vmem:[#allocation6 + $0xf0c] sm:$0xf]  ;;  %v9050_v53 = vld [vmem:[#allocation6 + $0xf18] sm:$0xf0] }
 0x470   :  { %v5952_v38 = vadd.f32 %v5951_v30, %v5923_v56  ;;  %6153 = vmatmul.bf16.vlgmr.msrb.gmra.mxu0 %v12437_v15  ;;  %6182 = vmatmul.bf16.vlgmr.msrb.gmra.mxu1 %v12438_v48  ;;  %v9053_v31 = vor.u32 %v10139_v50, %v9050_v53  ;;  %v10171_v61 = vld [vmem:[#allocation6 + $0x100c] sm:$0xf]  ;;  %v12498_v50 = vld [vmem:[#allocation72_spill] sm:$0xff] }
 0x471   :  { %6211 = vmatmul.bf16.vlgmr.msrb.gmra.mxu2 %v12439_v42  ;;  %6266 = vmatpush.bf16.msra.mxu0 %v9085_v9  ;;  %v9178_v9 = vld [vmem:[#allocation6 + $0x1018] sm:$0xf0] }
 0x472   :  { %6240 = vmatmul.bf16.vlgmr.msrb.gmra.mxu3 %v12452_v55  ;;  %6323 = vmatpush.bf16.msra.mxu2 %v9357_v1  ;;  %v10143_v1 = vld [vmem:[#allocation6 + $0xf2c] sm:$0xf] }
 0x473   :  { %6353 = vmatpush.bf16.msra.mxu3 %v9469_v21  ;;  %v9069_v49 = vor.u32 %v10143_v1, %v9066_v36 }
 0x474   :  { %v5980_v16 = vpop.f32.mrf.mxu2 }
 0x475   :  { %v5981_v28 = vadd.f32 %v5980_v16, %v5952_v38  ;;  %v6009_v15 = vpop.f32.mrf.mxu3  ;;  %v5924_v52 = vpop.f32.mrf.mxu0  ;;  %v9210_v38 = vld [vmem:[#allocation6 + $0x1058] sm:$0xf0]  ;;  %6267 = vmatpush.bf16.msra.mxu0 %v9069_v49 }
 0x476   :  { %v5925_v48 = vadd.f32 %v5924_v52, %v11837_v45  ;;  %v5953_v42 = vpop.f32.mrf.mxu1  ;;  %6324 = vmatpush.bf16.msra.mxu2 %v9341_v3  ;;  %v9213_v24 = vor.u32 %v10179_v47, %v9210_v38  ;;  %v10175_v52 = vld [vmem:[#allocation6 + $0x102c] sm:$0xf]  ;;  %v9434_v3 = vld [vmem:[#allocation6 + $0x1218] sm:$0xf0] }
 0x477   :  { %v11906_v55 = vadd.f32 %v6009_v15, %v5981_v28  ;;  %6354 = vmatpush.bf16.msra.mxu3 %v9453_v32  ;;  %v9437_v18 = vor.u32 %v10235_v8, %v9434_v3 }
 0x478   :  { %v5954_v2 = vadd.f32 %v5953_v42, %v5925_v48  ;;  %6295 = vmatpush.bf16.msra.mxu1 %v9213_v24  ;;  %v9194_v48 = vld [vmem:[#allocation6 + $0x1038] sm:$0xf0] }
 0x479   :  { %v9197_v41 = vor.u32 %v10175_v52, %v9194_v48  ;;  %6268 = vmatpush.bf16.msra.mxu0 %v9053_v31 }
 0x47b   :  { %6355 = vmatpush.bf16.msra.mxu3 %v9437_v18 }
 0x47c   :  { %v5982_v45 = vpop.f32.mrf.mxu2  ;;  %6296 = vmatpush.bf16.msra.mxu1 %v9197_v41 }
 0x47d   :  { %v5983_v33 = vadd.f32 %v5982_v45, %v5954_v2  ;;  %v6011_v26 = vpop.f32.mrf.mxu3  ;;  %v5927_v0 = vpop.f32.mrf.mxu0  ;;  %v9306_v2 = vld [vmem:[#allocation6 + $0x1118] sm:$0xf0] }
 0x47e   :  { %v5928_v56 = vadd.f32 %v5927_v0, %v11850_v17  ;;  %v5956_v30 = vpop.f32.mrf.mxu1  ;;  %v9325_v17 = vor.u32 %v10207_v4, %v9322_v51  ;;  %v9309_v23 = vor.u32 %v10203_v5, %v9306_v2  ;;  %v12497_v2 = vld [vmem:[#allocation59_spill] sm:$0xff] }
 0x47f   :  { %v11909_v14 = vadd.f32 %v6011_v26, %v5983_v33  ;;  %v9181_v26 = vor.u32 %v10171_v61, %v9178_v9 }
 0x480   :  { %v5957_v60 = vadd.f32 %v5956_v30, %v5928_v56  ;;  %6158 = vmatmul.bf16.gmra.mxu0 %v12441_v6  ;;  %6187 = vmatmul.bf16.gmra.mxu1 %v12442_v29 }
 0x481   :  { %6216 = vmatmul.bf16.gmra.mxu2 %v12443_v40  ;;  %6297 = vmatpush.bf16.msra.mxu1 %v9181_v26 }
 0x482   :  { %6245 = vmatmul.bf16.gmra.mxu3 %v12456_v43  ;;  %6325 = vmatpush.bf16.msra.mxu2 %v9325_v17 }
 0x484   :  { %v5985_v16 = vpop.f32.mrf.mxu2 }
 0x485   :  { %v5986_v28 = vadd.f32 %v5985_v16, %v5957_v60  ;;  %v6014_v6 = vpop.f32.mrf.mxu3  ;;  %v5929_v15 = vpop.f32.mrf.mxu0 }
 0x486   :  { %v5930_v29 = vadd.f32 %v5929_v15, %v11859_v57  ;;  %v5958_v40 = vpop.f32.mrf.mxu1  ;;  %6326 = vmatpush.bf16.msra.mxu2 %v9309_v23  ;;  %v12499_v23 = vld [vmem:[#allocation73_spill] sm:$0xff] }
 0x487   :  { %v11916_v43 = vadd.f32 %v6014_v6, %v5986_v28 }
 0x488   :  { %v5959_v42 = vadd.f32 %v5958_v40, %v5930_v29 }
 0x48c   :  { %v5987_v57 = vpop.f32.mrf.mxu2 }
 0x48d   :  { %v5988_v21 = vadd.f32 %v5987_v57, %v5959_v42  ;;  %v6016_v45 = vpop.f32.mrf.mxu3  ;;  %v5932_v33 = vpop.f32.mrf.mxu0 }
 0x48e   :  { %v5933_v0 = vadd.f32 %v5932_v33, %v11872_v54  ;;  %v5961_v56 = vpop.f32.mrf.mxu1 }
 0x48f   :  { %v11919_v30 = vadd.f32 %v6016_v45, %v5988_v21 }
 0x490   :  { %v5962_v47 = vadd.f32 %v5961_v56, %v5933_v0  ;;  %6163 = vmatmul.bf16.gmra.mxu0 %v12445_v11  ;;  %6192 = vmatmul.bf16.gmra.mxu1 %v12446_v13 }
 0x491   :  { %6221 = vmatmul.bf16.gmra.mxu2 %v12447_v62 }
 0x492   :  { %6250 = vmatmul.bf16.gmra.mxu3 %v12460_v37 }
 0x494   :  { %v5990_v38 = vpop.f32.mrf.mxu2 }
 0x495   :  { %v5991_v60 = vadd.f32 %v5990_v38, %v5962_v47  ;;  %v6019_v24 = vpop.f32.mrf.mxu3  ;;  %v5934_v4 = vpop.f32.mrf.mxu0  ;;  %v12501_v38 = vld [vmem:[#allocation63_spill] sm:$0xff] }
 0x496   :  { %v5935_v51 = vadd.f32 %v5934_v4, %v11881_v7  ;;  %v5963_v54 = vpop.f32.mrf.mxu1  ;;  %v12496_v7 = vld [vmem:[#allocation70_spill] sm:$0xff] }
 0x497   :  { %v11926_v1 = vadd.f32 %v6019_v24, %v5991_v60  ;;  %v12502_v60 = vld [vmem:[#allocation75_spill] sm:$0xff]  ;;  %v12503_v24 = vld [vmem:[#allocation76_spill] sm:$0xff] }
 0x498   :  { %v5964_v17 = vadd.f32 %v5963_v54, %v5935_v51 }
 0x49c   :  { %v5992_v36 = vpop.f32.mrf.mxu2 }
 0x49d   :  { %v5993_v58 = vadd.f32 %v5992_v36, %v5964_v17  ;;  %v6021_v34 = vpop.f32.mrf.mxu3  ;;  %v5937_v11 = vpop.f32.mrf.mxu0 }
 0x49e   :  { %v5938_v13 = vadd.f32 %v5937_v11, %v11894_v35  ;;  %v5966_v16 = vpop.f32.mrf.mxu1 }
 0x49f   :  { %v11929_v62 = vadd.f32 %v6021_v34, %v5993_v58 }
 0x4a0   :  { %v5967_v37 = vadd.f32 %v5966_v16, %v5938_v13  ;;  %6168 = vmatmul.bf16.gmra.mxu0 %v12449_v63  ;;  %6197 = vmatmul.bf16.gmra.mxu1 %v12450_v10 }
 0x4a1   :  { %6226 = vmatmul.bf16.gmra.mxu2 %v12451_v39 }
 0x4a2   :  { %6255 = vmatmul.bf16.gmra.mxu3 %v12496_v7 }
 0x4a4   :  { %v5995_v49 = vpop.f32.mrf.mxu2 }
 0x4a5   :  { %v5996_v32 = vadd.f32 %v5995_v49, %v5967_v37  ;;  %v6024_v28 = vpop.f32.mrf.mxu3  ;;  %v5939_v6 = vpop.f32.mrf.mxu0 }
 0x4a6   :  { %v5940_v15 = vadd.f32 %v5939_v6, %v11899_v12  ;;  %v5968_v29 = vpop.f32.mrf.mxu1  ;;  %v12500_v12 = vld [vmem:[#allocation74_spill] sm:$0xff]  ;;  %v12505_v6 = vld [vmem:[#allocation67_spill] sm:$0xff] }
 0x4a7   :  { %v11936_v35 = vadd.f32 %v6024_v28, %v5996_v32 }
 0x4a8   :  { %v5969_v40 = vadd.f32 %v5968_v29, %v5940_v15  ;;  %v12506_v15 = vld [vmem:[#allocation78_spill] sm:$0xff]  ;;  %v12507_v29 = vld [vmem:[#allocation79_spill] sm:$0xff] }
 0x4ac   :  { %v5997_v52 = vpop.f32.mrf.mxu2 }
 0x4ad   :  { %v5998_v48 = vadd.f32 %v5997_v52, %v5969_v40  ;;  %v6026_v42 = vpop.f32.mrf.mxu3  ;;  %v6038_v63 = vpop.f32.mrf.mxu0 }
 0x4ae   :  { %v6039_v10 = vadd.f32 %v6038_v63, %v11906_v55  ;;  %v6067_v41 = vpop.f32.mrf.mxu1 }
 0x4af   :  { %v11939_v39 = vadd.f32 %v6026_v42, %v5998_v48 }
 0x4b0   :  { %v6068_v5 = vadd.f32 %v6067_v41, %v6039_v10  ;;  %6269 = vmatmul.bf16.vlgmr.msra.gmra.mxu0 %v12497_v2  ;;  %6298 = vmatmul.bf16.vlgmr.msra.gmra.mxu1 %v12498_v50 }
 0x4b1   :  { %6327 = vmatmul.bf16.vlgmr.msra.gmra.mxu2 %v12499_v23 }
 0x4b2   :  { %6356 = vmatmul.bf16.vlgmr.msra.gmra.mxu3 %v12500_v12 }
 0x4b4   :  { %v6096_v53 = vpop.f32.mrf.mxu2 }
 0x4b5   :  { %v6097_v8 = vadd.f32 %v6096_v53, %v6068_v5  ;;  %v6125_v3 = vpop.f32.mrf.mxu3  ;;  %v6040_v31 = vpop.f32.mrf.mxu0 }
 0x4b6   :  { %v6041_v18 = vadd.f32 %v6040_v31, %v11909_v14  ;;  %v6069_v57 = vpop.f32.mrf.mxu1  ;;  %v12504_v14 = vld [vmem:[#allocation77_spill] sm:$0xff]  ;;  %v12509_v31 = vld [vmem:[#allocation71_spill] sm:$0xff] }
 0x4b7   :  { %v11946_v55 = vadd.f32 %v6125_v3, %v6097_v8 }
 0x4b8   :  { %v6070_v61 = vadd.f32 %v6069_v57, %v6041_v18  ;;  %v12510_v18 = vld [vmem:[#allocation81_spill] sm:$0xff]  ;;  %v12511_v57 = vld [vmem:[#allocation82_spill] sm:$0xff] }
 0x4bc   :  { %v6098_v9 = vpop.f32.mrf.mxu2 }
 0x4bd   :  { %v6099_v21 = vadd.f32 %v6098_v9, %v6070_v61  ;;  %v6127_v45 = vpop.f32.mrf.mxu3  ;;  %v6043_v33 = vpop.f32.mrf.mxu0 }
 0x4be   :  { %v6044_v26 = vadd.f32 %v6043_v33, %v11916_v43  ;;  %v6072_v0 = vpop.f32.mrf.mxu1 }
 0x4bf   :  { %v11949_v56 = vadd.f32 %v6127_v45, %v6099_v21 }
 0x4c0   :  { %v6073_v47 = vadd.f32 %v6072_v0, %v6044_v26  ;;  %6274 = vmatmul.bf16.gmra.mxu0 %v12501_v38  ;;  %6303 = vmatmul.bf16.gmra.mxu1 %v12502_v60 }
 0x4c1   :  { %6332 = vmatmul.bf16.gmra.mxu2 %v12503_v24 }
 0x4c2   :  { %6361 = vmatmul.bf16.gmra.mxu3 %v12504_v14 }
 0x4c4   :  { %v6101_v4 = vpop.f32.mrf.mxu2 }
 0x4c5   :  { %v6102_v51 = vadd.f32 %v6101_v4, %v6073_v47  ;;  %v6130_v54 = vpop.f32.mrf.mxu3  ;;  %v6045_v17 = vpop.f32.mrf.mxu0 }
 0x4c6   :  { %v6046_v36 = vadd.f32 %v6045_v17, %v11919_v30  ;;  %v6074_v58 = vpop.f32.mrf.mxu1  ;;  %v12508_v30 = vld [vmem:[#allocation80_spill] sm:$0xff] }
 0x4c7   :  { %v11956_v43 = vadd.f32 %v6130_v54, %v6102_v51 }
 0x4c8   :  { %v6075_v34 = vadd.f32 %v6074_v58, %v6046_v36 }
 0x4cc   :  { %v6103_v11 = vpop.f32.mrf.mxu2 }
 0x4cd   :  { %v6104_v13 = vadd.f32 %v6103_v11, %v6075_v34  ;;  %v6132_v16 = vpop.f32.mrf.mxu3  ;;  %v6048_v37 = vpop.f32.mrf.mxu0 }
 0x4ce   :  { %v6049_v7 = vadd.f32 %v6048_v37, %v11926_v1  ;;  %v6077_v49 = vpop.f32.mrf.mxu1 }
 0x4cf   :  { %v11959_v32 = vadd.f32 %v6132_v16, %v6104_v13 }
 0x4d0   :  { %v6078_v28 = vadd.f32 %v6077_v49, %v6049_v7  ;;  %6279 = vmatmul.bf16.gmra.mxu0 %v12505_v6  ;;  %6308 = vmatmul.bf16.gmra.mxu1 %v12506_v15 }
 0x4d1   :  { %6337 = vmatmul.bf16.gmra.mxu2 %v12507_v29 }
 0x4d2   :  { %6366 = vmatmul.bf16.gmra.mxu3 %v12508_v30 }
 0x4d4   :  { %v6106_v40 = vpop.f32.mrf.mxu2 }
 0x4d5   :  { %v6107_v52 = vadd.f32 %v6106_v40, %v6078_v28  ;;  %v6135_v48 = vpop.f32.mrf.mxu3  ;;  %v6050_v42 = vpop.f32.mrf.mxu0 }
 0x4d6   :  { %v6051_v63 = vadd.f32 %v6050_v42, %v11929_v62  ;;  %v6079_v10 = vpop.f32.mrf.mxu1  ;;  %v12512_v62 = vld [vmem:[#allocation83_spill] sm:$0xff] }
 0x4d7   :  { %v11966_v1 = vadd.f32 %v6135_v48, %v6107_v52 }
 0x4d8   :  { %v6080_v41 = vadd.f32 %v6079_v10, %v6051_v63 }
 0x4dc   :  { %v6108_v5 = vpop.f32.mrf.mxu2 }
 0x4dd   :  { %v6109_v2 = vadd.f32 %v6108_v5, %v6080_v41  ;;  %v6137_v50 = vpop.f32.mrf.mxu3  ;;  %v6053_v23 = vpop.f32.mrf.mxu0 }
 0x4de   :  { %v6054_v12 = vadd.f32 %v6053_v23, %v11936_v35  ;;  %v6082_v53 = vpop.f32.mrf.mxu1 }
 0x4df   :  { %v11969_v8 = vadd.f32 %v6137_v50, %v6109_v2 }
 0x4e0   :  { %v6083_v3 = vadd.f32 %v6082_v53, %v6054_v12  ;;  %6284 = vmatmul.bf16.gmra.mxu0 %v12509_v31  ;;  %6313 = vmatmul.bf16.gmra.mxu1 %v12510_v18 }
 0x4e1   :  { %6342 = vmatmul.bf16.gmra.mxu2 %v12511_v57 }
 0x4e2   :  { %6371 = vmatmul.bf16.gmra.mxu3 %v12512_v62 }
 0x4e4   :  { %v6111_v61 = vpop.f32.mrf.mxu2 }
 0x4e5   :  { %v6112_v9 = vadd.f32 %v6111_v61, %v6083_v3  ;;  %v6140_v21 = vpop.f32.mrf.mxu3  ;;  %v6055_v45 = vpop.f32.mrf.mxu0 }
 0x4e6   :  { %v6056_v33 = vadd.f32 %v6055_v45, %v11939_v39  ;;  %v6084_v26 = vpop.f32.mrf.mxu1 }
 0x4e7   :  { %v11976_v35 = vadd.f32 %v6140_v21, %v6112_v9 }
 0x4e8   :  { %v6085_v0 = vadd.f32 %v6084_v26, %v6056_v33  ;;  %v10271_v26 = vld [vmem:[#allocation8] sm:$0xf] }
 0x4ec   :  { %v6113_v47 = vpop.f32.mrf.mxu2 }
 0x4ed   :  { %v6114_v38 = vadd.f32 %v6113_v47, %v6085_v0  ;;  %v6142_v60 = vpop.f32.mrf.mxu3  ;;  %v6154_v24 = vpop.f32.mrf.mxu0  ;;  %v6413_v0 = vperm.slane %v10271_v26, 2  ;;  %v6414_v47 = vperm.slane %v10271_v26, 3 }
 0x4ee   :  { %v6183_v14 = vpop.f32.mrf.mxu1  ;;  %v6155_v41 = vadd.f32 %v6154_v24, %v11946_v55 }
 0x4ef   :  { %v11978_v4 = vadd.f32 %v6142_v60, %v6114_v38  ;;  %vm6425_vm13 = vcmp.eq.f32.partialorder %v6413_v0, 2.0  ;;  %vm6426_vm14 = vcmp.eq.f32.partialorder %v6414_v47, 2.0  ;;  %vm6421_vm15 = vcmp.eq.f32.partialorder %v6413_v0, 1.0 }
 0x4f0   :  { %v6184_v12 = vadd.f32 %v6183_v14, %v6155_v41  ;;  %vm6422_vm0 = vcmp.eq.f32.partialorder %v6414_v47, 1.0  ;;  %vm12025_vm2 = vmpackc.low %vm6426_vm14, %vm6425_vm13 }
 0x4f1   :  { %vm12032_vm3 = vmpackc.low %vm6422_vm0, %vm6421_vm15 }
 0x4f4   :  { %v6212_v51 = vpop.f32.mrf.mxu2 }
 0x4f5   :  { %v6241_v54 = vpop.f32.mrf.mxu3  ;;  %v6156_v17 = vpop.f32.mrf.mxu0  ;;  %v6213_v53 = vadd.f32 %v6212_v51, %v6184_v12 }
 0x4f6   :  { %v6185_v36 = vpop.f32.mrf.mxu1  ;;  %v6157_v3 = vadd.f32 %v6156_v17, %v11949_v56 }
 0x4f7   :  { %v6242_v18 = vadd.f32 %v6241_v54, %v6213_v53 }
 0x4f8   :  { %v6186_v55 = vadd.f32 %v6185_v36, %v6157_v3 }
 0x4fc   :  { %v6214_v58 = vpop.f32.mrf.mxu2 }
 0x4fd   :  { %v6243_v34 = vpop.f32.mrf.mxu3  ;;  %v6159_v11 = vpop.f32.mrf.mxu0  ;;  %v6215_v21 = vadd.f32 %v6214_v58, %v6186_v55 }
 0x4fe   :  { %v6188_v13 = vpop.f32.mrf.mxu1  ;;  %v6160_v45 = vadd.f32 %v6159_v11, %v11956_v43  ;;  %v12513_v43 = vmov 0.0  }
 0x4ff   :  { %v6244_v60 = vadd.f32 %v6243_v34, %v6215_v21  ;;  %v9552_v58 = vsel %vm6462_vm6, 1.0, %v12513_v43 }
 0x500   :  { %v6189_v51 = vadd.f32 %v6188_v13, %v6160_v45 }
 0x504   :  { %v6217_v39 = vpop.f32.mrf.mxu2 }
 0x505   :  { %v6246_v16 = vpop.f32.mrf.mxu3  ;;  %v6161_v37 = vpop.f32.mrf.mxu0  ;;  %v6218_v36 = vadd.f32 %v6217_v39, %v6189_v51 }
 0x506   :  { %v11980_v7 = vpop.f32.mrf.mxu1  ;;  %v6162_v13 = vadd.f32 %v6161_v37, %v11959_v32 }
 0x508   :  { %v6191_v21 = vadd.f32 %v11980_v7, %v6162_v13 }
 0x50c   :  { %v11982_v49 = vpop.f32.mrf.mxu2 }
 0x50d   :  { %v11984_v28 = vpop.f32.mrf.mxu3  ;;  %v11986_v6 = vpop.f32.mrf.mxu0  ;;  %v6220_v26 = vadd.f32 %v11982_v49, %v6191_v21 }
 0x50e   :  { %v11988_v15 = vpop.f32.mrf.mxu1 }
 0x514   :  { %v11990_v29 = vpop.f32.mrf.mxu2 }
 0x515   :  { %v11992_v30 = vpop.f32.mrf.mxu3  ;;  %v11994_v40 = vpop.f32.mrf.mxu0 }
 0x516   :  { %v11996_v52 = vpop.f32.mrf.mxu1  ;;  %v6167_v25 = vadd.f32 %v11994_v40, %v11969_v8  ;;  %v9560_v8 = vsel %vm6554_vm8, 1.0, %v12513_v43 }
 0x518   :  { %v6196_v40 = vadd.f32 %v11996_v52, %v6167_v25 }
 0x51c   :  { %v11998_v48 = vpop.f32.mrf.mxu2 }
 0x51d   :  { %v12000_v42 = vpop.f32.mrf.mxu3  ;;  %v12002_v63 = vpop.f32.mrf.mxu0 }
 0x51e   :  { %v12004_v10 = vpop.f32.mrf.mxu1  ;;  %v6170_v44 = vadd.f32 %v12002_v63, %v11976_v35  ;;  %v9564_v35 = vsel %vm6598_vm9, 1.0, %v12513_v43 }
 0x520   :  { %v6199_v63 = vadd.f32 %v12004_v10, %v6170_v44 }
 0x524   :  { %v12007_v5 = vpop.f32.mrf.mxu2 }
 0x525   :  { %v12009_v2 = vpop.f32.mrf.mxu3  ;;  %v12011_v50 = vpop.f32.mrf.mxu0 }
 0x526   :  { %v12013_v23 = vpop.f32.mrf.mxu1  ;;  %v6172_v59 = vadd.f32 %v12011_v50, %v11978_v4  ;;  %v9568_v4 = vsel %vm6642_vm10, 1.0, %v12513_v43  ;;  %vm6774_vm10 = vcmp.ge.f32.partialorder %v11896_v19, 1.25 }
 0x528   :  { %v6201_v50 = vadd.f32 %v12013_v23, %v6172_v59 }
 0x52c   :  { %v12016_v31 = vpop.f32.mrf.mxu2 }
 0x52d   :  { %v12018_v57 = vpop.f32.mrf.mxu3  ;;  %v6270_v62 = vpop.f32.mrf.mxu0 }
 0x52e   :  { %v6299_v61 = vpop.f32.mrf.mxu1  ;;  %v6271_v9 = vadd.f32 %v6270_v62, %v6242_v18  ;;  %v6247_v18 = vadd.f32 %v6246_v16, %v6218_v36 }
 0x530   :  { %v6300_v33 = vadd.f32 %v6299_v61, %v6271_v9 }
 0x534   :  { %v6328_v38 = vpop.f32.mrf.mxu2 }
 0x535   :  { %v6329_v24 = vadd.f32 %v6328_v38, %v6300_v33  ;;  %v6357_v56 = vpop.f32.mrf.mxu3  ;;  %v6272_v14 = vpop.f32.mrf.mxu0  ;;  %v6165_v38 = vadd.f32 %v11986_v6, %v11966_v1 }
 0x536   :  { %v6301_v54 = vpop.f32.mrf.mxu1  ;;  %v6273_v41 = vadd.f32 %v6272_v14, %v6244_v60  ;;  %v6249_v14 = vadd.f32 %v11984_v28, %v6220_v26 }
 0x537   :  { %v6358_v17 = vadd.f32 %v6357_v56, %v6329_v24  ;;  %v6194_v49 = vadd.f32 %v11988_v15, %v6165_v38 }
 0x538   :  { %v6302_v39 = vadd.f32 %v6301_v54, %v6273_v41 }
 0x539   :  { %vm6463_vm1 = vcmp.ge.f32.partialorder %v6358_v17, 1.25  ;;  %v6495_v16 = vmul.f32 0.75, %v6358_v17  ;;  %v6223_v28 = vadd.f32 %v11990_v29, %v6194_v49 }
 0x53a   :  { %v9553_v11 = vsel %vm6463_vm1, 1.0, %v12513_v43  ;;  %v6467_v9 = vsel %vm6463_vm1, 0.0, %v6358_v17  ;;  %v9556_v17 = vsel %vm6510_vm7, 1.0, %v12513_v43 }
 0x53b   :  { %v12030_v12 = vpack.c.bf16 %v9553_v11, %v9552_v58  ;;  %v6503_v0 = vmul.f32 0.97, %v6467_v9  ;;  %v6252_v29 = vadd.f32 %v11992_v30, %v6223_v28  ;;  %v6225_v30 = vadd.f32 %v11998_v48, %v6196_v40 }
 0x53c   :  { %v6330_v3 = vpop.f32.mrf.mxu2 }
 0x53d   :  { %v6481_v20 = vsel %vm12025_vm2, 0, %v12030_v12  ;;  %v6331_v62 = vadd.f32 %v6330_v3, %v6302_v39  ;;  %v6359_v61 = vpop.f32.mrf.mxu3  ;;  %v6275_v55 = vpop.f32.mrf.mxu0  ;;  %v6254_v48 = vadd.f32 %v12000_v42, %v6225_v30  ;;  %v6228_v42 = vadd.f32 %v12007_v5, %v6199_v63 }
 0x53e   :  { %v6485_v32 = vsel %vm12032_vm3, 0, %v6481_v20  ;;  %v6304_v37 = vpop.f32.mrf.mxu1  ;;  %v6276_v33 = vadd.f32 %v6275_v55, %v6247_v18 }
 0x53f   :  { %6487 = vst [vmem:[%s12148_s3 + $0x8] sm:$0xff] %v6485_v32  ;;  %v6360_v45 = vadd.f32 %v6359_v61, %v6331_v62  ;;  %v6257_v5 = vadd.f32 %v12009_v2, %v6228_v42  ;;  %v6230_v2 = vadd.f32 %v12016_v31, %v6201_v50 }
 0x540   :  { %v6305_v24 = vadd.f32 %v6304_v37, %v6276_v33 }
 0x541   :  { %v6499_v47 = vadd.f32 %v6495_v16, %v6360_v45 }
 0x543   :  { %v6507_v60 = vadd.f32 %v6503_v0, %v6499_v47  ;;  %v6539_v11 = vmul.f32 0.75, %v6499_v47 }
 0x544   :  { %v6333_v56 = vpop.f32.mrf.mxu2 }
 0x545   :  { %vm6511_vm4 = vcmp.ge.f32.partialorder %v6507_v60, 1.25  ;;  %v6334_v7 = vadd.f32 %v6333_v56, %v6305_v24  ;;  %v6362_v51 = vpop.f32.mrf.mxu3  ;;  %v6277_v54 = vpop.f32.mrf.mxu0 }
 0x546   :  { %v6515_v41 = vsel %vm6511_vm4, 0.0, %v6507_v60  ;;  %v9557_v36 = vsel %vm6511_vm4, 1.0, %v12513_v43  ;;  %v6306_v58 = vpop.f32.mrf.mxu1  ;;  %v6278_v13 = vadd.f32 %v6277_v54, %v6249_v14 }
 0x547   :  { %v6525_v1 = vpack.c.bf16 %v9557_v36, %v9556_v17  ;;  %v6363_v6 = vadd.f32 %v6362_v51, %v6334_v7  ;;  %v6547_v18 = vmul.f32 0.97, %v6515_v41 }
 0x548   :  { %v6307_v62 = vadd.f32 %v6306_v58, %v6278_v13 }
 0x549   :  { %v6527_v39 = vsel %vm12025_vm2, 0, %v6525_v1  ;;  %v6543_v3 = vadd.f32 %v6539_v11, %v6363_v6 }
 0x54a   :  { %v6529_v15 = vsel %vm12032_vm3, %v12030_v12, %v6527_v39 }
 0x54b   :  { %6531 = vst [vmem:[%s12148_s3 + $0x18] sm:$0xff] %v6529_v15  ;;  %v6551_v20 = vadd.f32 %v6547_v18, %v6543_v3  ;;  %v6583_v26 = vmul.f32 0.75, %v6543_v3 }
 0x54c   :  { %v6335_v61 = vpop.f32.mrf.mxu2 }
 0x54d   :  { %vm6555_vm5 = vcmp.ge.f32.partialorder %v6551_v20, 1.25  ;;  %v6336_v55 = vadd.f32 %v6335_v61, %v6307_v62  ;;  %v6364_v9 = vpop.f32.mrf.mxu3  ;;  %v6280_v32 = vpop.f32.mrf.mxu0 }
 0x54e   :  { %v6559_v37 = vsel %vm6555_vm5, 0.0, %v6551_v20  ;;  %v9561_v21 = vsel %vm6555_vm5, 1.0, %v12513_v43  ;;  %v6309_v45 = vpop.f32.mrf.mxu1  ;;  %v6281_v0 = vadd.f32 %v6280_v32, %v6252_v29 }
 0x54f   :  { %v6569_v16 = vpack.c.bf16 %v9561_v21, %v9560_v8  ;;  %v6365_v33 = vadd.f32 %v6364_v9, %v6336_v55  ;;  %v6591_v60 = vmul.f32 0.97, %v6559_v37 }
 0x550   :  { %v6310_v56 = vadd.f32 %v6309_v45, %v6281_v0 }
 0x551   :  { %v6571_v47 = vsel %vm12025_vm2, %v12030_v12, %v6569_v16  ;;  %v6587_v38 = vadd.f32 %v6583_v26, %v6365_v33  ;;  %v6259_v33 = vadd.f32 %v12018_v57, %v6230_v2 }
 0x552   :  { %v6573_v52 = vsel %vm12032_vm3, %v6525_v1, %v6571_v47 }
 0x553   :  { %6575 = vst [vmem:[%s12148_s3 + $0x28] sm:$0xff] %v6573_v52  ;;  %v6595_v24 = vadd.f32 %v6591_v60, %v6587_v38  ;;  %v6627_v58 = vmul.f32 0.75, %v6587_v38 }
 0x554   :  { %v6338_v14 = vpop.f32.mrf.mxu2 }
 0x555   :  { %vm6599_vm6 = vcmp.ge.f32.partialorder %v6595_v24, 1.25  ;;  %v6339_v7 = vadd.f32 %v6338_v14, %v6310_v56  ;;  %v6367_v12 = vpop.f32.mrf.mxu3  ;;  %v6282_v51 = vpop.f32.mrf.mxu0 }
 0x556   :  { %v6603_v54 = vsel %vm6599_vm6, 0.0, %v6595_v24  ;;  %v9565_v17 = vsel %vm6599_vm6, 1.0, %v12513_v43  ;;  %v6311_v49 = vpop.f32.mrf.mxu1  ;;  %v6283_v6 = vadd.f32 %v6282_v51, %v6254_v48 }
 0x557   :  { %v6613_v41 = vpack.c.bf16 %v9565_v17, %v9564_v35  ;;  %v6368_v36 = vadd.f32 %v6367_v12, %v6339_v7  ;;  %v6635_v28 = vmul.f32 0.97, %v6603_v54  ;;  %v9576_v35 = vsel %vm6730_vm12, 1.0, %v12513_v43 }
 0x558   :  { %v6312_v3 = vadd.f32 %v6311_v49, %v6283_v6 }
 0x559   :  { %v6615_v11 = vsel %vm12025_vm2, %v6525_v1, %v6613_v41  ;;  %v6631_v13 = vadd.f32 %v6627_v58, %v6368_v36 }
 0x55a   :  { %v6617_v10 = vsel %vm12032_vm3, %v6569_v16, %v6615_v11 }
 0x55b   :  { %6619 = vst [vmem:[%s12148_s3 + $0x38] sm:$0xff] %v6617_v10  ;;  %v6639_v39 = vadd.f32 %v6635_v28, %v6631_v13  ;;  %v6671_v55 = vmul.f32 0.75, %v6631_v13  ;;  %v9580_v13 = vsel %vm6774_vm10, 1.0, %v12513_v43 }
 0x55c   :  { %v6340_v18 = vpop.f32.mrf.mxu2 }
 0x55d   :  { %vm6643_vm7 = vcmp.ge.f32.partialorder %v6639_v39, 1.25  ;;  %v6341_v25 = vadd.f32 %v6340_v18, %v6312_v3  ;;  %v6369_v1 = vpop.f32.mrf.mxu3  ;;  %v6285_v15 = vpop.f32.mrf.mxu0 }
 0x55e   :  { %v6647_v20 = vsel %vm6643_vm7, 0.0, %v6639_v39  ;;  %v9569_v62 = vsel %vm6643_vm7, 1.0, %v12513_v43  ;;  %v6286_v9 = vadd.f32 %v6285_v15, %v6257_v5  ;;  %v6314_v32 = vpop.f32.mrf.mxu1 }
 0x55f   :  { %v6657_v61 = vpack.c.bf16 %v9569_v62, %v9568_v4  ;;  %v6370_v29 = vadd.f32 %v6369_v1, %v6341_v25  ;;  %v6679_v37 = vmul.f32 0.97, %v6647_v20 }
 0x560   :  { %v6315_v21 = vadd.f32 %v6314_v32, %v6286_v9 }
 0x561   :  { %v6659_v8 = vsel %vm12025_vm2, %v6569_v16, %v6657_v61  ;;  %v6675_v40 = vadd.f32 %v6671_v55, %v6370_v29  ;;  %v9572_v16 = vsel %vm6686_vm11, 1.0, %v12513_v43 }
 0x562   :  { %v6661_v22 = vsel %vm12032_vm3, %v6613_v41, %v6659_v8 }
 0x563   :  { %6663 = vst [vmem:[%s12148_s3 + $0x48] sm:$0xff] %v6661_v22  ;;  %v6683_v23 = vadd.f32 %v6679_v37, %v6675_v40  ;;  %v6715_v44 = vmul.f32 0.75, %v6675_v40 }
 0x564   :  { %v6343_v45 = vpop.f32.mrf.mxu2 }
 0x565   :  { %vm6687_vm8 = vcmp.ge.f32.partialorder %v6683_v23, 1.25  ;;  %v6344_v26 = vadd.f32 %v6343_v45, %v6315_v21  ;;  %v6372_v31 = vpop.f32.mrf.mxu3  ;;  %v6287_v0 = vpop.f32.mrf.mxu0 }
 0x566   :  { %v6691_v30 = vsel %vm6687_vm8, 0.0, %v6683_v23  ;;  %v9573_v47 = vsel %vm6687_vm8, 1.0, %v12513_v43  ;;  %v6288_v52 = vadd.f32 %v6287_v0, %v6259_v33  ;;  %v6316_v48 = vpop.f32.mrf.mxu1 }
 0x567   :  { %v6701_v38 = vpack.c.bf16 %v9573_v47, %v9572_v16  ;;  %v6373_v60 = vadd.f32 %v6372_v31, %v6344_v26  ;;  %v6723_v57 = vmul.f32 0.97, %v6691_v30 }
 0x568   :  { %v6317_v7 = vadd.f32 %v6316_v48, %v6288_v52 }
 0x569   :  { %v6703_v24 = vsel %vm12025_vm2, %v6613_v41, %v6701_v38  ;;  %v6719_v56 = vadd.f32 %v6715_v44, %v6373_v60 }
 0x56a   :  { %v6705_v14 = vsel %vm12032_vm3, %v6657_v61, %v6703_v24 }
 0x56b   :  { %6707 = vst [vmem:[%s12148_s3 + $0x58] sm:$0xff] %v6705_v14  ;;  %v6727_v46 = vadd.f32 %v6723_v57, %v6719_v56  ;;  %v6759_v36 = vmul.f32 0.75, %v6719_v56 }
 0x56c   :  { %v6345_v12 = vpop.f32.mrf.mxu2 }
 0x56d   :  { %vm6731_vm9 = vcmp.ge.f32.partialorder %v6727_v46, 1.25  ;;  %v6346_v51 = vadd.f32 %v6345_v12, %v6317_v7  ;;  %v6374_v17 = vpop.f32.mrf.mxu3 }
 0x56e   :  { %v6735_v63 = vsel %vm6731_vm9, 0.0, %v6727_v46  ;;  %v9577_v54 = vsel %vm6731_vm9, 1.0, %v12513_v43 }
 0x56f   :  { %v6745_v49 = vpack.c.bf16 %v9577_v54, %v9576_v35  ;;  %v6375_v41 = vadd.f32 %v6374_v17, %v6346_v51  ;;  %v6767_v42 = vmul.f32 0.97, %v6735_v63 }
 0x571   :  { %v6747_v58 = vsel %vm12025_vm2, %v6657_v61, %v6745_v49  ;;  %v6763_v6 = vadd.f32 %v6759_v36, %v6375_v41 }
 0x572   :  { %v6749_v11 = vsel %vm12032_vm3, %v6701_v38, %v6747_v58 }
 0x573   :  { %6751 = vst [vmem:[%s12148_s3 + $0x68] sm:$0xff] %v6749_v11  ;;  %v6771_v27 = vadd.f32 %v6767_v42, %v6763_v6 }
 0x575   :  { %vm6775_vm11 = vcmp.ge.f32.partialorder %v6771_v27, 1.25 }
 0x576   :  { %v9581_v28 = vsel %vm6775_vm11, 1.0, %v12513_v43 }
 0x577   :  { %v6789_v59 = vpack.c.bf16 %v9581_v28, %v9580_v13 }
 0x579   :  { %v6791_v10 = vsel %vm12025_vm2, %v6701_v38, %v6789_v59 }
 0x57a   :  { %v6793_v39 = vsel %vm12032_vm3, %v6745_v49, %v6791_v10 }
 0x57b   :  { %6795 = vst [vmem:[%s12148_s3 + $0x78] sm:$0xff] %v6793_v39 }
 0x57c   :  { %6812 = vsyncpa [#allocation7], 1 }
 0x57d   :  { %6813 = vsyncpa [#allocation9], 1 }

</bundles_post_ra>
